<compile_context>
chip_gen: v7x
topology: tpu7x:2x2x1
jax: 0.10.0
libtpu: 0.0.40
codegen_flags: <defaults>
</compile_context>

<pallas_src>
import jax
import jax.numpy as jnp
from jax import lax
from jax.experimental import pallas as pl
from jax.experimental.pallas import tpu as pltpu


# ----------------------------------------------------------------------------
# Kernel 1: fused per-channel affine (BatchNorm) + ReLU
# Layout: rows = B*C on sublanes, H*W on lanes (lane-dense when H*W % 128 == 0).
# scale/shift are full (rows, 1) blocks with a constant index_map so they are
# DMA'd once and stay resident; the kernel slices the rows it needs.
# ----------------------------------------------------------------------------
def _scale_shift_relu_kernel(x_ref, s_ref, t_ref, o_ref):
    tile_rows = x_ref.shape[0]
    r0 = pl.multiple_of(pl.program_id(0) * tile_rows, 8)
    s = s_ref[pl.ds(r0, tile_rows), :]
    t = t_ref[pl.ds(r0, tile_rows), :]
    x = x_ref[...].astype(jnp.float32)
    o_ref[...] = jnp.maximum(x * s + t, 0.0).astype(o_ref.dtype)


def _pick_row_tile(rows, lane_elems, *, cap_bytes=4 << 20):
    """Largest multiple-of-8 divisor of `rows` under a per-tile VMEM cap.

    Single full block when it fits (grid=1 is fine on single-TC chips); tiles
    always divide `rows` exactly so there is no host-side pad/slice round-trip.
    """
    max_rows = max(8, cap_bytes // max(1, lane_elems * 4))
    if rows <= max_rows:
        return rows
    tile = (min(max_rows, rows) // 8) * 8
    while tile >= 8:
        if rows % tile == 0:
            return tile
        tile -= 8
    return rows  # no multiple-of-8 divisor under the cap: single full block


def bn_relu(x, gamma, beta, *, eps=1e-5):
    """Training-mode BatchNorm2d (batch statistics) + ReLU on NCHW input."""
    B, C, H, W = x.shape
    xf = x.astype(jnp.float32)
    # Independent reductions -> single fused HBM pass; var = E[x^2] - mean^2.
    mean = jnp.mean(xf, axis=(0, 2, 3))
    meansq = jnp.mean(xf * xf, axis=(0, 2, 3))
    var = jnp.maximum(meansq - mean * mean, 0.0)
    scale = gamma * lax.rsqrt(var + eps)
    shift = beta - mean * scale

    rows, hw = B * C, H * W
    # TODO(synk): if H*W is not a multiple of 128 for deployment shapes, repack
    # so output stores are full vst rather than masked partial stores.
    x2 = xf.reshape(rows, hw)
    s2 = jnp.tile(scale, B).reshape(rows, 1)   # row b*C + c -> scale[c]
    t2 = jnp.tile(shift, B).reshape(rows, 1)

    tile_rows = _pick_row_tile(rows, hw)
    grid = (rows // tile_rows,)
    out = pl.pallas_call(
        _scale_shift_relu_kernel,
        out_shape=jax.ShapeDtypeStruct((rows, hw), x.dtype),
        grid_spec=pltpu.PrefetchScalarGridSpec(
            num_scalar_prefetch=0,
            grid=grid,
            in_specs=[
                pl.BlockSpec((tile_rows, hw), lambda i: (i, 0)),
                pl.BlockSpec((rows, 1), lambda i: (0, 0)),   # resident
                pl.BlockSpec((rows, 1), lambda i: (0, 0)),   # resident
            ],
            out_specs=pl.BlockSpec((tile_rows, hw), lambda i: (i, 0)),
        ),
        compiler_params=pltpu.CompilerParams(
            dimension_semantics=("parallel",),
            vmem_limit_bytes=32 * 1024 * 1024,
        ),
    )(x2, s2, t2)
    return out.reshape(B, C, H, W)


# ----------------------------------------------------------------------------
# Kernel 2: FFT-domain complex attention core.
# One grid step handles ALL heads of one batch element. q == k == v == fft2 of
# the conv output (as in the PyTorch module), so the kernel takes the
# real/imag planes once and reuses them (Pallas has no complex dtype).
# ----------------------------------------------------------------------------
def _spectral_attn_kernel(fr_ref, fi_ref, t_ref, or_ref, oi_ref):
    fr = fr_ref[0]          # (heads, ch, hw) f32
    fi = fi_ref[0]
    t = t_ref[...]          # (heads, 1, 1) per-head temperature (resident)

    # torch.nn.functional.normalize(q, dim=-1) for complex q (k == q):
    # q / max(||q||_2, 1e-12)  ==  q * rsqrt(max(sum|q|^2, 1e-24))
    sumsq = jnp.sum(fr * fr + fi * fi, axis=-1, keepdims=True)
    inv = lax.rsqrt(jnp.maximum(sumsq, 1e-24))
    qr = fr * inv
    qi = fi * inv

    def bmm_nt(a, b):  # per-head a @ b^T, f32 accumulation
        return jnp.einsum("hke,hle->hkl", a, b,
                          preferred_element_type=jnp.float32)

    def bmm_nn(a, b):  # per-head a @ b
        return jnp.einsum("hkl,hle->hke", a, b,
                          preferred_element_type=jnp.float32)

    # complex attn = (q @ k^T) * temperature (plain transpose, no conjugation)
    ar = (bmm_nt(qr, qr) - bmm_nt(qi, qi)) * t
    ai = (bmm_nt(qr, qi) + bmm_nt(qi, qr)) * t

    def softmax_last(a):
        m = jnp.max(a, axis=-1, keepdims=True)
        e = jnp.exp(a - m)
        return e * pl.reciprocal(jnp.sum(e, axis=-1, keepdims=True), approx=True)

    sr = softmax_last(ar)   # softmax of the real part
    si = softmax_last(ai)   # softmax of the imaginary part

    # complex attn @ v, with v == un-normalized fft (fr, fi)
    or_ref[0] = (bmm_nn(sr, fr) - bmm_nn(si, fi)).astype(or_ref.dtype)
    oi_ref[0] = (bmm_nn(sr, fi) + bmm_nn(si, fr)).astype(oi_ref.dtype)


def spectral_attention(f, temperature, num_heads):
    """f: complex64 (B, C, H, W) = fft2(conv_k). Returns |ifft2(attn @ v)| with
    ifft2 over the last two (c, h*w) axes — exactly as in the PyTorch code —
    rearranged back to (B, C, H, W)."""
    B, C, H, W = f.shape
    ch = C // num_heads
    hw = H * W
    f4 = f.reshape(B, num_heads, ch, hw)
    fr = jnp.real(f4).astype(jnp.float32)
    fi = jnp.imag(f4).astype(jnp.float32)
    t = temperature.reshape(num_heads, 1, 1).astype(jnp.float32)

    blk = pl.BlockSpec((1, num_heads, ch, hw), lambda b: (b, 0, 0, 0))
    t_blk = pl.BlockSpec((num_heads, 1, 1), lambda b: (0, 0, 0))   # resident
    out_r, out_i = pl.pallas_call(
        _spectral_attn_kernel,
        out_shape=(jax.ShapeDtypeStruct((B, num_heads, ch, hw), jnp.float32),
                   jax.ShapeDtypeStruct((B, num_heads, ch, hw), jnp.float32)),
        grid_spec=pltpu.PrefetchScalarGridSpec(
            num_scalar_prefetch=0,
            grid=(B,),
            in_specs=[blk, blk, t_blk],
            out_specs=[blk, blk],
        ),
        compiler_params=pltpu.CompilerParams(
            dimension_semantics=("parallel",),
            vmem_limit_bytes=32 * 1024 * 1024,
        ),
    )(fr, fi, t)

    out = lax.complex(out_r, out_i)
    out_abs = jnp.abs(jnp.fft.ifft2(out))     # ifft2 over last two dims (c, hw)
    return out_abs.reshape(B, C, H, W).astype(jnp.float32)


# ----------------------------------------------------------------------------
# XLA-side building blocks (convs, FFTs, gating) + PFAE forward
# ----------------------------------------------------------------------------
def conv2d(x, w, b=None, *, padding=0, dilation=1):
    dn = lax.conv_dimension_numbers(x.shape, w.shape, ("NCHW", "OIHW", "NCHW"))
    y = lax.conv_general_dilated(
        x, w, window_strides=(1, 1),
        padding=((padding, padding), (padding, padding)),
        rhs_dilation=(dilation, dilation),
        dimension_numbers=dn)
    if b is not None:
        y = y + b.reshape(1, -1, 1, 1)
    return y


def conv_bn_relu(x, cp, *, padding=0, dilation=1):
    y = conv2d(x, cp["w"], cp["b"], padding=padding, dilation=dilation)
    return bn_relu(y, cp["bn_g"], cp["bn_b"])


def gate_branch(xr, gp):
    # self.weight: 1x1 conv -> BN -> ReLU -> 1x1 conv -> Sigmoid
    h = conv2d(xr, gp["w1"], gp["b1"])
    h = bn_relu(h, gp["bn_g"], gp["bn_b"])
    h = conv2d(h, gp["w2"], gp["b2"])
    return jax.nn.sigmoid(h)


def pfae_stage(conv_out, p, num_heads):
    f = jnp.fft.fft2(conv_out.astype(jnp.float32))          # complex64 over (H, W)
    out_f = spectral_attention(f, p["temperature"], num_heads)
    gate = gate_branch(jnp.real(f), p["gate"])
    out_f_l = jnp.abs(jnp.fft.ifft2(gate * f)).astype(jnp.float32)
    cat = jnp.concatenate([out_f, out_f_l], axis=1)
    out = conv2d(cat, p["project_out_w"], None)              # project_out (no bias)
    return out + conv_out


def _chan_tile(f, target_c):
    # TODO(synk): the PyTorch module computes `x + F_k` with x having in_dim
    # channels and F_k having down_dim channels (would not broadcast in torch);
    # we channel-tile F_k (in_dim == 2 * down_dim) to keep the residual runnable.
    reps = target_c // f.shape[1]
    return jnp.tile(f, (1, reps, 1, 1))


def pfae_forward(p, x, *, num_heads=8):
    x = conv_bn_relu(x, p["down_conv"], padding=1)            # (B, in_dim, H, W)
    in_c = x.shape[1]
    conv1 = conv_bn_relu(x, p["conv1"])
    conv2 = conv_bn_relu(x, p["conv2"], padding=3, dilation=3)
    F_2 = pfae_stage(conv2, p, num_heads)
    conv3 = conv_bn_relu(x + _chan_tile(F_2, in_c), p["conv3"], padding=5, dilation=5)
    F_3 = pfae_stage(conv3, p, num_heads)
    conv4 = conv_bn_relu(x + _chan_tile(F_3, in_c), p["conv4"], padding=7, dilation=7)
    F_4 = pfae_stage(conv4, p, num_heads)
    conv5 = conv_bn_relu(x + _chan_tile(F_4, in_c), p["conv5"], padding=9, dilation=9)
    F_5 = pfae_stage(conv5, p, num_heads)

    # conv5 <- upsample(conv6(adaptive_avg_pool2d(x, 1)), (H, W), bilinear)
    gap = jnp.mean(x, axis=(2, 3), keepdims=True)
    g = conv_bn_relu(gap, p["conv6"])
    conv5_up = jnp.broadcast_to(g, (g.shape[0], g.shape[1], x.shape[2], x.shape[3]))

    fused = conv_bn_relu(
        jnp.concatenate([conv1, F_2, F_3, F_4, F_5, conv5_up], axis=1), p["fuse"])
    h = conv_bn_relu(fused, p["out1"], padding=1)
    return conv2d(h, p["out2_w"], p["out2_b"])                # (B, 1, H, W)


# ----------------------------------------------------------------------------
# Deterministic parameter construction (arrays only — conv geometry is static)
# ----------------------------------------------------------------------------
def _conv_w(key, cout, cin, k, scale=0.1):
    return scale * jax.random.normal(key, (cout, cin, k, k), dtype=jnp.float32)


def _cbr(key, cin, cout, k):
    return dict(
        w=_conv_w(key, cout, cin, k),
        b=jnp.zeros((cout,), jnp.float32),
        bn_g=jnp.ones((cout,), jnp.float32),
        bn_b=jnp.zeros((cout,), jnp.float32),
    )


def init_pfae_params(key, dim, in_dim):
    down = in_dim // 2
    mid = max(down // 16, 1)
    ks = jax.random.split(key, 13)
    return {
        "down_conv": _cbr(ks[0], dim, in_dim, 3),
        "conv1": _cbr(ks[1], in_dim, down, 1),
        "conv2": _cbr(ks[2], in_dim, down, 3),
        "conv3": _cbr(ks[3], in_dim, down, 3),
        "conv4": _cbr(ks[4], in_dim, down, 3),
        "conv5": _cbr(ks[5], in_dim, down, 3),
        "conv6": _cbr(ks[6], in_dim, down, 1),
        "fuse": _cbr(ks[7], 6 * down, down, 1),
        "out1": _cbr(ks[8], down, down // 2, 3),
        "out2_w": _conv_w(ks[9], 1, down // 2, 1),
        "out2_b": jnp.zeros((1,), jnp.float32),
        "project_out_w": _conv_w(ks[10], down, 2 * down, 1),
        "temperature": jnp.ones((8, 1, 1), jnp.float32),
        "gate": dict(
            w1=_conv_w(ks[11], mid, down, 1),
            b1=jnp.zeros((mid,), jnp.float32),
            bn_g=jnp.ones((mid,), jnp.float32),
            bn_b=jnp.zeros((mid,), jnp.float32),
            w2=_conv_w(ks[12], down, mid, 1),
            b2=jnp.zeros((down,), jnp.float32),
        ),
    }


if __name__ == "__main__":
    key = jax.random.PRNGKey(0)
    k_x, k_p = jax.random.split(key)

    B, dim, H, W = 2, 4, 16, 16
    in_dim = 32                 # down_dim = 16 -> 8 heads of 2 channels each

    x = jax.random.normal(k_x, (B, dim, H, W), dtype=jnp.float32)
    params = init_pfae_params(k_p, dim, in_dim)

    fwd = jax.jit(pfae_forward)
    y = fwd(params, x)
    y = jax.block_until_ready(y)

    assert y.shape == (B, 1, H, W), y.shape
    assert bool(jnp.all(jnp.isfinite(y)))
    print("KERNEL_OK")
</pallas_src>

<mosaic_0001>
module attributes {stable_mosaic.version = 11 : i64} {
  func.func @_scale_shift_relu_kernel(%arg0: i32, %arg1: memref<64x256xf32, #tpu.memory_space<vmem>>, %arg2: memref<64x1xf32, #tpu.memory_space<vmem>>, %arg3: memref<64x1xf32, #tpu.memory_space<vmem>>, %arg4: memref<64x256xf32, #tpu.memory_space<vmem>>) attributes {dimension_semantics = [#tpu.dimension_semantics<parallel>], iteration_bounds = array<i64: 1>, scalar_prefetch = 0 : i64, scratch_operands = 0 : i64, tpu.core_type = #tpu.core_type<tc>, window_params = [{transform_indices = @transform_0, window_bounds = array<i64: 64, 256>}, {pipeline_mode = #tpu.pipeline_mode<synchronous>, transform_indices = @transform_1, window_bounds = array<i64: 64, 1>}, {pipeline_mode = #tpu.pipeline_mode<synchronous>, transform_indices = @transform_2, window_bounds = array<i64: 64, 1>}, {transform_indices = @transform_3, window_bounds = array<i64: 64, 256>}]} {
    %c64_i32 = arith.constant 64 : i32
    %0 = arith.muli %arg0, %c64_i32 : i32
    %1 = tpu.assume_multiple %0, 8 : i32
    %2 = arith.index_cast %1 : i32 to index
    %c0 = arith.constant 0 : index
    %3 = vector.load %arg2[%2, %c0] : memref<64x1xf32, #tpu.memory_space<vmem>>, vector<64x1xf32>
    %4 = arith.index_cast %1 : i32 to index
    %c0_0 = arith.constant 0 : index
    %5 = vector.load %arg3[%4, %c0_0] : memref<64x1xf32, #tpu.memory_space<vmem>>, vector<64x1xf32>
    %c0_1 = arith.constant 0 : index
    %c0_2 = arith.constant 0 : index
    %6 = vector.load %arg1[%c0_1, %c0_2] : memref<64x256xf32, #tpu.memory_space<vmem>>, vector<64x256xf32>
    %7 = vector.broadcast %3 : vector<64x1xf32> to vector<64x256xf32>
    %8 = arith.mulf %6, %7 : vector<64x256xf32>
    %9 = vector.broadcast %5 : vector<64x1xf32> to vector<64x256xf32>
    %10 = arith.addf %8, %9 : vector<64x256xf32>
    %cst = arith.constant 0.000000e+00 : f32
    %11 = vector.broadcast %cst : f32 to vector<64x256xf32>
    %12 = arith.maximumf %10, %11 : vector<64x256xf32>
    %c0_3 = arith.constant 0 : index
    %c0_4 = arith.constant 0 : index
    %13 = vector.load %arg4[%c0_3, %c0_4] : memref<64x256xf32, #tpu.memory_space<vmem>>, vector<64x256xf32>
    tpu.vector_store %arg4[%c0_3, %c0_4], %12 {strides = array<i32>} : memref<64x256xf32, #tpu.memory_space<vmem>>, vector<64x256xf32>,
    return
  }
  func.func @transform_0(%arg0: i32) -> (i32, i32) {
    %c0_i32 = arith.constant 0 : i32
    %c0_i32_0 = arith.constant 0 : i32
    return %arg0, %c0_i32 : i32, i32
  }
  func.func @transform_1(%arg0: i32) -> (i32, i32) {
    %c0_i32 = arith.constant 0 : i32
    %c0_i32_0 = arith.constant 0 : i32
    %c0_i32_1 = arith.constant 0 : i32
    return %c0_i32, %c0_i32_0 : i32, i32
  }
  func.func @transform_2(%arg0: i32) -> (i32, i32) {
    %c0_i32 = arith.constant 0 : i32
    %c0_i32_0 = arith.constant 0 : i32
    %c0_i32_1 = arith.constant 0 : i32
    return %c0_i32, %c0_i32_0 : i32, i32
  }
  func.func @transform_3(%arg0: i32) -> (i32, i32) {
    %c0_i32 = arith.constant 0 : i32
    %c0_i32_0 = arith.constant 0 : i32
    return %arg0, %c0_i32 : i32, i32
  }
}

module attributes {stable_mosaic.version = 11 : i64} {
  func.func @_scale_shift_relu_kernel(%arg0: i32, %arg1: memref<32x1xf32, #tpu.memory_space<vmem>>, %arg2: memref<32x1xf32, #tpu.memory_space<vmem>>, %arg3: memref<32x1xf32, #tpu.memory_space<vmem>>, %arg4: memref<32x1xf32, #tpu.memory_space<vmem>>) attributes {dimension_semantics = [#tpu.dimension_semantics<parallel>], iteration_bounds = array<i64: 1>, scalar_prefetch = 0 : i64, scratch_operands = 0 : i64, tpu.core_type = #tpu.core_type<tc>, window_params = [{transform_indices = @transform_0, window_bounds = array<i64: 32, 1>}, {pipeline_mode = #tpu.pipeline_mode<synchronous>, transform_indices = @transform_1, window_bounds = array<i64: 32, 1>}, {pipeline_mode = #tpu.pipeline_mode<synchronous>, transform_indices = @transform_2, window_bounds = array<i64: 32, 1>}, {transform_indices = @transform_3, window_bounds = array<i64: 32, 1>}]} {
    %c32_i32 = arith.constant 32 : i32
    %0 = arith.muli %arg0, %c32_i32 : i32
    %1 = tpu.assume_multiple %0, 8 : i32
    %2 = arith.index_cast %1 : i32 to index
    %c0 = arith.constant 0 : index
    %3 = vector.load %arg2[%2, %c0] : memref<32x1xf32, #tpu.memory_space<vmem>>, vector<32x1xf32>
    %4 = arith.index_cast %1 : i32 to index
    %c0_0 = arith.constant 0 : index
    %5 = vector.load %arg3[%4, %c0_0] : memref<32x1xf32, #tpu.memory_space<vmem>>, vector<32x1xf32>
    %c0_1 = arith.constant 0 : index
    %c0_2 = arith.constant 0 : index
    %6 = vector.load %arg1[%c0_1, %c0_2] : memref<32x1xf32, #tpu.memory_space<vmem>>, vector<32x1xf32>
    %7 = arith.mulf %6, %3 : vector<32x1xf32>
    %8 = arith.addf %7, %5 : vector<32x1xf32>
    %cst = arith.constant 0.000000e+00 : f32
    %9 = vector.broadcast %cst : f32 to vector<32x1xf32>
    %10 = arith.maximumf %8, %9 : vector<32x1xf32>
    %c0_3 = arith.constant 0 : index
    %c0_4 = arith.constant 0 : index
    %11 = vector.load %arg4[%c0_3, %c0_4] : memref<32x1xf32, #tpu.memory_space<vmem>>, vector<32x1xf32>
    tpu.vector_store %arg4[%c0_3, %c0_4], %10 {strides = array<i32>} : memref<32x1xf32, #tpu.memory_space<vmem>>, vector<32x1xf32>,
    return
  }
  func.func @transform_0(%arg0: i32) -> (i32, i32) {
    %c0_i32 = arith.constant 0 : i32
    %c0_i32_0 = arith.constant 0 : i32
    return %arg0, %c0_i32 : i32, i32
  }
  func.func @transform_1(%arg0: i32) -> (i32, i32) {
    %c0_i32 = arith.constant 0 : i32
    %c0_i32_0 = arith.constant 0 : i32
    %c0_i32_1 = arith.constant 0 : i32
    return %c0_i32, %c0_i32_0 : i32, i32
  }
  func.func @transform_2(%arg0: i32) -> (i32, i32) {
    %c0_i32 = arith.constant 0 : i32
    %c0_i32_0 = arith.constant 0 : i32
    %c0_i32_1 = arith.constant 0 : i32
    return %c0_i32, %c0_i32_0 : i32, i32
  }
  func.func @transform_3(%arg0: i32) -> (i32, i32) {
    %c0_i32 = arith.constant 0 : i32
    %c0_i32_0 = arith.constant 0 : i32
    return %arg0, %c0_i32 : i32, i32
  }
}

module attributes {stable_mosaic.version = 11 : i64} {
  func.func @_scale_shift_relu_kernel(%arg0: i32, %arg1: memref<32x256xf32, #tpu.memory_space<vmem>>, %arg2: memref<32x1xf32, #tpu.memory_space<vmem>>, %arg3: memref<32x1xf32, #tpu.memory_space<vmem>>, %arg4: memref<32x256xf32, #tpu.memory_space<vmem>>) attributes {dimension_semantics = [#tpu.dimension_semantics<parallel>], iteration_bounds = array<i64: 1>, scalar_prefetch = 0 : i64, scratch_operands = 0 : i64, tpu.core_type = #tpu.core_type<tc>, window_params = [{transform_indices = @transform_0, window_bounds = array<i64: 32, 256>}, {pipeline_mode = #tpu.pipeline_mode<synchronous>, transform_indices = @transform_1, window_bounds = array<i64: 32, 1>}, {pipeline_mode = #tpu.pipeline_mode<synchronous>, transform_indices = @transform_2, window_bounds = array<i64: 32, 1>}, {transform_indices = @transform_3, window_bounds = array<i64: 32, 256>}]} {
    %c32_i32 = arith.constant 32 : i32
    %0 = arith.muli %arg0, %c32_i32 : i32
    %1 = tpu.assume_multiple %0, 8 : i32
    %2 = arith.index_cast %1 : i32 to index
    %c0 = arith.constant 0 : index
    %3 = vector.load %arg2[%2, %c0] : memref<32x1xf32, #tpu.memory_space<vmem>>, vector<32x1xf32>
    %4 = arith.index_cast %1 : i32 to index
    %c0_0 = arith.constant 0 : index
    %5 = vector.load %arg3[%4, %c0_0] : memref<32x1xf32, #tpu.memory_space<vmem>>, vector<32x1xf32>
    %c0_1 = arith.constant 0 : index
    %c0_2 = arith.constant 0 : index
    %6 = vector.load %arg1[%c0_1, %c0_2] : memref<32x256xf32, #tpu.memory_space<vmem>>, vector<32x256xf32>
    %7 = vector.broadcast %3 : vector<32x1xf32> to vector<32x256xf32>
    %8 = arith.mulf %6, %7 : vector<32x256xf32>
    %9 = vector.broadcast %5 : vector<32x1xf32> to vector<32x256xf32>
    %10 = arith.addf %8, %9 : vector<32x256xf32>
    %cst = arith.constant 0.000000e+00 : f32
    %11 = vector.broadcast %cst : f32 to vector<32x256xf32>
    %12 = arith.maximumf %10, %11 : vector<32x256xf32>
    %c0_3 = arith.constant 0 : index
    %c0_4 = arith.constant 0 : index
    %13 = vector.load %arg4[%c0_3, %c0_4] : memref<32x256xf32, #tpu.memory_space<vmem>>, vector<32x256xf32>
    tpu.vector_store %arg4[%c0_3, %c0_4], %12 {strides = array<i32>} : memref<32x256xf32, #tpu.memory_space<vmem>>, vector<32x256xf32>,
    return
  }
  func.func @transform_0(%arg0: i32) -> (i32, i32) {
    %c0_i32 = arith.constant 0 : i32
    %c0_i32_0 = arith.constant 0 : i32
    return %arg0, %c0_i32 : i32, i32
  }
  func.func @transform_1(%arg0: i32) -> (i32, i32) {
    %c0_i32 = arith.constant 0 : i32
    %c0_i32_0 = arith.constant 0 : i32
    %c0_i32_1 = arith.constant 0 : i32
    return %c0_i32, %c0_i32_0 : i32, i32
  }
  func.func @transform_2(%arg0: i32) -> (i32, i32) {
    %c0_i32 = arith.constant 0 : i32
    %c0_i32_0 = arith.constant 0 : i32
    %c0_i32_1 = arith.constant 0 : i32
    return %c0_i32, %c0_i32_0 : i32, i32
  }
  func.func @transform_3(%arg0: i32) -> (i32, i32) {
    %c0_i32 = arith.constant 0 : i32
    %c0_i32_0 = arith.constant 0 : i32
    return %arg0, %c0_i32 : i32, i32
  }
}

module attributes {stable_mosaic.version = 11 : i64} {
  func.func @_scale_shift_relu_kernel(%arg0: i32, %arg1: memref<2x256xf32, #tpu.memory_space<vmem>>, %arg2: memref<2x1xf32, #tpu.memory_space<vmem>>, %arg3: memref<2x1xf32, #tpu.memory_space<vmem>>, %arg4: memref<2x256xf32, #tpu.memory_space<vmem>>) attributes {dimension_semantics = [#tpu.dimension_semantics<parallel>], iteration_bounds = array<i64: 1>, scalar_prefetch = 0 : i64, scratch_operands = 0 : i64, tpu.core_type = #tpu.core_type<tc>, window_params = [{transform_indices = @transform_0, window_bounds = array<i64: 2, 256>}, {pipeline_mode = #tpu.pipeline_mode<synchronous>, transform_indices = @transform_1, window_bounds = array<i64: 2, 1>}, {pipeline_mode = #tpu.pipeline_mode<synchronous>, transform_indices = @transform_2, window_bounds = array<i64: 2, 1>}, {transform_indices = @transform_3, window_bounds = array<i64: 2, 256>}]} {
    %c2_i32 = arith.constant 2 : i32
    %0 = arith.muli %arg0, %c2_i32 : i32
    %1 = tpu.assume_multiple %0, 8 : i32
    %2 = arith.index_cast %1 : i32 to index
    %c0 = arith.constant 0 : index
    %3 = vector.load %arg2[%2, %c0] : memref<2x1xf32, #tpu.memory_space<vmem>>, vector<2x1xf32>
    %4 = arith.index_cast %1 : i32 to index
    %c0_0 = arith.constant 0 : index
    %5 = vector.load %arg3[%4, %c0_0] : memref<2x1xf32, #tpu.memory_space<vmem>>, vector<2x1xf32>
    %c0_1 = arith.constant 0 : index
    %c0_2 = arith.constant 0 : index
    %6 = vector.load %arg1[%c0_1, %c0_2] : memref<2x256xf32, #tpu.memory_space<vmem>>, vector<2x256xf32>
    %7 = vector.broadcast %3 : vector<2x1xf32> to vector<2x256xf32>
    %8 = arith.mulf %6, %7 : vector<2x256xf32>
    %9 = vector.broadcast %5 : vector<2x1xf32> to vector<2x256xf32>
    %10 = arith.addf %8, %9 : vector<2x256xf32>
    %cst = arith.constant 0.000000e+00 : f32
    %11 = vector.broadcast %cst : f32 to vector<2x256xf32>
    %12 = arith.maximumf %10, %11 : vector<2x256xf32>
    %c0_3 = arith.constant 0 : index
    %c0_4 = arith.constant 0 : index
    %13 = vector.load %arg4[%c0_3, %c0_4] : memref<2x256xf32, #tpu.memory_space<vmem>>, vector<2x256xf32>
    tpu.vector_store %arg4[%c0_3, %c0_4], %12 {strides = array<i32>} : memref<2x256xf32, #tpu.memory_space<vmem>>, vector<2x256xf32>,
    return
  }
  func.func @transform_0(%arg0: i32) -> (i32, i32) {
    %c0_i32 = arith.constant 0 : i32
    %c0_i32_0 = arith.constant 0 : i32
    return %arg0, %c0_i32 : i32, i32
  }
  func.func @transform_1(%arg0: i32) -> (i32, i32) {
    %c0_i32 = arith.constant 0 : i32
    %c0_i32_0 = arith.constant 0 : i32
    %c0_i32_1 = arith.constant 0 : i32
    return %c0_i32, %c0_i32_0 : i32, i32
  }
  func.func @transform_2(%arg0: i32) -> (i32, i32) {
    %c0_i32 = arith.constant 0 : i32
    %c0_i32_0 = arith.constant 0 : i32
    %c0_i32_1 = arith.constant 0 : i32
    return %c0_i32, %c0_i32_0 : i32, i32
  }
  func.func @transform_3(%arg0: i32) -> (i32, i32) {
    %c0_i32 = arith.constant 0 : i32
    %c0_i32_0 = arith.constant 0 : i32
    return %arg0, %c0_i32 : i32, i32
  }
}

module attributes {stable_mosaic.version = 11 : i64} {
  func.func @_spectral_attn_kernel(%arg0: i32, %arg1: memref<1x8x2x256xf32, #tpu.memory_space<vmem>>, %arg2: memref<1x8x2x256xf32, #tpu.memory_space<vmem>>, %arg3: memref<8x1x1xf32, #tpu.memory_space<vmem>>, %arg4: memref<1x8x2x256xf32, #tpu.memory_space<vmem>>, %arg5: memref<1x8x2x256xf32, #tpu.memory_space<vmem>>) attributes {dimension_semantics = [#tpu.dimension_semantics<parallel>], iteration_bounds = array<i64: 2>, scalar_prefetch = 0 : i64, scratch_operands = 0 : i64, tpu.core_type = #tpu.core_type<tc>, window_params = [{transform_indices = @transform_0, window_bounds = array<i64: 1, 8, 2, 256>}, {transform_indices = @transform_1, window_bounds = array<i64: 1, 8, 2, 256>}, {pipeline_mode = #tpu.pipeline_mode<synchronous>, transform_indices = @transform_2, window_bounds = array<i64: 8, 1, 1>}, {transform_indices = @transform_3, window_bounds = array<i64: 1, 8, 2, 256>}, {transform_indices = @transform_4, window_bounds = array<i64: 1, 8, 2, 256>}]} {
    %c0 = arith.constant 0 : index
    %c0_0 = arith.constant 0 : index
    %c0_1 = arith.constant 0 : index
    %c0_2 = arith.constant 0 : index
    %0 = vector.load %arg1[%c0, %c0_0, %c0_1, %c0_2] : memref<1x8x2x256xf32, #tpu.memory_space<vmem>>, vector<1x8x2x256xf32>
    %1 = vector.shape_cast %0 : vector<1x8x2x256xf32> to vector<8x2x256xf32>
    %c0_3 = arith.constant 0 : index
    %c0_4 = arith.constant 0 : index
    %c0_5 = arith.constant 0 : index
    %c0_6 = arith.constant 0 : index
    %2 = vector.load %arg2[%c0_3, %c0_4, %c0_5, %c0_6] : memref<1x8x2x256xf32, #tpu.memory_space<vmem>>, vector<1x8x2x256xf32>
    %3 = vector.shape_cast %2 : vector<1x8x2x256xf32> to vector<8x2x256xf32>
    %c0_7 = arith.constant 0 : index
    %c0_8 = arith.constant 0 : index
    %c0_9 = arith.constant 0 : index
    %4 = vector.load %arg3[%c0_7, %c0_8, %c0_9] : memref<8x1x1xf32, #tpu.memory_space<vmem>>, vector<8x1x1xf32>
    %5 = arith.mulf %1, %1 : vector<8x2x256xf32>
    %6 = arith.mulf %3, %3 : vector<8x2x256xf32>
    %7 = arith.addf %5, %6 : vector<8x2x256xf32>
    %cst = arith.constant dense<0.000000e+00> : vector<8x2xf32>
    %8 = vector.multi_reduction <add>, %7, %cst [2] : vector<8x2x256xf32> to vector<8x2xf32>
    %9 = vector.shape_cast %8 : vector<8x2xf32> to vector<8x2x1xf32>
    %cst_10 = arith.constant 1.000000e-24 : f32
    %10 = vector.broadcast %cst_10 : f32 to vector<8x2x1xf32>
    %11 = arith.maximumf %9, %10 : vector<8x2x1xf32>
    %12 = math.rsqrt %11 : vector<8x2x1xf32>
    %13 = vector.broadcast %12 : vector<8x2x1xf32> to vector<8x2x256xf32>
    %14 = arith.mulf %1, %13 : vector<8x2x256xf32>
    %15 = vector.broadcast %12 : vector<8x2x1xf32> to vector<8x2x256xf32>
    %16 = arith.mulf %3, %15 : vector<8x2x256xf32>
    "tpu.trace_start"() <{level = 10 : i32, message = "hke,hle->hkl"}> : () -> ()
    %cst_11 = arith.constant dense<0.000000e+00> : vector<8x2x2xf32>
    %17 = tpu.matmul %14, %14, %cst_11 {dimension_numbers = #tpu.dot_dimension_numbers<[2], [2], [1], [1], [0, 0, 0, 1, 1, 1], [0], [0]>} : vector<8x2x256xf32>, vector<8x2x256xf32>, vector<8x2x2xf32> -> vector<8x2x2xf32>
    %cst_12 = arith.constant dense<0.000000e+00> : vector<8x2x2xf32>
    %18 = tpu.matmul %16, %16, %cst_12 {dimension_numbers = #tpu.dot_dimension_numbers<[2], [2], [1], [1], [0, 0, 0, 1, 1, 1], [0], [0]>} : vector<8x2x256xf32>, vector<8x2x256xf32>, vector<8x2x2xf32> -> vector<8x2x2xf32>
    "tpu.trace_stop"() : () -> ()
    %19 = arith.subf %17, %18 : vector<8x2x2xf32>
    %20 = vector.broadcast %4 : vector<8x1x1xf32> to vector<8x2x2xf32>
    %21 = arith.mulf %19, %20 : vector<8x2x2xf32>
    "tpu.trace_start"() <{level = 10 : i32, message = "hke,hle->hkl"}> : () -> ()
    %cst_13 = arith.constant dense<0.000000e+00> : vector<8x2x2xf32>
    %22 = tpu.matmul %14, %16, %cst_13 {dimension_numbers = #tpu.dot_dimension_numbers<[2], [2], [1], [1], [0, 0, 0, 1, 1, 1], [0], [0]>} : vector<8x2x256xf32>, vector<8x2x256xf32>, vector<8x2x2xf32> -> vector<8x2x2xf32>
    %cst_14 = arith.constant dense<0.000000e+00> : vector<8x2x2xf32>
    %23 = tpu.matmul %16, %14, %cst_14 {dimension_numbers = #tpu.dot_dimension_numbers<[2], [2], [1], [1], [0, 0, 0, 1, 1, 1], [0], [0]>} : vector<8x2x256xf32>, vector<8x2x256xf32>, vector<8x2x2xf32> -> vector<8x2x2xf32>
    "tpu.trace_stop"() : () -> ()
    %24 = arith.addf %22, %23 : vector<8x2x2xf32>
    %25 = vector.broadcast %4 : vector<8x1x1xf32> to vector<8x2x2xf32>
    %26 = arith.mulf %24, %25 : vector<8x2x2xf32>
    %cst_15 = arith.constant dense<0xFF800000> : vector<8x2xf32>
    %27 = vector.multi_reduction <maximumf>, %21, %cst_15 [2] : vector<8x2x2xf32> to vector<8x2xf32>
    %28 = vector.shape_cast %27 : vector<8x2xf32> to vector<8x2x1xf32>
    %29 = vector.broadcast %28 : vector<8x2x1xf32> to vector<8x2x2xf32>
    %30 = arith.subf %21, %29 : vector<8x2x2xf32>
    %31 = math.exp %30 : vector<8x2x2xf32>
    %cst_16 = arith.constant dense<0.000000e+00> : vector<8x2xf32>
    %32 = vector.multi_reduction <add>, %31, %cst_16 [2] : vector<8x2x2xf32> to vector<8x2xf32>
    %33 = vector.shape_cast %32 : vector<8x2xf32> to vector<8x2x1xf32>
    %34 = tpu.reciprocal %33 {approx = true} : vector<8x2x1xf32> -> vector<8x2x1xf32>
    %35 = vector.broadcast %34 : vector<8x2x1xf32> to vector<8x2x2xf32>
    %36 = arith.mulf %31, %35 : vector<8x2x2xf32>
    %cst_17 = arith.constant dense<0xFF800000> : vector<8x2xf32>
    %37 = vector.multi_reduction <maximumf>, %26, %cst_17 [2] : vector<8x2x2xf32> to vector<8x2xf32>
    %38 = vector.shape_cast %37 : vector<8x2xf32> to vector<8x2x1xf32>
    %39 = vector.broadcast %38 : vector<8x2x1xf32> to vector<8x2x2xf32>
    %40 = arith.subf %26, %39 : vector<8x2x2xf32>
    %41 = math.exp %40 : vector<8x2x2xf32>
    %cst_18 = arith.constant dense<0.000000e+00> : vector<8x2xf32>
    %42 = vector.multi_reduction <add>, %41, %cst_18 [2] : vector<8x2x2xf32> to vector<8x2xf32>
    %43 = vector.shape_cast %42 : vector<8x2xf32> to vector<8x2x1xf32>
    %44 = tpu.reciprocal %43 {approx = true} : vector<8x2x1xf32> -> vector<8x2x1xf32>
    %45 = vector.broadcast %44 : vector<8x2x1xf32> to vector<8x2x2xf32>
    %46 = arith.mulf %41, %45 : vector<8x2x2xf32>
    "tpu.trace_start"() <{level = 10 : i32, message = "hkl,hle->hke"}> : () -> ()
    %cst_19 = arith.constant dense<0.000000e+00> : vector<8x2x256xf32>
    %47 = tpu.matmul %36, %1, %cst_19 {dimension_numbers = #tpu.dot_dimension_numbers<[2], [1], [1], [2], [0, 0, 0, 1, 1, 2], [0], [0]>} : vector<8x2x2xf32>, vector<8x2x256xf32>, vector<8x2x256xf32> -> vector<8x2x256xf32>
    %cst_20 = arith.constant dense<0.000000e+00> : vector<8x2x256xf32>
    %48 = tpu.matmul %46, %3, %cst_20 {dimension_numbers = #tpu.dot_dimension_numbers<[2], [1], [1], [2], [0, 0, 0, 1, 1, 2], [0], [0]>} : vector<8x2x2xf32>, vector<8x2x256xf32>, vector<8x2x256xf32> -> vector<8x2x256xf32>
    "tpu.trace_stop"() : () -> ()
    %49 = arith.subf %47, %48 : vector<8x2x256xf32>
    %c0_21 = arith.constant 0 : index
    %c0_22 = arith.constant 0 : index
    %c0_23 = arith.constant 0 : index
    %c0_24 = arith.constant 0 : index
    %50 = vector.load %arg4[%c0_21, %c0_22, %c0_23, %c0_24] : memref<1x8x2x256xf32, #tpu.memory_space<vmem>>, vector<1x8x2x256xf32>
    %51 = vector.shape_cast %50 : vector<1x8x2x256xf32> to vector<8x2x256xf32>
    %52 = vector.shape_cast %49 : vector<8x2x256xf32> to vector<1x8x2x256xf32>
    tpu.vector_store %arg4[%c0_21, %c0_22, %c0_23, %c0_24], %52 {strides = array<i32>} : memref<1x8x2x256xf32, #tpu.memory_space<vmem>>, vector<1x8x2x256xf32>,
    "tpu.trace_start"() <{level = 10 : i32, message = "hkl,hle->hke"}> : () -> ()
    %cst_25 = arith.constant dense<0.000000e+00> : vector<8x2x256xf32>
    %53 = tpu.matmul %36, %3, %cst_25 {dimension_numbers = #tpu.dot_dimension_numbers<[2], [1], [1], [2], [0, 0, 0, 1, 1, 2], [0], [0]>} : vector<8x2x2xf32>, vector<8x2x256xf32>, vector<8x2x256xf32> -> vector<8x2x256xf32>
    %cst_26 = arith.constant dense<0.000000e+00> : vector<8x2x256xf32>
    %54 = tpu.matmul %46, %1, %cst_26 {dimension_numbers = #tpu.dot_dimension_numbers<[2], [1], [1], [2], [0, 0, 0, 1, 1, 2], [0], [0]>} : vector<8x2x2xf32>, vector<8x2x256xf32>, vector<8x2x256xf32> -> vector<8x2x256xf32>
    "tpu.trace_stop"() : () -> ()
    %55 = arith.addf %53, %54 : vector<8x2x256xf32>
    %c0_27 = arith.constant 0 : index
    %c0_28 = arith.constant 0 : index
    %c0_29 = arith.constant 0 : index
    %c0_30 = arith.constant 0 : index
    %56 = vector.load %arg5[%c0_27, %c0_28, %c0_29, %c0_30] : memref<1x8x2x256xf32, #tpu.memory_space<vmem>>, vector<1x8x2x256xf32>
    %57 = vector.shape_cast %56 : vector<1x8x2x256xf32> to vector<8x2x256xf32>
    %58 = vector.shape_cast %55 : vector<8x2x256xf32> to vector<1x8x2x256xf32>
    tpu.vector_store %arg5[%c0_27, %c0_28, %c0_29, %c0_30], %58 {strides = array<i32>} : memref<1x8x2x256xf32, #tpu.memory_space<vmem>>, vector<1x8x2x256xf32>,
    return
  }
  func.func @transform_0(%arg0: i32) -> (i32, i32, i32, i32) {
    %c0_i32 = arith.constant 0 : i32
    %c0_i32_0 = arith.constant 0 : i32
    %c0_i32_1 = arith.constant 0 : i32
    %c0_i32_2 = arith.constant 0 : i32
    return %arg0, %c0_i32, %c0_i32_0, %c0_i32_1 : i32, i32, i32, i32
  }
  func.func @transform_1(%arg0: i32) -> (i32, i32, i32, i32) {
    %c0_i32 = arith.constant 0 : i32
    %c0_i32_0 = arith.constant 0 : i32
    %c0_i32_1 = arith.constant 0 : i32
    %c0_i32_2 = arith.constant 0 : i32
    return %arg0, %c0_i32, %c0_i32_0, %c0_i32_1 : i32, i32, i32, i32
  }
  func.func @transform_2(%arg0: i32) -> (i32, i32, i32) {
    %c0_i32 = arith.constant 0 : i32
    %c0_i32_0 = arith.constant 0 : i32
    %c0_i32_1 = arith.constant 0 : i32
    %c0_i32_2 = arith.constant 0 : i32
    return %c0_i32, %c0_i32_0, %c0_i32_1 : i32, i32, i32
  }
  func.func @transform_3(%arg0: i32) -> (i32, i32, i32, i32) {
    %c0_i32 = arith.constant 0 : i32
    %c0_i32_0 = arith.constant 0 : i32
    %c0_i32_1 = arith.constant 0 : i32
    %c0_i32_2 = arith.constant 0 : i32
    return %arg0, %c0_i32, %c0_i32_0, %c0_i32_1 : i32, i32, i32, i32
  }
  func.func @transform_4(%arg0: i32) -> (i32, i32, i32, i32) {
    %c0_i32 = arith.constant 0 : i32
    %c0_i32_0 = arith.constant 0 : i32
    %c0_i32_1 = arith.constant 0 : i32
    %c0_i32_2 = arith.constant 0 : i32
    return %arg0, %c0_i32, %c0_i32_0, %c0_i32_1 : i32, i32, i32, i32
  }
}

module attributes {stable_mosaic.version = 11 : i64} {
  func.func @_scale_shift_relu_kernel(%arg0: i32, %arg1: memref<16x256xf32, #tpu.memory_space<vmem>>, %arg2: memref<16x1xf32, #tpu.memory_space<vmem>>, %arg3: memref<16x1xf32, #tpu.memory_space<vmem>>, %arg4: memref<16x256xf32, #tpu.memory_space<vmem>>) attributes {dimension_semantics = [#tpu.dimension_semantics<parallel>], iteration_bounds = array<i64: 1>, scalar_prefetch = 0 : i64, scratch_operands = 0 : i64, tpu.core_type = #tpu.core_type<tc>, window_params = [{transform_indices = @transform_0, window_bounds = array<i64: 16, 256>}, {pipeline_mode = #tpu.pipeline_mode<synchronous>, transform_indices = @transform_1, window_bounds = array<i64: 16, 1>}, {pipeline_mode = #tpu.pipeline_mode<synchronous>, transform_indices = @transform_2, window_bounds = array<i64: 16, 1>}, {transform_indices = @transform_3, window_bounds = array<i64: 16, 256>}]} {
    %c16_i32 = arith.constant 16 : i32
    %0 = arith.muli %arg0, %c16_i32 : i32
    %1 = tpu.assume_multiple %0, 8 : i32
    %2 = arith.index_cast %1 : i32 to index
    %c0 = arith.constant 0 : index
    %3 = vector.load %arg2[%2, %c0] : memref<16x1xf32, #tpu.memory_space<vmem>>, vector<16x1xf32>
    %4 = arith.index_cast %1 : i32 to index
    %c0_0 = arith.constant 0 : index
    %5 = vector.load %arg3[%4, %c0_0] : memref<16x1xf32, #tpu.memory_space<vmem>>, vector<16x1xf32>
    %c0_1 = arith.constant 0 : index
    %c0_2 = arith.constant 0 : index
    %6 = vector.load %arg1[%c0_1, %c0_2] : memref<16x256xf32, #tpu.memory_space<vmem>>, vector<16x256xf32>
    %7 = vector.broadcast %3 : vector<16x1xf32> to vector<16x256xf32>
    %8 = arith.mulf %6, %7 : vector<16x256xf32>
    %9 = vector.broadcast %5 : vector<16x1xf32> to vector<16x256xf32>
    %10 = arith.addf %8, %9 : vector<16x256xf32>
    %cst = arith.constant 0.000000e+00 : f32
    %11 = vector.broadcast %cst : f32 to vector<16x256xf32>
    %12 = arith.maximumf %10, %11 : vector<16x256xf32>
    %c0_3 = arith.constant 0 : index
    %c0_4 = arith.constant 0 : index
    %13 = vector.load %arg4[%c0_3, %c0_4] : memref<16x256xf32, #tpu.memory_space<vmem>>, vector<16x256xf32>
    tpu.vector_store %arg4[%c0_3, %c0_4], %12 {strides = array<i32>} : memref<16x256xf32, #tpu.memory_space<vmem>>, vector<16x256xf32>,
    return
  }
  func.func @transform_0(%arg0: i32) -> (i32, i32) {
    %c0_i32 = arith.constant 0 : i32
    %c0_i32_0 = arith.constant 0 : i32
    return %arg0, %c0_i32 : i32, i32
  }
  func.func @transform_1(%arg0: i32) -> (i32, i32) {
    %c0_i32 = arith.constant 0 : i32
    %c0_i32_0 = arith.constant 0 : i32
    %c0_i32_1 = arith.constant 0 : i32
    return %c0_i32, %c0_i32_0 : i32, i32
  }
  func.func @transform_2(%arg0: i32) -> (i32, i32) {
    %c0_i32 = arith.constant 0 : i32
    %c0_i32_0 = arith.constant 0 : i32
    %c0_i32_1 = arith.constant 0 : i32
    return %c0_i32, %c0_i32_0 : i32, i32
  }
  func.func @transform_3(%arg0: i32) -> (i32, i32) {
    %c0_i32 = arith.constant 0 : i32
    %c0_i32_0 = arith.constant 0 : i32
    return %arg0, %c0_i32 : i32, i32
  }
}

</mosaic_0001>

<bundles_post_ra>
// kernel: tile.145
= control target key start
LH: loop header
LB: loop body
LE: loop exit
PB: predicated region body
PF: predicated region fallthrough
CT: control target
= control target key end

     0   :  { %s22_s0 = inlined_call_operand.vmem [shape: f32[32], index: 0, kind: input, shape index: {}]   ;;  %s23_s1 = inlined_call_operand.vmem [shape: f32[2,32], index: 1, kind: output, shape index: {}]  }
   0x1   :  { %v4_v0 = vld [vmem:[%s22_s0] ss:$0 sm:$0xff] }
   0x2   :  { %5 = vst [vmem:[%s23_s1] sm:$0x3] %v4_v0 }

// kernel: tile.0
= control target key start
LH: loop header
LB: loop body
LE: loop exit
PB: predicated region body
PF: predicated region fallthrough
CT: control target
= control target key end

     0   :  { %s354_s8 = smov 125   ;;  %s355_s9 = smov 126   ;;  %vm7_vm0 = vcmask 7168   ;;  %s653_s0 = inlined_call_operand.vmem [shape: f32[2,32], index: 0, kind: input, shape index: {}]   ;;  %s654_s1 = inlined_call_operand.vmem [shape: f32[64,1], index: 1, kind: output, shape index: {}]  }
   0x1   :  { %v4_v0 = vld [vmem:[%s653_s0] sm:$0x3]  ;;  %s353_s0 = smov 127   ;;  %s356_s10 = smov 124  }
   0x2   :  { %5 = vst [vmem:[#allocation0] sm:$0x3] %v4_v0  ;;  %s357_s11 = smov 123   ;;  %s358_s12 = smov 122  }
   0x3   :  { %s359_s13 = smov 121   ;;  %s360_s14 = smov 120  }
   0x4   :  { %s361_s15 = smov 119   ;;  %s362_s16 = smov 118  }
   0x5   :  { %s363_s17 = smov 117   ;;  %s364_s18 = smov 116  }
   0x6   :  { %s365_s19 = smov 115   ;;  %s366_s20 = smov 114  }
   0x7   :  { %s367_s21 = smov 113   ;;  %s368_s22 = smov 112  }
   0x8   :  { %s369_s23 = smov 111   ;;  %s370_s24 = smov 110  }
   0x9   :  { %v11_v1 = vld [vmem:[#allocation0] sm:$0x3]   ;;  %s371_s25 = smov 109   ;;  %s372_s26 = smov 108  }
   0xa   :  { %v27_v2 = vld [vmem:[#allocation0] sm:$0x3]   ;;  %12 = vrot.lane.b32.xlu0 %v11_v1, %s353_s0  ;;  %s373_s27 = smov 107   ;;  %s374_s28 = smov 106  }
   0xb   :  { %28 = vrot.lane.b32.xlu1 %v27_v2, %s354_s8  ;;  %v19_v3 = vld [vmem:[#allocation0] sm:$0x3]   ;;  %s375_s29 = smov 105   ;;  %s376_s30 = smov 104  }
   0xc   :  { %v35_v4 = vld [vmem:[#allocation0] sm:$0x3]   ;;  %s377_s6 = smov 103   ;;  %s378_s7 = smov 102  }
   0xd   :  { %v43_v5 = vld [vmem:[#allocation0] sm:$0x3]   ;;  %s379_s0 = smov 101   ;;  %s380_s8 = smov 100  }
   0xe   :  { %20 = vrot.lane.b32.xlu0 %v19_v3, %s355_s9  ;;  %v51_v6 = vld [vmem:[#allocation0] sm:$0x3]   ;;  %s381_s9 = smov 99  }
   0xf   :  { %36 = vrot.lane.b32.xlu1 %v35_v4, %s356_s10  ;;  %v59_v7 = vld [vmem:[#allocation0] sm:$0x3]   ;;  %s382_s10 = smov 98  }
  0x10   :  { %v67_v8 = vld [vmem:[#allocation0] sm:$0x3]  }
  0x11   :  { %v75_v9 = vld [vmem:[#allocation0] sm:$0x3]  }
  0x12   :  { %44 = vrot.lane.b32.xlu0 %v43_v5, %s357_s11  ;;  %v83_v10 = vld [vmem:[#allocation0] sm:$0x3]   ;;  %s383_s11 = smov 97  }
  0x13   :  { %52 = vrot.lane.b32.xlu1 %v51_v6, %s358_s12  ;;  %v91_v11 = vld [vmem:[#allocation0] sm:$0x3]  }
  0x14   :  { %v99_v12 = vld [vmem:[#allocation0] sm:$0x3]  }
  0x15   :  { %v107_v13 = vld [vmem:[#allocation0] sm:$0x3]  }
  0x16   :  { %60 = vrot.lane.b32.xlu0 %v59_v7, %s359_s13  ;;  %v115_v14 = vld [vmem:[#allocation0] sm:$0x3]  }
  0x17   :  { %68 = vrot.lane.b32.xlu1 %v67_v8, %s360_s14  ;;  %v123_v15 = vld [vmem:[#allocation0] sm:$0x3]  }
  0x18   :  { %v131_v16 = vld [vmem:[#allocation0] sm:$0x3]  }
  0x19   :  { %v139_v17 = vld [vmem:[#allocation0] sm:$0x3]  }
  0x1a   :  { %76 = vrot.lane.b32.xlu0 %v75_v9, %s361_s15  ;;  %v147_v18 = vld [vmem:[#allocation0] sm:$0x3]  }
  0x1b   :  { %84 = vrot.lane.b32.xlu1 %v83_v10, %s362_s16  ;;  %v155_v19 = vld [vmem:[#allocation0] sm:$0x3]  }
  0x1c   :  { %v163_v20 = vld [vmem:[#allocation0] sm:$0x3]  }
  0x1d   :  { %v171_v21 = vld [vmem:[#allocation0] sm:$0x3]  }
  0x1e   :  { %92 = vrot.lane.b32.xlu0 %v91_v11, %s363_s17  ;;  %v179_v22 = vld [vmem:[#allocation0] sm:$0x3]  }
  0x1f   :  { %100 = vrot.lane.b32.xlu1 %v99_v12, %s364_s18  ;;  %v187_v23 = vld [vmem:[#allocation0] sm:$0x3]  }
  0x20   :  { %v195_v24 = vld [vmem:[#allocation0] sm:$0x3]  }
  0x21   :  { %v203_v25 = vld [vmem:[#allocation0] sm:$0x3]  }
  0x22   :  { %108 = vrot.lane.b32.xlu0 %v107_v13, %s365_s19  ;;  %v211_v26 = vld [vmem:[#allocation0] sm:$0x3]  }
  0x23   :  { %116 = vrot.lane.b32.xlu1 %v115_v14, %s366_s20  ;;  %v6_v27 = vld [vmem:[#allocation0] sm:$0x3]  }
  0x24   :  { %8 = vst.msk [vmem:[%s654_s1] sm:$0x1] %vm7_vm0, %v6_v27   ;;  %259 = vst.msk [vmem:[%s654_s1 + $0x1f] sm:$0x2] %vm7_vm0, %v6_v27   ;;  %v219_v28 = vld [vmem:[#allocation0] sm:$0x3]  }
  0x25   :  { %v227_v29 = vld [vmem:[#allocation0] sm:$0x3]  }
  0x26   :  { %124 = vrot.lane.b32.xlu0 %v123_v15, %s367_s21  ;;  %v235_v30 = vld [vmem:[#allocation0] sm:$0x3]  }
  0x27   :  { %132 = vrot.lane.b32.xlu1 %v131_v16, %s368_s22  ;;  %v243_v31 = vld [vmem:[#allocation0] sm:$0x3]  }
  0x28   :  { %v251_v32 = vld [vmem:[#allocation0] sm:$0x3]  }
  0x2a   :  { %140 = vrot.lane.b32.xlu0 %v139_v17, %s369_s23 }
  0x2b   :  { %148 = vrot.lane.b32.xlu1 %v147_v18, %s370_s24 }
  0x2e   :  { %156 = vrot.lane.b32.xlu0 %v155_v19, %s371_s25 }
  0x2f   :  { %164 = vrot.lane.b32.xlu1 %v163_v20, %s372_s26 }
  0x32   :  { %172 = vrot.lane.b32.xlu0 %v171_v21, %s373_s27 }
  0x33   :  { %180 = vrot.lane.b32.xlu1 %v179_v22, %s374_s28 }
  0x36   :  { %188 = vrot.lane.b32.xlu0 %v187_v23, %s375_s29 }
  0x37   :  { %196 = vrot.lane.b32.xlu1 %v195_v24, %s376_s30 }
  0x3a   :  { %204 = vrot.lane.b32.xlu0 %v203_v25, %s377_s6 }
  0x3b   :  { %212 = vrot.lane.b32.xlu1 %v211_v26, %s378_s7 }
  0x3e   :  { %220 = vrot.lane.b32.xlu0 %v219_v28, %s379_s0 }
  0x3f   :  { %228 = vrot.lane.b32.xlu1 %v227_v29, %s380_s8 }
  0x42   :  { %236 = vrot.lane.b32.xlu0 %v235_v30, %s381_s9 }
  0x43   :  { %244 = vrot.lane.b32.xlu1 %v243_v31, %s382_s10 }
  0x46   :  { %252 = vrot.lane.b32.xlu0 %v251_v32, %s383_s11 }
  0x7c   :  { %v13_v33 = vpop.permute.xlu0 %12  }
  0x7d   :  { %v29_v34 = vpop.permute.xlu1 %28   ;;  %260 = vst.msk [vmem:[%s654_s1 + $0x1] sm:$0x1] %vm7_vm0, %v13_v33   ;;  %261 = vst.msk [vmem:[%s654_s1 + $0x20] sm:$0x2] %vm7_vm0, %v13_v33  }
  0x7e   :  { %264 = vst.msk [vmem:[%s654_s1 + $0x3] sm:$0x1] %vm7_vm0, %v29_v34   ;;  %265 = vst.msk [vmem:[%s654_s1 + $0x22] sm:$0x2] %vm7_vm0, %v29_v34  }
  0x80   :  { %v21_v35 = vpop.permute.xlu0 %20  }
  0x81   :  { %v37_v36 = vpop.permute.xlu1 %36   ;;  %262 = vst.msk [vmem:[%s654_s1 + $0x2] sm:$0x1] %vm7_vm0, %v21_v35   ;;  %263 = vst.msk [vmem:[%s654_s1 + $0x21] sm:$0x2] %vm7_vm0, %v21_v35  }
  0x82   :  { %266 = vst.msk [vmem:[%s654_s1 + $0x4] sm:$0x1] %vm7_vm0, %v37_v36   ;;  %267 = vst.msk [vmem:[%s654_s1 + $0x23] sm:$0x2] %vm7_vm0, %v37_v36  }
  0x84   :  { %v45_v37 = vpop.permute.xlu0 %44  }
  0x85   :  { %v53_v38 = vpop.permute.xlu1 %52   ;;  %268 = vst.msk [vmem:[%s654_s1 + $0x5] sm:$0x1] %vm7_vm0, %v45_v37   ;;  %269 = vst.msk [vmem:[%s654_s1 + $0x24] sm:$0x2] %vm7_vm0, %v45_v37  }
  0x86   :  { %270 = vst.msk [vmem:[%s654_s1 + $0x6] sm:$0x1] %vm7_vm0, %v53_v38   ;;  %271 = vst.msk [vmem:[%s654_s1 + $0x25] sm:$0x2] %vm7_vm0, %v53_v38  }
  0x88   :  { %v61_v39 = vpop.permute.xlu0 %60  }
  0x89   :  { %v69_v40 = vpop.permute.xlu1 %68   ;;  %272 = vst.msk [vmem:[%s654_s1 + $0x7] sm:$0x1] %vm7_vm0, %v61_v39   ;;  %273 = vst.msk [vmem:[%s654_s1 + $0x26] sm:$0x2] %vm7_vm0, %v61_v39  }
  0x8a   :  { %274 = vst.msk [vmem:[%s654_s1 + $0x8] sm:$0x1] %vm7_vm0, %v69_v40   ;;  %275 = vst.msk [vmem:[%s654_s1 + $0x27] sm:$0x2] %vm7_vm0, %v69_v40  }
  0x8c   :  { %v77_v41 = vpop.permute.xlu0 %76  }
  0x8d   :  { %v85_v42 = vpop.permute.xlu1 %84   ;;  %276 = vst.msk [vmem:[%s654_s1 + $0x9] sm:$0x1] %vm7_vm0, %v77_v41   ;;  %277 = vst.msk [vmem:[%s654_s1 + $0x28] sm:$0x2] %vm7_vm0, %v77_v41  }
  0x8e   :  { %278 = vst.msk [vmem:[%s654_s1 + $0xa] sm:$0x1] %vm7_vm0, %v85_v42   ;;  %279 = vst.msk [vmem:[%s654_s1 + $0x29] sm:$0x2] %vm7_vm0, %v85_v42  }
  0x90   :  { %v93_v43 = vpop.permute.xlu0 %92  }
  0x91   :  { %v101_v44 = vpop.permute.xlu1 %100   ;;  %280 = vst.msk [vmem:[%s654_s1 + $0xb] sm:$0x1] %vm7_vm0, %v93_v43   ;;  %281 = vst.msk [vmem:[%s654_s1 + $0x2a] sm:$0x2] %vm7_vm0, %v93_v43  }
  0x92   :  { %282 = vst.msk [vmem:[%s654_s1 + $0xc] sm:$0x1] %vm7_vm0, %v101_v44   ;;  %283 = vst.msk [vmem:[%s654_s1 + $0x2b] sm:$0x2] %vm7_vm0, %v101_v44  }
  0x94   :  { %v109_v45 = vpop.permute.xlu0 %108  }
  0x95   :  { %v117_v46 = vpop.permute.xlu1 %116   ;;  %284 = vst.msk [vmem:[%s654_s1 + $0xd] sm:$0x1] %vm7_vm0, %v109_v45   ;;  %285 = vst.msk [vmem:[%s654_s1 + $0x2c] sm:$0x2] %vm7_vm0, %v109_v45  }
  0x96   :  { %286 = vst.msk [vmem:[%s654_s1 + $0xe] sm:$0x1] %vm7_vm0, %v117_v46   ;;  %287 = vst.msk [vmem:[%s654_s1 + $0x2d] sm:$0x2] %vm7_vm0, %v117_v46  }
  0x98   :  { %v125_v47 = vpop.permute.xlu0 %124  }
  0x99   :  { %v133_v48 = vpop.permute.xlu1 %132   ;;  %288 = vst.msk [vmem:[%s654_s1 + $0xf] sm:$0x1] %vm7_vm0, %v125_v47   ;;  %289 = vst.msk [vmem:[%s654_s1 + $0x2e] sm:$0x2] %vm7_vm0, %v125_v47  }
  0x9a   :  { %290 = vst.msk [vmem:[%s654_s1 + $0x10] sm:$0x1] %vm7_vm0, %v133_v48   ;;  %291 = vst.msk [vmem:[%s654_s1 + $0x2f] sm:$0x2] %vm7_vm0, %v133_v48  }
  0x9c   :  { %v141_v49 = vpop.permute.xlu0 %140  }
  0x9d   :  { %v149_v50 = vpop.permute.xlu1 %148   ;;  %292 = vst.msk [vmem:[%s654_s1 + $0x11] sm:$0x1] %vm7_vm0, %v141_v49   ;;  %293 = vst.msk [vmem:[%s654_s1 + $0x30] sm:$0x2] %vm7_vm0, %v141_v49  }
  0x9e   :  { %294 = vst.msk [vmem:[%s654_s1 + $0x12] sm:$0x1] %vm7_vm0, %v149_v50   ;;  %295 = vst.msk [vmem:[%s654_s1 + $0x31] sm:$0x2] %vm7_vm0, %v149_v50  }
  0xa0   :  { %v157_v51 = vpop.permute.xlu0 %156  }
  0xa1   :  { %v165_v52 = vpop.permute.xlu1 %164   ;;  %296 = vst.msk [vmem:[%s654_s1 + $0x13] sm:$0x1] %vm7_vm0, %v157_v51   ;;  %297 = vst.msk [vmem:[%s654_s1 + $0x32] sm:$0x2] %vm7_vm0, %v157_v51  }
  0xa2   :  { %298 = vst.msk [vmem:[%s654_s1 + $0x14] sm:$0x1] %vm7_vm0, %v165_v52   ;;  %299 = vst.msk [vmem:[%s654_s1 + $0x33] sm:$0x2] %vm7_vm0, %v165_v52  }
  0xa4   :  { %v173_v53 = vpop.permute.xlu0 %172  }
  0xa5   :  { %v181_v54 = vpop.permute.xlu1 %180   ;;  %300 = vst.msk [vmem:[%s654_s1 + $0x15] sm:$0x1] %vm7_vm0, %v173_v53   ;;  %301 = vst.msk [vmem:[%s654_s1 + $0x34] sm:$0x2] %vm7_vm0, %v173_v53  }
  0xa6   :  { %302 = vst.msk [vmem:[%s654_s1 + $0x16] sm:$0x1] %vm7_vm0, %v181_v54   ;;  %303 = vst.msk [vmem:[%s654_s1 + $0x35] sm:$0x2] %vm7_vm0, %v181_v54  }
  0xa8   :  { %v189_v55 = vpop.permute.xlu0 %188  }
  0xa9   :  { %v197_v56 = vpop.permute.xlu1 %196   ;;  %304 = vst.msk [vmem:[%s654_s1 + $0x17] sm:$0x1] %vm7_vm0, %v189_v55   ;;  %305 = vst.msk [vmem:[%s654_s1 + $0x36] sm:$0x2] %vm7_vm0, %v189_v55  }
  0xaa   :  { %306 = vst.msk [vmem:[%s654_s1 + $0x18] sm:$0x1] %vm7_vm0, %v197_v56   ;;  %307 = vst.msk [vmem:[%s654_s1 + $0x37] sm:$0x2] %vm7_vm0, %v197_v56  }
  0xac   :  { %v205_v57 = vpop.permute.xlu0 %204  }
  0xad   :  { %v213_v58 = vpop.permute.xlu1 %212   ;;  %308 = vst.msk [vmem:[%s654_s1 + $0x19] sm:$0x1] %vm7_vm0, %v205_v57   ;;  %309 = vst.msk [vmem:[%s654_s1 + $0x38] sm:$0x2] %vm7_vm0, %v205_v57  }
  0xae   :  { %310 = vst.msk [vmem:[%s654_s1 + $0x1a] sm:$0x1] %vm7_vm0, %v213_v58   ;;  %311 = vst.msk [vmem:[%s654_s1 + $0x39] sm:$0x2] %vm7_vm0, %v213_v58  }
  0xb0   :  { %v221_v59 = vpop.permute.xlu0 %220  }
  0xb1   :  { %v229_v60 = vpop.permute.xlu1 %228   ;;  %312 = vst.msk [vmem:[%s654_s1 + $0x1b] sm:$0x1] %vm7_vm0, %v221_v59   ;;  %313 = vst.msk [vmem:[%s654_s1 + $0x3a] sm:$0x2] %vm7_vm0, %v221_v59  }
  0xb2   :  { %314 = vst.msk [vmem:[%s654_s1 + $0x1c] sm:$0x1] %vm7_vm0, %v229_v60   ;;  %315 = vst.msk [vmem:[%s654_s1 + $0x3b] sm:$0x2] %vm7_vm0, %v229_v60  }
  0xb4   :  { %v237_v61 = vpop.permute.xlu0 %236  }
  0xb5   :  { %v245_v62 = vpop.permute.xlu1 %244   ;;  %316 = vst.msk [vmem:[%s654_s1 + $0x1d] sm:$0x1] %vm7_vm0, %v237_v61   ;;  %317 = vst.msk [vmem:[%s654_s1 + $0x3c] sm:$0x2] %vm7_vm0, %v237_v61  }
  0xb6   :  { %318 = vst.msk [vmem:[%s654_s1 + $0x1e] sm:$0x1] %vm7_vm0, %v245_v62   ;;  %319 = vst.msk [vmem:[%s654_s1 + $0x3d] sm:$0x2] %vm7_vm0, %v245_v62  }
  0xb8   :  { %v253_v63 = vpop.permute.xlu0 %252  }
  0xb9   :  { %320 = vst.msk [vmem:[%s654_s1 + $0x1f] sm:$0x1] %vm7_vm0, %v253_v63   ;;  %321 = vst.msk [vmem:[%s654_s1 + $0x3e] sm:$0x2] %vm7_vm0, %v253_v63  }

// kernel: tile.252
= control target key start
LH: loop header
LB: loop body
LE: loop exit
PB: predicated region body
PF: predicated region fallthrough
CT: control target
= control target key end

     0   :  { %s22_s0 = inlined_call_operand.vmem [shape: f32[16], index: 0, kind: input, shape index: {}]   ;;  %s23_s1 = inlined_call_operand.vmem [shape: f32[2,16], index: 1, kind: output, shape index: {}]  }
   0x1   :  { %v4_v0 = vld [vmem:[%s22_s0] ss:$0 sm:$0xff] }
   0x2   :  { %5 = vst [vmem:[%s23_s1] sm:$0x3] %v4_v0 }

// kernel: tile.12
= control target key start
LH: loop header
LB: loop body
LE: loop exit
PB: predicated region body
PF: predicated region fallthrough
CT: control target
= control target key end

     0   :  { %s130_s8 = smov 125   ;;  %s131_s9 = smov 126   ;;  %vm7_vm0 = vcmask 7168   ;;  %s221_s0 = inlined_call_operand.vmem [shape: f32[2,16], index: 0, kind: input, shape index: {}]   ;;  %s222_s1 = inlined_call_operand.vmem [shape: f32[32,1], index: 1, kind: output, shape index: {}]  }
   0x1   :  { %v4_v0 = vld [vmem:[%s221_s0] sm:$0x3]  ;;  %s129_s0 = smov 127   ;;  %s132_s10 = smov 124  }
   0x2   :  { %5 = vst [vmem:[#allocation0] sm:$0x3] %v4_v0  ;;  %s133_s11 = smov 123   ;;  %s134_s12 = smov 122  }
   0x3   :  { %s135_s13 = smov 121   ;;  %s136_s14 = smov 120  }
   0x4   :  { %s137_s17 = smov 119   ;;  %s138_s18 = smov 118  }
   0x5   :  { %s139_s19 = smov 117   ;;  %s140_s20 = smov 116  }
   0x6   :  { %s141_s21 = smov 115   ;;  %s142_s22 = smov 114  }
   0x7   :  { %s143_s23 = smov 113  }
   0x9   :  { %v9_v1 = vld [vmem:[#allocation0] sm:$0x3]  }
   0xa   :  { %v21_v2 = vld [vmem:[#allocation0] sm:$0x3]   ;;  %10 = vrot.lane.b32.xlu0 %v9_v1, %s129_s0 }
   0xb   :  { %22 = vrot.lane.b32.xlu1 %v21_v2, %s130_s8  ;;  %v15_v3 = vld [vmem:[#allocation0] sm:$0x3]  }
   0xc   :  { %v27_v4 = vld [vmem:[#allocation0] sm:$0x3]  }
   0xd   :  { %v33_v5 = vld [vmem:[#allocation0] sm:$0x3]  }
   0xe   :  { %16 = vrot.lane.b32.xlu0 %v15_v3, %s131_s9  ;;  %v39_v6 = vld [vmem:[#allocation0] sm:$0x3]  }
   0xf   :  { %28 = vrot.lane.b32.xlu1 %v27_v4, %s132_s10  ;;  %v45_v7 = vld [vmem:[#allocation0] sm:$0x3]  }
  0x10   :  { %v51_v8 = vld [vmem:[#allocation0] sm:$0x3]  }
  0x11   :  { %v57_v9 = vld [vmem:[#allocation0] sm:$0x3]  }
  0x12   :  { %34 = vrot.lane.b32.xlu0 %v33_v5, %s133_s11  ;;  %v63_v10 = vld [vmem:[#allocation0] sm:$0x3]  }
  0x13   :  { %40 = vrot.lane.b32.xlu1 %v39_v6, %s134_s12  ;;  %v6_v11 = vld [vmem:[#allocation0] sm:$0x3]  }
  0x14   :  { %8 = vst.msk [vmem:[%s222_s1] ss:$16 sm:$0x3] %vm7_vm0, %v6_v11   ;;  %v69_v12 = vld [vmem:[#allocation0] sm:$0x3]  }
  0x15   :  { %v75_v13 = vld [vmem:[#allocation0] sm:$0x3]  }
  0x16   :  { %46 = vrot.lane.b32.xlu0 %v45_v7, %s135_s13  ;;  %v81_v14 = vld [vmem:[#allocation0] sm:$0x3]  }
  0x17   :  { %52 = vrot.lane.b32.xlu1 %v51_v8, %s136_s14  ;;  %v87_v15 = vld [vmem:[#allocation0] sm:$0x3]  }
  0x18   :  { %v93_v16 = vld [vmem:[#allocation0] sm:$0x3]  }
  0x1a   :  { %58 = vrot.lane.b32.xlu0 %v57_v9, %s137_s17 }
  0x1b   :  { %64 = vrot.lane.b32.xlu1 %v63_v10, %s138_s18 }
  0x1e   :  { %70 = vrot.lane.b32.xlu0 %v69_v12, %s139_s19 }
  0x1f   :  { %76 = vrot.lane.b32.xlu1 %v75_v13, %s140_s20 }
  0x22   :  { %82 = vrot.lane.b32.xlu0 %v81_v14, %s141_s21 }
  0x23   :  { %88 = vrot.lane.b32.xlu1 %v87_v15, %s142_s22 }
  0x26   :  { %94 = vrot.lane.b32.xlu0 %v93_v16, %s143_s23 }
  0x7c   :  { %v11_v17 = vpop.permute.xlu0 %10  }
  0x7d   :  { %v23_v18 = vpop.permute.xlu1 %22   ;;  %99 = vst.msk [vmem:[%s222_s1 + $0x1] ss:$16 sm:$0x3] %vm7_vm0, %v11_v17  }
  0x7e   :  { %101 = vst.msk [vmem:[%s222_s1 + $0x3] ss:$16 sm:$0x3] %vm7_vm0, %v23_v18  }
  0x80   :  { %v17_v19 = vpop.permute.xlu0 %16  }
  0x81   :  { %v29_v20 = vpop.permute.xlu1 %28   ;;  %100 = vst.msk [vmem:[%s222_s1 + $0x2] ss:$16 sm:$0x3] %vm7_vm0, %v17_v19  }
  0x82   :  { %102 = vst.msk [vmem:[%s222_s1 + $0x4] ss:$16 sm:$0x3] %vm7_vm0, %v29_v20  }
  0x84   :  { %v35_v21 = vpop.permute.xlu0 %34  }
  0x85   :  { %v41_v22 = vpop.permute.xlu1 %40   ;;  %103 = vst.msk [vmem:[%s222_s1 + $0x5] ss:$16 sm:$0x3] %vm7_vm0, %v35_v21  }
  0x86   :  { %104 = vst.msk [vmem:[%s222_s1 + $0x6] ss:$16 sm:$0x3] %vm7_vm0, %v41_v22  }
  0x88   :  { %v47_v23 = vpop.permute.xlu0 %46  }
  0x89   :  { %v53_v24 = vpop.permute.xlu1 %52   ;;  %105 = vst.msk [vmem:[%s222_s1 + $0x7] ss:$16 sm:$0x3] %vm7_vm0, %v47_v23  }
  0x8a   :  { %106 = vst.msk [vmem:[%s222_s1 + $0x8] ss:$16 sm:$0x3] %vm7_vm0, %v53_v24  }
  0x8c   :  { %v59_v25 = vpop.permute.xlu0 %58  }
  0x8d   :  { %v65_v26 = vpop.permute.xlu1 %64   ;;  %107 = vst.msk [vmem:[%s222_s1 + $0x9] ss:$16 sm:$0x3] %vm7_vm0, %v59_v25  }
  0x8e   :  { %108 = vst.msk [vmem:[%s222_s1 + $0xa] ss:$16 sm:$0x3] %vm7_vm0, %v65_v26  }
  0x90   :  { %v71_v27 = vpop.permute.xlu0 %70  }
  0x91   :  { %v77_v28 = vpop.permute.xlu1 %76   ;;  %109 = vst.msk [vmem:[%s222_s1 + $0xb] ss:$16 sm:$0x3] %vm7_vm0, %v71_v27  }
  0x92   :  { %110 = vst.msk [vmem:[%s222_s1 + $0xc] ss:$16 sm:$0x3] %vm7_vm0, %v77_v28  }
  0x94   :  { %v83_v29 = vpop.permute.xlu0 %82  }
  0x95   :  { %v89_v30 = vpop.permute.xlu1 %88   ;;  %111 = vst.msk [vmem:[%s222_s1 + $0xd] ss:$16 sm:$0x3] %vm7_vm0, %v83_v29  }
  0x96   :  { %112 = vst.msk [vmem:[%s222_s1 + $0xe] ss:$16 sm:$0x3] %vm7_vm0, %v89_v30  }
  0x98   :  { %v95_v31 = vpop.permute.xlu0 %94  }
  0x99   :  { %113 = vst.msk [vmem:[%s222_s1 + $0xf] ss:$16 sm:$0x3] %vm7_vm0, %v95_v31  }

// kernel: pfae_forward.17
= control target key start
LH: loop header
LB: loop body
LE: loop exit
PB: predicated region body
PF: predicated region fallthrough
CT: control target
= control target key end

     0   :  { %v200_v0 = vmov 0   ;;  %s369_s1 = inlined_call_operand.vmem [shape: f32[64,1], index: 1, kind: input, shape index: {}]   ;;  %s370_s2 = inlined_call_operand.vmem [shape: f32[64,1], index: 2, kind: input, shape index: {}]   ;;  %s371_s0 = inlined_call_operand.vmem [shape: f32[64,256], index: 0, kind: input, shape index: {}]   ;;  %s372_s3 = inlined_call_operand.vmem [shape: f32[64,256], index: 3, kind: output, shape index: {}]  }
   0x1   :  { %199 = vset.pattern.permute.xlu1 %v200_v0  ;;  %198 = vset.pattern.permute.xlu0 %v200_v0  ;;  %v18_v1 = vld [vmem:[%s369_s1 + $0x10] sm:$0xff]  ;;  %v16_v2 = vld [vmem:[%s369_s1] sm:$0xff]  ;;  %v19_v3 = vld [vmem:[%s369_s1 + $0x18] sm:$0xff] }
   0x2   :  { %61 = vperm.xlu1 %199, %v18_v1   ;;  %51 = vperm.xlu0 %198, %v16_v2   ;;  %v17_v4 = vld [vmem:[%s369_s1 + $0x8] sm:$0xff]  ;;  %v20_v6 = vld [vmem:[%s369_s1 + $0x20] sm:$0xff]  ;;  %v23_v7 = vld [vmem:[%s369_s1 + $0x38] sm:$0xff] }
   0x3   :  { %v21_v5 = vld [vmem:[%s369_s1 + $0x28] sm:$0xff]  ;;  %v22_v8 = vld [vmem:[%s369_s1 + $0x30] sm:$0xff]  ;;  %v25_v10 = vld [vmem:[%s370_s2] sm:$0xff] }
   0x4   :  { %v26_v9 = vld [vmem:[%s370_s2 + $0x8] sm:$0xff]  ;;  %v28_v11 = vld [vmem:[%s370_s2 + $0x18] sm:$0xff]  ;;  %v27_v12 = vld [vmem:[%s370_s2 + $0x10] sm:$0xff] }
   0x5   :  { %v30_v13 = vld [vmem:[%s370_s2 + $0x28] sm:$0xff]  ;;  %v29_v14 = vld [vmem:[%s370_s2 + $0x20] sm:$0xff]  ;;  %v32_v15 = vld [vmem:[%s370_s2 + $0x38] sm:$0xff] }
   0x6   :  { %66 = vperm.xlu1 %199, %v19_v3   ;;  %56 = vperm.xlu0 %198, %v17_v4   ;;  %v31_v16 = vld [vmem:[%s370_s2 + $0x30] sm:$0xff]  ;;  %v33_v23 = vld [vmem:[%s371_s0] sm:$0xff]  ;;  %v34_v24 = vld [vmem:[%s371_s0 + $0x8] sm:$0xff] }
   0x7   :  { %v35_v25 = vld [vmem:[%s371_s0 + $0x10] sm:$0xff]  ;;  %v36_v26 = vld [vmem:[%s371_s0 + $0x18] sm:$0xff]  ;;  %v37_v29 = vld [vmem:[%s371_s0 + $0x20] sm:$0xff] }
   0x8   :  { %v38_v30 = vld [vmem:[%s371_s0 + $0x28] sm:$0xff]  ;;  %v39_v33 = vld [vmem:[%s371_s0 + $0x30] sm:$0xff]  ;;  %v40_v34 = vld [vmem:[%s371_s0 + $0x38] sm:$0xff] }
   0x9   :  { %v43_v47 = vld [vmem:[%s371_s0 + $0x50] sm:$0xff]  ;;  %v44_v48 = vld [vmem:[%s371_s0 + $0x58] sm:$0xff]  ;;  %v41_v49 = vld [vmem:[%s371_s0 + $0x40] sm:$0xff] }
   0xa   :  { %76 = vperm.xlu1 %199, %v21_v5   ;;  %71 = vperm.xlu0 %198, %v20_v6   ;;  %v42_v50 = vld [vmem:[%s371_s0 + $0x48] sm:$0xff]  ;;  %v47_v1 = vld [vmem:[%s371_s0 + $0x70] sm:$0xff]  ;;  %v48_v2 = vld [vmem:[%s371_s0 + $0x78] sm:$0xff] }
   0xb   :  { %v45_v3 = vld [vmem:[%s371_s0 + $0x60] sm:$0xff]  ;;  %v46_v4 = vld [vmem:[%s371_s0 + $0x68] sm:$0xff] }
   0xe   :  { %86 = vperm.xlu1 %199, %v23_v7   ;;  %81 = vperm.xlu0 %198, %v22_v8  }
  0x12   :  { %112 = vperm.xlu1 %199, %v26_v9   ;;  %107 = vperm.xlu0 %198, %v25_v10  }
  0x16   :  { %122 = vperm.xlu1 %199, %v28_v11   ;;  %117 = vperm.xlu0 %198, %v27_v12  }
  0x1a   :  { %132 = vperm.xlu1 %199, %v30_v13   ;;  %127 = vperm.xlu0 %198, %v29_v14  }
  0x1e   :  { %142 = vperm.xlu1 %199, %v32_v15   ;;  %137 = vperm.xlu0 %198, %v31_v16  }
  0x81   :  { %v62_v17 = vpop.permute.xlu1 %61  ;;  %v52_v18 = vpop.permute.xlu0 %51 }
  0x82   :  { %v89_v31 = vmul.f32 %v52_v18, %v33_v23  ;;  %v90_v32 = vmul.f32 %v52_v18, %v34_v24  ;;  %v93_v43 = vmul.f32 %v62_v17, %v37_v29  ;;  %v94_v44 = vmul.f32 %v62_v17, %v38_v30 }
  0x85   :  { %v67_v19 = vpop.permute.xlu1 %66  ;;  %v57_v20 = vpop.permute.xlu0 %56 }
  0x86   :  { %v91_v35 = vmul.f32 %v57_v20, %v35_v25  ;;  %v92_v36 = vmul.f32 %v57_v20, %v36_v26  ;;  %v95_v45 = vmul.f32 %v67_v19, %v39_v33  ;;  %v96_v46 = vmul.f32 %v67_v19, %v40_v34 }
  0x89   :  { %v77_v21 = vpop.permute.xlu1 %76  ;;  %v72_v22 = vpop.permute.xlu0 %71 }
  0x8a   :  { %v99_v61 = vmul.f32 %v77_v21, %v43_v47  ;;  %v100_v62 = vmul.f32 %v77_v21, %v44_v48  ;;  %v97_v63 = vmul.f32 %v72_v22, %v41_v49  ;;  %v98_v0 = vmul.f32 %v72_v22, %v42_v50 }
  0x8d   :  { %v87_v27 = vpop.permute.xlu1 %86  ;;  %v281_v28 = vpop.permute.xlu0 %81 }
  0x8e   :  { %v103_v15 = vmul.f32 %v87_v27, %v47_v1  ;;  %v104_v16 = vmul.f32 %v87_v27, %v48_v2  ;;  %v101_v17 = vmul.f32 %v281_v28, %v45_v3  ;;  %v102_v18 = vmul.f32 %v281_v28, %v46_v4 }
  0x91   :  { %v113_v37 = vpop.permute.xlu1 %112  ;;  %v108_v38 = vpop.permute.xlu0 %107 }
  0x92   :  { %v147_v39 = vadd.f32 %v113_v37, %v91_v35  ;;  %v148_v40 = vadd.f32 %v113_v37, %v92_v36  ;;  %v145_v41 = vadd.f32 %v108_v38, %v89_v31  ;;  %v146_v42 = vadd.f32 %v108_v38, %v90_v32 }
  0x94   :  { %v163_v51 = vmax.f32 %v147_v39, 0.0  ;;  %v164_v52 = vmax.f32 %v148_v40, 0.0  ;;  %v161_v53 = vmax.f32 %v145_v41, 0.0  ;;  %v162_v54 = vmax.f32 %v146_v42, 0.0 }
  0x95   :  { %v123_v55 = vpop.permute.xlu1 %122  ;;  %v118_v56 = vpop.permute.xlu0 %117 }
  0x96   :  { %179 = vst [vmem:[%s372_s3 + $0x10] sm:$0xff] %v163_v51  ;;  %180 = vst [vmem:[%s372_s3 + $0x18] sm:$0xff] %v164_v52  ;;  %v151_v57 = vadd.f32 %v123_v55, %v95_v45  ;;  %v152_v58 = vadd.f32 %v123_v55, %v96_v46  ;;  %v149_v59 = vadd.f32 %v118_v56, %v93_v43 }
  0x97   :  { %177 = vst [vmem:[%s372_s3] sm:$0xff] %v161_v53  ;;  %178 = vst [vmem:[%s372_s3 + $0x8] sm:$0xff] %v162_v54  ;;  %v150_v60 = vadd.f32 %v118_v56, %v94_v44 }
  0x98   :  { %v167_v5 = vmax.f32 %v151_v57, 0.0  ;;  %v168_v6 = vmax.f32 %v152_v58, 0.0  ;;  %v165_v7 = vmax.f32 %v149_v59, 0.0 }
  0x99   :  { %v166_v8 = vmax.f32 %v150_v60, 0.0  ;;  %v133_v9 = vpop.permute.xlu1 %132  ;;  %v128_v10 = vpop.permute.xlu0 %127 }
  0x9a   :  { %183 = vst [vmem:[%s372_s3 + $0x30] sm:$0xff] %v167_v5  ;;  %184 = vst [vmem:[%s372_s3 + $0x38] sm:$0xff] %v168_v6  ;;  %v155_v11 = vadd.f32 %v133_v9, %v99_v61  ;;  %v156_v12 = vadd.f32 %v133_v9, %v100_v62  ;;  %v153_v13 = vadd.f32 %v128_v10, %v97_v63 }
  0x9b   :  { %181 = vst [vmem:[%s372_s3 + $0x20] sm:$0xff] %v165_v7  ;;  %182 = vst [vmem:[%s372_s3 + $0x28] sm:$0xff] %v166_v8  ;;  %v154_v14 = vadd.f32 %v128_v10, %v98_v0 }
  0x9c   :  { %v171_v19 = vmax.f32 %v155_v11, 0.0  ;;  %v172_v20 = vmax.f32 %v156_v12, 0.0  ;;  %v169_v21 = vmax.f32 %v153_v13, 0.0 }
  0x9d   :  { %v170_v22 = vmax.f32 %v154_v14, 0.0  ;;  %v143_v23 = vpop.permute.xlu1 %142  ;;  %v138_v24 = vpop.permute.xlu0 %137 }
  0x9e   :  { %187 = vst [vmem:[%s372_s3 + $0x50] sm:$0xff] %v171_v19  ;;  %188 = vst [vmem:[%s372_s3 + $0x58] sm:$0xff] %v172_v20  ;;  %v159_v25 = vadd.f32 %v143_v23, %v103_v15  ;;  %v160_v26 = vadd.f32 %v143_v23, %v104_v16  ;;  %v157_v27 = vadd.f32 %v138_v24, %v101_v17 }
  0x9f   :  { %185 = vst [vmem:[%s372_s3 + $0x40] sm:$0xff] %v169_v21  ;;  %186 = vst [vmem:[%s372_s3 + $0x48] sm:$0xff] %v170_v22  ;;  %v158_v28 = vadd.f32 %v138_v24, %v102_v18 }
  0xa0   :  { %v175_v29 = vmax.f32 %v159_v25, 0.0  ;;  %v176_v30 = vmax.f32 %v160_v26, 0.0  ;;  %v173_v31 = vmax.f32 %v157_v27, 0.0 }
  0xa1   :  { %v174_v32 = vmax.f32 %v158_v28, 0.0 }
  0xa2   :  { %191 = vst [vmem:[%s372_s3 + $0x70] sm:$0xff] %v175_v29  ;;  %192 = vst [vmem:[%s372_s3 + $0x78] sm:$0xff] %v176_v30 }
  0xa3   :  { %189 = vst [vmem:[%s372_s3 + $0x60] sm:$0xff] %v173_v31  ;;  %190 = vst [vmem:[%s372_s3 + $0x68] sm:$0xff] %v174_v32 }

// kernel: pfae_forward.31
= control target key start
LH: loop header
LB: loop body
LE: loop exit
PB: predicated region body
PF: predicated region fallthrough
CT: control target
= control target key end

     0   :  { %vm41_vm0 = vcmask 7168   ;;  %s118_s0 = inlined_call_operand.vmem [shape: f32[32,1], index: 0, kind: input, shape index: {}]   ;;  %s119_s1 = inlined_call_operand.vmem [shape: f32[32,1], index: 1, kind: input, shape index: {}]   ;;  %s120_s2 = inlined_call_operand.vmem [shape: f32[32,1], index: 2, kind: input, shape index: {}]   ;;  %s121_s3 = inlined_call_operand.vmem [shape: f32[32,1], index: 3, kind: output, shape index: {}]  }
   0x1   :  { %v16_v0 = vld [vmem:[%s119_s1] sm:$0xff]  ;;  %v17_v4 = vld [vmem:[%s119_s1 + $0x8] sm:$0xff]  ;;  %v18_v8 = vld [vmem:[%s119_s1 + $0x10] sm:$0xff] }
   0x2   :  { %v21_v1 = vld [vmem:[%s120_s2] sm:$0xff]  ;;  %v22_v5 = vld [vmem:[%s120_s2 + $0x8] sm:$0xff]  ;;  %v23_v9 = vld [vmem:[%s120_s2 + $0x10] sm:$0xff] }
   0x3   :  { %v25_v2 = vld [vmem:[%s118_s0] sm:$0xff]  ;;  %v26_v6 = vld [vmem:[%s118_s0 + $0x8] sm:$0xff]  ;;  %v27_v10 = vld [vmem:[%s118_s0 + $0x10] sm:$0xff] }
   0x4   :  { %v29_v3 = vmul.f32 %v25_v2, %v16_v0  ;;  %v30_v7 = vmul.f32 %v26_v6, %v17_v4  ;;  %v31_v12 = vmul.f32 %v27_v10, %v18_v8  ;;  %v19_v13 = vld [vmem:[%s119_s1 + $0x18] sm:$0xff] }
   0x5   :  { %v24_v14 = vld [vmem:[%s120_s2 + $0x18] sm:$0xff] }
   0x6   :  { %v33_v11 = vadd.f32 %v29_v3, %v21_v1  ;;  %v28_v15 = vld [vmem:[%s118_s0 + $0x18] sm:$0xff]  ;;  %v34_v16 = vadd.f32 %v30_v7, %v22_v5  ;;  %v35_v19 = vadd.f32 %v31_v12, %v23_v9 }
   0x7   :  { %v32_v17 = vmul.f32 %v28_v15, %v19_v13 }
   0x8   :  { %v37_v18 = vmax.f32 %v33_v11, 0.0  ;;  %v38_v20 = vmax.f32 %v34_v16, 0.0  ;;  %v39_v22 = vmax.f32 %v35_v19, 0.0 }
   0x9   :  { %v36_v21 = vadd.f32 %v32_v17, %v24_v14 }
   0xa   :  { %42 = vst.msk [vmem:[%s121_s3] sm:$0xff] %vm41_vm0, %v37_v18  ;;  %43 = vst.msk [vmem:[%s121_s3 + $0x8] sm:$0xff] %vm41_vm0, %v38_v20 }
   0xb   :  { %v40_v23 = vmax.f32 %v36_v21, 0.0  ;;  %44 = vst.msk [vmem:[%s121_s3 + $0x10] sm:$0xff] %vm41_vm0, %v39_v22 }
   0xd   :  { %45 = vst.msk [vmem:[%s121_s3 + $0x18] sm:$0xff] %vm41_vm0, %v40_v23 }

// kernel: pfae_forward.19
= control target key start
LH: loop header
LB: loop body
LE: loop exit
PB: predicated region body
PF: predicated region fallthrough
CT: control target
= control target key end

     0   :  { %v112_v0 = vmov 0   ;;  %s205_s1 = inlined_call_operand.vmem [shape: f32[32,1], index: 1, kind: input, shape index: {}]   ;;  %s206_s2 = inlined_call_operand.vmem [shape: f32[32,1], index: 2, kind: input, shape index: {}]   ;;  %s207_s0 = inlined_call_operand.vmem [shape: f32[32,256], index: 0, kind: input, shape index: {}]   ;;  %s208_s3 = inlined_call_operand.vmem [shape: f32[32,256], index: 3, kind: output, shape index: {}]  }
   0x1   :  { %111 = vset.pattern.permute.xlu1 %v112_v0  ;;  %110 = vset.pattern.permute.xlu0 %v112_v0  ;;  %v18_v1 = vld [vmem:[%s205_s1 + $0x10] sm:$0xff]  ;;  %v16_v2 = vld [vmem:[%s205_s1] sm:$0xff]  ;;  %v19_v3 = vld [vmem:[%s205_s1 + $0x18] sm:$0xff] }
   0x2   :  { %45 = vperm.xlu1 %111, %v18_v1   ;;  %35 = vperm.xlu0 %110, %v16_v2   ;;  %v17_v4 = vld [vmem:[%s205_s1 + $0x8] sm:$0xff]  ;;  %v21_v6 = vld [vmem:[%s206_s2] sm:$0xff]  ;;  %v24_v7 = vld [vmem:[%s206_s2 + $0x18] sm:$0xff] }
   0x3   :  { %v22_v5 = vld [vmem:[%s206_s2 + $0x8] sm:$0xff]  ;;  %v23_v8 = vld [vmem:[%s206_s2 + $0x10] sm:$0xff]  ;;  %v25_v11 = vld [vmem:[%s207_s0] sm:$0xff] }
   0x4   :  { %v26_v12 = vld [vmem:[%s207_s0 + $0x8] sm:$0xff]  ;;  %v27_v15 = vld [vmem:[%s207_s0 + $0x10] sm:$0xff]  ;;  %v28_v16 = vld [vmem:[%s207_s0 + $0x18] sm:$0xff] }
   0x5   :  { %v29_v17 = vld [vmem:[%s207_s0 + $0x20] sm:$0xff]  ;;  %v30_v18 = vld [vmem:[%s207_s0 + $0x28] sm:$0xff]  ;;  %v31_v21 = vld [vmem:[%s207_s0 + $0x30] sm:$0xff] }
   0x6   :  { %50 = vperm.xlu1 %111, %v19_v3   ;;  %40 = vperm.xlu0 %110, %v17_v4   ;;  %v32_v22 = vld [vmem:[%s207_s0 + $0x38] sm:$0xff] }
   0xa   :  { %68 = vperm.xlu1 %111, %v22_v5   ;;  %63 = vperm.xlu0 %110, %v21_v6  }
   0xe   :  { %78 = vperm.xlu1 %111, %v24_v7   ;;  %73 = vperm.xlu0 %110, %v23_v8  }
  0x81   :  { %v46_v9 = vpop.permute.xlu1 %45  ;;  %v36_v10 = vpop.permute.xlu0 %35 }
  0x82   :  { %v53_v19 = vmul.f32 %v36_v10, %v25_v11  ;;  %v54_v20 = vmul.f32 %v36_v10, %v26_v12  ;;  %v57_v31 = vmul.f32 %v46_v9, %v29_v17  ;;  %v58_v32 = vmul.f32 %v46_v9, %v30_v18 }
  0x85   :  { %v51_v13 = vpop.permute.xlu1 %50  ;;  %v41_v14 = vpop.permute.xlu0 %40 }
  0x86   :  { %v55_v23 = vmul.f32 %v41_v14, %v27_v15  ;;  %v56_v24 = vmul.f32 %v41_v14, %v28_v16  ;;  %v59_v33 = vmul.f32 %v51_v13, %v31_v21  ;;  %v60_v34 = vmul.f32 %v51_v13, %v32_v22 }
  0x89   :  { %v69_v25 = vpop.permute.xlu1 %68  ;;  %v64_v26 = vpop.permute.xlu0 %63 }
  0x8a   :  { %v83_v27 = vadd.f32 %v69_v25, %v55_v23  ;;  %v84_v28 = vadd.f32 %v69_v25, %v56_v24  ;;  %v81_v29 = vadd.f32 %v64_v26, %v53_v19  ;;  %v82_v30 = vadd.f32 %v64_v26, %v54_v20 }
  0x8c   :  { %v91_v35 = vmax.f32 %v83_v27, 0.0  ;;  %v92_v36 = vmax.f32 %v84_v28, 0.0  ;;  %v89_v37 = vmax.f32 %v81_v29, 0.0  ;;  %v90_v38 = vmax.f32 %v82_v30, 0.0 }
  0x8d   :  { %v79_v39 = vpop.permute.xlu1 %78  ;;  %v74_v40 = vpop.permute.xlu0 %73 }
  0x8e   :  { %99 = vst [vmem:[%s208_s3 + $0x10] sm:$0xff] %v91_v35  ;;  %100 = vst [vmem:[%s208_s3 + $0x18] sm:$0xff] %v92_v36  ;;  %v87_v41 = vadd.f32 %v79_v39, %v59_v33  ;;  %v88_v42 = vadd.f32 %v79_v39, %v60_v34  ;;  %v85_v43 = vadd.f32 %v74_v40, %v57_v31 }
  0x8f   :  { %97 = vst [vmem:[%s208_s3] sm:$0xff] %v89_v37  ;;  %98 = vst [vmem:[%s208_s3 + $0x8] sm:$0xff] %v90_v38  ;;  %v86_v44 = vadd.f32 %v74_v40, %v58_v32 }
  0x90   :  { %v95_v45 = vmax.f32 %v87_v41, 0.0  ;;  %v96_v46 = vmax.f32 %v88_v42, 0.0  ;;  %v93_v47 = vmax.f32 %v85_v43, 0.0 }
  0x91   :  { %v94_v48 = vmax.f32 %v86_v44, 0.0 }
  0x92   :  { %103 = vst [vmem:[%s208_s3 + $0x30] sm:$0xff] %v95_v45  ;;  %104 = vst [vmem:[%s208_s3 + $0x38] sm:$0xff] %v96_v46 }
  0x93   :  { %101 = vst [vmem:[%s208_s3 + $0x20] sm:$0xff] %v93_v47  ;;  %102 = vst [vmem:[%s208_s3 + $0x28] sm:$0xff] %v94_v48 }

// kernel: tile.170
= control target key start
LH: loop header
LB: loop body
LE: loop exit
PB: predicated region body
PF: predicated region fallthrough
CT: control target
= control target key end

     0   :  { %s20_s0 = inlined_call_operand.<no memory space> [shape: f32[], index: 0, kind: input, shape index: {}]   ;;  %s21_s1 = inlined_call_operand.vmem [shape: f32[2,1], index: 1, kind: output, shape index: {}]  }
   0x1   :  { %v2_v0 = vstv %s20_s0 }
   0x2   :  { %3 = vst [vmem:[%s21_s1] sm:$0x3] %v2_v0 }

// kernel: pfae_forward.21
= control target key start
LH: loop header
LB: loop body
LE: loop exit
PB: predicated region body
PF: predicated region fallthrough
CT: control target
= control target key end

     0   :  { %v55_v0 = vmov 0   ;;  %v56_v3 = vmov 269488144   ;;  %v27_v5 = vlaneseq  ;;  %s89_s1 = inlined_call_operand.vmem [shape: f32[2,1], index: 1, kind: input, shape index: {}]   ;;  %s90_s2 = inlined_call_operand.vmem [shape: f32[2,1], index: 2, kind: input, shape index: {}]   ;;  %s91_s0 = inlined_call_operand.vmem [shape: f32[2,256], index: 0, kind: input, shape index: {}]   ;;  %s92_s3 = inlined_call_operand.vmem [shape: f32[2,256], index: 3, kind: output, shape index: {}]  }
   0x1   :  { %54 = vset.pattern.permute.xlu0 %v55_v0  ;;  %v16_v1 = vld [vmem:[%s89_s1] sm:$0x3]  ;;  %v25_v4 = vunpack.c.l.s4 %v56_v3 }
   0x2   :  { %22 = vperm.xlu0 %54, %v16_v1   ;;  %v18_v2 = vld [vmem:[%s90_s2] sm:$0x3]  ;;  %v28_v7 = vshrl.u32 %v27_v5, 7 }
   0x3   :  { %v26_v6 = vunpack.c.0.s8 %v25_v4  ;;  %v19_v11 = vld [vmem:[%s91_s0] sm:$0xf] }
   0x5   :  { %v29_v8 = vsub.s32 %v26_v6, %v28_v7 }
   0x6   :  { %35 = vperm.xlu0 %54, %v18_v2  }
  0x81   :  { %v23_v9 = vpop.permute.xlu0 %22 }
  0x82   :  { %v30_v10 = vrot.slane %v23_v9, %v29_v8 }
  0x84   :  { %v32_v13 = vmul.f32 %v30_v10, %v19_v11 }
  0x85   :  { %v36_v12 = vpop.permute.xlu0 %35 }
  0x86   :  { %v43_v14 = vrot.slane %v36_v12, %v29_v8 }
  0x88   :  { %v45_v15 = vadd.f32 %v43_v14, %v32_v13 }
  0x8a   :  { %v46_v16 = vmax.f32 %v45_v15, 0.0 }
  0x8c   :  { %47 = vst [vmem:[%s92_s3] sm:$0xf] %v46_v16 }

// kernel: pfae_forward.20
= control target key start
LH: loop header
LB: loop body
LE: loop exit
PB: predicated region body
PF: predicated region fallthrough
CT: control target
= control target key end

     0   :  { %s6370_s15 = smov 0   ;;  %s7330_s0 = inlined_call_operand.vmem [shape: f32[2,8,2,256], index: 0, kind: input, shape index: {}]   ;;  %s7331_s1 = inlined_call_operand.vmem [shape: f32[2,8,2,256], index: 1, kind: input, shape index: {}]   ;;  %s7332_s2 = inlined_call_operand.vmem [shape: f32[8,1,1], index: 2, kind: input, shape index: {}]   ;;  %s7333_s3 = inlined_call_operand.vmem [shape: f32[2,8,2,256], index: 3, kind: output, shape index: {0}]   ;;  %s7334_s4 = inlined_call_operand.vmem [shape: f32[2,8,2,256], index: 4, kind: output, shape index: {1}]  }
   0x1 LB: > { %s6038_s16 = sadd.s32 4294967295, %s6339_s15   ;;  %p6042_p0 = scmp.ge.s32.totalorder %s6339_s15, 1  ;;  %s6339_s15 = sphi %s6370_s15, %s15_s15  }
   0x2   : > { %p175_p1 = scmp.lt.s32.totalorder %s6339_s15, 3 }
   0x4   : > { %p176_p2 = pnand %p6042_p0, %p175_p1 }
   0x5   : > { %p211_p3 = scmp.lt.s32.totalorder (!%p176_p2), %s6038_s16, 1  ;;  %v290_v0 = vlaneseq (!%p176_p2)  ;;  %v6341_v1 = vmov (!%p176_p2), 1983009808   ;;  %vm367_vm0 = vcmask (!%p176_p2), 1041408   ;;  %vm3024_vm1 = vcmask (!%p176_p2), 9216  }
   0x6   : > { %179 = sbr.rel (%p176_p2) target bundleno = 1036 (0x40c), region = 32  ;;  %v288_v2 = vunpack.c.l.s4 (!%p176_p2), %v6341_v1  ;;  %vm3210_vm2 = vcmask (!%p176_p2), 15360  }
   0x7   : > { %v6378_v4 = vshrl.u32 (!%p176_p2), %v290_v0, 7 }
   0x8   : > { %v289_v3 = vunpack.c.0.s8 (!%p176_p2), %v288_v2 }
   0xa   : > { %v6408_v10 = vsub.s32 (!%p176_p2), %v289_v3, %v6378_v4 }
   0xd   : > { %s7336_s16 = smov (!%p211_p3, %s6038_s16), 1 }
   0xe   : > { %s6380_s17 = sshll.u32 %s7336_s16, 5 }
   0xf   : > { %s6386_s20 = scalar_lea.vmem %s7330_s0, %s6380_s17  ;;  %s6392_s23 = scalar_lea.vmem %s7331_s1, %s6380_s17 }
  0x10   : > { %v6395_v5 = vld [vmem:[%s6386_s20] sm:$0xf]  ;;  %v6401_v7 = vld [vmem:[%s6386_s20 + $0x8] sm:$0xf]  ;;  %v6414_v12 = vld [vmem:[%s6386_s20 + $0x4] sm:$0xf]  ;;  %s7303_s18 = scalar_lea.vmem %s7333_s3, %s6380_s17  ;;  %s7317_s21 = scalar_lea.vmem %s7334_s4, %s6380_s17 }
  0x11   : > { %v6398_v6 = vld [vmem:[%s6392_s23] sm:$0xf]  ;;  %v255_v8 = vmul.f32 %v6395_v5, %v6395_v5  ;;  %v6411_v11 = vld [vmem:[%s6392_s23 + $0x8] sm:$0xf]  ;;  %v6417_v13 = vld [vmem:[%s6392_s23 + $0x4] sm:$0xf]  ;;  %v257_v14 = vmul.f32 %v6401_v7, %v6401_v7  ;;  %v256_v20 = vmul.f32 %v6414_v12, %v6414_v12 }
  0x12   : > { %v263_v9 = vmul.f32 %v6398_v6, %v6398_v6  ;;  %v265_v15 = vmul.f32 %v6411_v11, %v6411_v11  ;;  %v6424_v16 = vld [vmem:[%s6386_s20 + $0xc] sm:$0xf]  ;;  %v6430_v18 = vld [vmem:[%s6386_s20 + $0x10] sm:$0xf]  ;;  %v264_v21 = vmul.f32 %v6417_v13, %v6417_v13  ;;  %v6442_v24 = vld [vmem:[%s6386_s20 + $0x14] sm:$0xf] }
  0x13   : > { %v6427_v17 = vld [vmem:[%s6392_s23 + $0xc] sm:$0xf]  ;;  %v258_v22 = vmul.f32 %v6424_v16, %v6424_v16  ;;  %v6439_v23 = vld [vmem:[%s6392_s23 + $0x10] sm:$0xf]  ;;  %v6445_v25 = vld [vmem:[%s6392_s23 + $0x14] sm:$0xf]  ;;  %v259_v28 = vmul.f32 %v6430_v18, %v6430_v18  ;;  %v260_v32 = vmul.f32 %v6442_v24, %v6442_v24 }
  0x14   : > { %v271_v19 = vadd.f32 %v263_v9, %v255_v8  ;;  %v273_v26 = vadd.f32 %v265_v15, %v257_v14  ;;  %v266_v27 = vmul.f32 %v6427_v17, %v6427_v17  ;;  %v267_v29 = vmul.f32 %v6439_v23, %v6439_v23  ;;  %v6465_v45 = vld [vmem:[%s6386_s20 + $0x18] sm:$0xf]  ;;  %v6476_v55 = vld [vmem:[%s6386_s20 + $0x1c] sm:$0xf] }
  0x15   : > { %v272_v31 = vadd.f32 %v264_v21, %v256_v20  ;;  %v268_v33 = vmul.f32 %v6445_v25, %v6445_v25  ;;  %v6473_v54 = vld [vmem:[%s6392_s23 + $0x18] sm:$0xf]  ;;  %v261_v59 = vmul.f32 %v6465_v45, %v6465_v45  ;;  %v6482_v60 = vld [vmem:[%s6392_s23 + $0x1c] sm:$0xf]  ;;  %v262_v8 = vmul.f32 %v6476_v55, %v6476_v55 }
  0x16   : > { %v293_v30 = vrot.slane %v271_v19, %v6408_v10  ;;  %v309_v34 = vrot.slane %v273_v26, %v6408_v10  ;;  %v274_v35 = vadd.f32 %v266_v27, %v258_v22  ;;  %v275_v36 = vadd.f32 %v267_v29, %v259_v28 }
  0x17   : > { %v301_v39 = vrot.slane %v272_v31, %v6408_v10  ;;  %v276_v40 = vadd.f32 %v268_v33, %v260_v32  ;;  %v269_v3 = vmul.f32 %v6473_v54, %v6473_v54  ;;  %v270_v15 = vmul.f32 %v6482_v60, %v6482_v60 }
  0x18   : > { %v294_v37 = vcombine.high %v293_v30, %v293_v30  ;;  %v368_v38 = vsel %vm367_vm0, %v293_v30, 0.0  ;;  %v310_v41 = vcombine.high %v309_v34, %v309_v34  ;;  %v378_v42 = vsel %vm367_vm0, %v309_v34, 0.0 }
  0x19   : > { %v317_v43 = vrot.slane %v274_v35, %v6408_v10  ;;  %v325_v44 = vrot.slane %v275_v36, %v6408_v10  ;;  %v302_v47 = vcombine.high %v301_v39, %v301_v39  ;;  %v373_v48 = vsel %vm367_vm0, %v301_v39, 0.0  ;;  %v6052_v36 = vld [vmem:[%s7332_s2 + $0x1] ss:$0 sm:$0xff]  ;;  %v6053_v39 = vld [vmem:[%s7332_s2 + $0x2] ss:$0 sm:$0xff] }
  0x1a   : > { %v369_v46 = vsel %vm367_vm0, %v294_v37, 0.0  ;;  %v333_v49 = vrot.slane %v276_v40, %v6408_v10  ;;  %v379_v51 = vsel %vm367_vm0, %v310_v41, 0.0  ;;  %v277_v19 = vadd.f32 %v269_v3, %v261_v59  ;;  %v6054_v40 = vld [vmem:[%s7332_s2 + $0x3] ss:$0 sm:$0xff]  ;;  %v6055_v41 = vld [vmem:[%s7332_s2 + $0x4] ss:$0 sm:$0xff] }
  0x1b   : > { %v370_v50 = vadd.f32 %v369_v46, %v368_v38  ;;  %v318_v52 = vcombine.high %v317_v43, %v317_v43  ;;  %v383_v53 = vsel %vm367_vm0, %v317_v43, 0.0  ;;  %v380_v56 = vadd.f32 %v379_v51, %v378_v42  ;;  %v6051_v38 = vld [vmem:[%s7332_s2] ss:$0 sm:$0xff]  ;;  %v6056_v42 = vld [vmem:[%s7332_s2 + $0x5] ss:$0 sm:$0xff] }
  0x1c   : > { %v374_v57 = vsel %vm367_vm0, %v302_v47, 0.0  ;;  %v326_v58 = vcombine.high %v325_v44, %v325_v44  ;;  %v388_v63 = vsel %vm367_vm0, %v325_v44, 0.0  ;;  %v334_v0 = vcombine.high %v333_v49, %v333_v49  ;;  %v6057_v43 = vld [vmem:[%s7332_s2 + $0x6] ss:$0 sm:$0xff]  ;;  %v6058_v44 = vld [vmem:[%s7332_s2 + $0x7] ss:$0 sm:$0xff] }
  0x1d   : > { %371 = vadd.xlane.f32.xlu0 %v370_v50  ;;  %v375_v61 = vadd.f32 %v374_v57, %v373_v48  ;;  %v384_v62 = vsel %vm367_vm0, %v318_v52, 0.0  ;;  %381 = vadd.xlane.f32.xlu1 %v380_v56  ;;  %v393_v9 = vsel %vm367_vm0, %v333_v49, 0.0  ;;  %v278_v21 = vadd.f32 %v270_v15, %v262_v8 }
  0x1e   : > { %v385_v1 = vadd.f32 %v384_v62, %v383_v53  ;;  %v389_v2 = vsel %vm367_vm0, %v326_v58, 0.0  ;;  %v394_v14 = vsel %vm367_vm0, %v334_v0, 0.0  ;;  %v341_v26 = vrot.slane %v277_v19, %v6408_v10 }
  0x1f   : > { %v390_v20 = vadd.f32 %v389_v2, %v388_v63  ;;  %v395_v22 = vadd.f32 %v394_v14, %v393_v9  ;;  %v349_v27 = vrot.slane %v278_v21, %v6408_v10  ;;  %v6342_v37 = vmov 0  }
  0x20   : > { %v342_v28 = vcombine.high %v341_v26, %v341_v26  ;;  %v398_v29 = vsel %vm367_vm0, %v341_v26, 0.0  ;;  %6222 = vset.pattern.permute.xlu1 %v6342_v37  ;;  %6221 = vset.pattern.permute.xlu0 %v6342_v37  ;;  %v6343_v49 = vmov 269488144  }
  0x21   : > { %376 = vadd.xlane.f32.xlu0 %v375_v61  ;;  %386 = vadd.xlane.f32.xlu1 %v385_v1  ;;  %v350_v30 = vcombine.high %v349_v27, %v349_v27  ;;  %v403_v31 = vsel %vm367_vm0, %v349_v27, 0.0  ;;  %v433_v50 = vunpack.c.l.s4 %v6343_v49 }
  0x22   : > { %v399_v32 = vsel %vm367_vm0, %v342_v28, 0.0 }
  0x23   : > { %v400_v33 = vadd.f32 %v399_v32, %v398_v29  ;;  %v404_v34 = vsel %vm367_vm0, %v350_v30, 0.0  ;;  %v434_v57 = vunpack.c.0.s8 %v433_v50 }
  0x24   : > { %v405_v35 = vadd.f32 %v404_v34, %v403_v31 }
  0x25   : > { %391 = vadd.xlane.f32.xlu0 %v390_v20  ;;  %396 = vadd.xlane.f32.xlu1 %v395_v22  ;;  %v437_v63 = vsub.s32 %v434_v57, %v6378_v4 }
  0x29   : > { %401 = vadd.xlane.f32.xlu0 %v400_v33  ;;  %406 = vadd.xlane.f32.xlu1 %v405_v35 }
  0x3a   : > { %1861 = vperm.xlu1 %6222, %v6052_v36  }
  0x3e   : > { %1865 = vperm.xlu1 %6222, %v6053_v39  }
  0x3f   : > { %1857 = vperm.xlu0 %6221, %v6051_v38  }
  0x42   : > { %1869 = vperm.xlu1 %6222, %v6054_v40  }
  0x46   : > { %1873 = vperm.xlu1 %6222, %v6055_v41  }
  0x4a   : > { %1877 = vperm.xlu1 %6222, %v6056_v42  }
  0x4e   : > { %1881 = vperm.xlu1 %6222, %v6057_v43  }
  0x52   : > { %1885 = vperm.xlu1 %6222, %v6058_v44  }
  0xaa   : > { %v372_v46 = vpop.xlane.xlu0 %371  ;;  %v382_v48 = vpop.xlane.xlu1 %381 }
  0xab   : > { %v408_v47 = vmax.f32 %v372_v46, 1e-24  ;;  %v410_v51 = vmax.f32 %v382_v48, 1e-24 }
  0xad   : > { %6223 = vrsqrt.f32 %v408_v47 }
  0xae   : > { %6225 = vrsqrt.f32 %v410_v51  ;;  %v377_v52 = vpop.xlane.xlu0 %376  ;;  %v387_v56 = vpop.xlane.xlu1 %386 }
  0xaf   : > { %v409_v53 = vmax.f32 %v377_v52, 1e-24  ;;  %v411_v58 = vmax.f32 %v387_v56, 1e-24 }
  0xb1   : > { %6227 = vrsqrt.f32 %v409_v53 }
  0xb2   : > { %6229 = vrsqrt.f32 %v411_v58  ;;  %v392_v59 = vpop.xlane.xlu0 %391  ;;  %v397_v62 = vpop.xlane.xlu1 %396 }
  0xb3   : > { %v412_v61 = vmax.f32 %v392_v59, 1e-24  ;;  %v413_v0 = vmax.f32 %v397_v62, 1e-24 }
  0xb5   : > { %6231 = vrsqrt.f32 %v412_v61 }
  0xb6   : > { %6233 = vrsqrt.f32 %v413_v0  ;;  %v402_v1 = vpop.xlane.xlu0 %401  ;;  %v407_v8 = vpop.xlane.xlu1 %406 }
  0xb7   : > { %v6224_v2 = vpop.eup %6223  ;;  %v414_v3 = vmax.f32 %v402_v1, 1e-24  ;;  %v415_v15 = vmax.f32 %v407_v8, 1e-24 }
  0xb8   : > { %v6226_v9 = vpop.eup %6225  ;;  %v438_v14 = vrot.slane %v6224_v2, %v437_v63 }
  0xb9   : > { %v452_v19 = vrot.slane %v6226_v9, %v437_v63  ;;  %6235 = vrsqrt.f32 %v414_v3 }
  0xba   : > { %v496_v20 = vmul.f32 %v438_v14, %v6395_v5  ;;  %6237 = vrsqrt.f32 %v415_v15  ;;  %v6782_v15 = vpop.permute.xlu1 %1861 }
  0xbb   : > { %v6228_v21 = vpop.eup %6227  ;;  %v498_v22 = vmul.f32 %v452_v19, %v6401_v7  ;;  %v506_v52 = vmul.f32 %v452_v19, %v6411_v11 }
  0xbc   : > { %v6230_v26 = vpop.eup %6229  ;;  %v6529_v4 = vrot.slane %v496_v20, %v6408_v10  ;;  %v445_v27 = vrot.slane %v6228_v21, %v437_v63 }
  0xbd   : > { %v6532_v28 = vrot.slane %v498_v22, %v6408_v10  ;;  %v459_v29 = vrot.slane %v6230_v26, %v437_v63  ;;  %v6628_v58 = vrot.slane %v506_v52, %v6408_v10 }
  0xbe   : > { %v497_v30 = vmul.f32 %v445_v27, %v6414_v12  ;;  %v6537_v31 = vcombine.high %v6529_v4, %v6529_v4  ;;  %v505_v51 = vmul.f32 %v445_v27, %v6417_v13  ;;  %v6784_v21 = vpop.permute.xlu1 %1865 }
  0xbf   : > { %v6232_v32 = vpop.eup %6231  ;;  %v499_v33 = vmul.f32 %v459_v29, %v6424_v16  ;;  %v6542_v7 = vcombine.high %v6532_v28, %v6532_v28  ;;  %v507_v56 = vmul.f32 %v459_v29, %v6427_v17 }
  0xc0   : > { %v6234_v34 = vpop.eup %6233  ;;  %v6545_v35 = vrot.slane %v497_v30, %v6408_v10  ;;  %v466_v36 = vrot.slane %v6232_v32, %v437_v63  ;;  %523 = vmatprep.subr.mxu0 %v6537_v31  ;;  %587 = vmatprep.mubr.f32.mxu0 %v6537_v31  ;;  %v6618_v11 = vrot.slane %v505_v51, %v6408_v10 }
  0xc1   : > { %v6550_v12 = vrot.slane %v499_v33, %v6408_v10  ;;  %v473_v37 = vrot.slane %v6234_v34, %v437_v63  ;;  %524 = vmatpush1.xpose.msra.mxu0 %v6529_v4  ;;  %v6638_v17 = vrot.slane %v507_v56, %v6408_v10 }
  0xc2   : > { %v500_v16 = vmul.f32 %v466_v36, %v6430_v18  ;;  %v6556_v38 = vcombine.high %v6545_v35, %v6545_v35  ;;  %685 = vmatprep.subr.mxu0 %v6542_v7  ;;  %v504_v18 = vmul.f32 %v438_v14, %v6398_v6  ;;  %v508_v59 = vmul.f32 %v466_v36, %v6439_v23  ;;  %v6786_v29 = vpop.permute.xlu1 %1869 }
  0xc3   : > { %v6236_v39 = vpop.eup %6235  ;;  %v501_v40 = vmul.f32 %v473_v37, %v6442_v24  ;;  %v6562_v41 = vcombine.high %v6550_v12, %v6550_v12  ;;  %v509_v61 = vmul.f32 %v473_v37, %v6445_v25  ;;  %v6645_v23 = vcombine.high %v6618_v11, %v6618_v11  ;;  %v1858_v37 = vpop.permute.xlu0 %1857 }
  0xc4   : > { %v6238_v42 = vpop.eup %6237  ;;  %v6565_v43 = vrot.slane %v500_v16, %v6408_v10  ;;  %v480_v44 = vrot.slane %v6236_v39, %v437_v63  ;;  %588 = vmatmul.mubr.f32.vlgmr.msra.gmra.mrb[0].mxu0 %v6529_v4  ;;  %604 = vmatprep.subr.mxu1 %v6556_v38  ;;  %v6648_v62 = vrot.slane %v508_v59, %v6408_v10 }
  0xc5   : > { %v6571_v46 = vrot.slane %v501_v40, %v6408_v10  ;;  %v487_v47 = vrot.slane %v6238_v42, %v437_v63  ;;  %668 = vmatprep.mubr.f32.mxu1 %v6556_v38  ;;  %605 = vmatpush1.xpose.msra.mxu1 %v6545_v35  ;;  %v6655_v25 = vcombine.high %v6628_v58, %v6628_v58 }
  0xc6   : > { %v502_v24 = vmul.f32 %v480_v44, %v6465_v45  ;;  %686 = vmatpush1.xpose.msra.mxu0 %v6532_v28  ;;  %749 = vmatprep.mubr.f32.mxu0 %v6542_v7  ;;  %v6580_v48 = vcombine.high %v6565_v43, %v6565_v43  ;;  %v6594_v45 = vrot.slane %v504_v18, %v6408_v10  ;;  %v6788_v36 = vpop.permute.xlu1 %1873 }
  0xc7   : > { %v503_v6 = vmul.f32 %v487_v47, %v6476_v55  ;;  %766 = vmatprep.subr.mxu1 %v6562_v41  ;;  %v6586_v49 = vcombine.high %v6571_v46, %v6571_v46  ;;  %v510_v63 = vmul.f32 %v480_v44, %v6473_v54  ;;  %v6662_v0 = vrot.slane %v509_v61, %v6408_v10 }
  0xc8   : > { %v6589_v50 = vrot.slane %v502_v24, %v6408_v10  ;;  %669 = vmatmul.mubr.f32.vlgmr.msra.gmra.mrb[0].mxu1 %v6545_v35  ;;  %847 = vmatprep.subr.mxu0 %v6580_v48  ;;  %v6625_v57 = vcombine.high %v6594_v45, %v6594_v45  ;;  %v511_v54 = vmul.f32 %v487_v47, %v6482_v60 }
  0xc9   : > { %v6598_v55 = vrot.slane %v503_v6, %v6408_v10  ;;  %750 = vmatmul.mubr.f32.vlgmr.msra.gmra.mrb[2].mxu0 %v6532_v28  ;;  %767 = vmatpush1.xpose.msra.mxu1 %v6550_v12  ;;  %v6669_v1 = vcombine.high %v6638_v17, %v6638_v17  ;;  %v6672_v2 = vrot.slane %v510_v63, %v6408_v10 }
  0xca   : > { %830 = vmatprep.mubr.f32.mxu1 %v6562_v41  ;;  %848 = vmatpush1.xpose.msra.mxu0 %v6565_v43  ;;  %v6607_v53 = vcombine.high %v6589_v50, %v6589_v50  ;;  %v6678_v3 = vcombine.high %v6648_v62, %v6648_v62  ;;  %v6685_v60 = vrot.slane %v511_v54, %v6408_v10 }
  0xcb   : > { %911 = vmatprep.mubr.f32.mxu0 %v6580_v48  ;;  %928 = vmatprep.subr.mxu1 %v6586_v49  ;;  %v6615_v13 = vcombine.high %v6598_v55, %v6598_v55  ;;  %v6691_v8 = vcombine.high %v6662_v0, %v6662_v0  ;;  %v6697_v9 = vcombine.high %v6672_v2, %v6672_v2 }
  0xcc   : > { %831 = vmatmul.mubr.f32.vlgmr.msra.gmra.mrb[2].mxu1 %v6550_v12  ;;  %1009 = vmatprep.subr.mxu0 %v6607_v53  ;;  %v6707_v14 = vcombine.high %v6685_v60, %v6685_v60 }
  0xcd   : > { %912 = vmatmul.mubr.f32.vlgmr.msra.gmra.mrb[4].mxu0 %v6565_v43  ;;  %929 = vmatpush1.xpose.msra.mxu1 %v6571_v46 }
  0xce   : > { %992 = vmatprep.mubr.f32.mxu1 %v6586_v49  ;;  %1010 = vmatpush1.xpose.msra.mxu0 %v6589_v50 }
  0xcf   : > { %1171 = vmatprep.subr.mxu0 %v6625_v57  ;;  %1073 = vmatprep.mubr.f32.mxu0 %v6607_v53 }
  0xd0   : > { %993 = vmatmul.mubr.f32.vlgmr.msra.gmra.mrb[4].mxu1 %v6571_v46  ;;  %1090 = vmatprep.subr.mxu1 %v6615_v13 }
  0xd1   : > { %1074 = vmatmul.mubr.f32.vlgmr.msra.gmra.mrb[6].mxu0 %v6589_v50  ;;  %1091 = vmatpush1.xpose.msra.mxu1 %v6598_v55 }
  0xd2   : > { %1154 = vmatprep.mubr.f32.mxu1 %v6615_v13  ;;  %1172 = vmatpush1.xpose.msra.mxu0 %v6594_v45 }
  0xd3   : > { %1235 = vmatprep.mubr.f32.mxu0 %v6625_v57  ;;  %1252 = vmatprep.subr.mxu1 %v6645_v23 }
  0xd4   : > { %1333 = vmatprep.subr.mxu0 %v6655_v25  ;;  %1155 = vmatmul.mubr.f32.vlgmr.msra.gmra.mrb[6].mxu1 %v6598_v55 }
  0xd5   : > { %1236 = vmatmul.mubr.f32.vlgmr.msra.gmra.mrb[8].mxu0 %v6594_v45  ;;  %1253 = vmatpush1.xpose.msra.mxu1 %v6618_v11 }
  0xd6   : > { %1316 = vmatprep.mubr.f32.mxu1 %v6645_v23  ;;  %1334 = vmatpush1.xpose.msra.mxu0 %v6628_v58 }
  0xd7   : > { %1397 = vmatprep.mubr.f32.mxu0 %v6655_v25  ;;  %1414 = vmatprep.subr.mxu1 %v6669_v1 }
  0xd8   : > { %1495 = vmatprep.subr.mxu0 %v6678_v3  ;;  %1317 = vmatmul.mubr.f32.vlgmr.msra.gmra.mrb[8].mxu1 %v6618_v11 }
  0xd9   : > { %1398 = vmatmul.mubr.f32.vlgmr.msra.gmra.mrb[10].mxu0 %v6628_v58  ;;  %1415 = vmatpush1.xpose.msra.mxu1 %v6638_v17 }
  0xda   : > { %1478 = vmatprep.mubr.f32.mxu1 %v6669_v1  ;;  %1496 = vmatpush1.xpose.msra.mxu0 %v6648_v62 }
  0xdb   : > { %1559 = vmatprep.mubr.f32.mxu0 %v6678_v3  ;;  %1576 = vmatprep.subr.mxu1 %v6691_v8 }
  0xdc   : > { %1657 = vmatprep.subr.mxu0 %v6697_v9  ;;  %1479 = vmatmul.mubr.f32.vlgmr.msra.gmra.mrb[10].mxu1 %v6638_v17 }
  0xdd   : > { %1560 = vmatmul.mubr.f32.vlgmr.msra.gmra.mrb[12].mxu0 %v6648_v62  ;;  %1577 = vmatpush1.xpose.msra.mxu1 %v6662_v0 }
  0xde   : > { %1640 = vmatprep.mubr.f32.mxu1 %v6691_v8  ;;  %1658 = vmatpush1.xpose.msra.mxu0 %v6672_v2 }
  0xdf   : > { %1721 = vmatprep.mubr.f32.mxu0 %v6697_v9  ;;  %1738 = vmatprep.subr.mxu1 %v6707_v14 }
  0xe0   : > { %1896 = vmatprep.subr.mxu0 %v6537_v31  ;;  %1641 = vmatmul.mubr.f32.vlgmr.msra.gmra.mrb[12].mxu1 %v6662_v0 }
  0xe1   : > { %1722 = vmatmul.mubr.f32.vlgmr.msra.gmra.mrb[14].mxu0 %v6672_v2  ;;  %1739 = vmatpush1.xpose.msra.mxu1 %v6685_v60 }
  0xe2   : > { %1802 = vmatprep.mubr.f32.mxu1 %v6707_v14  ;;  %1897 = vmatpush1.xpose.msra.mxu0 %v6529_v4 }
  0xe3   : > { %1960 = vmatprep.mubr.f32.mxu0 %v6625_v57  ;;  %1966 = vmatprep.subr.mxu1 %v6556_v38 }
  0xe4   : > { %2036 = vmatprep.subr.mxu0 %v6542_v7  ;;  %1803 = vmatmul.mubr.f32.vlgmr.msra.gmra.mrb[14].mxu1 %v6685_v60 }
  0xe5   : > { %1961 = vmatmul.mubr.f32.vlgmr.msra.gmra.mrb[16].mxu0 %v6594_v45  ;;  %1967 = vmatpush1.xpose.msra.mxu1 %v6545_v35 }
  0xe6   : > { %2030 = vmatprep.mubr.f32.mxu1 %v6645_v23  ;;  %2037 = vmatpush1.xpose.msra.mxu0 %v6532_v28 }
  0xe7   : > { %2100 = vmatprep.mubr.f32.mxu0 %v6655_v25  ;;  %2106 = vmatprep.subr.mxu1 %v6562_v41 }
  0xe8   : > { %2176 = vmatprep.subr.mxu0 %v6580_v48  ;;  %2031 = vmatmul.mubr.f32.vlgmr.msra.gmra.mrb[16].mxu1 %v6618_v11 }
  0xe9   : > { %2101 = vmatmul.mubr.f32.vlgmr.msra.gmra.mrb[18].mxu0 %v6628_v58  ;;  %2107 = vmatpush1.xpose.msra.mxu1 %v6550_v12 }
  0xea   : > { %2170 = vmatprep.mubr.f32.mxu1 %v6669_v1  ;;  %2177 = vmatpush1.xpose.msra.mxu0 %v6565_v43 }
  0xeb   : > { %2240 = vmatprep.mubr.f32.mxu0 %v6678_v3  ;;  %2246 = vmatprep.subr.mxu1 %v6586_v49 }
  0xec   : > { %2316 = vmatprep.subr.mxu0 %v6607_v53  ;;  %2171 = vmatmul.mubr.f32.vlgmr.msra.gmra.mrb[18].mxu1 %v6638_v17 }
  0xed   : > { %2241 = vmatmul.mubr.f32.vlgmr.msra.gmra.mrb[20].mxu0 %v6648_v62  ;;  %2247 = vmatpush1.xpose.msra.mxu1 %v6571_v46 }
  0xee   : > { %2310 = vmatprep.mubr.f32.mxu1 %v6691_v8  ;;  %2317 = vmatpush1.xpose.msra.mxu0 %v6589_v50 }
  0xef   : > { %2380 = vmatprep.mubr.f32.mxu0 %v6697_v9  ;;  %2386 = vmatprep.subr.mxu1 %v6615_v13 }
  0xf0   : > { %2456 = vmatprep.subr.mxu0 %v6625_v57  ;;  %2311 = vmatmul.mubr.f32.vlgmr.msra.gmra.mrb[20].mxu1 %v6662_v0 }
  0xf1   : > { %2381 = vmatmul.mubr.f32.vlgmr.msra.gmra.mrb[22].mxu0 %v6672_v2  ;;  %2387 = vmatpush1.xpose.msra.mxu1 %v6598_v55 }
  0xf2   : > { %2450 = vmatprep.mubr.f32.mxu1 %v6707_v14  ;;  %2457 = vmatpush1.xpose.msra.mxu0 %v6594_v45 }
  0xf3   : > { %2520 = vmatprep.mubr.f32.mxu0 %v6537_v31  ;;  %2526 = vmatprep.subr.mxu1 %v6645_v23 }
  0xf4   : > { %2596 = vmatprep.subr.mxu0 %v6655_v25  ;;  %2451 = vmatmul.mubr.f32.vlgmr.msra.gmra.mrb[22].mxu1 %v6685_v60 }
  0xf5   : > { %2521 = vmatmul.mubr.f32.vlgmr.msra.gmra.mrb[16].mxu0 %v6529_v4  ;;  %2527 = vmatpush1.xpose.msra.mxu1 %v6618_v11 }
  0xf6   : > { %2590 = vmatprep.mubr.f32.mxu1 %v6556_v38  ;;  %2597 = vmatpush1.xpose.msra.mxu0 %v6628_v58 }
  0xf7   : > { %2660 = vmatprep.mubr.f32.mxu0 %v6542_v7  ;;  %2666 = vmatprep.subr.mxu1 %v6669_v1 }
  0xf8   : > { %2736 = vmatprep.subr.mxu0 %v6678_v3  ;;  %2591 = vmatmul.mubr.f32.vlgmr.msra.gmra.mrb[16].mxu1 %v6545_v35 }
  0xf9   : > { %2661 = vmatmul.mubr.f32.vlgmr.msra.gmra.mrb[18].mxu0 %v6532_v28  ;;  %2667 = vmatpush1.xpose.msra.mxu1 %v6638_v17 }
  0xfa   : > { %2730 = vmatprep.mubr.f32.mxu1 %v6562_v41  ;;  %2737 = vmatpush1.xpose.msra.mxu0 %v6648_v62 }
  0xfb   : > { %2800 = vmatprep.mubr.f32.mxu0 %v6580_v48  ;;  %2806 = vmatprep.subr.mxu1 %v6691_v8 }
  0xfc   : > { %2876 = vmatprep.subr.mxu0 %v6697_v9  ;;  %2731 = vmatmul.mubr.f32.vlgmr.msra.gmra.mrb[18].mxu1 %v6550_v12 }
  0xfd   : > { %2801 = vmatmul.mubr.f32.vlgmr.msra.gmra.mrb[20].mxu0 %v6565_v43  ;;  %2807 = vmatpush1.xpose.msra.mxu1 %v6662_v0 }
  0xfe   : > { %2870 = vmatprep.mubr.f32.mxu1 %v6586_v49  ;;  %2877 = vmatpush1.xpose.msra.mxu0 %v6672_v2 }
  0xff   : > { %2940 = vmatprep.mubr.f32.mxu0 %v6607_v53  ;;  %2946 = vmatprep.subr.mxu1 %v6707_v14 }
 0x100   : > { %2871 = vmatmul.mubr.f32.vlgmr.msra.gmra.mrb[20].mxu1 %v6571_v46  ;;  %v6792_v46 = vpop.permute.xlu1 %1877 }
 0x101   : > { %2941 = vmatmul.mubr.f32.vlgmr.msra.gmra.mrb[22].mxu0 %v6589_v50  ;;  %2947 = vmatpush1.xpose.msra.mxu1 %v6685_v60 }
 0x102   : > { %3010 = vmatprep.mubr.f32.mxu1 %v6615_v13 }
 0x104   : > { %3011 = vmatmul.mubr.f32.vlgmr.msra.gmra.mrb[22].mxu1 %v6598_v55  ;;  %v1882_v56 = vpop.permute.xlu1 %1881 }
 0x108   : > { %v1886_v9 = vpop.permute.xlu1 %1885 }
 0x197   : > { %v589_v19 = vpop.f32.mrb[0].mxu0 }
 0x198   : > { %v591_v20 = vpop.f32.mrb[1].mxu0 }
 0x19b   : > { %v670_v22 = vpop.f32.mrb[0].mxu1 }
 0x19c   : > { %v751_v26 = vpop.f32.mrb[2].mxu0  ;;  %v672_v4 = vpop.f32.mrb[1].mxu1 }
 0x19d   : > { %v753_v27 = vpop.f32.mrb[3].mxu0 }
 0x19f   : > { %v832_v28 = vpop.f32.mrb[2].mxu1 }
 0x1a0   : > { %v913_v30 = vpop.f32.mrb[4].mxu0  ;;  %v834_v31 = vpop.f32.mrb[3].mxu1 }
 0x1a1   : > { %v915_v32 = vpop.f32.mrb[5].mxu0 }
 0x1a3   : > { %v994_v33 = vpop.f32.mrb[4].mxu1 }
 0x1a4   : > { %v1075_v7 = vpop.f32.mrb[6].mxu0  ;;  %v996_v34 = vpop.f32.mrb[5].mxu1 }
 0x1a5   : > { %v1077_v35 = vpop.f32.mrb[7].mxu0 }
 0x1a7   : > { %v1156_v12 = vpop.f32.mrb[6].mxu1 }
 0x1a8   : > { %v1237_v16 = vpop.f32.mrb[8].mxu0  ;;  %v1158_v38 = vpop.f32.mrb[7].mxu1 }
 0x1a9   : > { %v1808_v39 = vsub.f32 %v589_v19, %v1237_v16  ;;  %v1239_v40 = vpop.f32.mrb[9].mxu0 }
 0x1ab   : > { %v6790_v41 = vmul.f32 %v1858_v37, %v1808_v39  ;;  %v1318_v42 = vpop.f32.mrb[8].mxu1 }
 0x1ac   : > { %v1809_v43 = vsub.f32 %v670_v22, %v1318_v42  ;;  %v1399_v44 = vpop.f32.mrb[10].mxu0  ;;  %v1320_v18 = vpop.f32.mrb[9].mxu1 }
 0x1ad   : > { %v1810_v47 = vsub.f32 %v751_v26, %v1399_v44  ;;  %v1401_v24 = vpop.f32.mrb[11].mxu0  ;;  %v3025_v48 = vsel %vm3024_vm1, %v6790_v41, -inf }
 0x1ae   : > { %3026 = vmax.xlane.f32.xlu1 %v3025_v48  ;;  %v6797_v6 = vmul.f32 %v6782_v15, %v1809_v43 }
 0x1af   : > { %v1480_v49 = vpop.f32.mrb[10].mxu1  ;;  %v6802_v52 = vmul.f32 %v6784_v21, %v1810_v47 }
 0x1b0   : > { %v1811_v50 = vsub.f32 %v832_v28, %v1480_v49  ;;  %v1561_v45 = vpop.f32.mrb[12].mxu0  ;;  %v1482_v51 = vpop.f32.mrb[11].mxu1  ;;  %v3028_v55 = vsel %vm3024_vm1, %v6797_v6, -inf }
 0x1b1   : > { %v1812_v53 = vsub.f32 %v913_v30, %v1561_v45  ;;  %v1563_v13 = vpop.f32.mrb[13].mxu0  ;;  %3029 = vmax.xlane.f32.xlu0 %v3028_v55  ;;  %v3031_v61 = vsel %vm3024_vm1, %v6802_v52, -inf }
 0x1b2   : > { %v6805_v11 = vmul.f32 %v6786_v29, %v1811_v50 }
 0x1b3   : > { %v1642_v57 = vpop.f32.mrb[12].mxu1  ;;  %v6812_v62 = vmul.f32 %v6788_v36, %v1812_v53 }
 0x1b4   : > { %v1813_v58 = vsub.f32 %v994_v33, %v1642_v57  ;;  %v1723_v59 = vpop.f32.mrb[14].mxu0  ;;  %v1644_v17 = vpop.f32.mrb[13].mxu1  ;;  %v3034_v23 = vsel %vm3024_vm1, %v6805_v11, -inf }
 0x1b5   : > { %v1814_v63 = vsub.f32 %v1075_v7, %v1723_v59  ;;  %v1725_v25 = vpop.f32.mrb[15].mxu0  ;;  %3032 = vmax.xlane.f32.xlu0 %v3031_v61  ;;  %3035 = vmax.xlane.f32.xlu1 %v3034_v23  ;;  %v3037_v3 = vsel %vm3024_vm1, %v6812_v62, -inf }
 0x1b6   : > { %v6815_v0 = vmul.f32 %v6792_v46, %v1813_v58 }
 0x1b7   : > { %v1804_v54 = vpop.f32.mrb[14].mxu1  ;;  %v6821_v8 = vmul.f32 %v1882_v56, %v1814_v63 }
 0x1b8   : > { %v1815_v1 = vsub.f32 %v1156_v12, %v1804_v54  ;;  %v1806_v2 = vpop.f32.mrb[15].mxu1  ;;  %v3040_v60 = vsel %vm3024_vm1, %v6815_v0, -inf }
 0x1b9   : > { %3038 = vmax.xlane.f32.xlu0 %v3037_v3  ;;  %3041 = vmax.xlane.f32.xlu1 %v3040_v60  ;;  %v3043_v19 = vsel %vm3024_vm1, %v6821_v8, -inf }
 0x1ba   : > { %v6823_v14 = vmul.f32 %v1886_v9, %v1815_v1 }
 0x1bc   : > { %v3046_v20 = vsel %vm3024_vm1, %v6823_v14, -inf }
 0x1bd   : > { %3044 = vmax.xlane.f32.xlu0 %v3043_v19  ;;  %3047 = vmax.xlane.f32.xlu1 %v3046_v20 }
 0x1c8   : > { %v2522_v22 = vpop.f32.mrb[16].mxu0 }
 0x1c9   : > { %v6829_v26 = vmul.f32 %v2522_v22, %v1858_v37  ;;  %v2524_v4 = vpop.f32.mrb[17].mxu0 }
 0x1cb   : > { %v2592_v27 = vpop.f32.mrb[16].mxu1  ;;  %v3113_v28 = vsel %vm3024_vm1, %v6829_v26, -inf }
 0x1cc   : > { %v6834_v30 = vmul.f32 %v2592_v27, %v6782_v15  ;;  %v2662_v31 = vpop.f32.mrb[18].mxu0  ;;  %3114 = vmax.xlane.f32.xlu0 %v3113_v28  ;;  %v2594_v32 = vpop.f32.mrb[17].mxu1 }
 0x1cd   : > { %v6837_v33 = vmul.f32 %v2662_v31, %v6784_v21  ;;  %v2664_v7 = vpop.f32.mrb[19].mxu0 }
 0x1ce   : > { %v3116_v34 = vsel %vm3024_vm1, %v6834_v30, -inf }
 0x1cf   : > { %v2732_v35 = vpop.f32.mrb[18].mxu1  ;;  %3117 = vmax.xlane.f32.xlu1 %v3116_v34  ;;  %v3119_v12 = vsel %vm3024_vm1, %v6837_v33, -inf }
 0x1d0   : > { %v6844_v37 = vmul.f32 %v2732_v35, %v6786_v29  ;;  %v2802_v15 = vpop.f32.mrb[20].mxu0  ;;  %3120 = vmax.xlane.f32.xlu0 %v3119_v12  ;;  %v2734_v16 = vpop.f32.mrb[19].mxu1 }
 0x1d1   : > { %v6847_v38 = vmul.f32 %v2802_v15, %v6788_v36  ;;  %v2804_v21 = vpop.f32.mrb[21].mxu0 }
 0x1d2   : > { %v3122_v39 = vsel %vm3024_vm1, %v6844_v37, -inf }
 0x1d3   : > { %v2872_v40 = vpop.f32.mrb[20].mxu1  ;;  %3123 = vmax.xlane.f32.xlu1 %v3122_v39  ;;  %v3125_v42 = vsel %vm3024_vm1, %v6847_v38, -inf }
 0x1d4   : > { %v6854_v43 = vmul.f32 %v2872_v40, %v6792_v46  ;;  %v2942_v29 = vpop.f32.mrb[22].mxu0  ;;  %3126 = vmax.xlane.f32.xlu0 %v3125_v42  ;;  %v2874_v44 = vpop.f32.mrb[21].mxu1 }
 0x1d5   : > { %v6856_v18 = vmul.f32 %v2942_v29, %v1882_v56  ;;  %v2944_v47 = vpop.f32.mrb[23].mxu0 }
 0x1d6   : > { %v3128_v36 = vsel %vm3024_vm1, %v6854_v43, -inf }
 0x1d7   : > { %v3012_v24 = vpop.f32.mrb[22].mxu1  ;;  %3129 = vmax.xlane.f32.xlu1 %v3128_v36  ;;  %v3131_v48 = vsel %vm3024_vm1, %v6856_v18, -inf }
 0x1d8   : > { %v6862_v49 = vmul.f32 %v3012_v24, %v1886_v9  ;;  %3132 = vmax.xlane.f32.xlu0 %v3131_v48  ;;  %v3014_v50 = vpop.f32.mrb[23].mxu1 }
 0x1da   : > { %v3134_v46 = vsel %vm3024_vm1, %v6862_v49, -inf }
 0x1db   : > { %3135 = vmax.xlane.f32.xlu1 %v3134_v46 }
 0x23b   : > { %v3027_v45 = vpop.xlane.xlu1 %3026 }
 0x23c   : > { %v3049_v51 = vsub.f32 %v6790_v41, %v3027_v45 }
 0x23e   : > { %v3057_v55 = vmul.f32 1.442695, %v3049_v51  ;;  %v3030_v53 = vpop.xlane.xlu0 %3029 }
 0x23f   : > { %v3050_v13 = vsub.f32 %v6797_v6, %v3030_v53 }
 0x240   : > { %6239 = vpow2.f32 %v3057_v55  ;;  %v6344_v55 = vmov 0.0  }
 0x241   : > { %v3059_v56 = vmul.f32 1.442695, %v3050_v13  ;;  %3282 = vmatprep.mubr.f32.mxu0 %v6344_v55  ;;  %3369 = vmatprep.mubr.f32.mxu1 %v6344_v55 }
 0x242   : > { %v3036_v57 = vpop.xlane.xlu1 %3035  ;;  %v3033_v58 = vpop.xlane.xlu0 %3032 }
 0x243   : > { %6241 = vpow2.f32 %v3059_v56  ;;  %v3052_v59 = vsub.f32 %v6805_v11, %v3036_v57  ;;  %v3051_v17 = vsub.f32 %v6802_v52, %v3033_v58 }
 0x245   : > { %v3063_v61 = vmul.f32 1.442695, %v3052_v59  ;;  %v3061_v23 = vmul.f32 1.442695, %v3051_v17 }
 0x246   : > { %v3042_v63 = vpop.xlane.xlu1 %3041  ;;  %v3039_v25 = vpop.xlane.xlu0 %3038  ;;  %v6945_v59 = vld.sshfl [vmem:[%s6386_s20 + $0xc] sm:$0x33 pattern:$0x76325410] }
 0x247   : > { %6243 = vpow2.f32 %v3063_v61  ;;  %v3054_v41 = vsub.f32 %v6815_v0, %v3042_v63  ;;  %v3053_v54 = vsub.f32 %v6812_v62, %v3039_v25  ;;  %v6961_v25 = vcombine.high %v6945_v59, %v6945_v59 }
 0x248   : > { %6245 = vpow2.f32 %v3061_v23 }
 0x249   : > { %v3067_v6 = vmul.f32 1.442695, %v3054_v41  ;;  %v3065_v1 = vmul.f32 1.442695, %v3053_v54 }
 0x24a   : > { %v6872_v2 = vpop.eup %6239  ;;  %v3048_v3 = vpop.xlane.xlu1 %3047 }
 0x24b   : > { %v3045_v60 = vpop.xlane.xlu0 %3044  ;;  %6247 = vpow2.f32 %v3067_v6  ;;  %v3056_v11 = vsub.f32 %v6823_v14, %v3048_v3  ;;  %v3073_v9 = vsel %vm3024_vm1, %v6872_v2, 0.0 }
 0x24c   : > { %v3055_v52 = vsub.f32 %v6821_v8, %v3045_v60  ;;  %6249 = vpow2.f32 %v3065_v1  ;;  %3074 = vadd.xlane.f32.xlu0 %v3073_v9 }
 0x24d   : > { %v6878_v0 = vpop.eup %6241  ;;  %v3071_v62 = vmul.f32 1.442695, %v3056_v11 }
 0x24e   : > { %v3069_v19 = vmul.f32 1.442695, %v3055_v52  ;;  %v3076_v20 = vsel %vm3024_vm1, %v6878_v0, 0.0 }
 0x24f   : > { %6251 = vpow2.f32 %v3071_v62  ;;  %3077 = vadd.xlane.f32.xlu1 %v3076_v20 }
 0x250   : > { %6253 = vpow2.f32 %v3069_v19 }
 0x251   : > { %v6882_v22 = vpop.eup %6243 }
 0x252   : > { %v6884_v14 = vpop.eup %6245  ;;  %v3082_v8 = vsel %vm3024_vm1, %v6882_v22, 0.0 }
 0x253   : > { %3083 = vadd.xlane.f32.xlu1 %v3082_v8  ;;  %v3079_v4 = vsel %vm3024_vm1, %v6884_v14, 0.0 }
 0x254   : > { %3080 = vadd.xlane.f32.xlu0 %v3079_v4 }
 0x255   : > { %v6890_v27 = vpop.eup %6247 }
 0x256   : > { %v6892_v28 = vpop.eup %6249  ;;  %v3088_v31 = vsel %vm3024_vm1, %v6890_v27, 0.0 }
 0x257   : > { %3089 = vadd.xlane.f32.xlu1 %v3088_v31  ;;  %v3085_v32 = vsel %vm3024_vm1, %v6892_v28, 0.0 }
 0x258   : > { %3086 = vadd.xlane.f32.xlu0 %v3085_v32  ;;  %v6990_v32 = vld.sshfl [vmem:[%s6386_s20 + $0x10] sm:$0x33 pattern:$0x76325410] }
 0x259   : > { %v6898_v7 = vpop.eup %6251  ;;  %v3115_v34 = vpop.xlane.xlu0 %3114 }
 0x25a   : > { %v6900_v35 = vpop.eup %6253  ;;  %v3137_v12 = vsub.f32 %v6829_v26, %v3115_v34  ;;  %v3094_v15 = vsel %vm3024_vm1, %v6898_v7, 0.0  ;;  %v6911_v26 = vrot.slane %v6395_v5, %v6408_v10 }
 0x25b   : > { %3095 = vadd.xlane.f32.xlu1 %v3094_v15  ;;  %v3091_v16 = vsel %vm3024_vm1, %v6900_v35, 0.0  ;;  %v6993_v15 = vld.sshfl [vmem:[%s6386_s20 + $0x14] sm:$0x33 pattern:$0x76325410] }
 0x25c   : > { %v3145_v21 = vmul.f32 1.442695, %v3137_v12  ;;  %3092 = vadd.xlane.f32.xlu0 %v3091_v16  ;;  %v3118_v39 = vpop.xlane.xlu1 %3117 }
 0x25d   : > { %v3138_v40 = vsub.f32 %v6834_v30, %v3118_v39  ;;  %v3121_v42 = vpop.xlane.xlu0 %3120  ;;  %v7000_v39 = vcombine.high %v6990_v32, %v6990_v32 }
 0x25e   : > { %6255 = vpow2.f32 %v3145_v21  ;;  %v3139_v29 = vsub.f32 %v6837_v33, %v3121_v42  ;;  %v6917_v33 = vcombine.high %v6911_v26, %v6911_v26 }
 0x25f   : > { %v3147_v44 = vmul.f32 1.442695, %v3138_v40 }
 0x260   : > { %v3149_v47 = vmul.f32 1.442695, %v3139_v29  ;;  %v3124_v36 = vpop.xlane.xlu1 %3123  ;;  %6059 = vmatprep.subr.msk.mxu0 %vm367_vm0, %v6917_v33 }
 0x261   : > { %6257 = vpow2.f32 %v3147_v44  ;;  %v3140_v24 = vsub.f32 %v6844_v37, %v3124_v36  ;;  %v3127_v48 = vpop.xlane.xlu0 %3126  ;;  %v6924_v37 = vld.sshfl [vmem:[%s6386_s20 + $0x4] sm:$0x33 pattern:$0x76325410]  ;;  %6060 = vmatpush1.msk.msra.mxu0 %vm367_vm0, %v6911_v26 }
 0x262   : > { %6259 = vpow2.f32 %v3149_v47  ;;  %v3141_v50 = vsub.f32 %v6847_v38, %v3127_v48  ;;  %v7017_v47 = vld.sshfl [vmem:[%s6386_s20 + $0x18] sm:$0x33 pattern:$0x76325410] }
 0x263   : > { %v3151_v30 = vmul.f32 1.442695, %v3140_v24 }
 0x264   : > { %v3153_v46 = vmul.f32 1.442695, %v3141_v50  ;;  %v3130_v45 = vpop.xlane.xlu1 %3129  ;;  %v7033_v50 = vld.sshfl [vmem:[%s6392_s23] sm:$0x33 pattern:$0x76325410] }
 0x265   : > { %6261 = vpow2.f32 %v3151_v30  ;;  %v3142_v5 = vsub.f32 %v6854_v43, %v3130_v45  ;;  %v3133_v10 = vpop.xlane.xlu0 %3132  ;;  %v6932_v43 = vld.sshfl [vmem:[%s6386_s20 + $0x8] sm:$0x33 pattern:$0x76325410] }
 0x266   : > { %6263 = vpow2.f32 %v3153_v46  ;;  %v3143_v51 = vsub.f32 %v6856_v18, %v3133_v10  ;;  %v6936_v18 = vcombine.high %v6924_v37, %v6924_v37  ;;  %v6957_v63 = vcombine.high %v6932_v43, %v6932_v43 }
 0x267   : > { %v3155_v38 = vmul.f32 1.442695, %v3142_v5  ;;  %v7040_v46 = vcombine.high %v7017_v47, %v7017_v47 }
 0x268   : > { %v6929_v53 = vpop.eup %6255  ;;  %v3157_v13 = vmul.f32 1.442695, %v3143_v51  ;;  %v3136_v56 = vpop.xlane.xlu1 %3135  ;;  %6062 = vmatprep.subr.msk.mxu1 %vm367_vm0, %v6936_v18  ;;  %6065 = vmatprep.subr.msk.mxu0 %vm367_vm0, %v6957_v63  ;;  %v7062_v51 = vld.sshfl [vmem:[%s6392_s23 + $0x8] sm:$0x33 pattern:$0x76325410] }
 0x269   : > { %6265 = vpow2.f32 %v3155_v38  ;;  %v3144_v57 = vsub.f32 %v6862_v49, %v3136_v56  ;;  %v3161_v58 = vsel %vm3024_vm1, %v6929_v53, 0.0  ;;  %6063 = vmatpush1.msk.msra.mxu1 %vm367_vm0, %v6924_v37 }
 0x26a   : > { %6267 = vpow2.f32 %v3157_v13  ;;  %3162 = vadd.xlane.f32.xlu0 %v3161_v58  ;;  %6068 = vmatprep.subr.msk.mxu1 %vm367_vm0, %v6961_v25  ;;  %v7072_v13 = vcombine.high %v7033_v50, %v7033_v50 }
 0x26b   : > { %v6947_v17 = vpop.eup %6257  ;;  %v3159_v61 = vmul.f32 1.442695, %v3144_v57 }
 0x26c   : > { %v6951_v23 = vpop.eup %6259  ;;  %v3164_v49 = vsel %vm3024_vm1, %v6947_v17, 0.0 }
 0x26d   : > { %6269 = vpow2.f32 %v3159_v61  ;;  %3165 = vadd.xlane.f32.xlu1 %v3164_v49  ;;  %v3167_v41 = vsel %vm3024_vm1, %v6951_v23, 0.0  ;;  %v7103_v49 = vcombine.high %v7062_v51, %v7062_v51 }
 0x26e   : > { %3168 = vadd.xlane.f32.xlu0 %v3167_v41 }
 0x26f   : > { %v6967_v54 = vpop.eup %6261 }
 0x270   : > { %v6971_v6 = vpop.eup %6263  ;;  %v3170_v1 = vsel %vm3024_vm1, %v6967_v54, 0.0 }
 0x271   : > { %3171 = vadd.xlane.f32.xlu1 %v3170_v1  ;;  %v3173_v3 = vsel %vm3024_vm1, %v6971_v6, 0.0 }
 0x272   : > { %3174 = vadd.xlane.f32.xlu0 %v3173_v3 }
 0x273   : > { %v6977_v60 = vpop.eup %6265 }
 0x274   : > { %v6979_v11 = vpop.eup %6267  ;;  %v3176_v52 = vsel %vm3024_vm1, %v6977_v60, 0.0 }
 0x275   : > { %3177 = vadd.xlane.f32.xlu1 %v3176_v52  ;;  %v3179_v9 = vsel %vm3024_vm1, %v6979_v11, 0.0 }
 0x276   : > { %3180 = vadd.xlane.f32.xlu0 %v3179_v9  ;;  %v7126_v9 = vld.sshfl [vmem:[%s6392_s23 + $0x10] sm:$0x33 pattern:$0x76325410] }
 0x277   : > { %v6985_v62 = vpop.eup %6269 }
 0x278   : > { %v3182_v19 = vsel %vm3024_vm1, %v6985_v62, 0.0 }
 0x279   : > { %3183 = vadd.xlane.f32.xlu1 %v3182_v19 }
 0x2d9   : > { %v3075_v20 = vpop.xlane.xlu0 %3074 }
 0x2da   : > { %6271 = vrcp.f32 %v3075_v20 }
 0x2dc   : > { %v3078_v8 = vpop.xlane.xlu1 %3077 }
 0x2dd   : > { %6273 = vrcp.f32 %v3078_v8 }
 0x2e0   : > { %v3084_v4 = vpop.xlane.xlu1 %3083 }
 0x2e1   : > { %6275 = vrcp.f32 %v3084_v4  ;;  %v3081_v31 = vpop.xlane.xlu0 %3080 }
 0x2e2   : > { %6277 = vrcp.f32 %v3081_v31  ;;  %v7131_v31 = vcombine.high %v7126_v9, %v7126_v9 }
 0x2e4   : > { %v6272_v34 = vpop.eup %6271  ;;  %v3090_v12 = vpop.xlane.xlu1 %3089 }
 0x2e5   : > { %v6996_v16 = vmul.f32 %v6272_v34, %v6872_v2  ;;  %6279 = vrcp.f32 %v3090_v12  ;;  %v3087_v21 = vpop.xlane.xlu0 %3086  ;;  %v7012_v2 = vcombine.high %v6993_v15, %v6993_v15  ;;  %v7134_v34 = vld.sshfl [vmem:[%s6392_s23 + $0x14] sm:$0x33 pattern:$0x76325410] }
 0x2e6   : > { %6281 = vrcp.f32 %v3087_v21  ;;  %v7137_v12 = vld.sshfl [vmem:[%s6392_s23 + $0x18] sm:$0x33 pattern:$0x76325410] }
 0x2e7   : > { %v6274_v40 = vpop.eup %6273  ;;  %6061 = vmatmul.mubr.msk.f32.vlgmr.msra.gmra.mrb[24].mxu0 %vm3210_vm2, %v6996_v16 }
 0x2e8   : > { %v7005_v42 = vmul.f32 %v6274_v40, %v6878_v0  ;;  %v3096_v29 = vpop.xlane.xlu1 %3095  ;;  %6066 = vmatpush1.msk.msra.mxu0 %vm367_vm0, %v6932_v43  ;;  %3456 = vmatprep.mubr.f32.mxu0 %v6344_v55  ;;  %v7022_v0 = vld.sshfl [vmem:[%s6386_s20 + $0x1c] sm:$0x33 pattern:$0x76325410] }
 0x2e9   : > { %6283 = vrcp.f32 %v3096_v29  ;;  %v3093_v44 = vpop.xlane.xlu0 %3092  ;;  %6071 = vmatprep.subr.msk.mxu0 %vm367_vm0, %v7000_v39  ;;  %v7046_v45 = vcombine.high %v7022_v0, %v7022_v0 }
 0x2ea   : > { %6285 = vrcp.f32 %v3093_v44  ;;  %6064 = vmatmul.mubr.msk.f32.vlgmr.msra.gmra.mrb[24].mxu1 %vm3210_vm2, %v7005_v42 }
 0x2eb   : > { %v6276_v36 = vpop.eup %6275  ;;  %6069 = vmatpush1.msk.msra.mxu1 %vm367_vm0, %v6945_v59  ;;  %3543 = vmatprep.mubr.f32.mxu1 %v6344_v55 }
 0x2ec   : > { %v6278_v24 = vpop.eup %6277  ;;  %v7028_v48 = vmul.f32 %v6276_v36, %v6882_v22  ;;  %6074 = vmatprep.subr.msk.mxu1 %vm367_vm0, %v7012_v2  ;;  %v7049_v22 = vld.sshfl [vmem:[%s6392_s23 + $0x4] sm:$0x33 pattern:$0x76325410]  ;;  %v7149_v36 = vcombine.high %v7134_v34, %v7134_v34 }
 0x2ed   : > { %v7036_v30 = vmul.f32 %v6278_v24, %v6884_v14  ;;  %v7152_v24 = vld.sshfl [vmem:[%s6392_s23 + $0x1c] sm:$0x33 pattern:$0x76325410] }
 0x2ee   : > { %6070 = vmatmul.mubr.msk.f32.vlgmr.msra.gmra.mrb[26].mxu1 %vm3210_vm2, %v7028_v48 }
 0x2ef   : > { %v6280_v5 = vpop.eup %6279  ;;  %6067 = vmatmul.mubr.msk.f32.vlgmr.msra.gmra.mrb[26].mxu0 %vm3210_vm2, %v7036_v30  ;;  %6075 = vmatpush1.msk.msra.mxu1 %vm367_vm0, %v6993_v15 }
 0x2f0   : > { %v6282_v14 = vpop.eup %6281  ;;  %v7056_v10 = vmul.f32 %v6280_v5, %v6890_v27  ;;  %6072 = vmatpush1.msk.msra.mxu0 %vm367_vm0, %v6990_v32  ;;  %3630 = vmatprep.mubr.f32.mxu0 %v6344_v55  ;;  %v7080_v27 = vcombine.high %v7049_v22, %v7049_v22 }
 0x2f1   : > { %v7065_v38 = vmul.f32 %v6282_v14, %v6892_v28  ;;  %3717 = vmatprep.mubr.f32.mxu1 %v6344_v55  ;;  %6077 = vmatprep.subr.msk.mxu0 %vm367_vm0, %v7040_v46  ;;  %v7083_v28 = vld.sshfl [vmem:[%s6392_s23 + $0xc] sm:$0x33 pattern:$0x76325410] }
 0x2f2   : > { %6076 = vmatmul.mubr.msk.f32.vlgmr.msra.gmra.mrb[28].mxu1 %vm3210_vm2, %v7056_v10  ;;  %6080 = vmatprep.subr.msk.mxu1 %vm367_vm0, %v7046_v45 }
 0x2f3   : > { %v6284_v56 = vpop.eup %6283  ;;  %6073 = vmatmul.mubr.msk.f32.vlgmr.msra.gmra.mrb[28].mxu0 %vm3210_vm2, %v7065_v38  ;;  %6081 = vmatpush1.msk.msra.mxu1 %vm367_vm0, %v7022_v0 }
 0x2f4   : > { %v6286_v57 = vpop.eup %6285  ;;  %v7090_v58 = vmul.f32 %v6284_v56, %v6898_v7  ;;  %6078 = vmatpush1.msk.msra.mxu0 %vm367_vm0, %v7017_v47  ;;  %3804 = vmatprep.mubr.f32.mxu0 %v6344_v55  ;;  %v7111_v7 = vcombine.high %v7083_v28, %v7083_v28 }
 0x2f5   : > { %v7096_v61 = vmul.f32 %v6286_v57, %v6900_v35  ;;  %3891 = vmatprep.mubr.f32.mxu1 %v6344_v55  ;;  %6083 = vmatprep.subr.msk.mxu0 %vm367_vm0, %v7072_v13  ;;  %v7172_v57 = vcombine.high %v7152_v24, %v7152_v24 }
 0x2f6   : > { %6082 = vmatmul.mubr.msk.f32.vlgmr.msra.gmra.mrb[30].mxu1 %vm3210_vm2, %v7090_v58  ;;  %6086 = vmatprep.subr.msk.mxu1 %vm367_vm0, %v7080_v27 }
 0x2f7   : > { %6079 = vmatmul.mubr.msk.f32.vlgmr.msra.gmra.mrb[30].mxu0 %vm3210_vm2, %v7096_v61  ;;  %v3163_v35 = vpop.xlane.xlu0 %3162  ;;  %6087 = vmatpush1.msk.msra.mxu1 %vm367_vm0, %v7049_v22 }
 0x2f8   : > { %6287 = vrcp.f32 %v3163_v35  ;;  %6084 = vmatpush1.msk.msra.mxu0 %vm367_vm0, %v7033_v50  ;;  %3978 = vmatprep.mubr.f32.mxu0 %v6344_v55 }
 0x2f9   : > { %6089 = vmatprep.subr.msk.mxu0 %vm367_vm0, %v7103_v49  ;;  %4065 = vmatprep.mubr.f32.mxu1 %v6344_v55 }
 0x2fa   : > { %v3166_v41 = vpop.xlane.xlu1 %3165  ;;  %6092 = vmatprep.subr.msk.mxu1 %vm367_vm0, %v7111_v7 }
 0x2fb   : > { %6289 = vrcp.f32 %v3166_v41  ;;  %v3169_v1 = vpop.xlane.xlu0 %3168 }
 0x2fc   : > { %6291 = vrcp.f32 %v3169_v1 }
 0x2fe   : > { %v3172_v3 = vpop.xlane.xlu1 %3171 }
 0x2ff   : > { %6293 = vrcp.f32 %v3172_v3  ;;  %v3175_v52 = vpop.xlane.xlu0 %3174 }
 0x300   : > { %6295 = vrcp.f32 %v3175_v52 }
 0x302   : > { %v6288_v19 = vpop.eup %6287  ;;  %v3178_v20 = vpop.xlane.xlu1 %3177 }
 0x303   : > { %v3193_v8 = vmul.f32 %v6288_v19, %v6929_v53  ;;  %6297 = vrcp.f32 %v3178_v20  ;;  %v3181_v4 = vpop.xlane.xlu0 %3180 }
 0x304   : > { %6299 = vrcp.f32 %v3181_v4 }
 0x305   : > { %v6290_v21 = vpop.eup %6289  ;;  %6085 = vmatmul.mubr.msk.f32.vlgmr.msra.gmra.mrb[32].mxu0 %vm3210_vm2, %v3193_v8 }
 0x306   : > { %v6292_v40 = vpop.eup %6291  ;;  %v3194_v29 = vmul.f32 %v6290_v21, %v6947_v17  ;;  %v3184_v44 = vpop.xlane.xlu1 %3183  ;;  %6090 = vmatpush1.msk.msra.mxu0 %vm367_vm0, %v7062_v51  ;;  %4152 = vmatprep.mubr.f32.mxu0 %v6344_v55  ;;  %v7157_v17 = vcombine.high %v7137_v12, %v7137_v12 }
 0x307   : > { %v3195_v53 = vmul.f32 %v6292_v40, %v6951_v23  ;;  %6301 = vrcp.f32 %v3184_v44  ;;  %6095 = vmatprep.subr.msk.mxu0 %vm367_vm0, %v7131_v31 }
 0x308   : > { %6088 = vmatmul.mubr.msk.f32.vlgmr.msra.gmra.mrb[32].mxu1 %vm3210_vm2, %v3194_v29 }
 0x309   : > { %v6294_v5 = vpop.eup %6293  ;;  %6091 = vmatmul.mubr.msk.f32.vlgmr.msra.gmra.mrb[34].mxu0 %vm3210_vm2, %v3195_v53  ;;  %6093 = vmatpush1.msk.msra.mxu1 %vm367_vm0, %v7083_v28 }
 0x30a   : > { %v6296_v23 = vpop.eup %6295  ;;  %v3196_v14 = vmul.f32 %v6294_v5, %v6967_v54  ;;  %4239 = vmatprep.mubr.f32.mxu1 %v6344_v55  ;;  %6096 = vmatpush1.msk.msra.mxu0 %vm367_vm0, %v7126_v9 }
 0x30b   : > { %v3197_v56 = vmul.f32 %v6296_v23, %v6971_v6  ;;  %4326 = vmatprep.mubr.f32.mxu0 %v6344_v55  ;;  %6098 = vmatprep.subr.msk.mxu1 %vm367_vm0, %v7149_v36 }
 0x30c   : > { %6094 = vmatmul.mubr.msk.f32.vlgmr.msra.gmra.mrb[34].mxu1 %vm3210_vm2, %v3196_v14  ;;  %6101 = vmatprep.subr.msk.mxu0 %vm367_vm0, %v7157_v17 }
 0x30d   : > { %v6298_v54 = vpop.eup %6297  ;;  %6097 = vmatmul.mubr.msk.f32.vlgmr.msra.gmra.mrb[36].mxu0 %vm3210_vm2, %v3197_v56  ;;  %6099 = vmatpush1.msk.msra.mxu1 %vm367_vm0, %v7134_v34 }
 0x30e   : > { %v6300_v6 = vpop.eup %6299  ;;  %v3198_v35 = vmul.f32 %v6298_v54, %v6977_v60  ;;  %4413 = vmatprep.mubr.f32.mxu1 %v6344_v55  ;;  %6102 = vmatpush1.msk.msra.mxu0 %vm367_vm0, %v7137_v12 }
 0x30f   : > { %v3199_v41 = vmul.f32 %v6300_v6, %v6979_v11  ;;  %4500 = vmatprep.mubr.f32.mxu0 %v6344_v55  ;;  %6104 = vmatprep.subr.msk.mxu1 %vm367_vm0, %v7172_v57 }
 0x310   : > { %6100 = vmatmul.mubr.msk.f32.vlgmr.msra.gmra.mrb[36].mxu1 %vm3210_vm2, %v3198_v35  ;;  %6115 = vmatprep.subr.msk.mxu0 %vm367_vm0, %v6917_v33 }
 0x311   : > { %v6302_v1 = vpop.eup %6301  ;;  %6103 = vmatmul.mubr.msk.f32.vlgmr.msra.gmra.mrb[38].mxu0 %vm3210_vm2, %v3199_v41  ;;  %6105 = vmatpush1.msk.msra.mxu1 %vm367_vm0, %v7152_v24 }
 0x312   : > { %v3200_v60 = vmul.f32 %v6302_v1, %v6985_v62  ;;  %4587 = vmatprep.mubr.f32.mxu1 %v6344_v55  ;;  %6116 = vmatpush1.msk.msra.mxu0 %vm367_vm0, %v6911_v26 }
 0x313   : > { %4770 = vmatprep.mubr.f32.mxu0 %v6344_v55  ;;  %6118 = vmatprep.subr.msk.mxu1 %vm367_vm0, %v6936_v18 }
 0x314   : > { %6106 = vmatmul.mubr.msk.f32.vlgmr.msra.gmra.mrb[38].mxu1 %vm3210_vm2, %v3200_v60  ;;  %6121 = vmatprep.subr.msk.mxu0 %vm367_vm0, %v6957_v63 }
 0x315   : > { %6117 = vmatmul.mubr.msk.f32.vlgmr.msra.gmra.mrb[40].mxu0 %vm3210_vm2, %v3193_v8  ;;  %6119 = vmatpush1.msk.msra.mxu1 %vm367_vm0, %v6924_v37 }
 0x316   : > { %4841 = vmatprep.mubr.f32.mxu1 %v6344_v55  ;;  %6122 = vmatpush1.msk.msra.mxu0 %vm367_vm0, %v6932_v43 }
 0x317   : > { %4912 = vmatprep.mubr.f32.mxu0 %v6344_v55  ;;  %6124 = vmatprep.subr.msk.mxu1 %vm367_vm0, %v6961_v25 }
 0x318   : > { %6120 = vmatmul.mubr.msk.f32.vlgmr.msra.gmra.mrb[40].mxu1 %vm3210_vm2, %v3194_v29  ;;  %6127 = vmatprep.subr.msk.mxu0 %vm367_vm0, %v7000_v39 }
 0x319   : > { %6123 = vmatmul.mubr.msk.f32.vlgmr.msra.gmra.mrb[42].mxu0 %vm3210_vm2, %v3195_v53  ;;  %6125 = vmatpush1.msk.msra.mxu1 %vm367_vm0, %v6945_v59 }
 0x31a   : > { %4983 = vmatprep.mubr.f32.mxu1 %v6344_v55  ;;  %6128 = vmatpush1.msk.msra.mxu0 %vm367_vm0, %v6990_v32 }
 0x31b   : > { %5054 = vmatprep.mubr.f32.mxu0 %v6344_v55  ;;  %6130 = vmatprep.subr.msk.mxu1 %vm367_vm0, %v7012_v2 }
 0x31c   : > { %6126 = vmatmul.mubr.msk.f32.vlgmr.msra.gmra.mrb[42].mxu1 %vm3210_vm2, %v3196_v14  ;;  %6133 = vmatprep.subr.msk.mxu0 %vm367_vm0, %v7040_v46 }
 0x31d   : > { %6129 = vmatmul.mubr.msk.f32.vlgmr.msra.gmra.mrb[44].mxu0 %vm3210_vm2, %v3197_v56  ;;  %6131 = vmatpush1.msk.msra.mxu1 %vm367_vm0, %v6993_v15 }
 0x31e   : > { %5125 = vmatprep.mubr.f32.mxu1 %v6344_v55  ;;  %6134 = vmatpush1.msk.msra.mxu0 %vm367_vm0, %v7017_v47 }
 0x31f   : > { %5196 = vmatprep.mubr.f32.mxu0 %v6344_v55  ;;  %6136 = vmatprep.subr.msk.mxu1 %vm367_vm0, %v7046_v45 }
 0x320   : > { %6132 = vmatmul.mubr.msk.f32.vlgmr.msra.gmra.mrb[44].mxu1 %vm3210_vm2, %v3198_v35  ;;  %6139 = vmatprep.subr.msk.mxu0 %vm367_vm0, %v7072_v13 }
 0x321   : > { %6135 = vmatmul.mubr.msk.f32.vlgmr.msra.gmra.mrb[46].mxu0 %vm3210_vm2, %v3199_v41  ;;  %6137 = vmatpush1.msk.msra.mxu1 %vm367_vm0, %v7022_v0 }
 0x322   : > { %5267 = vmatprep.mubr.f32.mxu1 %v6344_v55  ;;  %6140 = vmatpush1.msk.msra.mxu0 %vm367_vm0, %v7033_v50 }
 0x323   : > { %5338 = vmatprep.mubr.f32.mxu0 %v6344_v55  ;;  %6142 = vmatprep.subr.msk.mxu1 %vm367_vm0, %v7080_v27 }
 0x324   : > { %6138 = vmatmul.mubr.msk.f32.vlgmr.msra.gmra.mrb[46].mxu1 %vm3210_vm2, %v3200_v60  ;;  %6145 = vmatprep.subr.msk.mxu0 %vm367_vm0, %v7103_v49 }
 0x325   : > { %6141 = vmatmul.mubr.msk.f32.vlgmr.msra.gmra.mrb[40].mxu0 %vm3210_vm2, %v6996_v16  ;;  %6143 = vmatpush1.msk.msra.mxu1 %vm367_vm0, %v7049_v22 }
 0x326   : > { %5409 = vmatprep.mubr.f32.mxu1 %v6344_v55  ;;  %6146 = vmatpush1.msk.msra.mxu0 %vm367_vm0, %v7062_v51 }
 0x327   : > { %5480 = vmatprep.mubr.f32.mxu0 %v6344_v55  ;;  %6148 = vmatprep.subr.msk.mxu1 %vm367_vm0, %v7111_v7 }
 0x328   : > { %6144 = vmatmul.mubr.msk.f32.vlgmr.msra.gmra.mrb[40].mxu1 %vm3210_vm2, %v7005_v42  ;;  %6151 = vmatprep.subr.msk.mxu0 %vm367_vm0, %v7131_v31 }
 0x329   : > { %6147 = vmatmul.mubr.msk.f32.vlgmr.msra.gmra.mrb[42].mxu0 %vm3210_vm2, %v7036_v30  ;;  %6149 = vmatpush1.msk.msra.mxu1 %vm367_vm0, %v7083_v28 }
 0x32a   : > { %5551 = vmatprep.mubr.f32.mxu1 %v6344_v55  ;;  %6152 = vmatpush1.msk.msra.mxu0 %vm367_vm0, %v7126_v9 }
 0x32b   : > { %5622 = vmatprep.mubr.f32.mxu0 %v6344_v55  ;;  %6154 = vmatprep.subr.msk.mxu1 %vm367_vm0, %v7149_v36 }
 0x32c   : > { %6150 = vmatmul.mubr.msk.f32.vlgmr.msra.gmra.mrb[42].mxu1 %vm3210_vm2, %v7028_v48  ;;  %6157 = vmatprep.subr.msk.mxu0 %vm367_vm0, %v7157_v17 }
 0x32d   : > { %6153 = vmatmul.mubr.msk.f32.vlgmr.msra.gmra.mrb[44].mxu0 %vm3210_vm2, %v7065_v38  ;;  %6155 = vmatpush1.msk.msra.mxu1 %vm367_vm0, %v7134_v34 }
 0x32e   : > { %5693 = vmatprep.mubr.f32.mxu1 %v6344_v55  ;;  %6158 = vmatpush1.msk.msra.mxu0 %vm367_vm0, %v7137_v12 }
 0x32f   : > { %5764 = vmatprep.mubr.f32.mxu0 %v6344_v55  ;;  %6160 = vmatprep.subr.msk.mxu1 %vm367_vm0, %v7172_v57 }
 0x330   : > { %6156 = vmatmul.mubr.msk.f32.vlgmr.msra.gmra.mrb[44].mxu1 %vm3210_vm2, %v7056_v10 }
 0x331   : > { %6159 = vmatmul.mubr.msk.f32.vlgmr.msra.gmra.mrb[46].mxu0 %vm3210_vm2, %v7096_v61  ;;  %6161 = vmatpush1.msk.msra.mxu1 %vm367_vm0, %v7152_v24 }
 0x332   : > { %5835 = vmatprep.mubr.f32.mxu1 %v6344_v55 }
 0x334   : > { %6162 = vmatmul.mubr.msk.f32.vlgmr.msra.gmra.mrb[46].mxu1 %vm3210_vm2, %v7090_v58 }
 0x3ba   : > { %v3284_v26 = vpop.f32.mrb[24].mxu0 }
 0x3bb   : > { %v3286_v33 = vpop.f32.mrb[25].mxu0 }
 0x3bd   : > { %v3371_v37 = vpop.f32.mrb[24].mxu1 }
 0x3be   : > { %v3373_v43 = vpop.f32.mrb[25].mxu1 }
 0x3c1   : > { %v3545_v18 = vpop.f32.mrb[26].mxu1 }
 0x3c2   : > { %v3458_v59 = vpop.f32.mrb[26].mxu0  ;;  %v3547_v63 = vpop.f32.mrb[27].mxu1 }
 0x3c3   : > { %v3460_v25 = vpop.f32.mrb[27].mxu0 }
 0x3c5   : > { %v3719_v11 = vpop.f32.mrb[28].mxu1 }
 0x3c6   : > { %v3632_v62 = vpop.f32.mrb[28].mxu0  ;;  %v3721_v32 = vpop.f32.mrb[29].mxu1 }
 0x3c7   : > { %v3634_v15 = vpop.f32.mrb[29].mxu0 }
 0x3c9   : > { %v3893_v16 = vpop.f32.mrb[30].mxu1 }
 0x3ca   : > { %v3806_v39 = vpop.f32.mrb[30].mxu0  ;;  %v3895_v42 = vpop.f32.mrb[31].mxu1 }
 0x3cb   : > { %v3808_v55 = vpop.f32.mrb[31].mxu0 }
 0x3d8   : > { %v3980_v2 = vpop.f32.mrb[32].mxu0 }
 0x3d9   : > { %v4594_v47 = vsub.f32 %v3284_v26, %v3980_v2  ;;  %v3982_v0 = vpop.f32.mrb[33].mxu0 }
 0x3da   : > { %v4595_v48 = vsub.f32 %v3286_v33, %v3982_v0 }
 0x3db   : > { %v4067_v50 = vpop.f32.mrb[32].mxu1 }
 0x3dc   : > { %v4626_v30 = vcombine.low %v4594_v47, %v4595_v48  ;;  %v4596_v46 = vsub.f32 %v3371_v37, %v4067_v50  ;;  %v4154_v45 = vpop.f32.mrb[34].mxu0  ;;  %v4069_v22 = vpop.f32.mrb[33].mxu1 }
 0x3dd   : > { %v4598_v10 = vsub.f32 %v3458_v59, %v4154_v45  ;;  %v4597_v51 = vsub.f32 %v3373_v43, %v4069_v22  ;;  %v4156_v38 = vpop.f32.mrb[35].mxu0 }
 0x3de   : > { %6107 = vst.sshfl [vmem:[%s7303_s18] sm:$0x33 pattern:$0x76325410] %v4626_v30  ;;  %v4599_v13 = vsub.f32 %v3460_v25, %v4156_v38 }
 0x3df   : > { %v4634_v27 = vcombine.low %v4596_v46, %v4597_v51  ;;  %v4241_v28 = vpop.f32.mrb[34].mxu1 }
 0x3e0   : > { %v4642_v58 = vcombine.low %v4598_v10, %v4599_v13  ;;  %v4600_v61 = vsub.f32 %v3545_v18, %v4241_v28  ;;  %v4328_v49 = vpop.f32.mrb[36].mxu0  ;;  %v4243_v7 = vpop.f32.mrb[35].mxu1 }
 0x3e1   : > { %6108 = vst.sshfl [vmem:[%s7303_s18 + $0x4] sm:$0x33 pattern:$0x76325410] %v4634_v27  ;;  %v4602_v3 = vsub.f32 %v3632_v62, %v4328_v49  ;;  %v4601_v52 = vsub.f32 %v3547_v63, %v4243_v7  ;;  %v4330_v9 = vpop.f32.mrb[37].mxu0 }
 0x3e2   : > { %6109 = vst.sshfl [vmem:[%s7303_s18 + $0x8] sm:$0x33 pattern:$0x76325410] %v4642_v58  ;;  %v4603_v19 = vsub.f32 %v3634_v15, %v4330_v9 }
 0x3e3   : > { %v4650_v20 = vcombine.low %v4600_v61, %v4601_v52  ;;  %v4415_v8 = vpop.f32.mrb[36].mxu1 }
 0x3e4   : > { %v4658_v4 = vcombine.low %v4602_v3, %v4603_v19  ;;  %v4604_v31 = vsub.f32 %v3719_v11, %v4415_v8  ;;  %v4502_v34 = vpop.f32.mrb[38].mxu0  ;;  %v4417_v12 = vpop.f32.mrb[37].mxu1 }
 0x3e5   : > { %6110 = vst.sshfl [vmem:[%s7303_s18 + $0xc] sm:$0x33 pattern:$0x76325410] %v4650_v20  ;;  %v4606_v21 = vsub.f32 %v3806_v39, %v4502_v34  ;;  %v4605_v40 = vsub.f32 %v3721_v32, %v4417_v12  ;;  %v4504_v29 = vpop.f32.mrb[39].mxu0 }
 0x3e6   : > { %6111 = vst.sshfl [vmem:[%s7303_s18 + $0x10] sm:$0x33 pattern:$0x76325410] %v4658_v4  ;;  %v4607_v44 = vsub.f32 %v3808_v55, %v4504_v29 }
 0x3e7   : > { %v4666_v53 = vcombine.low %v4604_v31, %v4605_v40  ;;  %v4589_v36 = vpop.f32.mrb[38].mxu1 }
 0x3e8   : > { %v4674_v24 = vcombine.low %v4606_v21, %v4607_v44  ;;  %v4608_v17 = vsub.f32 %v3893_v16, %v4589_v36  ;;  %v4591_v5 = vpop.f32.mrb[39].mxu1 }
 0x3e9   : > { %6112 = vst.sshfl [vmem:[%s7303_s18 + $0x14] sm:$0x33 pattern:$0x76325410] %v4666_v53  ;;  %v4609_v23 = vsub.f32 %v3895_v42, %v4591_v5 }
 0x3ea   : > { %6113 = vst.sshfl [vmem:[%s7303_s18 + $0x18] sm:$0x33 pattern:$0x76325410] %v4674_v24 }
 0x3eb   : > { %v4682_v14 = vcombine.low %v4608_v17, %v4609_v23 }
 0x3ed   : > { %6114 = vst.sshfl [vmem:[%s7303_s18 + $0x1c] sm:$0x33 pattern:$0x76325410] %v4682_v14 }
 0x3f8   : > { %v5340_v56 = vpop.f32.mrb[40].mxu0 }
 0x3f9   : > { %v5342_v57 = vpop.f32.mrb[41].mxu0 }
 0x3fa   : > { %v5858_v54 = vcombine.low %v5340_v56, %v5342_v57 }
 0x3fb   : > { %v5411_v6 = vpop.f32.mrb[40].mxu1 }
 0x3fc   : > { %6163 = vst.sshfl [vmem:[%s7317_s21] sm:$0x33 pattern:$0x76325410] %v5858_v54  ;;  %v5482_v35 = vpop.f32.mrb[42].mxu0  ;;  %v5413_v41 = vpop.f32.mrb[41].mxu1 }
 0x3fd   : > { %v5866_v1 = vcombine.low %v5411_v6, %v5413_v41  ;;  %v5484_v60 = vpop.f32.mrb[43].mxu0 }
 0x3fe   : > { %v5874_v26 = vcombine.low %v5482_v35, %v5484_v60 }
 0x3ff   : > { %6164 = vst.sshfl [vmem:[%s7317_s21 + $0x4] sm:$0x33 pattern:$0x76325410] %v5866_v1  ;;  %v5553_v33 = vpop.f32.mrb[42].mxu1 }
 0x400   : > { %6165 = vst.sshfl [vmem:[%s7317_s21 + $0x8] sm:$0x33 pattern:$0x76325410] %v5874_v26  ;;  %v5624_v37 = vpop.f32.mrb[44].mxu0  ;;  %v5555_v43 = vpop.f32.mrb[43].mxu1 }
 0x401   : > { %v5882_v18 = vcombine.low %v5553_v33, %v5555_v43  ;;  %v5626_v59 = vpop.f32.mrb[45].mxu0 }
 0x402   : > { %v5890_v63 = vcombine.low %v5624_v37, %v5626_v59 }
 0x403   : > { %6166 = vst.sshfl [vmem:[%s7317_s21 + $0xc] sm:$0x33 pattern:$0x76325410] %v5882_v18  ;;  %v5695_v25 = vpop.f32.mrb[44].mxu1 }
 0x404   : > { %6167 = vst.sshfl [vmem:[%s7317_s21 + $0x10] sm:$0x33 pattern:$0x76325410] %v5890_v63  ;;  %v5766_v11 = vpop.f32.mrb[46].mxu0  ;;  %v5697_v62 = vpop.f32.mrb[45].mxu1 }
 0x405   : > { %v5898_v32 = vcombine.low %v5695_v25, %v5697_v62  ;;  %v5768_v15 = vpop.f32.mrb[47].mxu0 }
 0x406   : > { %v5906_v16 = vcombine.low %v5766_v11, %v5768_v15 }
 0x407   : > { %6168 = vst.sshfl [vmem:[%s7317_s21 + $0x14] sm:$0x33 pattern:$0x76325410] %v5898_v32  ;;  %v5837_v39 = vpop.f32.mrb[46].mxu1 }
 0x408   : > { %6169 = vst.sshfl [vmem:[%s7317_s21 + $0x18] sm:$0x33 pattern:$0x76325410] %v5906_v16  ;;  %v5839_v42 = vpop.f32.mrb[47].mxu1 }
 0x409   : > { %v5914_v55 = vcombine.low %v5837_v39, %v5839_v42 }
 0x40b   : > { %6170 = vst.sshfl [vmem:[%s7317_s21 + $0x1c] sm:$0x33 pattern:$0x76325410] %v5914_v55 }
 0x40c PF: > { %s15_s15 = sadd.s32 1, %s6339_s15  }
 0x40d   : > { %p12_p4 = scmp.ge.s32.totalorder %s15_s15, 4  }
 0x40f   :  { %14 = sbr.rel (!%p12_p4) target bundleno = 1 (0x1), region = 77 }

// kernel: tile.179
= control target key start
LH: loop header
LB: loop body
LE: loop exit
PB: predicated region body
PF: predicated region fallthrough
CT: control target
= control target key end

     0   :  { %vm2562_vm0 = vcmask 1047556   ;;  %s7670_s10 = smov 16   ;;  %vm2564_vm1 = vcmask 130048   ;;  %vm3525_vm2 = vcmask 261248   ;;  %s11073_s0 = inlined_call_operand.vmem [shape: f32[2,2,16,16,16], index: 0, kind: input, shape index: {}]   ;;  %s11074_s1 = inlined_call_operand.vmem [shape: f32[2,32,16,16], index: 1, kind: output, shape index: {}]  }
   0x1   :  { %v7407_v0 = vld [vmem:[%s11073_s0 + $0xe] sm:$0x3]  ;;  %v7408_v1 = vld [vmem:[%s11073_s0 + $0xc] sm:$0x3]  ;;  %v7409_v2 = vld [vmem:[%s11073_s0 + $0xa] sm:$0x3] }
   0x2   :  { %2528 = vst [vmem:[#allocation1 + $0x38] sm:$0x3] %v7407_v0  ;;  %2533 = vst [vmem:[#allocation1 + $0x30] sm:$0x3] %v7408_v1  ;;  %v7410_v3 = vld [vmem:[%s11073_s0 + $0x8] sm:$0x3] }
   0x3   :  { %2538 = vst [vmem:[#allocation1 + $0x28] sm:$0x3] %v7409_v2  ;;  %v7411_v4 = vld [vmem:[%s11073_s0 + $0x6] sm:$0x3]  ;;  %v7412_v5 = vld [vmem:[%s11073_s0 + $0x4] sm:$0x3] }
   0x4   :  { %2543 = vst [vmem:[#allocation1 + $0x20] sm:$0x3] %v7410_v3  ;;  %2548 = vst [vmem:[#allocation1 + $0x18] sm:$0x3] %v7411_v4  ;;  %v7413_v6 = vld [vmem:[%s11073_s0 + $0x2] sm:$0x3] }
   0x5   :  { %2553 = vst [vmem:[#allocation1 + $0x10] sm:$0x3] %v7412_v5  ;;  %v2558_v7 = vld [vmem:[%s11073_s0] sm:$0x3]  ;;  %2557 = vst [vmem:[#allocation1 + $0x8] sm:$0x3] %v7413_v6 }
   0x6   :  { %2559 = vst [vmem:[#allocation1] sm:$0x3] %v2558_v7  ;;  %v7391_v8 = vld [vmem:[%s11073_s0 + $0x2e] sm:$0x3]  ;;  %v7392_v9 = vld [vmem:[%s11073_s0 + $0x2c] sm:$0x3] }
   0x7   :  { %v7393_v10 = vld [vmem:[%s11073_s0 + $0x2a] sm:$0x3]  ;;  %2448 = vst [vmem:[#allocation1 + $0xb8] sm:$0x3] %v7391_v8  ;;  %2453 = vst [vmem:[#allocation1 + $0xb0] sm:$0x3] %v7392_v9 }
   0x8   :  { %2458 = vst [vmem:[#allocation1 + $0xa8] sm:$0x3] %v7393_v10  ;;  %v7394_v11 = vld [vmem:[%s11073_s0 + $0x28] sm:$0x3]  ;;  %v7395_v12 = vld [vmem:[%s11073_s0 + $0x26] sm:$0x3] }
   0x9   :  { %v7396_v13 = vld [vmem:[%s11073_s0 + $0x24] sm:$0x3]  ;;  %2463 = vst [vmem:[#allocation1 + $0xa0] sm:$0x3] %v7394_v11  ;;  %2468 = vst [vmem:[#allocation1 + $0x98] sm:$0x3] %v7395_v12 }
   0xa   :  { %2473 = vst [vmem:[#allocation1 + $0x90] sm:$0x3] %v7396_v13  ;;  %v7397_v14 = vld [vmem:[%s11073_s0 + $0x22] sm:$0x3]  ;;  %v7398_v15 = vld [vmem:[%s11073_s0 + $0x20] sm:$0x3] }
   0xb   :  { %v7399_v16 = vld [vmem:[%s11073_s0 + $0x1e] sm:$0x3]  ;;  %2478 = vst [vmem:[#allocation1 + $0x88] sm:$0x3] %v7397_v14  ;;  %2483 = vst [vmem:[#allocation1 + $0x80] sm:$0x3] %v7398_v15 }
   0xc   :  { %2488 = vst [vmem:[#allocation1 + $0x78] sm:$0x3] %v7399_v16  ;;  %v7400_v17 = vld [vmem:[%s11073_s0 + $0x1c] sm:$0x3]  ;;  %v7401_v18 = vld [vmem:[%s11073_s0 + $0x1a] sm:$0x3] }
   0xd   :  { %v7402_v19 = vld [vmem:[%s11073_s0 + $0x18] sm:$0x3]  ;;  %2493 = vst [vmem:[#allocation1 + $0x70] sm:$0x3] %v7400_v17  ;;  %2498 = vst [vmem:[#allocation1 + $0x68] sm:$0x3] %v7401_v18 }
   0xe   :  { %2503 = vst [vmem:[#allocation1 + $0x60] sm:$0x3] %v7402_v19  ;;  %v7403_v20 = vld [vmem:[%s11073_s0 + $0x16] sm:$0x3]  ;;  %v7404_v21 = vld [vmem:[%s11073_s0 + $0x14] sm:$0x3] }
   0xf   :  { %v7405_v22 = vld [vmem:[%s11073_s0 + $0x12] sm:$0x3]  ;;  %2508 = vst [vmem:[#allocation1 + $0x58] sm:$0x3] %v7403_v20  ;;  %2513 = vst [vmem:[#allocation1 + $0x50] sm:$0x3] %v7404_v21 }
  0x10   :  { %2518 = vst [vmem:[#allocation1 + $0x48] sm:$0x3] %v7405_v22  ;;  %v7406_v23 = vld [vmem:[%s11073_s0 + $0x10] sm:$0x3]  ;;  %v7383_v24 = vld [vmem:[%s11073_s0 + $0x3e] sm:$0x3] }
  0x11   :  { %v7384_v25 = vld [vmem:[%s11073_s0 + $0x3c] sm:$0x3]  ;;  %v3520_v26 = vld [vmem:[#allocation1 + $0x1] ss:$8 sm:$0xf0]  }
  0x12   :  { %2523 = vst [vmem:[#allocation1 + $0x40] sm:$0x3] %v7406_v23  ;;  %2408 = vst [vmem:[#allocation1 + $0xf8] sm:$0x3] %v7383_v24  ;;  %v7385_v27 = vld [vmem:[%s11073_s0 + $0x3a] sm:$0x3] }
  0x13   :  { %2413 = vst [vmem:[#allocation1 + $0xf0] sm:$0x3] %v7384_v25  ;;  %v3518_v28 = vld [vmem:[#allocation1 + $0x1] ss:$8 sm:$0xf]  }
  0x14   :  { %2418 = vst [vmem:[#allocation1 + $0xe8] sm:$0x3] %v7385_v27  ;;  %v7386_v29 = vld [vmem:[%s11073_s0 + $0x38] sm:$0x3]  ;;  %v3522_v30 = vsel %vm2562_vm0, %v3520_v26, %v3518_v28  ;;  %v7387_v31 = vld [vmem:[%s11073_s0 + $0x36] sm:$0x3] }
  0x15   :  { %2423 = vst [vmem:[#allocation1 + $0xe0] sm:$0x3] %v7386_v29  ;;  %v7388_v32 = vld [vmem:[%s11073_s0 + $0x34] sm:$0x3]  ;;  %v7389_v33 = vld [vmem:[%s11073_s0 + $0x32] sm:$0x3]  ;;  %3523 = vrot.lane.b32.xlu0 %v3522_v30, %s7670_s10 }
  0x16   :  { %v3553_v34 = vld [vmem:[#allocation1 + $0x81] ss:$8 sm:$0xf0]   ;;  %2428 = vst [vmem:[#allocation1 + $0xd8] sm:$0x3] %v7387_v31 }
  0x17   :  { %2433 = vst [vmem:[#allocation1 + $0xd0] sm:$0x3] %v7388_v32  ;;  %2438 = vst [vmem:[#allocation1 + $0xc8] sm:$0x3] %v7389_v33  ;;  %v7390_v35 = vld [vmem:[%s11073_s0 + $0x30] sm:$0x3] }
  0x18   :  { %v3551_v36 = vld [vmem:[#allocation1 + $0x81] ss:$8 sm:$0xf]   ;;  %2443 = vst [vmem:[#allocation1 + $0xc0] sm:$0x3] %v7390_v35 }
  0x19   :  { %v7375_v37 = vld [vmem:[%s11073_s0 + $0x4e] sm:$0x3]  ;;  %v3555_v38 = vsel %vm2562_vm0, %v3553_v34, %v3551_v36  ;;  %v3536_v39 = vld [vmem:[#allocation1 + $0x41] ss:$8 sm:$0xf0]  }
  0x1a   :  { %2368 = vst [vmem:[#allocation1 + $0x138] sm:$0x3] %v7375_v37  ;;  %v7376_v40 = vld [vmem:[%s11073_s0 + $0x4c] sm:$0x3]  ;;  %3556 = vrot.lane.b32.xlu1 %v3555_v38, %s7670_s10  ;;  %v7377_v41 = vld [vmem:[%s11073_s0 + $0x4a] sm:$0x3] }
  0x1b   :  { %2373 = vst [vmem:[#allocation1 + $0x130] sm:$0x3] %v7376_v40  ;;  %v7378_v42 = vld [vmem:[%s11073_s0 + $0x48] sm:$0x3]  ;;  %v7379_v43 = vld [vmem:[%s11073_s0 + $0x46] sm:$0x3] }
  0x1c   :  { %v3534_v44 = vld [vmem:[#allocation1 + $0x41] ss:$8 sm:$0xf]   ;;  %2378 = vst [vmem:[#allocation1 + $0x128] sm:$0x3] %v7377_v41 }
  0x1d   :  { %2383 = vst [vmem:[#allocation1 + $0x120] sm:$0x3] %v7378_v42  ;;  %2388 = vst [vmem:[#allocation1 + $0x118] sm:$0x3] %v7379_v43  ;;  %v7380_v45 = vld [vmem:[%s11073_s0 + $0x44] sm:$0x3]  ;;  %v3538_v46 = vsel %vm2562_vm0, %v3536_v39, %v3534_v44 }
  0x1e   :  { %2393 = vst [vmem:[#allocation1 + $0x110] sm:$0x3] %v7380_v45  ;;  %v7381_v47 = vld [vmem:[%s11073_s0 + $0x42] sm:$0x3]  ;;  %v7382_v48 = vld [vmem:[%s11073_s0 + $0x40] sm:$0x3]  ;;  %3539 = vrot.lane.b32.xlu0 %v3538_v46, %s7670_s10 }
  0x1f   :  { %v7367_v49 = vld [vmem:[%s11073_s0 + $0x5e] sm:$0x3]  ;;  %v3570_v50 = vld [vmem:[#allocation1 + $0xc1] ss:$8 sm:$0xf0]  }
  0x20   :  { %2398 = vst [vmem:[#allocation1 + $0x108] sm:$0x3] %v7381_v47  ;;  %2403 = vst [vmem:[#allocation1 + $0x100] sm:$0x3] %v7382_v48  ;;  %v7368_v51 = vld [vmem:[%s11073_s0 + $0x5c] sm:$0x3] }
  0x21   :  { %2328 = vst [vmem:[#allocation1 + $0x178] sm:$0x3] %v7367_v49  ;;  %2333 = vst [vmem:[#allocation1 + $0x170] sm:$0x3] %v7368_v51  ;;  %v7369_v52 = vld [vmem:[%s11073_s0 + $0x5a] sm:$0x3] }
  0x22   :  { %v7370_v53 = vld [vmem:[%s11073_s0 + $0x58] sm:$0x3]  ;;  %v7371_v54 = vld [vmem:[%s11073_s0 + $0x56] sm:$0x3]  ;;  %2338 = vst [vmem:[#allocation1 + $0x168] sm:$0x3] %v7369_v52 }
  0x23   :  { %v3568_v55 = vld [vmem:[#allocation1 + $0xc1] ss:$8 sm:$0xf]   ;;  %2343 = vst [vmem:[#allocation1 + $0x160] sm:$0x3] %v7370_v53 }
  0x24   :  { %2348 = vst [vmem:[#allocation1 + $0x158] sm:$0x3] %v7371_v54  ;;  %v7372_v56 = vld [vmem:[%s11073_s0 + $0x54] sm:$0x3]  ;;  %v3572_v57 = vsel %vm2562_vm0, %v3570_v50, %v3568_v55  ;;  %v7373_v58 = vld [vmem:[%s11073_s0 + $0x52] sm:$0x3] }
  0x25   :  { %2353 = vst [vmem:[#allocation1 + $0x150] sm:$0x3] %v7372_v56  ;;  %v7374_v59 = vld [vmem:[%s11073_s0 + $0x50] sm:$0x3]  ;;  %v7359_v60 = vld [vmem:[%s11073_s0 + $0x6e] sm:$0x3]  ;;  %3573 = vrot.lane.b32.xlu1 %v3572_v57, %s7670_s10 }
  0x26   :  { %2358 = vst [vmem:[#allocation1 + $0x148] sm:$0x3] %v7373_v58  ;;  %2363 = vst [vmem:[#allocation1 + $0x140] sm:$0x3] %v7374_v59  ;;  %v7360_v61 = vld [vmem:[%s11073_s0 + $0x6c] sm:$0x3] }
  0x27   :  { %2288 = vst [vmem:[#allocation1 + $0x1b8] sm:$0x3] %v7359_v60  ;;  %v7361_v62 = vld [vmem:[%s11073_s0 + $0x6a] sm:$0x3]  ;;  %v7362_v63 = vld [vmem:[%s11073_s0 + $0x68] sm:$0x3] }
  0x28   :  { %v3587_v0 = vld [vmem:[#allocation1 + $0x101] ss:$8 sm:$0xf0]   ;;  %2293 = vst [vmem:[#allocation1 + $0x1b0] sm:$0x3] %v7360_v61 }
  0x29   :  { %2298 = vst [vmem:[#allocation1 + $0x1a8] sm:$0x3] %v7361_v62  ;;  %2303 = vst [vmem:[#allocation1 + $0x1a0] sm:$0x3] %v7362_v63  ;;  %v7363_v1 = vld [vmem:[%s11073_s0 + $0x66] sm:$0x3] }
  0x2a   :  { %2308 = vst [vmem:[#allocation1 + $0x198] sm:$0x3] %v7363_v1  ;;  %v7364_v2 = vld [vmem:[%s11073_s0 + $0x64] sm:$0x3]  ;;  %v7365_v3 = vld [vmem:[%s11073_s0 + $0x62] sm:$0x3] }
  0x2b   :  { %v7366_v4 = vld [vmem:[%s11073_s0 + $0x60] sm:$0x3]  ;;  %2313 = vst [vmem:[#allocation1 + $0x190] sm:$0x3] %v7364_v2  ;;  %2318 = vst [vmem:[#allocation1 + $0x188] sm:$0x3] %v7365_v3 }
  0x2c   :  { %v3585_v5 = vld [vmem:[#allocation1 + $0x101] ss:$8 sm:$0xf]   ;;  %2323 = vst [vmem:[#allocation1 + $0x180] sm:$0x3] %v7366_v4 }
  0x2d   :  { %v7351_v6 = vld [vmem:[%s11073_s0 + $0x7e] sm:$0x3]  ;;  %v3589_v7 = vsel %vm2562_vm0, %v3587_v0, %v3585_v5  ;;  %v7352_v8 = vld [vmem:[%s11073_s0 + $0x7c] sm:$0x3]  ;;  %v7353_v9 = vld [vmem:[%s11073_s0 + $0x7a] sm:$0x3] }
  0x2e   :  { %2248 = vst [vmem:[#allocation1 + $0x1f8] sm:$0x3] %v7351_v6  ;;  %v7354_v10 = vld [vmem:[%s11073_s0 + $0x78] sm:$0x3]  ;;  %3590 = vrot.lane.b32.xlu0 %v3589_v7, %s7670_s10  ;;  %2253 = vst [vmem:[#allocation1 + $0x1f0] sm:$0x3] %v7352_v8 }
  0x2f   :  { %v3604_v11 = vld [vmem:[#allocation1 + $0x141] ss:$8 sm:$0xf0]   ;;  %2258 = vst [vmem:[#allocation1 + $0x1e8] sm:$0x3] %v7353_v9 }
  0x30   :  { %2263 = vst [vmem:[#allocation1 + $0x1e0] sm:$0x3] %v7354_v10  ;;  %v7355_v12 = vld [vmem:[%s11073_s0 + $0x76] sm:$0x3]  ;;  %v7356_v13 = vld [vmem:[%s11073_s0 + $0x74] sm:$0x3] }
  0x31   :  { %2268 = vst [vmem:[#allocation1 + $0x1d8] sm:$0x3] %v7355_v12  ;;  %v7357_v14 = vld [vmem:[%s11073_s0 + $0x72] sm:$0x3]  ;;  %v7358_v15 = vld [vmem:[%s11073_s0 + $0x70] sm:$0x3] }
  0x32   :  { %v3602_v16 = vld [vmem:[#allocation1 + $0x141] ss:$8 sm:$0xf]   ;;  %2273 = vst [vmem:[#allocation1 + $0x1d0] sm:$0x3] %v7356_v13 }
  0x33   :  { %2278 = vst [vmem:[#allocation1 + $0x1c8] sm:$0x3] %v7357_v14  ;;  %2283 = vst [vmem:[#allocation1 + $0x1c0] sm:$0x3] %v7358_v15  ;;  %v7343_v17 = vld [vmem:[%s11073_s0 + $0x8e] sm:$0x3]  ;;  %v3606_v18 = vsel %vm2562_vm0, %v3604_v11, %v3602_v16 }
  0x34   :  { %v3621_v19 = vld [vmem:[#allocation1 + $0x181] ss:$8 sm:$0xf0]   ;;  %2208 = vst [vmem:[#allocation1 + $0x238] sm:$0x3] %v7343_v17  ;;  %3607 = vrot.lane.b32.xlu1 %v3606_v18, %s7670_s10 }
  0x35   :  { %v7344_v20 = vld [vmem:[%s11073_s0 + $0x8c] sm:$0x3]  ;;  %v7345_v21 = vld [vmem:[%s11073_s0 + $0x8a] sm:$0x3]  ;;  %v7346_v22 = vld [vmem:[%s11073_s0 + $0x88] sm:$0x3] }
  0x36   :  { %2213 = vst [vmem:[#allocation1 + $0x230] sm:$0x3] %v7344_v20  ;;  %v7347_v23 = vld [vmem:[%s11073_s0 + $0x86] sm:$0x3]  ;;  %2218 = vst [vmem:[#allocation1 + $0x228] sm:$0x3] %v7345_v21 }
  0x37   :  { %v3619_v24 = vld [vmem:[#allocation1 + $0x181] ss:$8 sm:$0xf]   ;;  %2223 = vst [vmem:[#allocation1 + $0x220] sm:$0x3] %v7346_v22 }
  0x38   :  { %2228 = vst [vmem:[#allocation1 + $0x218] sm:$0x3] %v7347_v23  ;;  %v7348_v25 = vld [vmem:[%s11073_s0 + $0x84] sm:$0x3]  ;;  %v3623_v26 = vsel %vm2562_vm0, %v3621_v19, %v3619_v24  ;;  %v7349_v27 = vld [vmem:[%s11073_s0 + $0x82] sm:$0x3] }
  0x39   :  { %2233 = vst [vmem:[#allocation1 + $0x210] sm:$0x3] %v7348_v25  ;;  %v7350_v28 = vld [vmem:[%s11073_s0 + $0x80] sm:$0x3]  ;;  %v7335_v29 = vld [vmem:[%s11073_s0 + $0x9e] sm:$0x3]  ;;  %3624 = vrot.lane.b32.xlu0 %v3623_v26, %s7670_s10 }
  0x3a   :  { %v3638_v30 = vld [vmem:[#allocation1 + $0x1c1] ss:$8 sm:$0xf0]   ;;  %2238 = vst [vmem:[#allocation1 + $0x208] sm:$0x3] %v7349_v27 }
  0x3b   :  { %2243 = vst [vmem:[#allocation1 + $0x200] sm:$0x3] %v7350_v28  ;;  %2168 = vst [vmem:[#allocation1 + $0x278] sm:$0x3] %v7335_v29  ;;  %v7336_v31 = vld [vmem:[%s11073_s0 + $0x9c] sm:$0x3] }
  0x3c   :  { %2173 = vst [vmem:[#allocation1 + $0x270] sm:$0x3] %v7336_v31  ;;  %v7337_v32 = vld [vmem:[%s11073_s0 + $0x9a] sm:$0x3]  ;;  %v7338_v33 = vld [vmem:[%s11073_s0 + $0x98] sm:$0x3] }
  0x3d   :  { %v7339_v34 = vld [vmem:[%s11073_s0 + $0x96] sm:$0x3]  ;;  %v3636_v35 = vld [vmem:[#allocation1 + $0x1c1] ss:$8 sm:$0xf]  }
  0x3e   :  { %2178 = vst [vmem:[#allocation1 + $0x268] sm:$0x3] %v7337_v32  ;;  %2183 = vst [vmem:[#allocation1 + $0x260] sm:$0x3] %v7338_v33  ;;  %v7340_v36 = vld [vmem:[%s11073_s0 + $0x94] sm:$0x3]  ;;  %v3640_v37 = vsel %vm2562_vm0, %v3638_v30, %v3636_v35 }
  0x3f   :  { %2188 = vst [vmem:[#allocation1 + $0x258] sm:$0x3] %v7339_v34  ;;  %2193 = vst [vmem:[#allocation1 + $0x250] sm:$0x3] %v7340_v36  ;;  %v7341_v38 = vld [vmem:[%s11073_s0 + $0x92] sm:$0x3]  ;;  %3641 = vrot.lane.b32.xlu1 %v3640_v37, %s7670_s10 }
  0x40   :  { %v7342_v39 = vld [vmem:[%s11073_s0 + $0x90] sm:$0x3]  ;;  %v7327_v40 = vld [vmem:[%s11073_s0 + $0xae] sm:$0x3]  ;;  %2198 = vst [vmem:[#allocation1 + $0x248] sm:$0x3] %v7341_v38 }
  0x41   :  { %2203 = vst [vmem:[#allocation1 + $0x240] sm:$0x3] %v7342_v39  ;;  %2128 = vst [vmem:[#allocation1 + $0x2b8] sm:$0x3] %v7327_v40  ;;  %v7328_v41 = vld [vmem:[%s11073_s0 + $0xac] sm:$0x3] }
  0x42   :  { %v7329_v42 = vld [vmem:[%s11073_s0 + $0xaa] sm:$0x3]  ;;  %v7330_v43 = vld [vmem:[%s11073_s0 + $0xa8] sm:$0x3]  ;;  %2133 = vst [vmem:[#allocation1 + $0x2b0] sm:$0x3] %v7328_v41 }
  0x43   :  { %v3655_v44 = vld [vmem:[#allocation1 + $0x201] ss:$8 sm:$0xf0]   ;;  %2138 = vst [vmem:[#allocation1 + $0x2a8] sm:$0x3] %v7329_v42 }
  0x44   :  { %2143 = vst [vmem:[#allocation1 + $0x2a0] sm:$0x3] %v7330_v43  ;;  %v7331_v45 = vld [vmem:[%s11073_s0 + $0xa6] sm:$0x3]  ;;  %v7332_v46 = vld [vmem:[%s11073_s0 + $0xa4] sm:$0x3] }
  0x45   :  { %2148 = vst [vmem:[#allocation1 + $0x298] sm:$0x3] %v7331_v45  ;;  %v7333_v47 = vld [vmem:[%s11073_s0 + $0xa2] sm:$0x3]  ;;  %v7334_v48 = vld [vmem:[%s11073_s0 + $0xa0] sm:$0x3] }
  0x46   :  { %v3653_v49 = vld [vmem:[#allocation1 + $0x201] ss:$8 sm:$0xf]   ;;  %2153 = vst [vmem:[#allocation1 + $0x290] sm:$0x3] %v7332_v46 }
  0x47   :  { %2158 = vst [vmem:[#allocation1 + $0x288] sm:$0x3] %v7333_v47  ;;  %2163 = vst [vmem:[#allocation1 + $0x280] sm:$0x3] %v7334_v48  ;;  %v7319_v50 = vld [vmem:[%s11073_s0 + $0xbe] sm:$0x3]  ;;  %v3657_v51 = vsel %vm2562_vm0, %v3655_v44, %v3653_v49 }
  0x48   :  { %2088 = vst [vmem:[#allocation1 + $0x2f8] sm:$0x3] %v7319_v50  ;;  %v7320_v52 = vld [vmem:[%s11073_s0 + $0xbc] sm:$0x3]  ;;  %v7321_v53 = vld [vmem:[%s11073_s0 + $0xba] sm:$0x3]  ;;  %3658 = vrot.lane.b32.xlu0 %v3657_v51, %s7670_s10 }
  0x49   :  { %v7322_v54 = vld [vmem:[%s11073_s0 + $0xb8] sm:$0x3]  ;;  %2093 = vst [vmem:[#allocation1 + $0x2f0] sm:$0x3] %v7320_v52  ;;  %2098 = vst [vmem:[#allocation1 + $0x2e8] sm:$0x3] %v7321_v53 }
  0x4a   :  { %v3672_v55 = vld [vmem:[#allocation1 + $0x241] ss:$8 sm:$0xf0]   ;;  %2103 = vst [vmem:[#allocation1 + $0x2e0] sm:$0x3] %v7322_v54 }
  0x4b   :  { %v7323_v56 = vld [vmem:[%s11073_s0 + $0xb6] sm:$0x3]  ;;  %v7324_v57 = vld [vmem:[%s11073_s0 + $0xb4] sm:$0x3]  ;;  %v7325_v58 = vld [vmem:[%s11073_s0 + $0xb2] sm:$0x3] }
  0x4c   :  { %2108 = vst [vmem:[#allocation1 + $0x2d8] sm:$0x3] %v7323_v56  ;;  %v7326_v59 = vld [vmem:[%s11073_s0 + $0xb0] sm:$0x3]  ;;  %2113 = vst [vmem:[#allocation1 + $0x2d0] sm:$0x3] %v7324_v57 }
  0x4d   :  { %v3670_v60 = vld [vmem:[#allocation1 + $0x241] ss:$8 sm:$0xf]   ;;  %2118 = vst [vmem:[#allocation1 + $0x2c8] sm:$0x3] %v7325_v58 }
  0x4e   :  { %2123 = vst [vmem:[#allocation1 + $0x2c0] sm:$0x3] %v7326_v59  ;;  %v7311_v61 = vld [vmem:[%s11073_s0 + $0xce] sm:$0x3]  ;;  %v3674_v62 = vsel %vm2562_vm0, %v3672_v55, %v3670_v60  ;;  %v7312_v0 = vld [vmem:[%s11073_s0 + $0xcc] sm:$0x3] }
  0x4f   :  { %v3689_v63 = vld [vmem:[#allocation1 + $0x281] ss:$8 sm:$0xf0]   ;;  %2048 = vst [vmem:[#allocation1 + $0x338] sm:$0x3] %v7311_v61  ;;  %3675 = vrot.lane.b32.xlu1 %v3674_v62, %s7670_s10 }
  0x50   :  { %2053 = vst [vmem:[#allocation1 + $0x330] sm:$0x3] %v7312_v0  ;;  %v7313_v1 = vld [vmem:[%s11073_s0 + $0xca] sm:$0x3]  ;;  %v7314_v2 = vld [vmem:[%s11073_s0 + $0xc8] sm:$0x3] }
  0x51   :  { %v7315_v3 = vld [vmem:[%s11073_s0 + $0xc6] sm:$0x3]  ;;  %v3687_v4 = vld [vmem:[#allocation1 + $0x281] ss:$8 sm:$0xf]  }
  0x52   :  { %2058 = vst [vmem:[#allocation1 + $0x328] sm:$0x3] %v7313_v1  ;;  %2063 = vst [vmem:[#allocation1 + $0x320] sm:$0x3] %v7314_v2  ;;  %v7316_v5 = vld [vmem:[%s11073_s0 + $0xc4] sm:$0x3]  ;;  %v3691_v6 = vsel %vm2562_vm0, %v3689_v63, %v3687_v4 }
  0x53   :  { %2068 = vst [vmem:[#allocation1 + $0x318] sm:$0x3] %v7315_v3  ;;  %2073 = vst [vmem:[#allocation1 + $0x310] sm:$0x3] %v7316_v5  ;;  %v7317_v7 = vld [vmem:[%s11073_s0 + $0xc2] sm:$0x3]  ;;  %3692 = vrot.lane.b32.xlu0 %v3691_v6, %s7670_s10 }
  0x54   :  { %v7318_v8 = vld [vmem:[%s11073_s0 + $0xc0] sm:$0x3]  ;;  %v7303_v9 = vld [vmem:[%s11073_s0 + $0xde] sm:$0x3]  ;;  %2078 = vst [vmem:[#allocation1 + $0x308] sm:$0x3] %v7317_v7 }
  0x55   :  { %v3706_v10 = vld [vmem:[#allocation1 + $0x2c1] ss:$8 sm:$0xf0]   ;;  %2083 = vst [vmem:[#allocation1 + $0x300] sm:$0x3] %v7318_v8 }
  0x56   :  { %2008 = vst [vmem:[#allocation1 + $0x378] sm:$0x3] %v7303_v9  ;;  %v7304_v11 = vld [vmem:[%s11073_s0 + $0xdc] sm:$0x3]  ;;  %v7305_v12 = vld [vmem:[%s11073_s0 + $0xda] sm:$0x3] }
  0x57   :  { %2013 = vst [vmem:[#allocation1 + $0x370] sm:$0x3] %v7304_v11  ;;  %v7306_v13 = vld [vmem:[%s11073_s0 + $0xd8] sm:$0x3]  ;;  %v7307_v14 = vld [vmem:[%s11073_s0 + $0xd6] sm:$0x3] }
  0x58   :  { %v3704_v15 = vld [vmem:[#allocation1 + $0x2c1] ss:$8 sm:$0xf]   ;;  %2018 = vst [vmem:[#allocation1 + $0x368] sm:$0x3] %v7305_v12 }
  0x59   :  { %2023 = vst [vmem:[#allocation1 + $0x360] sm:$0x3] %v7306_v13  ;;  %2028 = vst [vmem:[#allocation1 + $0x358] sm:$0x3] %v7307_v14  ;;  %v7308_v16 = vld [vmem:[%s11073_s0 + $0xd4] sm:$0x3]  ;;  %v3708_v17 = vsel %vm2562_vm0, %v3706_v10, %v3704_v15 }
  0x5a   :  { %2033 = vst [vmem:[#allocation1 + $0x350] sm:$0x3] %v7308_v16  ;;  %v7309_v18 = vld [vmem:[%s11073_s0 + $0xd2] sm:$0x3]  ;;  %v7310_v19 = vld [vmem:[%s11073_s0 + $0xd0] sm:$0x3]  ;;  %3709 = vrot.lane.b32.xlu1 %v3708_v17, %s7670_s10 }
  0x5b   :  { %v7295_v20 = vld [vmem:[%s11073_s0 + $0xee] sm:$0x3]  ;;  %2038 = vst [vmem:[#allocation1 + $0x348] sm:$0x3] %v7309_v18  ;;  %2043 = vst [vmem:[#allocation1 + $0x340] sm:$0x3] %v7310_v19 }
  0x5c   :  { %1968 = vst [vmem:[#allocation1 + $0x3b8] sm:$0x3] %v7295_v20  ;;  %v7296_v21 = vld [vmem:[%s11073_s0 + $0xec] sm:$0x3]  ;;  %v7297_v22 = vld [vmem:[%s11073_s0 + $0xea] sm:$0x3] }
  0x5d   :  { %v7298_v23 = vld [vmem:[%s11073_s0 + $0xe8] sm:$0x3]  ;;  %1973 = vst [vmem:[#allocation1 + $0x3b0] sm:$0x3] %v7296_v21  ;;  %1978 = vst [vmem:[#allocation1 + $0x3a8] sm:$0x3] %v7297_v22 }
  0x5e   :  { %v3723_v24 = vld [vmem:[#allocation1 + $0x301] ss:$8 sm:$0xf0]   ;;  %1983 = vst [vmem:[#allocation1 + $0x3a0] sm:$0x3] %v7298_v23 }
  0x5f   :  { %v7299_v25 = vld [vmem:[%s11073_s0 + $0xe6] sm:$0x3]  ;;  %v7300_v26 = vld [vmem:[%s11073_s0 + $0xe4] sm:$0x3]  ;;  %v7301_v27 = vld [vmem:[%s11073_s0 + $0xe2] sm:$0x3] }
  0x60   :  { %1988 = vst [vmem:[#allocation1 + $0x398] sm:$0x3] %v7299_v25  ;;  %v7302_v28 = vld [vmem:[%s11073_s0 + $0xe0] sm:$0x3]  ;;  %1993 = vst [vmem:[#allocation1 + $0x390] sm:$0x3] %v7300_v26 }
  0x61   :  { %v3721_v29 = vld [vmem:[#allocation1 + $0x301] ss:$8 sm:$0xf]   ;;  %1998 = vst [vmem:[#allocation1 + $0x388] sm:$0x3] %v7301_v27 }
  0x62   :  { %2003 = vst [vmem:[#allocation1 + $0x380] sm:$0x3] %v7302_v28  ;;  %v7287_v30 = vld [vmem:[%s11073_s0 + $0xfe] sm:$0x3]  ;;  %v3725_v31 = vsel %vm2562_vm0, %v3723_v24, %v3721_v29  ;;  %v7288_v32 = vld [vmem:[%s11073_s0 + $0xfc] sm:$0x3] }
  0x63   :  { %1928 = vst [vmem:[#allocation1 + $0x3f8] sm:$0x3] %v7287_v30  ;;  %v7289_v33 = vld [vmem:[%s11073_s0 + $0xfa] sm:$0x3]  ;;  %v7290_v34 = vld [vmem:[%s11073_s0 + $0xf8] sm:$0x3]  ;;  %3726 = vrot.lane.b32.xlu0 %v3725_v31, %s7670_s10 }
  0x64   :  { %v3740_v35 = vld [vmem:[#allocation1 + $0x341] ss:$8 sm:$0xf0]   ;;  %1933 = vst [vmem:[#allocation1 + $0x3f0] sm:$0x3] %v7288_v32 }
  0x65   :  { %1938 = vst [vmem:[#allocation1 + $0x3e8] sm:$0x3] %v7289_v33  ;;  %1943 = vst [vmem:[#allocation1 + $0x3e0] sm:$0x3] %v7290_v34  ;;  %v7291_v36 = vld [vmem:[%s11073_s0 + $0xf6] sm:$0x3] }
  0x66   :  { %1948 = vst [vmem:[#allocation1 + $0x3d8] sm:$0x3] %v7291_v36  ;;  %v7292_v37 = vld [vmem:[%s11073_s0 + $0xf4] sm:$0x3]  ;;  %v7293_v38 = vld [vmem:[%s11073_s0 + $0xf2] sm:$0x3] }
  0x67   :  { %v7294_v39 = vld [vmem:[%s11073_s0 + $0xf0] sm:$0x3]  ;;  %1953 = vst [vmem:[#allocation1 + $0x3d0] sm:$0x3] %v7292_v37  ;;  %1958 = vst [vmem:[#allocation1 + $0x3c8] sm:$0x3] %v7293_v38 }
  0x68   :  { %v3738_v40 = vld [vmem:[#allocation1 + $0x341] ss:$8 sm:$0xf]   ;;  %1963 = vst [vmem:[#allocation1 + $0x3c0] sm:$0x3] %v7294_v39 }
  0x69   :  { %v7279_v41 = vld [vmem:[%s11073_s0 + $0x10e] sm:$0x3]  ;;  %v3742_v42 = vsel %vm2562_vm0, %v3740_v35, %v3738_v40  ;;  %v3757_v43 = vld [vmem:[#allocation1 + $0x381] ss:$8 sm:$0xf0]  }
  0x6a   :  { %1888 = vst [vmem:[#allocation1 + $0x438] sm:$0x3] %v7279_v41  ;;  %v7280_v44 = vld [vmem:[%s11073_s0 + $0x10c] sm:$0x3]  ;;  %3743 = vrot.lane.b32.xlu1 %v3742_v42, %s7670_s10  ;;  %v7281_v45 = vld [vmem:[%s11073_s0 + $0x10a] sm:$0x3] }
  0x6b   :  { %1893 = vst [vmem:[#allocation1 + $0x430] sm:$0x3] %v7280_v44  ;;  %v7282_v46 = vld [vmem:[%s11073_s0 + $0x108] sm:$0x3]  ;;  %v7283_v47 = vld [vmem:[%s11073_s0 + $0x106] sm:$0x3] }
  0x6c   :  { %v3755_v48 = vld [vmem:[#allocation1 + $0x381] ss:$8 sm:$0xf]   ;;  %1898 = vst [vmem:[#allocation1 + $0x428] sm:$0x3] %v7281_v45 }
  0x6d   :  { %1903 = vst [vmem:[#allocation1 + $0x420] sm:$0x3] %v7282_v46  ;;  %1908 = vst [vmem:[#allocation1 + $0x418] sm:$0x3] %v7283_v47  ;;  %v7284_v49 = vld [vmem:[%s11073_s0 + $0x104] sm:$0x3]  ;;  %v3759_v50 = vsel %vm2562_vm0, %v3757_v43, %v3755_v48 }
  0x6e   :  { %1913 = vst [vmem:[#allocation1 + $0x410] sm:$0x3] %v7284_v49  ;;  %v7285_v51 = vld [vmem:[%s11073_s0 + $0x102] sm:$0x3]  ;;  %v7286_v52 = vld [vmem:[%s11073_s0 + $0x100] sm:$0x3]  ;;  %3760 = vrot.lane.b32.xlu0 %v3759_v50, %s7670_s10 }
  0x6f   :  { %v7271_v53 = vld [vmem:[%s11073_s0 + $0x11e] sm:$0x3]  ;;  %v3774_v54 = vld [vmem:[#allocation1 + $0x3c1] ss:$8 sm:$0xf0]  }
  0x70   :  { %1918 = vst [vmem:[#allocation1 + $0x408] sm:$0x3] %v7285_v51  ;;  %1923 = vst [vmem:[#allocation1 + $0x400] sm:$0x3] %v7286_v52  ;;  %v7272_v55 = vld [vmem:[%s11073_s0 + $0x11c] sm:$0x3] }
  0x71   :  { %1848 = vst [vmem:[#allocation1 + $0x478] sm:$0x3] %v7271_v53  ;;  %1853 = vst [vmem:[#allocation1 + $0x470] sm:$0x3] %v7272_v55  ;;  %v7273_v56 = vld [vmem:[%s11073_s0 + $0x11a] sm:$0x3] }
  0x72   :  { %v7274_v57 = vld [vmem:[%s11073_s0 + $0x118] sm:$0x3]  ;;  %v7275_v58 = vld [vmem:[%s11073_s0 + $0x116] sm:$0x3]  ;;  %1858 = vst [vmem:[#allocation1 + $0x468] sm:$0x3] %v7273_v56 }
  0x73   :  { %v3772_v59 = vld [vmem:[#allocation1 + $0x3c1] ss:$8 sm:$0xf]   ;;  %1863 = vst [vmem:[#allocation1 + $0x460] sm:$0x3] %v7274_v57 }
  0x74   :  { %1868 = vst [vmem:[#allocation1 + $0x458] sm:$0x3] %v7275_v58  ;;  %v7276_v60 = vld [vmem:[%s11073_s0 + $0x114] sm:$0x3]  ;;  %v3776_v61 = vsel %vm2562_vm0, %v3774_v54, %v3772_v59  ;;  %v7277_v62 = vld [vmem:[%s11073_s0 + $0x112] sm:$0x3] }
  0x75   :  { %1873 = vst [vmem:[#allocation1 + $0x450] sm:$0x3] %v7276_v60  ;;  %v7278_v63 = vld [vmem:[%s11073_s0 + $0x110] sm:$0x3]  ;;  %v7263_v0 = vld [vmem:[%s11073_s0 + $0x12e] sm:$0x3]  ;;  %3777 = vrot.lane.b32.xlu1 %v3776_v61, %s7670_s10 }
  0x76   :  { %1878 = vst [vmem:[#allocation1 + $0x448] sm:$0x3] %v7277_v62  ;;  %1883 = vst [vmem:[#allocation1 + $0x440] sm:$0x3] %v7278_v63  ;;  %v7264_v1 = vld [vmem:[%s11073_s0 + $0x12c] sm:$0x3] }
  0x77   :  { %1808 = vst [vmem:[#allocation1 + $0x4b8] sm:$0x3] %v7263_v0  ;;  %v7265_v2 = vld [vmem:[%s11073_s0 + $0x12a] sm:$0x3]  ;;  %v7266_v3 = vld [vmem:[%s11073_s0 + $0x128] sm:$0x3] }
  0x78   :  { %v3791_v4 = vld [vmem:[#allocation1 + $0x401] ss:$8 sm:$0xf0]   ;;  %1813 = vst [vmem:[#allocation1 + $0x4b0] sm:$0x3] %v7264_v1 }
  0x79   :  { %1818 = vst [vmem:[#allocation1 + $0x4a8] sm:$0x3] %v7265_v2  ;;  %1823 = vst [vmem:[#allocation1 + $0x4a0] sm:$0x3] %v7266_v3  ;;  %v7267_v5 = vld [vmem:[%s11073_s0 + $0x126] sm:$0x3] }
  0x7a   :  { %1828 = vst [vmem:[#allocation1 + $0x498] sm:$0x3] %v7267_v5  ;;  %v7268_v6 = vld [vmem:[%s11073_s0 + $0x124] sm:$0x3]  ;;  %v7269_v7 = vld [vmem:[%s11073_s0 + $0x122] sm:$0x3] }
  0x7b   :  { %v7270_v8 = vld [vmem:[%s11073_s0 + $0x120] sm:$0x3]  ;;  %1833 = vst [vmem:[#allocation1 + $0x490] sm:$0x3] %v7268_v6  ;;  %1838 = vst [vmem:[#allocation1 + $0x488] sm:$0x3] %v7269_v7 }
  0x7c   :  { %v3789_v9 = vld [vmem:[#allocation1 + $0x401] ss:$8 sm:$0xf]   ;;  %1843 = vst [vmem:[#allocation1 + $0x480] sm:$0x3] %v7270_v8 }
  0x7d   :  { %v7255_v10 = vld [vmem:[%s11073_s0 + $0x13e] sm:$0x3]  ;;  %v3793_v11 = vsel %vm2562_vm0, %v3791_v4, %v3789_v9  ;;  %v7256_v12 = vld [vmem:[%s11073_s0 + $0x13c] sm:$0x3]  ;;  %v7257_v13 = vld [vmem:[%s11073_s0 + $0x13a] sm:$0x3] }
  0x7e   :  { %1768 = vst [vmem:[#allocation1 + $0x4f8] sm:$0x3] %v7255_v10  ;;  %v7258_v14 = vld [vmem:[%s11073_s0 + $0x138] sm:$0x3]  ;;  %3794 = vrot.lane.b32.xlu0 %v3793_v11, %s7670_s10  ;;  %1773 = vst [vmem:[#allocation1 + $0x4f0] sm:$0x3] %v7256_v12 }
  0x7f   :  { %v3808_v15 = vld [vmem:[#allocation1 + $0x441] ss:$8 sm:$0xf0]   ;;  %1778 = vst [vmem:[#allocation1 + $0x4e8] sm:$0x3] %v7257_v13 }
  0x80   :  { %1783 = vst [vmem:[#allocation1 + $0x4e0] sm:$0x3] %v7258_v14  ;;  %v7259_v16 = vld [vmem:[%s11073_s0 + $0x136] sm:$0x3]  ;;  %v7260_v17 = vld [vmem:[%s11073_s0 + $0x134] sm:$0x3] }
  0x81   :  { %1788 = vst [vmem:[#allocation1 + $0x4d8] sm:$0x3] %v7259_v16  ;;  %v7261_v18 = vld [vmem:[%s11073_s0 + $0x132] sm:$0x3]  ;;  %v7262_v19 = vld [vmem:[%s11073_s0 + $0x130] sm:$0x3] }
  0x82   :  { %v3806_v20 = vld [vmem:[#allocation1 + $0x441] ss:$8 sm:$0xf]   ;;  %1793 = vst [vmem:[#allocation1 + $0x4d0] sm:$0x3] %v7260_v17 }
  0x83   :  { %1798 = vst [vmem:[#allocation1 + $0x4c8] sm:$0x3] %v7261_v18  ;;  %1803 = vst [vmem:[#allocation1 + $0x4c0] sm:$0x3] %v7262_v19  ;;  %v7247_v21 = vld [vmem:[%s11073_s0 + $0x14e] sm:$0x3]  ;;  %v3810_v22 = vsel %vm2562_vm0, %v3808_v15, %v3806_v20 }
  0x84   :  { %v3825_v23 = vld [vmem:[#allocation1 + $0x481] ss:$8 sm:$0xf0]   ;;  %1728 = vst [vmem:[#allocation1 + $0x538] sm:$0x3] %v7247_v21  ;;  %3811 = vrot.lane.b32.xlu1 %v3810_v22, %s7670_s10 }
  0x85   :  { %v7248_v24 = vld [vmem:[%s11073_s0 + $0x14c] sm:$0x3]  ;;  %v7249_v25 = vld [vmem:[%s11073_s0 + $0x14a] sm:$0x3]  ;;  %v7250_v26 = vld [vmem:[%s11073_s0 + $0x148] sm:$0x3] }
  0x86   :  { %1733 = vst [vmem:[#allocation1 + $0x530] sm:$0x3] %v7248_v24  ;;  %v7251_v27 = vld [vmem:[%s11073_s0 + $0x146] sm:$0x3]  ;;  %1738 = vst [vmem:[#allocation1 + $0x528] sm:$0x3] %v7249_v25 }
  0x87   :  { %v3823_v28 = vld [vmem:[#allocation1 + $0x481] ss:$8 sm:$0xf]   ;;  %1743 = vst [vmem:[#allocation1 + $0x520] sm:$0x3] %v7250_v26 }
  0x88   :  { %1748 = vst [vmem:[#allocation1 + $0x518] sm:$0x3] %v7251_v27  ;;  %v7252_v29 = vld [vmem:[%s11073_s0 + $0x144] sm:$0x3]  ;;  %v3827_v30 = vsel %vm2562_vm0, %v3825_v23, %v3823_v28  ;;  %v7253_v31 = vld [vmem:[%s11073_s0 + $0x142] sm:$0x3] }
  0x89   :  { %1753 = vst [vmem:[#allocation1 + $0x510] sm:$0x3] %v7252_v29  ;;  %v7254_v32 = vld [vmem:[%s11073_s0 + $0x140] sm:$0x3]  ;;  %v7239_v33 = vld [vmem:[%s11073_s0 + $0x15e] sm:$0x3]  ;;  %3828 = vrot.lane.b32.xlu0 %v3827_v30, %s7670_s10 }
  0x8a   :  { %v3842_v34 = vld [vmem:[#allocation1 + $0x4c1] ss:$8 sm:$0xf0]   ;;  %1758 = vst [vmem:[#allocation1 + $0x508] sm:$0x3] %v7253_v31 }
  0x8b   :  { %1763 = vst [vmem:[#allocation1 + $0x500] sm:$0x3] %v7254_v32  ;;  %1688 = vst [vmem:[#allocation1 + $0x578] sm:$0x3] %v7239_v33  ;;  %v7240_v35 = vld [vmem:[%s11073_s0 + $0x15c] sm:$0x3] }
  0x8c   :  { %1693 = vst [vmem:[#allocation1 + $0x570] sm:$0x3] %v7240_v35  ;;  %v7241_v36 = vld [vmem:[%s11073_s0 + $0x15a] sm:$0x3]  ;;  %v7242_v37 = vld [vmem:[%s11073_s0 + $0x158] sm:$0x3] }
  0x8d   :  { %v7243_v38 = vld [vmem:[%s11073_s0 + $0x156] sm:$0x3]  ;;  %v3840_v39 = vld [vmem:[#allocation1 + $0x4c1] ss:$8 sm:$0xf]  }
  0x8e   :  { %1698 = vst [vmem:[#allocation1 + $0x568] sm:$0x3] %v7241_v36  ;;  %1703 = vst [vmem:[#allocation1 + $0x560] sm:$0x3] %v7242_v37  ;;  %v7244_v40 = vld [vmem:[%s11073_s0 + $0x154] sm:$0x3]  ;;  %v3844_v41 = vsel %vm2562_vm0, %v3842_v34, %v3840_v39 }
  0x8f   :  { %1708 = vst [vmem:[#allocation1 + $0x558] sm:$0x3] %v7243_v38  ;;  %1713 = vst [vmem:[#allocation1 + $0x550] sm:$0x3] %v7244_v40  ;;  %v7245_v42 = vld [vmem:[%s11073_s0 + $0x152] sm:$0x3]  ;;  %3845 = vrot.lane.b32.xlu1 %v3844_v41, %s7670_s10 }
  0x90   :  { %v7246_v43 = vld [vmem:[%s11073_s0 + $0x150] sm:$0x3]  ;;  %v7231_v44 = vld [vmem:[%s11073_s0 + $0x16e] sm:$0x3]  ;;  %1718 = vst [vmem:[#allocation1 + $0x548] sm:$0x3] %v7245_v42 }
  0x91   :  { %1723 = vst [vmem:[#allocation1 + $0x540] sm:$0x3] %v7246_v43  ;;  %1648 = vst [vmem:[#allocation1 + $0x5b8] sm:$0x3] %v7231_v44  ;;  %v7232_v45 = vld [vmem:[%s11073_s0 + $0x16c] sm:$0x3] }
  0x92   :  { %v7233_v46 = vld [vmem:[%s11073_s0 + $0x16a] sm:$0x3]  ;;  %v7234_v47 = vld [vmem:[%s11073_s0 + $0x168] sm:$0x3]  ;;  %1653 = vst [vmem:[#allocation1 + $0x5b0] sm:$0x3] %v7232_v45 }
  0x93   :  { %v3859_v48 = vld [vmem:[#allocation1 + $0x501] ss:$8 sm:$0xf0]   ;;  %1658 = vst [vmem:[#allocation1 + $0x5a8] sm:$0x3] %v7233_v46 }
  0x94   :  { %1663 = vst [vmem:[#allocation1 + $0x5a0] sm:$0x3] %v7234_v47  ;;  %v7235_v49 = vld [vmem:[%s11073_s0 + $0x166] sm:$0x3]  ;;  %v7236_v50 = vld [vmem:[%s11073_s0 + $0x164] sm:$0x3] }
  0x95   :  { %1668 = vst [vmem:[#allocation1 + $0x598] sm:$0x3] %v7235_v49  ;;  %v7237_v51 = vld [vmem:[%s11073_s0 + $0x162] sm:$0x3]  ;;  %v7238_v52 = vld [vmem:[%s11073_s0 + $0x160] sm:$0x3] }
  0x96   :  { %v3857_v53 = vld [vmem:[#allocation1 + $0x501] ss:$8 sm:$0xf]   ;;  %1673 = vst [vmem:[#allocation1 + $0x590] sm:$0x3] %v7236_v50 }
  0x97   :  { %1678 = vst [vmem:[#allocation1 + $0x588] sm:$0x3] %v7237_v51  ;;  %1683 = vst [vmem:[#allocation1 + $0x580] sm:$0x3] %v7238_v52  ;;  %v7223_v54 = vld [vmem:[%s11073_s0 + $0x17e] sm:$0x3]  ;;  %v3861_v55 = vsel %vm2562_vm0, %v3859_v48, %v3857_v53 }
  0x98   :  { %1608 = vst [vmem:[#allocation1 + $0x5f8] sm:$0x3] %v7223_v54  ;;  %v7224_v56 = vld [vmem:[%s11073_s0 + $0x17c] sm:$0x3]  ;;  %v7225_v57 = vld [vmem:[%s11073_s0 + $0x17a] sm:$0x3]  ;;  %3862 = vrot.lane.b32.xlu0 %v3861_v55, %s7670_s10 }
  0x99   :  { %v7226_v58 = vld [vmem:[%s11073_s0 + $0x178] sm:$0x3]  ;;  %1613 = vst [vmem:[#allocation1 + $0x5f0] sm:$0x3] %v7224_v56  ;;  %1618 = vst [vmem:[#allocation1 + $0x5e8] sm:$0x3] %v7225_v57 }
  0x9a   :  { %v3876_v59 = vld [vmem:[#allocation1 + $0x541] ss:$8 sm:$0xf0]   ;;  %1623 = vst [vmem:[#allocation1 + $0x5e0] sm:$0x3] %v7226_v58 }
  0x9b   :  { %v7227_v60 = vld [vmem:[%s11073_s0 + $0x176] sm:$0x3]  ;;  %v7228_v61 = vld [vmem:[%s11073_s0 + $0x174] sm:$0x3]  ;;  %v7229_v62 = vld [vmem:[%s11073_s0 + $0x172] sm:$0x3] }
  0x9c   :  { %1628 = vst [vmem:[#allocation1 + $0x5d8] sm:$0x3] %v7227_v60  ;;  %v7230_v63 = vld [vmem:[%s11073_s0 + $0x170] sm:$0x3]  ;;  %1633 = vst [vmem:[#allocation1 + $0x5d0] sm:$0x3] %v7228_v61 }
  0x9d   :  { %v3874_v0 = vld [vmem:[#allocation1 + $0x541] ss:$8 sm:$0xf]   ;;  %1638 = vst [vmem:[#allocation1 + $0x5c8] sm:$0x3] %v7229_v62 }
  0x9e   :  { %1643 = vst [vmem:[#allocation1 + $0x5c0] sm:$0x3] %v7230_v63  ;;  %v7215_v1 = vld [vmem:[%s11073_s0 + $0x18e] sm:$0x3]  ;;  %v3878_v2 = vsel %vm2562_vm0, %v3876_v59, %v3874_v0  ;;  %v7216_v4 = vld [vmem:[%s11073_s0 + $0x18c] sm:$0x3] }
  0x9f   :  { %v3893_v3 = vld [vmem:[#allocation1 + $0x581] ss:$8 sm:$0xf0]   ;;  %1568 = vst [vmem:[#allocation1 + $0x638] sm:$0x3] %v7215_v1  ;;  %3879 = vrot.lane.b32.xlu1 %v3878_v2, %s7670_s10 }
  0xa0   :  { %1573 = vst [vmem:[#allocation1 + $0x630] sm:$0x3] %v7216_v4  ;;  %v7217_v5 = vld [vmem:[%s11073_s0 + $0x18a] sm:$0x3]  ;;  %v7218_v6 = vld [vmem:[%s11073_s0 + $0x188] sm:$0x3] }
  0xa1   :  { %v7219_v7 = vld [vmem:[%s11073_s0 + $0x186] sm:$0x3]  ;;  %v3891_v8 = vld [vmem:[#allocation1 + $0x581] ss:$8 sm:$0xf]  }
  0xa2   :  { %1578 = vst [vmem:[#allocation1 + $0x628] sm:$0x3] %v7217_v5  ;;  %1583 = vst [vmem:[#allocation1 + $0x620] sm:$0x3] %v7218_v6  ;;  %v7220_v9 = vld [vmem:[%s11073_s0 + $0x184] sm:$0x3]  ;;  %v3895_v10 = vsel %vm2562_vm0, %v3893_v3, %v3891_v8 }
  0xa3   :  { %1588 = vst [vmem:[#allocation1 + $0x618] sm:$0x3] %v7219_v7  ;;  %1593 = vst [vmem:[#allocation1 + $0x610] sm:$0x3] %v7220_v9  ;;  %v7221_v11 = vld [vmem:[%s11073_s0 + $0x182] sm:$0x3]  ;;  %3896 = vrot.lane.b32.xlu0 %v3895_v10, %s7670_s10 }
  0xa4   :  { %v7222_v12 = vld [vmem:[%s11073_s0 + $0x180] sm:$0x3]  ;;  %v7207_v13 = vld [vmem:[%s11073_s0 + $0x19e] sm:$0x3]  ;;  %1598 = vst [vmem:[#allocation1 + $0x608] sm:$0x3] %v7221_v11 }
  0xa5   :  { %v3910_v14 = vld [vmem:[#allocation1 + $0x5c1] ss:$8 sm:$0xf0]   ;;  %1603 = vst [vmem:[#allocation1 + $0x600] sm:$0x3] %v7222_v12 }
  0xa6   :  { %1528 = vst [vmem:[#allocation1 + $0x678] sm:$0x3] %v7207_v13  ;;  %v7208_v15 = vld [vmem:[%s11073_s0 + $0x19c] sm:$0x3]  ;;  %v7209_v16 = vld [vmem:[%s11073_s0 + $0x19a] sm:$0x3] }
  0xa7   :  { %1533 = vst [vmem:[#allocation1 + $0x670] sm:$0x3] %v7208_v15  ;;  %v7210_v17 = vld [vmem:[%s11073_s0 + $0x198] sm:$0x3]  ;;  %v7211_v18 = vld [vmem:[%s11073_s0 + $0x196] sm:$0x3] }
  0xa8   :  { %v3908_v19 = vld [vmem:[#allocation1 + $0x5c1] ss:$8 sm:$0xf]   ;;  %1538 = vst [vmem:[#allocation1 + $0x668] sm:$0x3] %v7209_v16 }
  0xa9   :  { %1543 = vst [vmem:[#allocation1 + $0x660] sm:$0x3] %v7210_v17  ;;  %1548 = vst [vmem:[#allocation1 + $0x658] sm:$0x3] %v7211_v18  ;;  %v7212_v20 = vld [vmem:[%s11073_s0 + $0x194] sm:$0x3]  ;;  %v3912_v21 = vsel %vm2562_vm0, %v3910_v14, %v3908_v19 }
  0xaa   :  { %1553 = vst [vmem:[#allocation1 + $0x650] sm:$0x3] %v7212_v20  ;;  %v7213_v22 = vld [vmem:[%s11073_s0 + $0x192] sm:$0x3]  ;;  %v7214_v23 = vld [vmem:[%s11073_s0 + $0x190] sm:$0x3]  ;;  %3913 = vrot.lane.b32.xlu1 %v3912_v21, %s7670_s10 }
  0xab   :  { %v7199_v24 = vld [vmem:[%s11073_s0 + $0x1ae] sm:$0x3]  ;;  %1558 = vst [vmem:[#allocation1 + $0x648] sm:$0x3] %v7213_v22  ;;  %1563 = vst [vmem:[#allocation1 + $0x640] sm:$0x3] %v7214_v23 }
  0xac   :  { %1488 = vst [vmem:[#allocation1 + $0x6b8] sm:$0x3] %v7199_v24  ;;  %v7200_v25 = vld [vmem:[%s11073_s0 + $0x1ac] sm:$0x3]  ;;  %v7201_v26 = vld [vmem:[%s11073_s0 + $0x1aa] sm:$0x3] }
  0xad   :  { %v7202_v27 = vld [vmem:[%s11073_s0 + $0x1a8] sm:$0x3]  ;;  %1493 = vst [vmem:[#allocation1 + $0x6b0] sm:$0x3] %v7200_v25  ;;  %1498 = vst [vmem:[#allocation1 + $0x6a8] sm:$0x3] %v7201_v26 }
  0xae   :  { %v3927_v28 = vld [vmem:[#allocation1 + $0x601] ss:$8 sm:$0xf0]   ;;  %1503 = vst [vmem:[#allocation1 + $0x6a0] sm:$0x3] %v7202_v27 }
  0xaf   :  { %v7203_v29 = vld [vmem:[%s11073_s0 + $0x1a6] sm:$0x3]  ;;  %v7204_v30 = vld [vmem:[%s11073_s0 + $0x1a4] sm:$0x3]  ;;  %v7205_v31 = vld [vmem:[%s11073_s0 + $0x1a2] sm:$0x3] }
  0xb0   :  { %1508 = vst [vmem:[#allocation1 + $0x698] sm:$0x3] %v7203_v29  ;;  %v7206_v32 = vld [vmem:[%s11073_s0 + $0x1a0] sm:$0x3]  ;;  %1513 = vst [vmem:[#allocation1 + $0x690] sm:$0x3] %v7204_v30  ;;  %v8514_v29 = vpop.permute.xlu0 %3523  }
  0xb1   :  { %v3925_v33 = vld [vmem:[#allocation1 + $0x601] ss:$8 sm:$0xf]   ;;  %1518 = vst [vmem:[#allocation1 + $0x688] sm:$0x3] %v7205_v31 }
  0xb2   :  { %1523 = vst [vmem:[#allocation1 + $0x680] sm:$0x3] %v7206_v32  ;;  %v7191_v34 = vld [vmem:[%s11073_s0 + $0x1be] sm:$0x3]  ;;  %v3929_v35 = vsel %vm2562_vm0, %v3927_v28, %v3925_v33  ;;  %v7192_v36 = vld [vmem:[%s11073_s0 + $0x1bc] sm:$0x3] }
  0xb3   :  { %1448 = vst [vmem:[#allocation1 + $0x6f8] sm:$0x3] %v7191_v34  ;;  %v7193_v37 = vld [vmem:[%s11073_s0 + $0x1ba] sm:$0x3]  ;;  %v7194_v38 = vld [vmem:[%s11073_s0 + $0x1b8] sm:$0x3]  ;;  %3930 = vrot.lane.b32.xlu0 %v3929_v35, %s7670_s10 }
  0xb4   :  { %v3944_v39 = vld [vmem:[#allocation1 + $0x641] ss:$8 sm:$0xf0]   ;;  %1453 = vst [vmem:[#allocation1 + $0x6f0] sm:$0x3] %v7192_v36 }
  0xb5   :  { %1458 = vst [vmem:[#allocation1 + $0x6e8] sm:$0x3] %v7193_v37  ;;  %1463 = vst [vmem:[#allocation1 + $0x6e0] sm:$0x3] %v7194_v38  ;;  %v7195_v40 = vld [vmem:[%s11073_s0 + $0x1b6] sm:$0x3] }
  0xb6   :  { %1468 = vst [vmem:[#allocation1 + $0x6d8] sm:$0x3] %v7195_v40  ;;  %v7196_v41 = vld [vmem:[%s11073_s0 + $0x1b4] sm:$0x3]  ;;  %v7197_v42 = vld [vmem:[%s11073_s0 + $0x1b2] sm:$0x3] }
  0xb7   :  { %v7198_v43 = vld [vmem:[%s11073_s0 + $0x1b0] sm:$0x3]  ;;  %1473 = vst [vmem:[#allocation1 + $0x6d0] sm:$0x3] %v7196_v41  ;;  %1478 = vst [vmem:[#allocation1 + $0x6c8] sm:$0x3] %v7197_v42 }
  0xb8   :  { %v3942_v44 = vld [vmem:[#allocation1 + $0x641] ss:$8 sm:$0xf]   ;;  %1483 = vst [vmem:[#allocation1 + $0x6c0] sm:$0x3] %v7198_v43 }
  0xb9   :  { %v7183_v45 = vld [vmem:[%s11073_s0 + $0x1ce] sm:$0x3]  ;;  %v3946_v46 = vsel %vm2562_vm0, %v3944_v39, %v3942_v44  ;;  %v3961_v47 = vld [vmem:[#allocation1 + $0x681] ss:$8 sm:$0xf0]   ;;  %v8539_v39 = vpop.permute.xlu1 %3556  }
  0xba   :  { %1408 = vst [vmem:[#allocation1 + $0x738] sm:$0x3] %v7183_v45  ;;  %v7184_v48 = vld [vmem:[%s11073_s0 + $0x1cc] sm:$0x3]  ;;  %3947 = vrot.lane.b32.xlu1 %v3946_v46, %s7670_s10  ;;  %v7185_v49 = vld [vmem:[%s11073_s0 + $0x1ca] sm:$0x3] }
  0xbb   :  { %1413 = vst [vmem:[#allocation1 + $0x730] sm:$0x3] %v7184_v48  ;;  %v7186_v50 = vld [vmem:[%s11073_s0 + $0x1c8] sm:$0x3]  ;;  %v7187_v51 = vld [vmem:[%s11073_s0 + $0x1c6] sm:$0x3] }
  0xbc   :  { %v3959_v52 = vld [vmem:[#allocation1 + $0x681] ss:$8 sm:$0xf]   ;;  %1418 = vst [vmem:[#allocation1 + $0x728] sm:$0x3] %v7185_v49 }
  0xbd   :  { %1423 = vst [vmem:[#allocation1 + $0x720] sm:$0x3] %v7186_v50  ;;  %1428 = vst [vmem:[#allocation1 + $0x718] sm:$0x3] %v7187_v51  ;;  %v7188_v53 = vld [vmem:[%s11073_s0 + $0x1c4] sm:$0x3]  ;;  %v3963_v54 = vsel %vm2562_vm0, %v3961_v47, %v3959_v52  ;;  %v8557_v47 = vpop.permute.xlu0 %3539  }
  0xbe   :  { %1433 = vst [vmem:[#allocation1 + $0x710] sm:$0x3] %v7188_v53  ;;  %v7189_v55 = vld [vmem:[%s11073_s0 + $0x1c2] sm:$0x3]  ;;  %v7190_v56 = vld [vmem:[%s11073_s0 + $0x1c0] sm:$0x3]  ;;  %3964 = vrot.lane.b32.xlu0 %v3963_v54, %s7670_s10 }
  0xbf   :  { %v7175_v57 = vld [vmem:[%s11073_s0 + $0x1de] sm:$0x3]  ;;  %v3978_v58 = vld [vmem:[#allocation1 + $0x6c1] ss:$8 sm:$0xf0]  }
  0xc0   :  { %1438 = vst [vmem:[#allocation1 + $0x708] sm:$0x3] %v7189_v55  ;;  %1443 = vst [vmem:[#allocation1 + $0x700] sm:$0x3] %v7190_v56  ;;  %v7176_v59 = vld [vmem:[%s11073_s0 + $0x1dc] sm:$0x3] }
  0xc1   :  { %1368 = vst [vmem:[#allocation1 + $0x778] sm:$0x3] %v7175_v57  ;;  %1373 = vst [vmem:[#allocation1 + $0x770] sm:$0x3] %v7176_v59  ;;  %v7177_v60 = vld [vmem:[%s11073_s0 + $0x1da] sm:$0x3] }
  0xc2   :  { %v7178_v61 = vld [vmem:[%s11073_s0 + $0x1d8] sm:$0x3]  ;;  %v7179_v62 = vld [vmem:[%s11073_s0 + $0x1d6] sm:$0x3]  ;;  %1378 = vst [vmem:[#allocation1 + $0x768] sm:$0x3] %v7177_v60  ;;  %v8591_v60 = vpop.permute.xlu1 %3573  }
  0xc3   :  { %v3976_v63 = vld [vmem:[#allocation1 + $0x6c1] ss:$8 sm:$0xf]   ;;  %1383 = vst [vmem:[#allocation1 + $0x760] sm:$0x3] %v7178_v61 }
  0xc4   :  { %1388 = vst [vmem:[#allocation1 + $0x758] sm:$0x3] %v7179_v62  ;;  %v7180_v0 = vld [vmem:[%s11073_s0 + $0x1d4] sm:$0x3]  ;;  %v3980_v1 = vsel %vm2562_vm0, %v3978_v58, %v3976_v63  ;;  %v7181_v2 = vld [vmem:[%s11073_s0 + $0x1d2] sm:$0x3] }
  0xc5   :  { %1393 = vst [vmem:[#allocation1 + $0x750] sm:$0x3] %v7180_v0  ;;  %v7182_v3 = vld [vmem:[%s11073_s0 + $0x1d0] sm:$0x3]  ;;  %v7167_v4 = vld [vmem:[%s11073_s0 + $0x1ee] sm:$0x3]  ;;  %3981 = vrot.lane.b32.xlu1 %v3980_v1, %s7670_s10 }
  0xc6   :  { %1398 = vst [vmem:[#allocation1 + $0x748] sm:$0x3] %v7181_v2  ;;  %1403 = vst [vmem:[#allocation1 + $0x740] sm:$0x3] %v7182_v3  ;;  %v7168_v5 = vld [vmem:[%s11073_s0 + $0x1ec] sm:$0x3] }
  0xc7   :  { %1328 = vst [vmem:[#allocation1 + $0x7b8] sm:$0x3] %v7167_v4  ;;  %v7169_v6 = vld [vmem:[%s11073_s0 + $0x1ea] sm:$0x3]  ;;  %v7170_v7 = vld [vmem:[%s11073_s0 + $0x1e8] sm:$0x3] }
  0xc8   :  { %v3995_v8 = vld [vmem:[#allocation1 + $0x701] ss:$8 sm:$0xf0]   ;;  %1333 = vst [vmem:[#allocation1 + $0x7b0] sm:$0x3] %v7168_v5 }
  0xc9   :  { %1338 = vst [vmem:[#allocation1 + $0x7a8] sm:$0x3] %v7169_v6  ;;  %1343 = vst [vmem:[#allocation1 + $0x7a0] sm:$0x3] %v7170_v7  ;;  %v7171_v9 = vld [vmem:[%s11073_s0 + $0x1e6] sm:$0x3] }
  0xca   :  { %1348 = vst [vmem:[#allocation1 + $0x798] sm:$0x3] %v7171_v9  ;;  %v7172_v10 = vld [vmem:[%s11073_s0 + $0x1e4] sm:$0x3]  ;;  %v7173_v11 = vld [vmem:[%s11073_s0 + $0x1e2] sm:$0x3] }
  0xcb   :  { %v7174_v12 = vld [vmem:[%s11073_s0 + $0x1e0] sm:$0x3]  ;;  %1353 = vst [vmem:[#allocation1 + $0x790] sm:$0x3] %v7172_v10  ;;  %1358 = vst [vmem:[#allocation1 + $0x788] sm:$0x3] %v7173_v11  ;;  %v8622_v10 = vpop.permute.xlu0 %3590  }
  0xcc   :  { %v3993_v13 = vld [vmem:[#allocation1 + $0x701] ss:$8 sm:$0xf]   ;;  %1363 = vst [vmem:[#allocation1 + $0x780] sm:$0x3] %v7174_v12 }
  0xcd   :  { %v7159_v14 = vld [vmem:[%s11073_s0 + $0x1fe] sm:$0x3]  ;;  %v3997_v15 = vsel %vm2562_vm0, %v3995_v8, %v3993_v13  ;;  %v7160_v16 = vld [vmem:[%s11073_s0 + $0x1fc] sm:$0x3]  ;;  %v7161_v17 = vld [vmem:[%s11073_s0 + $0x1fa] sm:$0x3] }
  0xce   :  { %1288 = vst [vmem:[#allocation1 + $0x7f8] sm:$0x3] %v7159_v14  ;;  %v7162_v18 = vld [vmem:[%s11073_s0 + $0x1f8] sm:$0x3]  ;;  %3998 = vrot.lane.b32.xlu0 %v3997_v15, %s7670_s10  ;;  %1293 = vst [vmem:[#allocation1 + $0x7f0] sm:$0x3] %v7160_v16 }
  0xcf   :  { %v4012_v19 = vld [vmem:[#allocation1 + $0x741] ss:$8 sm:$0xf0]   ;;  %1298 = vst [vmem:[#allocation1 + $0x7e8] sm:$0x3] %v7161_v17 }
  0xd0   :  { %1303 = vst [vmem:[#allocation1 + $0x7e0] sm:$0x3] %v7162_v18  ;;  %v7163_v20 = vld [vmem:[%s11073_s0 + $0x1f6] sm:$0x3]  ;;  %v7164_v21 = vld [vmem:[%s11073_s0 + $0x1f4] sm:$0x3] }
  0xd1   :  { %1308 = vst [vmem:[#allocation1 + $0x7d8] sm:$0x3] %v7163_v20  ;;  %v7165_v22 = vld [vmem:[%s11073_s0 + $0x1f2] sm:$0x3]  ;;  %v7166_v23 = vld [vmem:[%s11073_s0 + $0x1f0] sm:$0x3] }
  0xd2   :  { %v4010_v24 = vld [vmem:[#allocation1 + $0x741] ss:$8 sm:$0xf]   ;;  %1313 = vst [vmem:[#allocation1 + $0x7d0] sm:$0x3] %v7164_v21 }
  0xd3   :  { %1318 = vst [vmem:[#allocation1 + $0x7c8] sm:$0x3] %v7165_v22  ;;  %1323 = vst [vmem:[#allocation1 + $0x7c0] sm:$0x3] %v7166_v23  ;;  %v7151_v25 = vld [vmem:[%s11073_s0 + $0x20e] sm:$0x3]  ;;  %v4014_v26 = vsel %vm2562_vm0, %v4012_v19, %v4010_v24  ;;  %v8651_v23 = vpop.permute.xlu1 %3607  }
  0xd4   :  { %v4029_v27 = vld [vmem:[#allocation1 + $0x781] ss:$8 sm:$0xf0]   ;;  %1248 = vst [vmem:[#allocation1 + $0x838] sm:$0x3] %v7151_v25  ;;  %4015 = vrot.lane.b32.xlu1 %v4014_v26, %s7670_s10 }
  0xd5   :  { %v7152_v28 = vld [vmem:[%s11073_s0 + $0x20c] sm:$0x3]  ;;  %v7153_v30 = vld [vmem:[%s11073_s0 + $0x20a] sm:$0x3]  ;;  %v7154_v31 = vld [vmem:[%s11073_s0 + $0x208] sm:$0x3] }
  0xd6   :  { %1253 = vst [vmem:[#allocation1 + $0x830] sm:$0x3] %v7152_v28  ;;  %v7155_v32 = vld [vmem:[%s11073_s0 + $0x206] sm:$0x3]  ;;  %1258 = vst [vmem:[#allocation1 + $0x828] sm:$0x3] %v7153_v30 }
  0xd7   :  { %v4027_v33 = vld [vmem:[#allocation1 + $0x781] ss:$8 sm:$0xf]   ;;  %1263 = vst [vmem:[#allocation1 + $0x820] sm:$0x3] %v7154_v31 }
  0xd8   :  { %1268 = vst [vmem:[#allocation1 + $0x818] sm:$0x3] %v7155_v32  ;;  %v7156_v34 = vld [vmem:[%s11073_s0 + $0x204] sm:$0x3]  ;;  %v4031_v35 = vsel %vm2562_vm0, %v4029_v27, %v4027_v33  ;;  %v7157_v36 = vld [vmem:[%s11073_s0 + $0x202] sm:$0x3]  ;;  %v8669_v32 = vpop.permute.xlu0 %3624  }
  0xd9   :  { %1273 = vst [vmem:[#allocation1 + $0x810] sm:$0x3] %v7156_v34  ;;  %v7158_v37 = vld [vmem:[%s11073_s0 + $0x200] sm:$0x3]  ;;  %v7143_v38 = vld [vmem:[%s11073_s0 + $0x21e] sm:$0x3]  ;;  %4032 = vrot.lane.b32.xlu0 %v4031_v35, %s7670_s10 }
  0xda   :  { %v4046_v40 = vld [vmem:[#allocation1 + $0x7c1] ss:$8 sm:$0xf0]   ;;  %1278 = vst [vmem:[#allocation1 + $0x808] sm:$0x3] %v7157_v36 }
  0xdb   :  { %1283 = vst [vmem:[#allocation1 + $0x800] sm:$0x3] %v7158_v37  ;;  %1208 = vst [vmem:[#allocation1 + $0x878] sm:$0x3] %v7143_v38  ;;  %v7144_v41 = vld [vmem:[%s11073_s0 + $0x21c] sm:$0x3] }
  0xdc   :  { %1213 = vst [vmem:[#allocation1 + $0x870] sm:$0x3] %v7144_v41  ;;  %v7145_v42 = vld [vmem:[%s11073_s0 + $0x21a] sm:$0x3]  ;;  %v7146_v43 = vld [vmem:[%s11073_s0 + $0x218] sm:$0x3] }
  0xdd   :  { %v7147_v44 = vld [vmem:[%s11073_s0 + $0x216] sm:$0x3]  ;;  %v4044_v45 = vld [vmem:[#allocation1 + $0x7c1] ss:$8 sm:$0xf]  }
  0xde   :  { %1218 = vst [vmem:[#allocation1 + $0x868] sm:$0x3] %v7145_v42  ;;  %1223 = vst [vmem:[#allocation1 + $0x860] sm:$0x3] %v7146_v43  ;;  %v7148_v46 = vld [vmem:[%s11073_s0 + $0x214] sm:$0x3]  ;;  %v4048_v48 = vsel %vm2562_vm0, %v4046_v40, %v4044_v45 }
  0xdf   :  { %1228 = vst [vmem:[#allocation1 + $0x858] sm:$0x3] %v7147_v44  ;;  %1233 = vst [vmem:[#allocation1 + $0x850] sm:$0x3] %v7148_v46  ;;  %v7149_v49 = vld [vmem:[%s11073_s0 + $0x212] sm:$0x3]  ;;  %4049 = vrot.lane.b32.xlu1 %v4048_v48, %s7670_s10  ;;  %v8703_v46 = vpop.permute.xlu1 %3641  }
  0xe0   :  { %v7150_v50 = vld [vmem:[%s11073_s0 + $0x210] sm:$0x3]  ;;  %v7135_v51 = vld [vmem:[%s11073_s0 + $0x22e] sm:$0x3]  ;;  %1238 = vst [vmem:[#allocation1 + $0x848] sm:$0x3] %v7149_v49 }
  0xe1   :  { %1243 = vst [vmem:[#allocation1 + $0x840] sm:$0x3] %v7150_v50  ;;  %1168 = vst [vmem:[#allocation1 + $0x8b8] sm:$0x3] %v7135_v51  ;;  %v7136_v52 = vld [vmem:[%s11073_s0 + $0x22c] sm:$0x3] }
  0xe2   :  { %v7137_v53 = vld [vmem:[%s11073_s0 + $0x22a] sm:$0x3]  ;;  %v7138_v54 = vld [vmem:[%s11073_s0 + $0x228] sm:$0x3]  ;;  %1173 = vst [vmem:[#allocation1 + $0x8b0] sm:$0x3] %v7136_v52 }
  0xe3   :  { %v4063_v55 = vld [vmem:[#allocation1 + $0x801] ss:$8 sm:$0xf0]   ;;  %1178 = vst [vmem:[#allocation1 + $0x8a8] sm:$0x3] %v7137_v53 }
  0xe4   :  { %1183 = vst [vmem:[#allocation1 + $0x8a0] sm:$0x3] %v7138_v54  ;;  %v7139_v56 = vld [vmem:[%s11073_s0 + $0x226] sm:$0x3]  ;;  %v7140_v57 = vld [vmem:[%s11073_s0 + $0x224] sm:$0x3] }
  0xe5   :  { %1188 = vst [vmem:[#allocation1 + $0x898] sm:$0x3] %v7139_v56  ;;  %v7141_v58 = vld [vmem:[%s11073_s0 + $0x222] sm:$0x3]  ;;  %v7142_v59 = vld [vmem:[%s11073_s0 + $0x220] sm:$0x3] }
  0xe6   :  { %v4061_v61 = vld [vmem:[#allocation1 + $0x801] ss:$8 sm:$0xf]   ;;  %1193 = vst [vmem:[#allocation1 + $0x890] sm:$0x3] %v7140_v57 }
  0xe7   :  { %1198 = vst [vmem:[#allocation1 + $0x888] sm:$0x3] %v7141_v58  ;;  %1203 = vst [vmem:[#allocation1 + $0x880] sm:$0x3] %v7142_v59  ;;  %v7127_v62 = vld [vmem:[%s11073_s0 + $0x23e] sm:$0x3]  ;;  %v4065_v63 = vsel %vm2562_vm0, %v4063_v55, %v4061_v61 }
  0xe8   :  { %1128 = vst [vmem:[#allocation1 + $0x8f8] sm:$0x3] %v7127_v62  ;;  %v7128_v0 = vld [vmem:[%s11073_s0 + $0x23c] sm:$0x3]  ;;  %v7129_v1 = vld [vmem:[%s11073_s0 + $0x23a] sm:$0x3]  ;;  %4066 = vrot.lane.b32.xlu0 %v4065_v63, %s7670_s10  ;;  %v8734_v62 = vpop.permute.xlu0 %3658  }
  0xe9   :  { %v7130_v2 = vld [vmem:[%s11073_s0 + $0x238] sm:$0x3]  ;;  %1133 = vst [vmem:[#allocation1 + $0x8f0] sm:$0x3] %v7128_v0  ;;  %1138 = vst [vmem:[#allocation1 + $0x8e8] sm:$0x3] %v7129_v1 }
  0xea   :  { %v4080_v3 = vld [vmem:[#allocation1 + $0x841] ss:$8 sm:$0xf0]   ;;  %1143 = vst [vmem:[#allocation1 + $0x8e0] sm:$0x3] %v7130_v2 }
  0xeb   :  { %v7131_v4 = vld [vmem:[%s11073_s0 + $0x236] sm:$0x3]  ;;  %v7132_v5 = vld [vmem:[%s11073_s0 + $0x234] sm:$0x3]  ;;  %v7133_v6 = vld [vmem:[%s11073_s0 + $0x232] sm:$0x3] }
  0xec   :  { %1148 = vst [vmem:[#allocation1 + $0x8d8] sm:$0x3] %v7131_v4  ;;  %v7134_v7 = vld [vmem:[%s11073_s0 + $0x230] sm:$0x3]  ;;  %1153 = vst [vmem:[#allocation1 + $0x8d0] sm:$0x3] %v7132_v5 }
  0xed   :  { %v4078_v8 = vld [vmem:[#allocation1 + $0x841] ss:$8 sm:$0xf]   ;;  %1158 = vst [vmem:[#allocation1 + $0x8c8] sm:$0x3] %v7133_v6 }
  0xee   :  { %1163 = vst [vmem:[#allocation1 + $0x8c0] sm:$0x3] %v7134_v7  ;;  %v7119_v9 = vld [vmem:[%s11073_s0 + $0x24e] sm:$0x3]  ;;  %v4082_v11 = vsel %vm2562_vm0, %v4080_v3, %v4078_v8  ;;  %v7120_v13 = vld [vmem:[%s11073_s0 + $0x24c] sm:$0x3] }
  0xef   :  { %v4097_v12 = vld [vmem:[#allocation1 + $0x881] ss:$8 sm:$0xf0]   ;;  %1088 = vst [vmem:[#allocation1 + $0x938] sm:$0x3] %v7119_v9  ;;  %4083 = vrot.lane.b32.xlu1 %v4082_v11, %s7670_s10 }
  0xf0   :  { %1093 = vst [vmem:[#allocation1 + $0x930] sm:$0x3] %v7120_v13  ;;  %v7121_v14 = vld [vmem:[%s11073_s0 + $0x24a] sm:$0x3]  ;;  %v7122_v15 = vld [vmem:[%s11073_s0 + $0x248] sm:$0x3] }
  0xf1   :  { %v7123_v16 = vld [vmem:[%s11073_s0 + $0x246] sm:$0x3]  ;;  %v4095_v17 = vld [vmem:[#allocation1 + $0x881] ss:$8 sm:$0xf]  }
  0xf2   :  { %1098 = vst [vmem:[#allocation1 + $0x928] sm:$0x3] %v7121_v14  ;;  %1103 = vst [vmem:[#allocation1 + $0x920] sm:$0x3] %v7122_v15  ;;  %v7124_v18 = vld [vmem:[%s11073_s0 + $0x244] sm:$0x3]  ;;  %v4099_v19 = vsel %vm2562_vm0, %v4097_v12, %v4095_v17  ;;  %v8763_v12 = vpop.permute.xlu1 %3675  }
  0xf3   :  { %1108 = vst [vmem:[#allocation1 + $0x918] sm:$0x3] %v7123_v16  ;;  %1113 = vst [vmem:[#allocation1 + $0x910] sm:$0x3] %v7124_v18  ;;  %v7125_v20 = vld [vmem:[%s11073_s0 + $0x242] sm:$0x3]  ;;  %4100 = vrot.lane.b32.xlu0 %v4099_v19, %s7670_s10 }
  0xf4   :  { %v7126_v21 = vld [vmem:[%s11073_s0 + $0x240] sm:$0x3]  ;;  %v7111_v22 = vld [vmem:[%s11073_s0 + $0x25e] sm:$0x3]  ;;  %1118 = vst [vmem:[#allocation1 + $0x908] sm:$0x3] %v7125_v20  ;;  %v8781_v20 = vpop.permute.xlu0 %3692  }
  0xf5   :  { %v4114_v24 = vld [vmem:[#allocation1 + $0x8c1] ss:$8 sm:$0xf0]   ;;  %1123 = vst [vmem:[#allocation1 + $0x900] sm:$0x3] %v7126_v21 }
  0xf6   :  { %1048 = vst [vmem:[#allocation1 + $0x978] sm:$0x3] %v7111_v22  ;;  %v7112_v25 = vld [vmem:[%s11073_s0 + $0x25c] sm:$0x3]  ;;  %v7113_v26 = vld [vmem:[%s11073_s0 + $0x25a] sm:$0x3] }
  0xf7   :  { %1053 = vst [vmem:[#allocation1 + $0x970] sm:$0x3] %v7112_v25  ;;  %v7114_v27 = vld [vmem:[%s11073_s0 + $0x258] sm:$0x3]  ;;  %v7115_v28 = vld [vmem:[%s11073_s0 + $0x256] sm:$0x3] }
  0xf8   :  { %v4112_v30 = vld [vmem:[#allocation1 + $0x8c1] ss:$8 sm:$0xf]   ;;  %1058 = vst [vmem:[#allocation1 + $0x968] sm:$0x3] %v7113_v26 }
  0xf9   :  { %1063 = vst [vmem:[#allocation1 + $0x960] sm:$0x3] %v7114_v27  ;;  %1068 = vst [vmem:[#allocation1 + $0x958] sm:$0x3] %v7115_v28  ;;  %v7116_v31 = vld [vmem:[%s11073_s0 + $0x254] sm:$0x3]  ;;  %v4116_v33 = vsel %vm2562_vm0, %v4114_v24, %v4112_v30 }
  0xfa   :  { %1073 = vst [vmem:[#allocation1 + $0x950] sm:$0x3] %v7116_v31  ;;  %v7117_v34 = vld [vmem:[%s11073_s0 + $0x252] sm:$0x3]  ;;  %v7118_v35 = vld [vmem:[%s11073_s0 + $0x250] sm:$0x3]  ;;  %4117 = vrot.lane.b32.xlu1 %v4116_v33, %s7670_s10 }
  0xfb   :  { %v7103_v36 = vld [vmem:[%s11073_s0 + $0x26e] sm:$0x3]  ;;  %1078 = vst [vmem:[#allocation1 + $0x948] sm:$0x3] %v7117_v34  ;;  %1083 = vst [vmem:[#allocation1 + $0x940] sm:$0x3] %v7118_v35 }
  0xfc   :  { %1008 = vst [vmem:[#allocation1 + $0x9b8] sm:$0x3] %v7103_v36  ;;  %v7104_v37 = vld [vmem:[%s11073_s0 + $0x26c] sm:$0x3]  ;;  %v7105_v38 = vld [vmem:[%s11073_s0 + $0x26a] sm:$0x3]  ;;  %v8815_v36 = vpop.permute.xlu1 %3709  }
  0xfd   :  { %v7106_v40 = vld [vmem:[%s11073_s0 + $0x268] sm:$0x3]  ;;  %1013 = vst [vmem:[#allocation1 + $0x9b0] sm:$0x3] %v7104_v37  ;;  %1018 = vst [vmem:[#allocation1 + $0x9a8] sm:$0x3] %v7105_v38 }
  0xfe   :  { %v4131_v41 = vld [vmem:[#allocation1 + $0x901] ss:$8 sm:$0xf0]   ;;  %1023 = vst [vmem:[#allocation1 + $0x9a0] sm:$0x3] %v7106_v40 }
  0xff   :  { %v7107_v42 = vld [vmem:[%s11073_s0 + $0x266] sm:$0x3]  ;;  %v7108_v43 = vld [vmem:[%s11073_s0 + $0x264] sm:$0x3]  ;;  %v7109_v44 = vld [vmem:[%s11073_s0 + $0x262] sm:$0x3] }
 0x100   :  { %1028 = vst [vmem:[#allocation1 + $0x998] sm:$0x3] %v7107_v42  ;;  %v7110_v45 = vld [vmem:[%s11073_s0 + $0x260] sm:$0x3]  ;;  %1033 = vst [vmem:[#allocation1 + $0x990] sm:$0x3] %v7108_v43 }
 0x101   :  { %v4129_v48 = vld [vmem:[#allocation1 + $0x901] ss:$8 sm:$0xf]   ;;  %1038 = vst [vmem:[#allocation1 + $0x988] sm:$0x3] %v7109_v44 }
 0x102   :  { %1043 = vst [vmem:[#allocation1 + $0x980] sm:$0x3] %v7110_v45  ;;  %v7095_v49 = vld [vmem:[%s11073_s0 + $0x27e] sm:$0x3]  ;;  %v4133_v50 = vsel %vm2562_vm0, %v4131_v41, %v4129_v48  ;;  %v7096_v51 = vld [vmem:[%s11073_s0 + $0x27c] sm:$0x3] }
 0x103   :  { %968 = vst [vmem:[#allocation1 + $0x9f8] sm:$0x3] %v7095_v49  ;;  %v7097_v52 = vld [vmem:[%s11073_s0 + $0x27a] sm:$0x3]  ;;  %v7098_v53 = vld [vmem:[%s11073_s0 + $0x278] sm:$0x3]  ;;  %4134 = vrot.lane.b32.xlu0 %v4133_v50, %s7670_s10 }
 0x104   :  { %v4148_v54 = vld [vmem:[#allocation1 + $0x941] ss:$8 sm:$0xf0]   ;;  %973 = vst [vmem:[#allocation1 + $0x9f0] sm:$0x3] %v7096_v51 }
 0x105   :  { %978 = vst [vmem:[#allocation1 + $0x9e8] sm:$0x3] %v7097_v52  ;;  %983 = vst [vmem:[#allocation1 + $0x9e0] sm:$0x3] %v7098_v53  ;;  %v7099_v55 = vld [vmem:[%s11073_s0 + $0x276] sm:$0x3]  ;;  %v8846_v53 = vpop.permute.xlu0 %3726  }
 0x106   :  { %988 = vst [vmem:[#allocation1 + $0x9d8] sm:$0x3] %v7099_v55  ;;  %v7100_v56 = vld [vmem:[%s11073_s0 + $0x274] sm:$0x3]  ;;  %v7101_v57 = vld [vmem:[%s11073_s0 + $0x272] sm:$0x3] }
 0x107   :  { %v7102_v58 = vld [vmem:[%s11073_s0 + $0x270] sm:$0x3]  ;;  %993 = vst [vmem:[#allocation1 + $0x9d0] sm:$0x3] %v7100_v56  ;;  %998 = vst [vmem:[#allocation1 + $0x9c8] sm:$0x3] %v7101_v57 }
 0x108   :  { %v4146_v59 = vld [vmem:[#allocation1 + $0x941] ss:$8 sm:$0xf]   ;;  %1003 = vst [vmem:[#allocation1 + $0x9c0] sm:$0x3] %v7102_v58 }
 0x109   :  { %v7087_v61 = vld [vmem:[%s11073_s0 + $0x28e] sm:$0x3]  ;;  %v4150_v63 = vsel %vm2562_vm0, %v4148_v54, %v4146_v59  ;;  %v4165_v0 = vld [vmem:[#allocation1 + $0x981] ss:$8 sm:$0xf0]  }
 0x10a   :  { %928 = vst [vmem:[#allocation1 + $0xa38] sm:$0x3] %v7087_v61  ;;  %v7088_v1 = vld [vmem:[%s11073_s0 + $0x28c] sm:$0x3]  ;;  %4151 = vrot.lane.b32.xlu1 %v4150_v63, %s7670_s10  ;;  %v7089_v2 = vld [vmem:[%s11073_s0 + $0x28a] sm:$0x3] }
 0x10b   :  { %933 = vst [vmem:[#allocation1 + $0xa30] sm:$0x3] %v7088_v1  ;;  %v7090_v3 = vld [vmem:[%s11073_s0 + $0x288] sm:$0x3]  ;;  %v7091_v4 = vld [vmem:[%s11073_s0 + $0x286] sm:$0x3] }
 0x10c   :  { %v4163_v5 = vld [vmem:[#allocation1 + $0x981] ss:$8 sm:$0xf]   ;;  %938 = vst [vmem:[#allocation1 + $0xa28] sm:$0x3] %v7089_v2 }
 0x10d   :  { %943 = vst [vmem:[#allocation1 + $0xa20] sm:$0x3] %v7090_v3  ;;  %948 = vst [vmem:[#allocation1 + $0xa18] sm:$0x3] %v7091_v4  ;;  %v7092_v6 = vld [vmem:[%s11073_s0 + $0x284] sm:$0x3]  ;;  %v4167_v7 = vsel %vm2562_vm0, %v4165_v0, %v4163_v5  ;;  %v8875_v4 = vpop.permute.xlu1 %3743  }
 0x10e   :  { %953 = vst [vmem:[#allocation1 + $0xa10] sm:$0x3] %v7092_v6  ;;  %v7093_v8 = vld [vmem:[%s11073_s0 + $0x282] sm:$0x3]  ;;  %v7094_v9 = vld [vmem:[%s11073_s0 + $0x280] sm:$0x3]  ;;  %4168 = vrot.lane.b32.xlu0 %v4167_v7, %s7670_s10 }
 0x10f   :  { %v7079_v11 = vld [vmem:[%s11073_s0 + $0x29e] sm:$0x3]  ;;  %v4182_v13 = vld [vmem:[#allocation1 + $0x9c1] ss:$8 sm:$0xf0]  }
 0x110   :  { %958 = vst [vmem:[#allocation1 + $0xa08] sm:$0x3] %v7093_v8  ;;  %963 = vst [vmem:[#allocation1 + $0xa00] sm:$0x3] %v7094_v9  ;;  %v7080_v14 = vld [vmem:[%s11073_s0 + $0x29c] sm:$0x3] }
 0x111   :  { %888 = vst [vmem:[#allocation1 + $0xa78] sm:$0x3] %v7079_v11  ;;  %893 = vst [vmem:[#allocation1 + $0xa70] sm:$0x3] %v7080_v14  ;;  %v7081_v15 = vld [vmem:[%s11073_s0 + $0x29a] sm:$0x3]  ;;  %v8893_v14 = vpop.permute.xlu0 %3760  }
 0x112   :  { %v7082_v16 = vld [vmem:[%s11073_s0 + $0x298] sm:$0x3]  ;;  %v7083_v17 = vld [vmem:[%s11073_s0 + $0x296] sm:$0x3]  ;;  %898 = vst [vmem:[#allocation1 + $0xa68] sm:$0x3] %v7081_v15 }
 0x113   :  { %v4180_v18 = vld [vmem:[#allocation1 + $0x9c1] ss:$8 sm:$0xf]   ;;  %903 = vst [vmem:[#allocation1 + $0xa60] sm:$0x3] %v7082_v16 }
 0x114   :  { %908 = vst [vmem:[#allocation1 + $0xa58] sm:$0x3] %v7083_v17  ;;  %v7084_v19 = vld [vmem:[%s11073_s0 + $0x294] sm:$0x3]  ;;  %v4184_v21 = vsel %vm2562_vm0, %v4182_v13, %v4180_v18  ;;  %v7085_v22 = vld [vmem:[%s11073_s0 + $0x292] sm:$0x3] }
 0x115   :  { %913 = vst [vmem:[#allocation1 + $0xa50] sm:$0x3] %v7084_v19  ;;  %v7086_v24 = vld [vmem:[%s11073_s0 + $0x290] sm:$0x3]  ;;  %v7071_v25 = vld [vmem:[%s11073_s0 + $0x2ae] sm:$0x3]  ;;  %4185 = vrot.lane.b32.xlu1 %v4184_v21, %s7670_s10 }
 0x116   :  { %918 = vst [vmem:[#allocation1 + $0xa48] sm:$0x3] %v7085_v22  ;;  %923 = vst [vmem:[#allocation1 + $0xa40] sm:$0x3] %v7086_v24  ;;  %v7072_v26 = vld [vmem:[%s11073_s0 + $0x2ac] sm:$0x3] }
 0x117   :  { %848 = vst [vmem:[#allocation1 + $0xab8] sm:$0x3] %v7071_v25  ;;  %v7073_v27 = vld [vmem:[%s11073_s0 + $0x2aa] sm:$0x3]  ;;  %v7074_v28 = vld [vmem:[%s11073_s0 + $0x2a8] sm:$0x3] }
 0x118   :  { %v4199_v30 = vld [vmem:[#allocation1 + $0xa01] ss:$8 sm:$0xf0]   ;;  %853 = vst [vmem:[#allocation1 + $0xab0] sm:$0x3] %v7072_v26 }
 0x119   :  { %858 = vst [vmem:[#allocation1 + $0xaa8] sm:$0x3] %v7073_v27  ;;  %863 = vst [vmem:[#allocation1 + $0xaa0] sm:$0x3] %v7074_v28  ;;  %v7075_v31 = vld [vmem:[%s11073_s0 + $0x2a6] sm:$0x3] }
 0x11a   :  { %868 = vst [vmem:[#allocation1 + $0xa98] sm:$0x3] %v7075_v31  ;;  %v7076_v33 = vld [vmem:[%s11073_s0 + $0x2a4] sm:$0x3]  ;;  %v7077_v34 = vld [vmem:[%s11073_s0 + $0x2a2] sm:$0x3] }
 0x11b   :  { %v7078_v35 = vld [vmem:[%s11073_s0 + $0x2a0] sm:$0x3]  ;;  %873 = vst [vmem:[#allocation1 + $0xa90] sm:$0x3] %v7076_v33  ;;  %878 = vst [vmem:[#allocation1 + $0xa88] sm:$0x3] %v7077_v34 }
 0x11c   :  { %v4197_v37 = vld [vmem:[#allocation1 + $0xa01] ss:$8 sm:$0xf]   ;;  %883 = vst [vmem:[#allocation1 + $0xa80] sm:$0x3] %v7078_v35 }
 0x11d   :  { %v7063_v38 = vld [vmem:[%s11073_s0 + $0x2be] sm:$0x3]  ;;  %v4201_v40 = vsel %vm2562_vm0, %v4199_v30, %v4197_v37  ;;  %v7064_v41 = vld [vmem:[%s11073_s0 + $0x2bc] sm:$0x3]  ;;  %v7065_v42 = vld [vmem:[%s11073_s0 + $0x2ba] sm:$0x3]  ;;  %v8927_v30 = vpop.permute.xlu1 %3777  }
 0x11e   :  { %808 = vst [vmem:[#allocation1 + $0xaf8] sm:$0x3] %v7063_v38  ;;  %v7066_v43 = vld [vmem:[%s11073_s0 + $0x2b8] sm:$0x3]  ;;  %4202 = vrot.lane.b32.xlu0 %v4201_v40, %s7670_s10  ;;  %813 = vst [vmem:[#allocation1 + $0xaf0] sm:$0x3] %v7064_v41 }
 0x11f   :  { %v4216_v44 = vld [vmem:[#allocation1 + $0xa41] ss:$8 sm:$0xf0]   ;;  %818 = vst [vmem:[#allocation1 + $0xae8] sm:$0x3] %v7065_v42 }
 0x120   :  { %823 = vst [vmem:[#allocation1 + $0xae0] sm:$0x3] %v7066_v43  ;;  %v7067_v45 = vld [vmem:[%s11073_s0 + $0x2b6] sm:$0x3]  ;;  %v7068_v48 = vld [vmem:[%s11073_s0 + $0x2b4] sm:$0x3] }
 0x121   :  { %828 = vst [vmem:[#allocation1 + $0xad8] sm:$0x3] %v7067_v45  ;;  %v7069_v49 = vld [vmem:[%s11073_s0 + $0x2b2] sm:$0x3]  ;;  %v7070_v50 = vld [vmem:[%s11073_s0 + $0x2b0] sm:$0x3] }
 0x122   :  { %v4214_v51 = vld [vmem:[#allocation1 + $0xa41] ss:$8 sm:$0xf]   ;;  %833 = vst [vmem:[#allocation1 + $0xad0] sm:$0x3] %v7068_v48 }
 0x123   :  { %838 = vst [vmem:[#allocation1 + $0xac8] sm:$0x3] %v7069_v49  ;;  %843 = vst [vmem:[#allocation1 + $0xac0] sm:$0x3] %v7070_v50  ;;  %v7055_v52 = vld [vmem:[%s11073_s0 + $0x2ce] sm:$0x3]  ;;  %v4218_v54 = vsel %vm2562_vm0, %v4216_v44, %v4214_v51  ;;  %v8958_v49 = vpop.permute.xlu0 %3794  }
 0x124   :  { %v4233_v55 = vld [vmem:[#allocation1 + $0xa81] ss:$8 sm:$0xf0]   ;;  %768 = vst [vmem:[#allocation1 + $0xb38] sm:$0x3] %v7055_v52  ;;  %4219 = vrot.lane.b32.xlu1 %v4218_v54, %s7670_s10 }
 0x125   :  { %v7056_v56 = vld [vmem:[%s11073_s0 + $0x2cc] sm:$0x3]  ;;  %v7057_v57 = vld [vmem:[%s11073_s0 + $0x2ca] sm:$0x3]  ;;  %v7058_v58 = vld [vmem:[%s11073_s0 + $0x2c8] sm:$0x3] }
 0x126   :  { %773 = vst [vmem:[#allocation1 + $0xb30] sm:$0x3] %v7056_v56  ;;  %v7059_v59 = vld [vmem:[%s11073_s0 + $0x2c6] sm:$0x3]  ;;  %778 = vst [vmem:[#allocation1 + $0xb28] sm:$0x3] %v7057_v57 }
 0x127   :  { %v4231_v61 = vld [vmem:[#allocation1 + $0xa81] ss:$8 sm:$0xf]   ;;  %783 = vst [vmem:[#allocation1 + $0xb20] sm:$0x3] %v7058_v58 }
 0x128   :  { %788 = vst [vmem:[#allocation1 + $0xb18] sm:$0x3] %v7059_v59  ;;  %v7060_v63 = vld [vmem:[%s11073_s0 + $0x2c4] sm:$0x3]  ;;  %v4235_v0 = vsel %vm2562_vm0, %v4233_v55, %v4231_v61  ;;  %v7061_v1 = vld [vmem:[%s11073_s0 + $0x2c2] sm:$0x3] }
 0x129   :  { %793 = vst [vmem:[#allocation1 + $0xb10] sm:$0x3] %v7060_v63  ;;  %v7062_v2 = vld [vmem:[%s11073_s0 + $0x2c0] sm:$0x3]  ;;  %v7047_v3 = vld [vmem:[%s11073_s0 + $0x2de] sm:$0x3]  ;;  %4236 = vrot.lane.b32.xlu0 %v4235_v0, %s7670_s10 }
 0x12a   :  { %v4250_v5 = vld [vmem:[#allocation1 + $0xac1] ss:$8 sm:$0xf0]   ;;  %798 = vst [vmem:[#allocation1 + $0xb08] sm:$0x3] %v7061_v1  ;;  %v8987_v1 = vpop.permute.xlu1 %3811  }
 0x12b   :  { %803 = vst [vmem:[#allocation1 + $0xb00] sm:$0x3] %v7062_v2  ;;  %728 = vst [vmem:[#allocation1 + $0xb78] sm:$0x3] %v7047_v3  ;;  %v7048_v6 = vld [vmem:[%s11073_s0 + $0x2dc] sm:$0x3] }
 0x12c   :  { %733 = vst [vmem:[#allocation1 + $0xb70] sm:$0x3] %v7048_v6  ;;  %v7049_v7 = vld [vmem:[%s11073_s0 + $0x2da] sm:$0x3]  ;;  %v7050_v8 = vld [vmem:[%s11073_s0 + $0x2d8] sm:$0x3] }
 0x12d   :  { %v7051_v9 = vld [vmem:[%s11073_s0 + $0x2d6] sm:$0x3]  ;;  %v4248_v11 = vld [vmem:[#allocation1 + $0xac1] ss:$8 sm:$0xf]  }
 0x12e   :  { %738 = vst [vmem:[#allocation1 + $0xb68] sm:$0x3] %v7049_v7  ;;  %743 = vst [vmem:[#allocation1 + $0xb60] sm:$0x3] %v7050_v8  ;;  %v7052_v13 = vld [vmem:[%s11073_s0 + $0x2d4] sm:$0x3]  ;;  %v4252_v15 = vsel %vm2562_vm0, %v4250_v5, %v4248_v11  ;;  %v9005_v11 = vpop.permute.xlu0 %3828  }
 0x12f   :  { %748 = vst [vmem:[#allocation1 + $0xb58] sm:$0x3] %v7051_v9  ;;  %753 = vst [vmem:[#allocation1 + $0xb50] sm:$0x3] %v7052_v13  ;;  %v7053_v16 = vld [vmem:[%s11073_s0 + $0x2d2] sm:$0x3]  ;;  %4253 = vrot.lane.b32.xlu1 %v4252_v15, %s7670_s10 }
 0x130   :  { %v7054_v17 = vld [vmem:[%s11073_s0 + $0x2d0] sm:$0x3]  ;;  %v7039_v18 = vld [vmem:[%s11073_s0 + $0x2ee] sm:$0x3]  ;;  %758 = vst [vmem:[#allocation1 + $0xb48] sm:$0x3] %v7053_v16 }
 0x131   :  { %763 = vst [vmem:[#allocation1 + $0xb40] sm:$0x3] %v7054_v17  ;;  %688 = vst [vmem:[#allocation1 + $0xbb8] sm:$0x3] %v7039_v18  ;;  %v7040_v19 = vld [vmem:[%s11073_s0 + $0x2ec] sm:$0x3] }
 0x132   :  { %v7041_v21 = vld [vmem:[%s11073_s0 + $0x2ea] sm:$0x3]  ;;  %v7042_v22 = vld [vmem:[%s11073_s0 + $0x2e8] sm:$0x3]  ;;  %693 = vst [vmem:[#allocation1 + $0xbb0] sm:$0x3] %v7040_v19 }
 0x133   :  { %v4267_v24 = vld [vmem:[#allocation1 + $0xb01] ss:$8 sm:$0xf0]   ;;  %698 = vst [vmem:[#allocation1 + $0xba8] sm:$0x3] %v7041_v21 }
 0x134   :  { %703 = vst [vmem:[#allocation1 + $0xba0] sm:$0x3] %v7042_v22  ;;  %v7043_v25 = vld [vmem:[%s11073_s0 + $0x2e6] sm:$0x3]  ;;  %v7044_v26 = vld [vmem:[%s11073_s0 + $0x2e4] sm:$0x3] }
 0x135   :  { %708 = vst [vmem:[#allocation1 + $0xb98] sm:$0x3] %v7043_v25  ;;  %v7045_v27 = vld [vmem:[%s11073_s0 + $0x2e2] sm:$0x3]  ;;  %v7046_v28 = vld [vmem:[%s11073_s0 + $0x2e0] sm:$0x3] }
 0x136   :  { %v4265_v31 = vld [vmem:[#allocation1 + $0xb01] ss:$8 sm:$0xf]   ;;  %713 = vst [vmem:[#allocation1 + $0xb90] sm:$0x3] %v7044_v26 }
 0x137   :  { %718 = vst [vmem:[#allocation1 + $0xb88] sm:$0x3] %v7045_v27  ;;  %723 = vst [vmem:[#allocation1 + $0xb80] sm:$0x3] %v7046_v28  ;;  %v7031_v33 = vld [vmem:[%s11073_s0 + $0x2fe] sm:$0x3]  ;;  %v4269_v34 = vsel %vm2562_vm0, %v4267_v24, %v4265_v31  ;;  %v9039_v28 = vpop.permute.xlu1 %3845  }
 0x138   :  { %648 = vst [vmem:[#allocation1 + $0xbf8] sm:$0x3] %v7031_v33  ;;  %v7032_v35 = vld [vmem:[%s11073_s0 + $0x2fc] sm:$0x3]  ;;  %v7033_v37 = vld [vmem:[%s11073_s0 + $0x2fa] sm:$0x3]  ;;  %4270 = vrot.lane.b32.xlu0 %v4269_v34, %s7670_s10 }
 0x139   :  { %v7034_v38 = vld [vmem:[%s11073_s0 + $0x2f8] sm:$0x3]  ;;  %653 = vst [vmem:[#allocation1 + $0xbf0] sm:$0x3] %v7032_v35  ;;  %658 = vst [vmem:[#allocation1 + $0xbe8] sm:$0x3] %v7033_v37 }
 0x13a   :  { %v4284_v40 = vld [vmem:[#allocation1 + $0xb41] ss:$8 sm:$0xf0]   ;;  %663 = vst [vmem:[#allocation1 + $0xbe0] sm:$0x3] %v7034_v38 }
 0x13b   :  { %v7035_v41 = vld [vmem:[%s11073_s0 + $0x2f6] sm:$0x3]  ;;  %v7036_v42 = vld [vmem:[%s11073_s0 + $0x2f4] sm:$0x3]  ;;  %v7037_v43 = vld [vmem:[%s11073_s0 + $0x2f2] sm:$0x3] }
 0x13c   :  { %668 = vst [vmem:[#allocation1 + $0xbd8] sm:$0x3] %v7035_v41  ;;  %v7038_v44 = vld [vmem:[%s11073_s0 + $0x2f0] sm:$0x3]  ;;  %673 = vst [vmem:[#allocation1 + $0xbd0] sm:$0x3] %v7036_v42 }
 0x13d   :  { %v4282_v45 = vld [vmem:[#allocation1 + $0xb41] ss:$8 sm:$0xf]   ;;  %678 = vst [vmem:[#allocation1 + $0xbc8] sm:$0x3] %v7037_v43 }
 0x13e   :  { %683 = vst [vmem:[#allocation1 + $0xbc0] sm:$0x3] %v7038_v44  ;;  %v7023_v48 = vld [vmem:[%s11073_s0 + $0x30e] sm:$0x3]  ;;  %v4286_v50 = vsel %vm2562_vm0, %v4284_v40, %v4282_v45  ;;  %v7024_v52 = vld [vmem:[%s11073_s0 + $0x30c] sm:$0x3] }
 0x13f   :  { %v4301_v51 = vld [vmem:[#allocation1 + $0xb81] ss:$8 sm:$0xf0]   ;;  %608 = vst [vmem:[#allocation1 + $0xc38] sm:$0x3] %v7023_v48  ;;  %4287 = vrot.lane.b32.xlu1 %v4286_v50, %s7670_s10  ;;  %v9070_v50 = vpop.permute.xlu0 %3862  }
 0x140   :  { %613 = vst [vmem:[#allocation1 + $0xc30] sm:$0x3] %v7024_v52  ;;  %v7025_v54 = vld [vmem:[%s11073_s0 + $0x30a] sm:$0x3]  ;;  %v7026_v55 = vld [vmem:[%s11073_s0 + $0x308] sm:$0x3] }
 0x141   :  { %v7027_v56 = vld [vmem:[%s11073_s0 + $0x306] sm:$0x3]  ;;  %v4299_v57 = vld [vmem:[#allocation1 + $0xb81] ss:$8 sm:$0xf]  }
 0x142   :  { %618 = vst [vmem:[#allocation1 + $0xc28] sm:$0x3] %v7025_v54  ;;  %623 = vst [vmem:[#allocation1 + $0xc20] sm:$0x3] %v7026_v55  ;;  %v7028_v58 = vld [vmem:[%s11073_s0 + $0x304] sm:$0x3]  ;;  %v4303_v59 = vsel %vm2562_vm0, %v4301_v51, %v4299_v57 }
 0x143   :  { %628 = vst [vmem:[#allocation1 + $0xc18] sm:$0x3] %v7027_v56  ;;  %633 = vst [vmem:[#allocation1 + $0xc10] sm:$0x3] %v7028_v58  ;;  %v7029_v61 = vld [vmem:[%s11073_s0 + $0x302] sm:$0x3]  ;;  %4304 = vrot.lane.b32.xlu0 %v4303_v59, %s7670_s10 }
 0x144   :  { %v7030_v63 = vld [vmem:[%s11073_s0 + $0x300] sm:$0x3]  ;;  %v7015_v0 = vld [vmem:[%s11073_s0 + $0x31e] sm:$0x3]  ;;  %638 = vst [vmem:[#allocation1 + $0xc08] sm:$0x3] %v7029_v61 }
 0x145   :  { %v4318_v2 = vld [vmem:[#allocation1 + $0xbc1] ss:$8 sm:$0xf0]   ;;  %643 = vst [vmem:[#allocation1 + $0xc00] sm:$0x3] %v7030_v63 }
 0x146   :  { %568 = vst [vmem:[#allocation1 + $0xc78] sm:$0x3] %v7015_v0  ;;  %v7016_v3 = vld [vmem:[%s11073_s0 + $0x31c] sm:$0x3]  ;;  %v7017_v5 = vld [vmem:[%s11073_s0 + $0x31a] sm:$0x3] }
 0x147   :  { %573 = vst [vmem:[#allocation1 + $0xc70] sm:$0x3] %v7016_v3  ;;  %v7018_v6 = vld [vmem:[%s11073_s0 + $0x318] sm:$0x3]  ;;  %v7019_v7 = vld [vmem:[%s11073_s0 + $0x316] sm:$0x3]  ;;  %v9099_v3 = vpop.permute.xlu1 %3879  }
 0x148   :  { %v4316_v8 = vld [vmem:[#allocation1 + $0xbc1] ss:$8 sm:$0xf]   ;;  %578 = vst [vmem:[#allocation1 + $0xc68] sm:$0x3] %v7017_v5 }
 0x149   :  { %583 = vst [vmem:[#allocation1 + $0xc60] sm:$0x3] %v7018_v6  ;;  %588 = vst [vmem:[#allocation1 + $0xc58] sm:$0x3] %v7019_v7  ;;  %v7020_v9 = vld [vmem:[%s11073_s0 + $0x314] sm:$0x3]  ;;  %v4320_v13 = vsel %vm2562_vm0, %v4318_v2, %v4316_v8 }
 0x14a   :  { %593 = vst [vmem:[#allocation1 + $0xc50] sm:$0x3] %v7020_v9  ;;  %v7021_v15 = vld [vmem:[%s11073_s0 + $0x312] sm:$0x3]  ;;  %v7022_v16 = vld [vmem:[%s11073_s0 + $0x310] sm:$0x3]  ;;  %4321 = vrot.lane.b32.xlu1 %v4320_v13, %s7670_s10 }
 0x14b   :  { %v7007_v17 = vld [vmem:[%s11073_s0 + $0x32e] sm:$0x3]  ;;  %598 = vst [vmem:[#allocation1 + $0xc48] sm:$0x3] %v7021_v15  ;;  %603 = vst [vmem:[#allocation1 + $0xc40] sm:$0x3] %v7022_v16  ;;  %v9117_v16 = vpop.permute.xlu0 %3896  }
 0x14c   :  { %528 = vst [vmem:[#allocation1 + $0xcb8] sm:$0x3] %v7007_v17  ;;  %v7008_v18 = vld [vmem:[%s11073_s0 + $0x32c] sm:$0x3]  ;;  %v7009_v19 = vld [vmem:[%s11073_s0 + $0x32a] sm:$0x3] }
 0x14d   :  { %v7010_v21 = vld [vmem:[%s11073_s0 + $0x328] sm:$0x3]  ;;  %533 = vst [vmem:[#allocation1 + $0xcb0] sm:$0x3] %v7008_v18  ;;  %538 = vst [vmem:[#allocation1 + $0xca8] sm:$0x3] %v7009_v19 }
 0x14e   :  { %v4335_v22 = vld [vmem:[#allocation1 + $0xc01] ss:$8 sm:$0xf0]   ;;  %543 = vst [vmem:[#allocation1 + $0xca0] sm:$0x3] %v7010_v21 }
 0x14f   :  { %v7011_v24 = vld [vmem:[%s11073_s0 + $0x326] sm:$0x3]  ;;  %v7012_v25 = vld [vmem:[%s11073_s0 + $0x324] sm:$0x3]  ;;  %v7013_v26 = vld [vmem:[%s11073_s0 + $0x322] sm:$0x3] }
 0x150   :  { %548 = vst [vmem:[#allocation1 + $0xc98] sm:$0x3] %v7011_v24  ;;  %v7014_v27 = vld [vmem:[%s11073_s0 + $0x320] sm:$0x3]  ;;  %553 = vst [vmem:[#allocation1 + $0xc90] sm:$0x3] %v7012_v25 }
 0x151   :  { %v4333_v31 = vld [vmem:[#allocation1 + $0xc01] ss:$8 sm:$0xf]   ;;  %558 = vst [vmem:[#allocation1 + $0xc88] sm:$0x3] %v7013_v26 }
 0x152   :  { %563 = vst [vmem:[#allocation1 + $0xc80] sm:$0x3] %v7014_v27  ;;  %v6999_v33 = vld [vmem:[%s11073_s0 + $0x33e] sm:$0x3]  ;;  %v4337_v34 = vsel %vm2562_vm0, %v4335_v22, %v4333_v31  ;;  %v7000_v35 = vld [vmem:[%s11073_s0 + $0x33c] sm:$0x3] }
 0x153   :  { %488 = vst [vmem:[#allocation1 + $0xcf8] sm:$0x3] %v6999_v33  ;;  %v7001_v37 = vld [vmem:[%s11073_s0 + $0x33a] sm:$0x3]  ;;  %v7002_v38 = vld [vmem:[%s11073_s0 + $0x338] sm:$0x3]  ;;  %4338 = vrot.lane.b32.xlu0 %v4337_v34, %s7670_s10 }
 0x154   :  { %v4352_v40 = vld [vmem:[#allocation1 + $0xc41] ss:$8 sm:$0xf0]   ;;  %493 = vst [vmem:[#allocation1 + $0xcf0] sm:$0x3] %v7000_v35  ;;  %v9151_v35 = vpop.permute.xlu1 %3913  }
 0x155   :  { %498 = vst [vmem:[#allocation1 + $0xce8] sm:$0x3] %v7001_v37  ;;  %503 = vst [vmem:[#allocation1 + $0xce0] sm:$0x3] %v7002_v38  ;;  %v7003_v41 = vld [vmem:[%s11073_s0 + $0x336] sm:$0x3] }
 0x156   :  { %508 = vst [vmem:[#allocation1 + $0xcd8] sm:$0x3] %v7003_v41  ;;  %v7004_v42 = vld [vmem:[%s11073_s0 + $0x334] sm:$0x3]  ;;  %v7005_v43 = vld [vmem:[%s11073_s0 + $0x332] sm:$0x3] }
 0x157   :  { %v7006_v44 = vld [vmem:[%s11073_s0 + $0x330] sm:$0x3]  ;;  %513 = vst [vmem:[#allocation1 + $0xcd0] sm:$0x3] %v7004_v42  ;;  %518 = vst [vmem:[#allocation1 + $0xcc8] sm:$0x3] %v7005_v43 }
 0x158   :  { %v4350_v45 = vld [vmem:[#allocation1 + $0xc41] ss:$8 sm:$0xf]   ;;  %523 = vst [vmem:[#allocation1 + $0xcc0] sm:$0x3] %v7006_v44 }
 0x159   :  { %v6991_v48 = vld [vmem:[%s11073_s0 + $0x34e] sm:$0x3]  ;;  %v4354_v51 = vsel %vm2562_vm0, %v4352_v40, %v4350_v45  ;;  %v4369_v52 = vld [vmem:[#allocation1 + $0xc81] ss:$8 sm:$0xf0]  }
 0x15a   :  { %448 = vst [vmem:[#allocation1 + $0xd38] sm:$0x3] %v6991_v48  ;;  %v6992_v54 = vld [vmem:[%s11073_s0 + $0x34c] sm:$0x3]  ;;  %4355 = vrot.lane.b32.xlu1 %v4354_v51, %s7670_s10  ;;  %v6993_v55 = vld [vmem:[%s11073_s0 + $0x34a] sm:$0x3] }
 0x15b   :  { %453 = vst [vmem:[#allocation1 + $0xd30] sm:$0x3] %v6992_v54  ;;  %v6994_v56 = vld [vmem:[%s11073_s0 + $0x348] sm:$0x3]  ;;  %v6995_v57 = vld [vmem:[%s11073_s0 + $0x346] sm:$0x3] }
 0x15c   :  { %v4367_v58 = vld [vmem:[#allocation1 + $0xc81] ss:$8 sm:$0xf]   ;;  %458 = vst [vmem:[#allocation1 + $0xd28] sm:$0x3] %v6993_v55 }
 0x15d   :  { %463 = vst [vmem:[#allocation1 + $0xd20] sm:$0x3] %v6994_v56  ;;  %468 = vst [vmem:[#allocation1 + $0xd18] sm:$0x3] %v6995_v57  ;;  %v6996_v59 = vld [vmem:[%s11073_s0 + $0x344] sm:$0x3]  ;;  %v4371_v61 = vsel %vm2562_vm0, %v4369_v52, %v4367_v58  ;;  %v9182_v56 = vpop.permute.xlu0 %3930  }
 0x15e   :  { %473 = vst [vmem:[#allocation1 + $0xd10] sm:$0x3] %v6996_v59  ;;  %v6997_v63 = vld [vmem:[%s11073_s0 + $0x342] sm:$0x3]  ;;  %v6998_v0 = vld [vmem:[%s11073_s0 + $0x340] sm:$0x3]  ;;  %4372 = vrot.lane.b32.xlu0 %v4371_v61, %s7670_s10 }
 0x15f   :  { %v6983_v2 = vld [vmem:[%s11073_s0 + $0x35e] sm:$0x3]  ;;  %v4386_v5 = vld [vmem:[#allocation1 + $0xcc1] ss:$8 sm:$0xf0]  }
 0x160   :  { %478 = vst [vmem:[#allocation1 + $0xd08] sm:$0x3] %v6997_v63  ;;  %483 = vst [vmem:[#allocation1 + $0xd00] sm:$0x3] %v6998_v0  ;;  %v6984_v6 = vld [vmem:[%s11073_s0 + $0x35c] sm:$0x3] }
 0x161   :  { %408 = vst [vmem:[#allocation1 + $0xd78] sm:$0x3] %v6983_v2  ;;  %413 = vst [vmem:[#allocation1 + $0xd70] sm:$0x3] %v6984_v6  ;;  %v6985_v7 = vld [vmem:[%s11073_s0 + $0x35a] sm:$0x3] }
 0x162   :  { %v6986_v8 = vld [vmem:[%s11073_s0 + $0x358] sm:$0x3]  ;;  %v6987_v9 = vld [vmem:[%s11073_s0 + $0x356] sm:$0x3]  ;;  %418 = vst [vmem:[#allocation1 + $0xd68] sm:$0x3] %v6985_v7 }
 0x163   :  { %v4384_v13 = vld [vmem:[#allocation1 + $0xcc1] ss:$8 sm:$0xf]   ;;  %423 = vst [vmem:[#allocation1 + $0xd60] sm:$0x3] %v6986_v8 }
 0x164   :  { %428 = vst [vmem:[#allocation1 + $0xd58] sm:$0x3] %v6987_v9  ;;  %v6988_v15 = vld [vmem:[%s11073_s0 + $0x354] sm:$0x3]  ;;  %v4388_v17 = vsel %vm2562_vm0, %v4386_v5, %v4384_v13  ;;  %v6989_v18 = vld [vmem:[%s11073_s0 + $0x352] sm:$0x3]  ;;  %v9211_v13 = vpop.permute.xlu1 %3947  }
 0x165   :  { %433 = vst [vmem:[#allocation1 + $0xd50] sm:$0x3] %v6988_v15  ;;  %v6990_v19 = vld [vmem:[%s11073_s0 + $0x350] sm:$0x3]  ;;  %v6975_v21 = vld [vmem:[%s11073_s0 + $0x36e] sm:$0x3]  ;;  %4389 = vrot.lane.b32.xlu1 %v4388_v17, %s7670_s10 }
 0x166   :  { %438 = vst [vmem:[#allocation1 + $0xd48] sm:$0x3] %v6989_v18  ;;  %443 = vst [vmem:[#allocation1 + $0xd40] sm:$0x3] %v6990_v19  ;;  %v6976_v22 = vld [vmem:[%s11073_s0 + $0x36c] sm:$0x3] }
 0x167   :  { %368 = vst [vmem:[#allocation1 + $0xdb8] sm:$0x3] %v6975_v21  ;;  %v6977_v24 = vld [vmem:[%s11073_s0 + $0x36a] sm:$0x3]  ;;  %v6978_v25 = vld [vmem:[%s11073_s0 + $0x368] sm:$0x3] }
 0x168   :  { %v4403_v26 = vld [vmem:[#allocation1 + $0xd01] ss:$8 sm:$0xf0]   ;;  %373 = vst [vmem:[#allocation1 + $0xdb0] sm:$0x3] %v6976_v22 }
 0x169   :  { %378 = vst [vmem:[#allocation1 + $0xda8] sm:$0x3] %v6977_v24  ;;  %383 = vst [vmem:[#allocation1 + $0xda0] sm:$0x3] %v6978_v25  ;;  %v6979_v27 = vld [vmem:[%s11073_s0 + $0x366] sm:$0x3]  ;;  %v9229_v25 = vpop.permute.xlu0 %3964  }
 0x16a   :  { %388 = vst [vmem:[#allocation1 + $0xd98] sm:$0x3] %v6979_v27  ;;  %v6980_v31 = vld [vmem:[%s11073_s0 + $0x364] sm:$0x3]  ;;  %v6981_v33 = vld [vmem:[%s11073_s0 + $0x362] sm:$0x3] }
 0x16b   :  { %v6982_v34 = vld [vmem:[%s11073_s0 + $0x360] sm:$0x3]  ;;  %393 = vst [vmem:[#allocation1 + $0xd90] sm:$0x3] %v6980_v31  ;;  %398 = vst [vmem:[#allocation1 + $0xd88] sm:$0x3] %v6981_v33 }
 0x16c   :  { %v4401_v37 = vld [vmem:[#allocation1 + $0xd01] ss:$8 sm:$0xf]   ;;  %403 = vst [vmem:[#allocation1 + $0xd80] sm:$0x3] %v6982_v34 }
 0x16d   :  { %v6967_v38 = vld [vmem:[%s11073_s0 + $0x37e] sm:$0x3]  ;;  %v4405_v40 = vsel %vm2562_vm0, %v4403_v26, %v4401_v37  ;;  %v6968_v41 = vld [vmem:[%s11073_s0 + $0x37c] sm:$0x3]  ;;  %v6969_v42 = vld [vmem:[%s11073_s0 + $0x37a] sm:$0x3] }
 0x16e   :  { %328 = vst [vmem:[#allocation1 + $0xdf8] sm:$0x3] %v6967_v38  ;;  %v6970_v43 = vld [vmem:[%s11073_s0 + $0x378] sm:$0x3]  ;;  %4406 = vrot.lane.b32.xlu0 %v4405_v40, %s7670_s10  ;;  %333 = vst [vmem:[#allocation1 + $0xdf0] sm:$0x3] %v6968_v41 }
 0x16f   :  { %v4420_v44 = vld [vmem:[#allocation1 + $0xd41] ss:$8 sm:$0xf0]   ;;  %338 = vst [vmem:[#allocation1 + $0xde8] sm:$0x3] %v6969_v42 }
 0x170   :  { %343 = vst [vmem:[#allocation1 + $0xde0] sm:$0x3] %v6970_v43  ;;  %v6971_v45 = vld [vmem:[%s11073_s0 + $0x376] sm:$0x3]  ;;  %v6972_v48 = vld [vmem:[%s11073_s0 + $0x374] sm:$0x3] }
 0x171   :  { %348 = vst [vmem:[#allocation1 + $0xdd8] sm:$0x3] %v6971_v45  ;;  %v6973_v51 = vld [vmem:[%s11073_s0 + $0x372] sm:$0x3]  ;;  %v6974_v52 = vld [vmem:[%s11073_s0 + $0x370] sm:$0x3] }
 0x172   :  { %v4418_v54 = vld [vmem:[#allocation1 + $0xd41] ss:$8 sm:$0xf]   ;;  %353 = vst [vmem:[#allocation1 + $0xdd0] sm:$0x3] %v6972_v48 }
 0x173   :  { %358 = vst [vmem:[#allocation1 + $0xdc8] sm:$0x3] %v6973_v51  ;;  %363 = vst [vmem:[#allocation1 + $0xdc0] sm:$0x3] %v6974_v52  ;;  %v6959_v55 = vld [vmem:[%s11073_s0 + $0x38e] sm:$0x3]  ;;  %v4422_v57 = vsel %vm2562_vm0, %v4420_v44, %v4418_v54  ;;  %v9250_v44 = vpop.permute.xlu1 %3981  }
 0x174   :  { %v4437_v58 = vld [vmem:[#allocation1 + $0xd81] ss:$8 sm:$0xf0]   ;;  %288 = vst [vmem:[#allocation1 + $0xe38] sm:$0x3] %v6959_v55  ;;  %4423 = vrot.lane.b32.xlu1 %v4422_v57, %s7670_s10 }
 0x175   :  { %v6960_v59 = vld [vmem:[%s11073_s0 + $0x38c] sm:$0x3]  ;;  %v6961_v61 = vld [vmem:[%s11073_s0 + $0x38a] sm:$0x3]  ;;  %v6962_v63 = vld [vmem:[%s11073_s0 + $0x388] sm:$0x3] }
 0x176   :  { %293 = vst [vmem:[#allocation1 + $0xe30] sm:$0x3] %v6960_v59  ;;  %v6963_v0 = vld [vmem:[%s11073_s0 + $0x386] sm:$0x3]  ;;  %298 = vst [vmem:[#allocation1 + $0xe28] sm:$0x3] %v6961_v61 }
 0x177   :  { %v4435_v2 = vld [vmem:[#allocation1 + $0xd81] ss:$8 sm:$0xf]   ;;  %303 = vst [vmem:[#allocation1 + $0xe20] sm:$0x3] %v6962_v63 }
 0x178   :  { %308 = vst [vmem:[#allocation1 + $0xe18] sm:$0x3] %v6963_v0  ;;  %v6964_v5 = vld [vmem:[%s11073_s0 + $0x384] sm:$0x3]  ;;  %v4439_v6 = vsel %vm2562_vm0, %v4437_v58, %v4435_v2  ;;  %v6965_v7 = vld [vmem:[%s11073_s0 + $0x382] sm:$0x3]  ;;  %v9302_v2 = vpop.permute.xlu0 %3998  }
 0x179   :  { %313 = vst [vmem:[#allocation1 + $0xe10] sm:$0x3] %v6964_v5  ;;  %v6966_v8 = vld [vmem:[%s11073_s0 + $0x380] sm:$0x3]  ;;  %v6951_v9 = vld [vmem:[%s11073_s0 + $0x39e] sm:$0x3]  ;;  %4440 = vrot.lane.b32.xlu0 %v4439_v6, %s7670_s10 }
 0x17a   :  { %v4454_v15 = vld [vmem:[#allocation1 + $0xdc1] ss:$8 sm:$0xf0]   ;;  %318 = vst [vmem:[#allocation1 + $0xe08] sm:$0x3] %v6965_v7 }
 0x17b   :  { %323 = vst [vmem:[#allocation1 + $0xe00] sm:$0x3] %v6966_v8  ;;  %248 = vst [vmem:[#allocation1 + $0xe78] sm:$0x3] %v6951_v9  ;;  %v6952_v17 = vld [vmem:[%s11073_s0 + $0x39c] sm:$0x3] }
 0x17c   :  { %253 = vst [vmem:[#allocation1 + $0xe70] sm:$0x3] %v6952_v17  ;;  %v6953_v18 = vld [vmem:[%s11073_s0 + $0x39a] sm:$0x3]  ;;  %v6954_v19 = vld [vmem:[%s11073_s0 + $0x398] sm:$0x3] }
 0x17d   :  { %v6955_v21 = vld [vmem:[%s11073_s0 + $0x396] sm:$0x3]  ;;  %v4452_v22 = vld [vmem:[#allocation1 + $0xdc1] ss:$8 sm:$0xf]  }
 0x17e   :  { %258 = vst [vmem:[#allocation1 + $0xe68] sm:$0x3] %v6953_v18  ;;  %263 = vst [vmem:[#allocation1 + $0xe60] sm:$0x3] %v6954_v19  ;;  %v6956_v24 = vld [vmem:[%s11073_s0 + $0x394] sm:$0x3]  ;;  %v4456_v26 = vsel %vm2562_vm0, %v4454_v15, %v4452_v22 }
 0x17f   :  { %268 = vst [vmem:[#allocation1 + $0xe58] sm:$0x3] %v6955_v21  ;;  %273 = vst [vmem:[#allocation1 + $0xe50] sm:$0x3] %v6956_v24  ;;  %v6957_v27 = vld [vmem:[%s11073_s0 + $0x392] sm:$0x3]  ;;  %4457 = vrot.lane.b32.xlu1 %v4456_v26, %s7670_s10  ;;  %v9333_v26 = vpop.permute.xlu1 %4015  }
 0x180   :  { %v6958_v31 = vld [vmem:[%s11073_s0 + $0x390] sm:$0x3]  ;;  %v6943_v33 = vld [vmem:[%s11073_s0 + $0x3ae] sm:$0x3]  ;;  %278 = vst [vmem:[#allocation1 + $0xe48] sm:$0x3] %v6957_v27 }
 0x181   :  { %283 = vst [vmem:[#allocation1 + $0xe40] sm:$0x3] %v6958_v31  ;;  %v2560_v34 = vld [vmem:[#allocation1] ss:$8 sm:$0xf]  }
 0x182   :  { %v2561_v37 = vld [vmem:[#allocation1] ss:$8 sm:$0xf0]   ;;  %208 = vst [vmem:[#allocation1 + $0xeb8] sm:$0x3] %v6943_v33 }
 0x183   :  { %v4471_v38 = vld [vmem:[#allocation1 + $0xe01] ss:$8 sm:$0xf0]   ;;  %v2563_v40 = vsel %vm2562_vm0, %v2561_v37, %v2560_v34  ;;  %v2588_v41 = vld [vmem:[#allocation1 + $0x80] ss:$8 sm:$0xf]  }
 0x184   :  { %2565 = vst.msk [vmem:[#allocation0] sm:$0x3] %vm2564_vm1, %v2563_v40   ;;  %2567 = vst.msk [vmem:[#allocation0 + $0x6] sm:$0xc] %vm2564_vm1, %v2563_v40   ;;  %v6944_v43 = vld [vmem:[%s11073_s0 + $0x3ac] sm:$0x3] }
 0x185   :  { %2569 = vst.msk [vmem:[#allocation0 + $0xc] sm:$0x30] %vm2564_vm1, %v2563_v40   ;;  %2571 = vst.msk [vmem:[#allocation0 + $0x12] sm:$0xc0] %vm2564_vm1, %v2563_v40   ;;  %v6945_v48 = vld [vmem:[%s11073_s0 + $0x3aa] sm:$0x3] }
 0x186   :  { %v2590_v42 = vld [vmem:[#allocation1 + $0x80] ss:$8 sm:$0xf0]   ;;  %v4469_v45 = vld [vmem:[#allocation1 + $0xe01] ss:$8 sm:$0xf]  }
 0x187   :  { %3526 = vst.msk [vmem:[#allocation0] sm:$0x3] %vm3525_vm2, %v8514_v29   ;;  %3528 = vst.msk [vmem:[#allocation0 + $0x6] sm:$0xc] %vm3525_vm2, %v8514_v29   ;;  %v4473_v51 = vsel %vm2562_vm0, %v4471_v38, %v4469_v45  ;;  %v6946_v52 = vld [vmem:[%s11073_s0 + $0x3a8] sm:$0x3] }
 0x188   :  { %3530 = vst.msk [vmem:[#allocation0 + $0xc] sm:$0x30] %vm3525_vm2, %v8514_v29   ;;  %3532 = vst.msk [vmem:[#allocation0 + $0x12] sm:$0xc0] %vm3525_vm2, %v8514_v29   ;;  %v2592_v29 = vsel %vm2562_vm0, %v2590_v42, %v2588_v41  ;;  %v6947_v54 = vld [vmem:[%s11073_s0 + $0x3a6] sm:$0x3]  ;;  %4474 = vrot.lane.b32.xlu0 %v4473_v51, %s7670_s10  ;;  %v9350_v41 = vpop.permute.xlu0 %4032  }
 0x189   :  { %213 = vst [vmem:[#allocation1 + $0xeb0] sm:$0x3] %v6944_v43  ;;  %2595 = vst.msk [vmem:[#allocation0 + $0x40] sm:$0x3] %vm2564_vm1, %v2592_v29   ;;  %v6948_v55 = vld [vmem:[%s11073_s0 + $0x3a4] sm:$0x3] }
 0x18a   :  { %2597 = vst.msk [vmem:[#allocation0 + $0x46] sm:$0xc] %vm2564_vm1, %v2592_v29   ;;  %2599 = vst.msk [vmem:[#allocation0 + $0x4c] sm:$0x30] %vm2564_vm1, %v2592_v29   ;;  %v6950_v58 = vld [vmem:[%s11073_s0 + $0x3a0] sm:$0x3] }
 0x18b   :  { %2601 = vst.msk [vmem:[#allocation0 + $0x52] sm:$0xc0] %vm2564_vm1, %v2592_v29   ;;  %218 = vst [vmem:[#allocation1 + $0xea8] sm:$0x3] %v6945_v48  ;;  %v6935_v59 = vld [vmem:[%s11073_s0 + $0x3be] sm:$0x3] }
 0x18c   :  { %v4488_v57 = vld [vmem:[#allocation1 + $0xe41] ss:$8 sm:$0xf0]   ;;  %3560 = vst.msk [vmem:[#allocation0 + $0x40] sm:$0x3] %vm3525_vm2, %v8539_v39  }
 0x18d   :  { %3562 = vst.msk [vmem:[#allocation0 + $0x46] sm:$0xc] %vm3525_vm2, %v8539_v39   ;;  %3564 = vst.msk [vmem:[#allocation0 + $0x4c] sm:$0x30] %vm3525_vm2, %v8539_v39   ;;  %v6936_v61 = vld [vmem:[%s11073_s0 + $0x3bc] sm:$0x3] }
 0x18e   :  { %3566 = vst.msk [vmem:[#allocation0 + $0x52] sm:$0xc0] %vm3525_vm2, %v8539_v39   ;;  %223 = vst [vmem:[#allocation1 + $0xea0] sm:$0x3] %v6946_v52  ;;  %v6949_v39 = vld [vmem:[%s11073_s0 + $0x3a2] sm:$0x3] }
 0x18f   :  { %228 = vst [vmem:[#allocation1 + $0xe98] sm:$0x3] %v6947_v54  ;;  %233 = vst [vmem:[#allocation1 + $0xe90] sm:$0x3] %v6948_v55  ;;  %v6937_v0 = vld [vmem:[%s11073_s0 + $0x3ba] sm:$0x3] }
 0x190   :  { %238 = vst [vmem:[#allocation1 + $0xe88] sm:$0x3] %v6949_v39  ;;  %v4486_v63 = vld [vmem:[#allocation1 + $0xe41] ss:$8 sm:$0xf]  }
 0x191   :  { %243 = vst [vmem:[#allocation1 + $0xe80] sm:$0x3] %v6950_v58  ;;  %168 = vst [vmem:[#allocation1 + $0xef8] sm:$0x3] %v6935_v59  ;;  %v4490_v5 = vsel %vm2562_vm0, %v4488_v57, %v4486_v63  ;;  %v6938_v6 = vld [vmem:[%s11073_s0 + $0x3b8] sm:$0x3]  ;;  %v9396_v58 = vpop.permute.xlu1 %4049  }
 0x192   :  { %173 = vst [vmem:[#allocation1 + $0xef0] sm:$0x3] %v6936_v61  ;;  %178 = vst [vmem:[#allocation1 + $0xee8] sm:$0x3] %v6937_v0  ;;  %v6939_v7 = vld [vmem:[%s11073_s0 + $0x3b6] sm:$0x3]  ;;  %4491 = vrot.lane.b32.xlu1 %v4490_v5, %s7670_s10 }
 0x193   :  { %v6940_v8 = vld [vmem:[%s11073_s0 + $0x3b4] sm:$0x3]  ;;  %183 = vst [vmem:[#allocation1 + $0xee0] sm:$0x3] %v6938_v6  ;;  %188 = vst [vmem:[#allocation1 + $0xed8] sm:$0x3] %v6939_v7 }
 0x194   :  { %193 = vst [vmem:[#allocation1 + $0xed0] sm:$0x3] %v6940_v8  ;;  %v6941_v9 = vld [vmem:[%s11073_s0 + $0x3b2] sm:$0x3]  ;;  %v6942_v15 = vld [vmem:[%s11073_s0 + $0x3b0] sm:$0x3] }
 0x195   :  { %v6927_v17 = vld [vmem:[%s11073_s0 + $0x3ce] sm:$0x3]  ;;  %v4607_v18 = vld [vmem:[#allocation0] sm:$0x3]  ;;  %v4611_v19 = vld [vmem:[#allocation0 + $0x8] sm:$0x3] }
 0x196   :  { %v4616_v21 = vld [vmem:[#allocation0 + $0x10] sm:$0x3]  ;;  %198 = vst [vmem:[#allocation1 + $0xec8] sm:$0x3] %v6941_v9  ;;  %203 = vst [vmem:[#allocation1 + $0xec0] sm:$0x3] %v6942_v15 }
 0x197   :  { %128 = vst [vmem:[#allocation1 + $0xf38] sm:$0x3] %v6927_v17  ;;  %4609 = vst [vmem:[%s11074_s1] sm:$0x3] %v4607_v18  ;;  %v4622_v22 = vld [vmem:[#allocation0 + $0x18] sm:$0x3] }
 0x198   :  { %7414 = vst [vmem:[%s11074_s1 + $0x2] sm:$0x3] %v4611_v19  ;;  %7415 = vst [vmem:[%s11074_s1 + $0x4] sm:$0x3] %v4616_v21  ;;  %v4652_v27 = vld [vmem:[#allocation0 + $0x40] sm:$0x3]  ;;  %v9429_v19 = vpop.permute.xlu0 %4066  }
 0x199   :  { %v2573_v24 = vld [vmem:[#allocation1 + $0x40] ss:$8 sm:$0xf]   ;;  %7416 = vst [vmem:[%s11074_s1 + $0x6] sm:$0x3] %v4622_v22 }
 0x19a   :  { %v4658_v31 = vld [vmem:[#allocation0 + $0x48] sm:$0x3]  ;;  %v4664_v33 = vld [vmem:[#allocation0 + $0x50] sm:$0x3]  ;;  %7421 = vst [vmem:[%s11074_s1 + $0x10] sm:$0x3] %v4652_v27 }
 0x19b   :  { %7422 = vst [vmem:[%s11074_s1 + $0x12] sm:$0x3] %v4658_v31  ;;  %7423 = vst [vmem:[%s11074_s1 + $0x14] sm:$0x3] %v4664_v33  ;;  %v4670_v34 = vld [vmem:[#allocation0 + $0x58] sm:$0x3] }
 0x19c   :  { %v4505_v37 = vld [vmem:[#allocation1 + $0xe81] ss:$8 sm:$0xf0]   ;;  %7424 = vst [vmem:[%s11074_s1 + $0x16] sm:$0x3] %v4670_v34 }
 0x19d   :  { %v4503_v38 = vld [vmem:[#allocation1 + $0xe81] ss:$8 sm:$0xf]   ;;  %v2575_v40 = vld [vmem:[#allocation1 + $0x40] ss:$8 sm:$0xf0]  }
 0x19e   :  { %v4507_v42 = vsel %vm2562_vm0, %v4505_v37, %v4503_v38  ;;  %v2577_v43 = vsel %vm2562_vm0, %v2575_v40, %v2573_v24  ;;  %v2603_v45 = vld [vmem:[#allocation1 + $0xc0] ss:$8 sm:$0xf]   ;;  %v4522_v48 = vld [vmem:[#allocation1 + $0xec1] ss:$8 sm:$0xf0]  }
 0x19f   :  { %v2605_v29 = vld [vmem:[#allocation1 + $0xc0] ss:$8 sm:$0xf0]   ;;  %4508 = vrot.lane.b32.xlu0 %v4507_v42, %s7670_s10  ;;  %2580 = vst.msk [vmem:[#allocation0 + $0x20] sm:$0x3] %vm2564_vm1, %v2577_v43  }
 0x1a0   :  { %2582 = vst.msk [vmem:[#allocation0 + $0x26] sm:$0xc] %vm2564_vm1, %v2577_v43   ;;  %2584 = vst.msk [vmem:[#allocation0 + $0x2c] sm:$0x30] %vm2564_vm1, %v2577_v43   ;;  %v2607_v51 = vsel %vm2562_vm0, %v2605_v29, %v2603_v45  ;;  %v6928_v52 = vld [vmem:[%s11073_s0 + $0x3cc] sm:$0x3]  ;;  %v9471_v45 = vpop.permute.xlu1 %4083  }
 0x1a1   :  { %2586 = vst.msk [vmem:[#allocation0 + $0x32] sm:$0xc0] %vm2564_vm1, %v2577_v43   ;;  %v4520_v54 = vld [vmem:[#allocation1 + $0xec1] ss:$8 sm:$0xf]  }
 0x1a2   :  { %3543 = vst.msk [vmem:[#allocation0 + $0x20] sm:$0x3] %vm3525_vm2, %v8557_v47   ;;  %3545 = vst.msk [vmem:[#allocation0 + $0x26] sm:$0xc] %vm3525_vm2, %v8557_v47   ;;  %v4524_v55 = vsel %vm2562_vm0, %v4522_v48, %v4520_v54  ;;  %v6931_v57 = vld [vmem:[%s11073_s0 + $0x3c6] sm:$0x3] }
 0x1a3   :  { %3547 = vst.msk [vmem:[#allocation0 + $0x2c] sm:$0x30] %vm3525_vm2, %v8557_v47   ;;  %3549 = vst.msk [vmem:[#allocation0 + $0x32] sm:$0xc0] %vm3525_vm2, %v8557_v47   ;;  %v6929_v47 = vld [vmem:[%s11073_s0 + $0x3ca] sm:$0x3]  ;;  %4525 = vrot.lane.b32.xlu1 %v4524_v55, %s7670_s10 }
 0x1a4   :  { %2610 = vst.msk [vmem:[#allocation0 + $0x60] sm:$0x3] %vm2564_vm1, %v2607_v51   ;;  %2612 = vst.msk [vmem:[#allocation0 + $0x66] sm:$0xc] %vm2564_vm1, %v2607_v51   ;;  %v6932_v39 = vld [vmem:[%s11073_s0 + $0x3c4] sm:$0x3] }
 0x1a5   :  { %2614 = vst.msk [vmem:[#allocation0 + $0x6c] sm:$0x30] %vm2564_vm1, %v2607_v51   ;;  %2616 = vst.msk [vmem:[#allocation0 + $0x72] sm:$0xc0] %vm2564_vm1, %v2607_v51   ;;  %v6933_v59 = vld [vmem:[%s11073_s0 + $0x3c2] sm:$0x3] }
 0x1a6   :  { %133 = vst [vmem:[#allocation1 + $0xf30] sm:$0x3] %v6928_v52  ;;  %3577 = vst.msk [vmem:[#allocation0 + $0x60] sm:$0x3] %vm3525_vm2, %v8591_v60   ;;  %v6934_v61 = vld [vmem:[%s11073_s0 + $0x3c0] sm:$0x3] }
 0x1a7   :  { %3579 = vst.msk [vmem:[#allocation0 + $0x66] sm:$0xc] %vm3525_vm2, %v8591_v60   ;;  %3581 = vst.msk [vmem:[#allocation0 + $0x6c] sm:$0x30] %vm3525_vm2, %v8591_v60   ;;  %v6919_v63 = vld [vmem:[%s11073_s0 + $0x3de] sm:$0x3] }
 0x1a8   :  { %3583 = vst.msk [vmem:[#allocation0 + $0x72] sm:$0xc0] %vm3525_vm2, %v8591_v60   ;;  %138 = vst [vmem:[#allocation1 + $0xf28] sm:$0x3] %v6929_v47  ;;  %v6930_v60 = vld [vmem:[%s11073_s0 + $0x3c8] sm:$0x3] }
 0x1a9   :  { %143 = vst [vmem:[#allocation1 + $0xf20] sm:$0x3] %v6930_v60  ;;  %148 = vst [vmem:[#allocation1 + $0xf18] sm:$0x3] %v6931_v57  ;;  %v6920_v0 = vld [vmem:[%s11073_s0 + $0x3dc] sm:$0x3] }
 0x1aa   :  { %153 = vst [vmem:[#allocation1 + $0xf10] sm:$0x3] %v6932_v39  ;;  %158 = vst [vmem:[#allocation1 + $0xf08] sm:$0x3] %v6933_v59  ;;  %v6921_v5 = vld [vmem:[%s11073_s0 + $0x3da] sm:$0x3]  ;;  %v9492_v39 = vpop.permute.xlu0 %4100  }
 0x1ab   :  { %163 = vst [vmem:[#allocation1 + $0xf00] sm:$0x3] %v6934_v61  ;;  %88 = vst [vmem:[#allocation1 + $0xf78] sm:$0x3] %v6919_v63  ;;  %v6922_v6 = vld [vmem:[%s11073_s0 + $0x3d8] sm:$0x3] }
 0x1ac   :  { %93 = vst [vmem:[#allocation1 + $0xf70] sm:$0x3] %v6920_v0  ;;  %98 = vst [vmem:[#allocation1 + $0xf68] sm:$0x3] %v6921_v5  ;;  %v6923_v7 = vld [vmem:[%s11073_s0 + $0x3d6] sm:$0x3] }
 0x1ad   :  { %103 = vst [vmem:[#allocation1 + $0xf60] sm:$0x3] %v6922_v6  ;;  %v6924_v8 = vld [vmem:[%s11073_s0 + $0x3d4] sm:$0x3]  ;;  %v6925_v9 = vld [vmem:[%s11073_s0 + $0x3d2] sm:$0x3] }
 0x1ae   :  { %108 = vst [vmem:[#allocation1 + $0xf58] sm:$0x3] %v6923_v7  ;;  %113 = vst [vmem:[#allocation1 + $0xf50] sm:$0x3] %v6924_v8  ;;  %v6926_v15 = vld [vmem:[%s11073_s0 + $0x3d0] sm:$0x3] }
 0x1af   :  { %118 = vst [vmem:[#allocation1 + $0xf48] sm:$0x3] %v6925_v9  ;;  %v2618_v17 = vld [vmem:[#allocation1 + $0x100] ss:$8 sm:$0xf]  }
 0x1b0   :  { %123 = vst [vmem:[#allocation1 + $0xf40] sm:$0x3] %v6926_v15  ;;  %v2620_v18 = vld [vmem:[#allocation1 + $0x100] ss:$8 sm:$0xf0]  }
 0x1b1   :  { %v4628_v21 = vld [vmem:[#allocation0 + $0x20] sm:$0x3]  ;;  %v4634_v22 = vld [vmem:[#allocation0 + $0x28] sm:$0x3]  ;;  %v4640_v24 = vld [vmem:[#allocation0 + $0x30] sm:$0x3]  ;;  %v2622_v27 = vsel %vm2562_vm0, %v2620_v18, %v2618_v17 }
 0x1b2   :  { %v2633_v31 = vld [vmem:[#allocation1 + $0x140] ss:$8 sm:$0xf]   ;;  %7417 = vst [vmem:[%s11074_s1 + $0x8] sm:$0x3] %v4628_v21  ;;  %v9537_v21 = vpop.permute.xlu1 %4117  }
 0x1b3   :  { %7418 = vst [vmem:[%s11074_s1 + $0xa] sm:$0x3] %v4634_v22  ;;  %7419 = vst [vmem:[%s11074_s1 + $0xc] sm:$0x3] %v4640_v24  ;;  %v4646_v33 = vld [vmem:[#allocation0 + $0x38] sm:$0x3] }
 0x1b4   :  { %v4676_v34 = vld [vmem:[#allocation0 + $0x60] sm:$0x3]  ;;  %v4682_v37 = vld [vmem:[#allocation0 + $0x68] sm:$0x3]  ;;  %2625 = vst.msk [vmem:[#allocation0 + $0x80] sm:$0x3] %vm2564_vm1, %v2622_v27  }
 0x1b5   :  { %2627 = vst.msk [vmem:[#allocation0 + $0x86] sm:$0xc] %vm2564_vm1, %v2622_v27   ;;  %2629 = vst.msk [vmem:[#allocation0 + $0x8c] sm:$0x30] %vm2564_vm1, %v2622_v27   ;;  %v4688_v38 = vld [vmem:[#allocation0 + $0x70] sm:$0x3] }
 0x1b6   :  { %2631 = vst.msk [vmem:[#allocation0 + $0x92] sm:$0xc0] %vm2564_vm1, %v2622_v27   ;;  %7420 = vst [vmem:[%s11074_s1 + $0xe] sm:$0x3] %v4646_v33  ;;  %v4694_v40 = vld [vmem:[#allocation0 + $0x78] sm:$0x3] }
 0x1b7   :  { %7425 = vst [vmem:[%s11074_s1 + $0x18] sm:$0x3] %v4676_v34  ;;  %7426 = vst [vmem:[%s11074_s1 + $0x1a] sm:$0x3] %v4682_v37  ;;  %v6912_v54 = vld [vmem:[%s11073_s0 + $0x3ec] sm:$0x3] }
 0x1b8   :  { %3594 = vst.msk [vmem:[#allocation0 + $0x80] sm:$0x3] %vm3525_vm2, %v8622_v10   ;;  %3596 = vst.msk [vmem:[#allocation0 + $0x86] sm:$0xc] %vm3525_vm2, %v8622_v10   ;;  %v6913_v47 = vld [vmem:[%s11073_s0 + $0x3ea] sm:$0x3] }
 0x1b9   :  { %3598 = vst.msk [vmem:[#allocation0 + $0x8c] sm:$0x30] %vm3525_vm2, %v8622_v10   ;;  %3600 = vst.msk [vmem:[#allocation0 + $0x92] sm:$0xc0] %vm3525_vm2, %v8622_v10   ;;  %v6911_v10 = vld [vmem:[%s11073_s0 + $0x3ee] sm:$0x3] }
 0x1ba   :  { %7427 = vst [vmem:[%s11074_s1 + $0x1c] sm:$0x3] %v4688_v38  ;;  %7428 = vst [vmem:[%s11074_s1 + $0x1e] sm:$0x3] %v4694_v40  ;;  %v6914_v55 = vld [vmem:[%s11073_s0 + $0x3e8] sm:$0x3] }
 0x1bb   :  { %v4537_v42 = vld [vmem:[#allocation1 + $0xf01] ss:$8 sm:$0xf]   ;;  %48 = vst [vmem:[#allocation1 + $0xfb8] sm:$0x3] %v6911_v10 }
 0x1bc   :  { %v4539_v43 = vld [vmem:[#allocation1 + $0xf01] ss:$8 sm:$0xf0]   ;;  %v2635_v51 = vld [vmem:[#allocation1 + $0x140] ss:$8 sm:$0xf0]  }
 0x1bd   :  { %v4541_v29 = vsel %vm2562_vm0, %v4539_v43, %v4537_v42  ;;  %v4556_v48 = vld [vmem:[#allocation1 + $0xf41] ss:$8 sm:$0xf0]   ;;  %v2637_v52 = vsel %vm2562_vm0, %v2635_v51, %v2633_v31  ;;  %53 = vst [vmem:[#allocation1 + $0xfb0] sm:$0x3] %v6912_v54 }
 0x1be   :  { %4542 = vrot.lane.b32.xlu0 %v4541_v29, %s7670_s10  ;;  %v4554_v60 = vld [vmem:[#allocation1 + $0xf41] ss:$8 sm:$0xf]   ;;  %2640 = vst.msk [vmem:[#allocation0 + $0xa0] sm:$0x3] %vm2564_vm1, %v2637_v52  }
 0x1bf   :  { %2642 = vst.msk [vmem:[#allocation0 + $0xa6] sm:$0xc] %vm2564_vm1, %v2637_v52   ;;  %2644 = vst.msk [vmem:[#allocation0 + $0xac] sm:$0x30] %vm2564_vm1, %v2637_v52   ;;  %v6915_v57 = vld [vmem:[%s11073_s0 + $0x3e6] sm:$0x3]  ;;  %v4558_v59 = vsel %vm2562_vm0, %v4556_v48, %v4554_v60 }
 0x1c0   :  { %2646 = vst.msk [vmem:[#allocation0 + $0xb2] sm:$0xc0] %vm2564_vm1, %v2637_v52   ;;  %58 = vst [vmem:[#allocation1 + $0xfa8] sm:$0x3] %v6913_v47  ;;  %v6917_v61 = vld [vmem:[%s11073_s0 + $0x3e2] sm:$0x3]  ;;  %4559 = vrot.lane.b32.xlu1 %v4558_v59, %s7670_s10 }
 0x1c1   :  { %63 = vst [vmem:[#allocation1 + $0xfa0] sm:$0x3] %v6914_v55  ;;  %3611 = vst.msk [vmem:[#allocation0 + $0xa0] sm:$0x3] %vm3525_vm2, %v8651_v23   ;;  %v6918_v63 = vld [vmem:[%s11073_s0 + $0x3e0] sm:$0x3] }
 0x1c2   :  { %3613 = vst.msk [vmem:[#allocation0 + $0xa6] sm:$0xc] %vm3525_vm2, %v8651_v23   ;;  %3615 = vst.msk [vmem:[#allocation0 + $0xac] sm:$0x30] %vm3525_vm2, %v8651_v23   ;;  %v6903_v0 = vld [vmem:[%s11073_s0 + $0x3fe] sm:$0x3] }
 0x1c3   :  { %3617 = vst.msk [vmem:[#allocation0 + $0xb2] sm:$0xc0] %vm3525_vm2, %v8651_v23   ;;  %68 = vst [vmem:[#allocation1 + $0xf98] sm:$0x3] %v6915_v57  ;;  %v6916_v23 = vld [vmem:[%s11073_s0 + $0x3e4] sm:$0x3] }
 0x1c4   :  { %73 = vst [vmem:[#allocation1 + $0xf90] sm:$0x3] %v6916_v23  ;;  %78 = vst [vmem:[#allocation1 + $0xf88] sm:$0x3] %v6917_v61  ;;  %v6904_v5 = vld [vmem:[%s11073_s0 + $0x3fc] sm:$0x3] }
 0x1c5   :  { %83 = vst [vmem:[#allocation1 + $0xf80] sm:$0x3] %v6918_v63  ;;  %v6905_v6 = vld [vmem:[%s11073_s0 + $0x3fa] sm:$0x3]  ;;  %v4700_v7 = vld [vmem:[#allocation0 + $0x80] sm:$0x3]  ;;  %v9599_v63 = vpop.permute.xlu1 %4151  }
 0x1c6   :  { %v4706_v8 = vld [vmem:[#allocation0 + $0x88] sm:$0x3]  ;;  %v4712_v9 = vld [vmem:[#allocation0 + $0x90] sm:$0x3]  ;;  %8 = vst [vmem:[#allocation1 + $0xff8] sm:$0x3] %v6903_v0 }
 0x1c7   :  { %13 = vst [vmem:[#allocation1 + $0xff0] sm:$0x3] %v6904_v5  ;;  %18 = vst [vmem:[#allocation1 + $0xfe8] sm:$0x3] %v6905_v6  ;;  %v4718_v15 = vld [vmem:[#allocation0 + $0x98] sm:$0x3] }
 0x1c8   :  { %7429 = vst [vmem:[%s11074_s1 + $0x20] sm:$0x3] %v4700_v7  ;;  %7430 = vst [vmem:[%s11074_s1 + $0x22] sm:$0x3] %v4706_v8  ;;  %v6906_v17 = vld [vmem:[%s11073_s0 + $0x3f8] sm:$0x3] }
 0x1c9   :  { %7431 = vst [vmem:[%s11074_s1 + $0x24] sm:$0x3] %v4712_v9  ;;  %v6907_v18 = vld [vmem:[%s11073_s0 + $0x3f6] sm:$0x3]  ;;  %7432 = vst [vmem:[%s11074_s1 + $0x26] sm:$0x3] %v4718_v15 }
 0x1ca   :  { %23 = vst [vmem:[#allocation1 + $0xfe0] sm:$0x3] %v6906_v17  ;;  %28 = vst [vmem:[#allocation1 + $0xfd8] sm:$0x3] %v6907_v18  ;;  %v6908_v22 = vld [vmem:[%s11073_s0 + $0x3f4] sm:$0x3] }
 0x1cb   :  { %v6909_v24 = vld [vmem:[%s11073_s0 + $0x3f2] sm:$0x3]  ;;  %v6910_v27 = vld [vmem:[%s11073_s0 + $0x3f0] sm:$0x3]  ;;  %33 = vst [vmem:[#allocation1 + $0xfd0] sm:$0x3] %v6908_v22 }
 0x1cc   :  { %38 = vst [vmem:[#allocation1 + $0xfc8] sm:$0x3] %v6909_v24  ;;  %43 = vst [vmem:[#allocation1 + $0xfc0] sm:$0x3] %v6910_v27  ;;  %v4724_v40 = vld [vmem:[#allocation0 + $0xa0] sm:$0x3] }
 0x1cd   :  { %v2648_v31 = vld [vmem:[#allocation1 + $0x180] ss:$8 sm:$0xf]   ;;  %v4573_v34 = vld [vmem:[#allocation1 + $0xf81] ss:$8 sm:$0xf0]  }
 0x1ce   :  { %v2650_v33 = vld [vmem:[#allocation1 + $0x180] ss:$8 sm:$0xf0]   ;;  %7433 = vst [vmem:[%s11074_s1 + $0x28] sm:$0x3] %v4724_v40 }
 0x1cf   :  { %v2652_v37 = vsel %vm2562_vm0, %v2650_v33, %v2648_v31  ;;  %v2663_v38 = vld [vmem:[#allocation1 + $0x1c0] ss:$8 sm:$0xf]   ;;  %v4571_v29 = vld [vmem:[#allocation1 + $0xf81] ss:$8 sm:$0xf]  }
 0x1d0   :  { %v4730_v10 = vld [vmem:[#allocation0 + $0xa8] sm:$0x3]  ;;  %v4736_v42 = vld [vmem:[#allocation0 + $0xb0] sm:$0x3]  ;;  %2655 = vst.msk [vmem:[#allocation0 + $0xc0] sm:$0x3] %vm2564_vm1, %v2652_v37   ;;  %v4575_v48 = vsel %vm2562_vm0, %v4573_v34, %v4571_v29 }
 0x1d1   :  { %2657 = vst.msk [vmem:[#allocation0 + $0xc6] sm:$0xc] %vm2564_vm1, %v2652_v37   ;;  %2659 = vst.msk [vmem:[#allocation0 + $0xcc] sm:$0x30] %vm2564_vm1, %v2652_v37   ;;  %v4742_v43 = vld [vmem:[#allocation0 + $0xb8] sm:$0x3]  ;;  %4576 = vrot.lane.b32.xlu0 %v4575_v48, %s7670_s10 }
 0x1d2   :  { %2661 = vst.msk [vmem:[#allocation0 + $0xd2] sm:$0xc0] %vm2564_vm1, %v2652_v37   ;;  %7434 = vst [vmem:[%s11074_s1 + $0x2a] sm:$0x3] %v4730_v10  ;;  %v9682_v10 = vpop.permute.xlu1 %4185  }
 0x1d3   :  { %7435 = vst [vmem:[%s11074_s1 + $0x2c] sm:$0x3] %v4736_v42  ;;  %3628 = vst.msk [vmem:[#allocation0 + $0xc0] sm:$0x3] %vm3525_vm2, %v8669_v32  }
 0x1d4   :  { %3630 = vst.msk [vmem:[#allocation0 + $0xc6] sm:$0xc] %vm3525_vm2, %v8669_v32   ;;  %3632 = vst.msk [vmem:[#allocation0 + $0xcc] sm:$0x30] %vm3525_vm2, %v8669_v32  }
 0x1d5   :  { %3634 = vst.msk [vmem:[#allocation0 + $0xd2] sm:$0xc0] %vm3525_vm2, %v8669_v32   ;;  %v9573_v32 = vpop.permute.xlu0 %4134   ;;  %7436 = vst [vmem:[%s11074_s1 + $0x2e] sm:$0x3] %v4742_v43 }
 0x1d6   :  { %v2665_v51 = vld [vmem:[#allocation1 + $0x1c0] ss:$8 sm:$0xf0]   ;;  %v4590_v60 = vld [vmem:[#allocation1 + $0xfc1] ss:$8 sm:$0xf0]  }
 0x1d7   :  { %v2678_v52 = vld [vmem:[#allocation1 + $0x200] ss:$8 sm:$0xf]   ;;  %v2667_v54 = vsel %vm2562_vm0, %v2665_v51, %v2663_v38  ;;  %v4588_v23 = vld [vmem:[#allocation1 + $0xfc1] ss:$8 sm:$0xf]  }
 0x1d8   :  { %v2680_v47 = vld [vmem:[#allocation1 + $0x200] ss:$8 sm:$0xf0]   ;;  %2670 = vst.msk [vmem:[#allocation0 + $0xe0] sm:$0x3] %vm2564_vm1, %v2667_v54   ;;  %v4592_v0 = vsel %vm2562_vm0, %v4590_v60, %v4588_v23 }
 0x1d9   :  { %v2693_v55 = vld [vmem:[#allocation1 + $0x240] ss:$8 sm:$0xf]   ;;  %2672 = vst.msk [vmem:[#allocation0 + $0xe6] sm:$0xc] %vm2564_vm1, %v2667_v54   ;;  %v2682_v57 = vsel %vm2562_vm0, %v2680_v47, %v2678_v52  ;;  %4593 = vrot.lane.b32.xlu1 %v4592_v0, %s7670_s10  ;;  %v9629_v18 = vpop.permute.xlu0 %4168  }
 0x1da   :  { %2674 = vst.msk [vmem:[#allocation0 + $0xec] sm:$0x30] %vm2564_vm1, %v2667_v54   ;;  %2676 = vst.msk [vmem:[#allocation0 + $0xf2] sm:$0xc0] %vm2564_vm1, %v2667_v54   ;;  %v4748_v8 = vld [vmem:[#allocation0 + $0xc0] sm:$0x3] }
 0x1db   :  { %v2695_v59 = vld [vmem:[#allocation1 + $0x240] ss:$8 sm:$0xf0]   ;;  %3645 = vst.msk [vmem:[#allocation0 + $0xe0] sm:$0x3] %vm3525_vm2, %v8703_v46  }
 0x1dc   :  { %3647 = vst.msk [vmem:[#allocation0 + $0xe6] sm:$0xc] %vm3525_vm2, %v8703_v46   ;;  %3649 = vst.msk [vmem:[#allocation0 + $0xec] sm:$0x30] %vm3525_vm2, %v8703_v46   ;;  %v4754_v9 = vld [vmem:[#allocation0 + $0xc8] sm:$0x3] }
 0x1dd   :  { %3651 = vst.msk [vmem:[#allocation0 + $0xf2] sm:$0xc0] %vm3525_vm2, %v8703_v46   ;;  %v2697_v46 = vsel %vm2562_vm0, %v2695_v59, %v2693_v55  ;;  %v2708_v61 = vld [vmem:[#allocation1 + $0x280] ss:$8 sm:$0xf]  }
 0x1de   :  { %2685 = vst.msk [vmem:[#allocation0 + $0x100] sm:$0x3] %vm2564_vm1, %v2682_v57   ;;  %2687 = vst.msk [vmem:[#allocation0 + $0x106] sm:$0xc] %vm2564_vm1, %v2682_v57   ;;  %v4760_v15 = vld [vmem:[#allocation0 + $0xd0] sm:$0x3] }
 0x1df   :  { %2689 = vst.msk [vmem:[#allocation0 + $0x10c] sm:$0x30] %vm2564_vm1, %v2682_v57   ;;  %2691 = vst.msk [vmem:[#allocation0 + $0x112] sm:$0xc0] %vm2564_vm1, %v2682_v57   ;;  %v4766_v22 = vld [vmem:[#allocation0 + $0xd8] sm:$0x3] }
 0x1e0   :  { %3662 = vst.msk [vmem:[#allocation0 + $0x100] sm:$0x3] %vm3525_vm2, %v8734_v62   ;;  %3664 = vst.msk [vmem:[#allocation0 + $0x106] sm:$0xc] %vm3525_vm2, %v8734_v62  }
 0x1e1   :  { %3666 = vst.msk [vmem:[#allocation0 + $0x10c] sm:$0x30] %vm3525_vm2, %v8734_v62   ;;  %3668 = vst.msk [vmem:[#allocation0 + $0x112] sm:$0xc0] %vm3525_vm2, %v8734_v62  }
 0x1e2   :  { %2700 = vst.msk [vmem:[#allocation0 + $0x120] sm:$0x3] %vm2564_vm1, %v2697_v46   ;;  %2702 = vst.msk [vmem:[#allocation0 + $0x126] sm:$0xc] %vm2564_vm1, %v2697_v46   ;;  %v4772_v37 = vld [vmem:[#allocation0 + $0xe0] sm:$0x3] }
 0x1e3   :  { %2704 = vst.msk [vmem:[#allocation0 + $0x12c] sm:$0x30] %vm2564_vm1, %v2697_v46   ;;  %2706 = vst.msk [vmem:[#allocation0 + $0x132] sm:$0xc0] %vm2564_vm1, %v2697_v46   ;;  %v4778_v38 = vld [vmem:[#allocation0 + $0xe8] sm:$0x3]  ;;  %v9749_v46 = vpop.permute.xlu0 %4202  }
 0x1e4   :  { %v2710_v62 = vld [vmem:[#allocation1 + $0x280] ss:$8 sm:$0xf0]   ;;  %3679 = vst.msk [vmem:[#allocation0 + $0x120] sm:$0x3] %vm3525_vm2, %v8763_v12  }
 0x1e5   :  { %v2723_v5 = vld [vmem:[#allocation1 + $0x2c0] ss:$8 sm:$0xf]   ;;  %3681 = vst.msk [vmem:[#allocation0 + $0x126] sm:$0xc] %vm3525_vm2, %v8763_v12  }
 0x1e6   :  { %3683 = vst.msk [vmem:[#allocation0 + $0x12c] sm:$0x30] %vm3525_vm2, %v8763_v12   ;;  %3685 = vst.msk [vmem:[#allocation0 + $0x132] sm:$0xc0] %vm3525_vm2, %v8763_v12   ;;  %v2712_v12 = vsel %vm2562_vm0, %v2710_v62, %v2708_v61  ;;  %v4784_v40 = vld [vmem:[#allocation0 + $0xf0] sm:$0x3] }
 0x1e7   :  { %v2725_v6 = vld [vmem:[#allocation1 + $0x2c0] ss:$8 sm:$0xf0]   ;;  %2715 = vst.msk [vmem:[#allocation0 + $0x140] sm:$0x3] %vm2564_vm1, %v2712_v12  }
 0x1e8   :  { %v2738_v7 = vld [vmem:[#allocation1 + $0x300] ss:$8 sm:$0xf]   ;;  %2717 = vst.msk [vmem:[#allocation0 + $0x146] sm:$0xc] %vm2564_vm1, %v2712_v12   ;;  %v2727_v17 = vsel %vm2562_vm0, %v2725_v6, %v2723_v5 }
 0x1e9   :  { %2719 = vst.msk [vmem:[#allocation0 + $0x14c] sm:$0x30] %vm2564_vm1, %v2712_v12   ;;  %2721 = vst.msk [vmem:[#allocation0 + $0x152] sm:$0xc0] %vm2564_vm1, %v2712_v12   ;;  %v4790_v42 = vld [vmem:[#allocation0 + $0xf8] sm:$0x3] }
 0x1ea   :  { %7437 = vst [vmem:[%s11074_s1 + $0x30] sm:$0x3] %v4748_v8  ;;  %7438 = vst [vmem:[%s11074_s1 + $0x32] sm:$0x3] %v4754_v9  ;;  %v4796_v43 = vld [vmem:[#allocation0 + $0x100] sm:$0x3] }
 0x1eb   :  { %7439 = vst [vmem:[%s11074_s1 + $0x34] sm:$0x3] %v4760_v15  ;;  %3696 = vst.msk [vmem:[#allocation0 + $0x140] sm:$0x3] %vm3525_vm2, %v8781_v20   ;;  %v4802_v29 = vld [vmem:[#allocation0 + $0x108] sm:$0x3] }
 0x1ec   :  { %3698 = vst.msk [vmem:[#allocation0 + $0x146] sm:$0xc] %vm3525_vm2, %v8781_v20   ;;  %3700 = vst.msk [vmem:[#allocation0 + $0x14c] sm:$0x30] %vm3525_vm2, %v8781_v20   ;;  %v4814_v48 = vld [vmem:[#allocation0 + $0x118] sm:$0x3] }
 0x1ed   :  { %3702 = vst.msk [vmem:[#allocation0 + $0x152] sm:$0xc0] %vm3525_vm2, %v8781_v20   ;;  %v2740_v20 = vld [vmem:[#allocation1 + $0x300] ss:$8 sm:$0xf0]  }
 0x1ee   :  { %2730 = vst.msk [vmem:[#allocation0 + $0x160] sm:$0x3] %vm2564_vm1, %v2727_v17   ;;  %2732 = vst.msk [vmem:[#allocation0 + $0x166] sm:$0xc] %vm2564_vm1, %v2727_v17   ;;  %v4820_v51 = vld [vmem:[#allocation0 + $0x120] sm:$0x3] }
 0x1ef   :  { %2734 = vst.msk [vmem:[#allocation0 + $0x16c] sm:$0x30] %vm2564_vm1, %v2727_v17   ;;  %2736 = vst.msk [vmem:[#allocation0 + $0x172] sm:$0xc0] %vm2564_vm1, %v2727_v17   ;;  %v4832_v52 = vld [vmem:[#allocation0 + $0x130] sm:$0x3] }
 0x1f0   :  { %7440 = vst [vmem:[%s11074_s1 + $0x36] sm:$0x3] %v4766_v22  ;;  %3713 = vst.msk [vmem:[#allocation0 + $0x160] sm:$0x3] %vm3525_vm2, %v8815_v36   ;;  %v4838_v54 = vld [vmem:[#allocation0 + $0x138] sm:$0x3]  ;;  %v9784_v22 = vpop.permute.xlu1 %4219  }
 0x1f1   :  { %3715 = vst.msk [vmem:[#allocation0 + $0x166] sm:$0xc] %vm3525_vm2, %v8815_v36   ;;  %3717 = vst.msk [vmem:[#allocation0 + $0x16c] sm:$0x30] %vm3525_vm2, %v8815_v36  }
 0x1f2   :  { %3719 = vst.msk [vmem:[#allocation0 + $0x172] sm:$0xc0] %vm3525_vm2, %v8815_v36   ;;  %v2742_v36 = vsel %vm2562_vm0, %v2740_v20, %v2738_v7  ;;  %v2753_v24 = vld [vmem:[#allocation1 + $0x340] ss:$8 sm:$0xf]  }
 0x1f3   :  { %v2755_v27 = vld [vmem:[#allocation1 + $0x340] ss:$8 sm:$0xf0]   ;;  %2745 = vst.msk [vmem:[#allocation0 + $0x180] sm:$0x3] %vm2564_vm1, %v2742_v36  }
 0x1f4   :  { %2747 = vst.msk [vmem:[#allocation0 + $0x186] sm:$0xc] %vm2564_vm1, %v2742_v36   ;;  %2749 = vst.msk [vmem:[#allocation0 + $0x18c] sm:$0x30] %vm2564_vm1, %v2742_v36   ;;  %v2757_v31 = vsel %vm2562_vm0, %v2755_v27, %v2753_v24  ;;  %v4844_v47 = vld [vmem:[#allocation0 + $0x140] sm:$0x3] }
 0x1f5   :  { %2751 = vst.msk [vmem:[#allocation0 + $0x192] sm:$0xc0] %vm2564_vm1, %v2742_v36   ;;  %v2768_v33 = vld [vmem:[#allocation1 + $0x380] ss:$8 sm:$0xf]  }
 0x1f6   :  { %v2770_v34 = vld [vmem:[#allocation1 + $0x380] ss:$8 sm:$0xf0]   ;;  %3730 = vst.msk [vmem:[#allocation0 + $0x180] sm:$0x3] %vm3525_vm2, %v8846_v53  }
 0x1f7   :  { %3732 = vst.msk [vmem:[#allocation0 + $0x186] sm:$0xc] %vm3525_vm2, %v8846_v53   ;;  %3734 = vst.msk [vmem:[#allocation0 + $0x18c] sm:$0x30] %vm3525_vm2, %v8846_v53   ;;  %v4850_v55 = vld [vmem:[#allocation0 + $0x148] sm:$0x3] }
 0x1f8   :  { %3736 = vst.msk [vmem:[#allocation0 + $0x192] sm:$0xc0] %vm3525_vm2, %v8846_v53   ;;  %v2772_v53 = vsel %vm2562_vm0, %v2770_v34, %v2768_v33  ;;  %7441 = vst [vmem:[%s11074_s1 + $0x38] sm:$0x3] %v4772_v37  ;;  %v4856_v60 = vld [vmem:[#allocation0 + $0x150] sm:$0x3] }
 0x1f9   :  { %2760 = vst.msk [vmem:[#allocation0 + $0x1a0] sm:$0x3] %vm2564_vm1, %v2757_v31   ;;  %2762 = vst.msk [vmem:[#allocation0 + $0x1a6] sm:$0xc] %vm2564_vm1, %v2757_v31   ;;  %v4862_v57 = vld [vmem:[#allocation0 + $0x158] sm:$0x3] }
 0x1fa   :  { %2764 = vst.msk [vmem:[#allocation0 + $0x1ac] sm:$0x30] %vm2564_vm1, %v2757_v31   ;;  %2766 = vst.msk [vmem:[#allocation0 + $0x1b2] sm:$0xc0] %vm2564_vm1, %v2757_v31   ;;  %v4868_v59 = vld [vmem:[#allocation0 + $0x160] sm:$0x3] }
 0x1fb   :  { %7442 = vst [vmem:[%s11074_s1 + $0x3a] sm:$0x3] %v4778_v38  ;;  %7443 = vst [vmem:[%s11074_s1 + $0x3c] sm:$0x3] %v4784_v40  ;;  %v4874_v23 = vld [vmem:[#allocation0 + $0x168] sm:$0x3]  ;;  %v9805_v38 = vpop.permute.xlu0 %4236  }
 0x1fc   :  { %3747 = vst.msk [vmem:[#allocation0 + $0x1a0] sm:$0x3] %vm3525_vm2, %v8875_v4   ;;  %3749 = vst.msk [vmem:[#allocation0 + $0x1a6] sm:$0xc] %vm3525_vm2, %v8875_v4   ;;  %v4880_v61 = vld [vmem:[#allocation0 + $0x170] sm:$0x3] }
 0x1fd   :  { %3751 = vst.msk [vmem:[#allocation0 + $0x1ac] sm:$0x30] %vm3525_vm2, %v8875_v4   ;;  %3753 = vst.msk [vmem:[#allocation0 + $0x1b2] sm:$0xc0] %vm3525_vm2, %v8875_v4   ;;  %v4808_v4 = vld [vmem:[#allocation0 + $0x110] sm:$0x3] }
 0x1fe   :  { %2775 = vst.msk [vmem:[#allocation0 + $0x1c0] sm:$0x3] %vm2564_vm1, %v2772_v53   ;;  %2777 = vst.msk [vmem:[#allocation0 + $0x1c6] sm:$0xc] %vm2564_vm1, %v2772_v53   ;;  %v4886_v0 = vld [vmem:[#allocation0 + $0x178] sm:$0x3] }
 0x1ff   :  { %2779 = vst.msk [vmem:[#allocation0 + $0x1cc] sm:$0x30] %vm2564_vm1, %v2772_v53   ;;  %2781 = vst.msk [vmem:[#allocation0 + $0x1d2] sm:$0xc0] %vm2564_vm1, %v2772_v53   ;;  %v4892_v62 = vld [vmem:[#allocation0 + $0x180] sm:$0x3] }
 0x200   :  { %7444 = vst [vmem:[%s11074_s1 + $0x3e] sm:$0x3] %v4790_v42  ;;  %7445 = vst [vmem:[%s11074_s1 + $0x40] sm:$0x3] %v4796_v43  ;;  %v4898_v5 = vld [vmem:[#allocation0 + $0x188] sm:$0x3] }
 0x201   :  { %7446 = vst [vmem:[%s11074_s1 + $0x42] sm:$0x3] %v4802_v29  ;;  %3764 = vst.msk [vmem:[#allocation0 + $0x1c0] sm:$0x3] %vm3525_vm2, %v8893_v14   ;;  %v4904_v12 = vld [vmem:[#allocation0 + $0x190] sm:$0x3] }
 0x202   :  { %3766 = vst.msk [vmem:[#allocation0 + $0x1c6] sm:$0xc] %vm3525_vm2, %v8893_v14   ;;  %3768 = vst.msk [vmem:[#allocation0 + $0x1cc] sm:$0x30] %vm3525_vm2, %v8893_v14   ;;  %v4910_v6 = vld [vmem:[#allocation0 + $0x198] sm:$0x3] }
 0x203   :  { %3770 = vst.msk [vmem:[#allocation0 + $0x1d2] sm:$0xc0] %vm3525_vm2, %v8893_v14   ;;  %7447 = vst [vmem:[%s11074_s1 + $0x44] sm:$0x3] %v4808_v4  ;;  %v4826_v14 = vld [vmem:[#allocation0 + $0x128] sm:$0x3] }
 0x204   :  { %7448 = vst [vmem:[%s11074_s1 + $0x46] sm:$0x3] %v4814_v48  ;;  %7449 = vst [vmem:[%s11074_s1 + $0x48] sm:$0x3] %v4820_v51  ;;  %v4916_v7 = vld [vmem:[#allocation0 + $0x1a0] sm:$0x3] }
 0x205   :  { %7450 = vst [vmem:[%s11074_s1 + $0x4a] sm:$0x3] %v4826_v14  ;;  %7451 = vst [vmem:[%s11074_s1 + $0x4c] sm:$0x3] %v4832_v52  ;;  %v4922_v8 = vld [vmem:[#allocation0 + $0x1a8] sm:$0x3]  ;;  %v9851_v52 = vpop.permute.xlu1 %4253  }
 0x206   :  { %7452 = vst [vmem:[%s11074_s1 + $0x4e] sm:$0x3] %v4838_v54  ;;  %7453 = vst [vmem:[%s11074_s1 + $0x50] sm:$0x3] %v4844_v47  ;;  %v4928_v9 = vld [vmem:[#allocation0 + $0x1b0] sm:$0x3] }
 0x207   :  { %7454 = vst [vmem:[%s11074_s1 + $0x52] sm:$0x3] %v4850_v55  ;;  %7455 = vst [vmem:[%s11074_s1 + $0x54] sm:$0x3] %v4856_v60  ;;  %v4934_v15 = vld [vmem:[#allocation0 + $0x1b8] sm:$0x3] }
 0x208   :  { %7456 = vst [vmem:[%s11074_s1 + $0x56] sm:$0x3] %v4862_v57  ;;  %7457 = vst [vmem:[%s11074_s1 + $0x58] sm:$0x3] %v4868_v59  ;;  %v4940_v17 = vld [vmem:[#allocation0 + $0x1c0] sm:$0x3] }
 0x209   :  { %7458 = vst [vmem:[%s11074_s1 + $0x5a] sm:$0x3] %v4874_v23  ;;  %7459 = vst [vmem:[%s11074_s1 + $0x5c] sm:$0x3] %v4880_v61  ;;  %v4946_v20 = vld [vmem:[#allocation0 + $0x1c8] sm:$0x3] }
 0x20a   :  { %7460 = vst [vmem:[%s11074_s1 + $0x5e] sm:$0x3] %v4886_v0  ;;  %7461 = vst [vmem:[%s11074_s1 + $0x60] sm:$0x3] %v4892_v62  ;;  %v4952_v36 = vld [vmem:[#allocation0 + $0x1d0] sm:$0x3] }
 0x20b   :  { %7462 = vst [vmem:[%s11074_s1 + $0x62] sm:$0x3] %v4898_v5  ;;  %7463 = vst [vmem:[%s11074_s1 + $0x64] sm:$0x3] %v4904_v12  ;;  %v4958_v24 = vld [vmem:[#allocation0 + $0x1d8] sm:$0x3]  ;;  %v9918_v12 = vpop.permute.xlu0 %4270  }
 0x20c   :  { %7464 = vst [vmem:[%s11074_s1 + $0x66] sm:$0x3] %v4910_v6  ;;  %7465 = vst [vmem:[%s11074_s1 + $0x68] sm:$0x3] %v4916_v7 }
 0x20d   :  { %7466 = vst [vmem:[%s11074_s1 + $0x6a] sm:$0x3] %v4922_v8  ;;  %7467 = vst [vmem:[%s11074_s1 + $0x6c] sm:$0x3] %v4928_v9 }
 0x20e   :  { %7468 = vst [vmem:[%s11074_s1 + $0x6e] sm:$0x3] %v4934_v15  ;;  %7469 = vst [vmem:[%s11074_s1 + $0x70] sm:$0x3] %v4940_v17 }
 0x20f   :  { %7470 = vst [vmem:[%s11074_s1 + $0x72] sm:$0x3] %v4946_v20  ;;  %7471 = vst [vmem:[%s11074_s1 + $0x74] sm:$0x3] %v4952_v36 }
 0x210   :  { %7472 = vst [vmem:[%s11074_s1 + $0x76] sm:$0x3] %v4958_v24  ;;  %v2783_v27 = vld [vmem:[#allocation1 + $0x3c0] ss:$8 sm:$0xf]  }
 0x211   :  { %v2785_v31 = vld [vmem:[#allocation1 + $0x3c0] ss:$8 sm:$0xf0]  }
 0x212   :  { %v2787_v33 = vsel %vm2562_vm0, %v2785_v31, %v2783_v27  ;;  %v2798_v34 = vld [vmem:[#allocation1 + $0x400] ss:$8 sm:$0xf]   ;;  %v9976_v31 = vpop.permute.xlu1 %4287  }
 0x213   :  { %v2800_v37 = vld [vmem:[#allocation1 + $0x400] ss:$8 sm:$0xf0]   ;;  %2790 = vst.msk [vmem:[#allocation0 + $0x1e0] sm:$0x3] %vm2564_vm1, %v2787_v33  }
 0x214   :  { %2792 = vst.msk [vmem:[#allocation0 + $0x1e6] sm:$0xc] %vm2564_vm1, %v2787_v33   ;;  %2794 = vst.msk [vmem:[#allocation0 + $0x1ec] sm:$0x30] %vm2564_vm1, %v2787_v33   ;;  %v2802_v40 = vsel %vm2562_vm0, %v2800_v37, %v2798_v34 }
 0x215   :  { %2796 = vst.msk [vmem:[#allocation0 + $0x1f2] sm:$0xc0] %vm2564_vm1, %v2787_v33   ;;  %v2813_v53 = vld [vmem:[#allocation1 + $0x440] ss:$8 sm:$0xf]  }
 0x216   :  { %v2815_v42 = vld [vmem:[#allocation1 + $0x440] ss:$8 sm:$0xf0]   ;;  %3781 = vst.msk [vmem:[#allocation0 + $0x1e0] sm:$0x3] %vm3525_vm2, %v8927_v30  }
 0x217   :  { %3783 = vst.msk [vmem:[#allocation0 + $0x1e6] sm:$0xc] %vm3525_vm2, %v8927_v30   ;;  %3785 = vst.msk [vmem:[#allocation0 + $0x1ec] sm:$0x30] %vm3525_vm2, %v8927_v30  }
 0x218   :  { %3787 = vst.msk [vmem:[#allocation0 + $0x1f2] sm:$0xc0] %vm3525_vm2, %v8927_v30   ;;  %v2817_v30 = vsel %vm2562_vm0, %v2815_v42, %v2813_v53  ;;  %v2828_v43 = vld [vmem:[#allocation1 + $0x480] ss:$8 sm:$0xf]  }
 0x219   :  { %2805 = vst.msk [vmem:[#allocation0 + $0x200] sm:$0x3] %vm2564_vm1, %v2802_v40   ;;  %2807 = vst.msk [vmem:[#allocation0 + $0x206] sm:$0xc] %vm2564_vm1, %v2802_v40  }
 0x21a   :  { %2809 = vst.msk [vmem:[#allocation0 + $0x20c] sm:$0x30] %vm2564_vm1, %v2802_v40   ;;  %2811 = vst.msk [vmem:[#allocation0 + $0x212] sm:$0xc0] %vm2564_vm1, %v2802_v40  }
 0x21b   :  { %v2830_v29 = vld [vmem:[#allocation1 + $0x480] ss:$8 sm:$0xf0]   ;;  %3798 = vst.msk [vmem:[#allocation0 + $0x200] sm:$0x3] %vm3525_vm2, %v8958_v49  }
 0x21c   :  { %3800 = vst.msk [vmem:[#allocation0 + $0x206] sm:$0xc] %vm3525_vm2, %v8958_v49   ;;  %3802 = vst.msk [vmem:[#allocation0 + $0x20c] sm:$0x30] %vm3525_vm2, %v8958_v49  }
 0x21d   :  { %3804 = vst.msk [vmem:[#allocation0 + $0x212] sm:$0xc0] %vm3525_vm2, %v8958_v49   ;;  %v2832_v49 = vsel %vm2562_vm0, %v2830_v29, %v2828_v43  ;;  %v2843_v4 = vld [vmem:[#allocation1 + $0x4c0] ss:$8 sm:$0xf]  }
 0x21e   :  { %2820 = vst.msk [vmem:[#allocation0 + $0x220] sm:$0x3] %vm2564_vm1, %v2817_v30   ;;  %2822 = vst.msk [vmem:[#allocation0 + $0x226] sm:$0xc] %vm2564_vm1, %v2817_v30   ;;  %v4964_v0 = vld [vmem:[#allocation0 + $0x1e0] sm:$0x3] }
 0x21f   :  { %2824 = vst.msk [vmem:[#allocation0 + $0x22c] sm:$0x30] %vm2564_vm1, %v2817_v30   ;;  %2826 = vst.msk [vmem:[#allocation0 + $0x232] sm:$0xc0] %vm2564_vm1, %v2817_v30   ;;  %v4970_v62 = vld [vmem:[#allocation0 + $0x1e8] sm:$0x3] }
 0x220   :  { %v2845_v48 = vld [vmem:[#allocation1 + $0x4c0] ss:$8 sm:$0xf0]   ;;  %3815 = vst.msk [vmem:[#allocation0 + $0x220] sm:$0x3] %vm3525_vm2, %v8987_v1  }
 0x221   :  { %3817 = vst.msk [vmem:[#allocation0 + $0x226] sm:$0xc] %vm3525_vm2, %v8987_v1   ;;  %3819 = vst.msk [vmem:[#allocation0 + $0x22c] sm:$0x30] %vm3525_vm2, %v8987_v1   ;;  %v4976_v5 = vld [vmem:[#allocation0 + $0x1f0] sm:$0x3] }
 0x222   :  { %3821 = vst.msk [vmem:[#allocation0 + $0x232] sm:$0xc0] %vm3525_vm2, %v8987_v1   ;;  %v2847_v1 = vsel %vm2562_vm0, %v2845_v48, %v2843_v4  ;;  %v2858_v51 = vld [vmem:[#allocation1 + $0x500] ss:$8 sm:$0xf]  }
 0x223   :  { %2835 = vst.msk [vmem:[#allocation0 + $0x240] sm:$0x3] %vm2564_vm1, %v2832_v49   ;;  %2837 = vst.msk [vmem:[#allocation0 + $0x246] sm:$0xc] %vm2564_vm1, %v2832_v49   ;;  %v4982_v6 = vld [vmem:[#allocation0 + $0x1f8] sm:$0x3] }
 0x224   :  { %2839 = vst.msk [vmem:[#allocation0 + $0x24c] sm:$0x30] %vm2564_vm1, %v2832_v49   ;;  %2841 = vst.msk [vmem:[#allocation0 + $0x252] sm:$0xc0] %vm2564_vm1, %v2832_v49   ;;  %v4988_v7 = vld [vmem:[#allocation0 + $0x200] sm:$0x3]  ;;  %v10005_v49 = vpop.permute.xlu0 %4304  }
 0x225   :  { %v2860_v14 = vld [vmem:[#allocation1 + $0x500] ss:$8 sm:$0xf0]   ;;  %3832 = vst.msk [vmem:[#allocation0 + $0x240] sm:$0x3] %vm3525_vm2, %v9005_v11  }
 0x226   :  { %3834 = vst.msk [vmem:[#allocation0 + $0x246] sm:$0xc] %vm3525_vm2, %v9005_v11   ;;  %3836 = vst.msk [vmem:[#allocation0 + $0x24c] sm:$0x30] %vm3525_vm2, %v9005_v11   ;;  %v4994_v8 = vld [vmem:[#allocation0 + $0x208] sm:$0x3] }
 0x227   :  { %3838 = vst.msk [vmem:[#allocation0 + $0x252] sm:$0xc0] %vm3525_vm2, %v9005_v11   ;;  %v2862_v11 = vsel %vm2562_vm0, %v2860_v14, %v2858_v51  ;;  %v2873_v54 = vld [vmem:[#allocation1 + $0x540] ss:$8 sm:$0xf]  }
 0x228   :  { %2850 = vst.msk [vmem:[#allocation0 + $0x260] sm:$0x3] %vm2564_vm1, %v2847_v1   ;;  %2852 = vst.msk [vmem:[#allocation0 + $0x266] sm:$0xc] %vm2564_vm1, %v2847_v1   ;;  %v5006_v9 = vld [vmem:[#allocation0 + $0x218] sm:$0x3] }
 0x229   :  { %2854 = vst.msk [vmem:[#allocation0 + $0x26c] sm:$0x30] %vm2564_vm1, %v2847_v1   ;;  %2856 = vst.msk [vmem:[#allocation0 + $0x272] sm:$0xc0] %vm2564_vm1, %v2847_v1   ;;  %v5012_v15 = vld [vmem:[#allocation0 + $0x220] sm:$0x3] }
 0x22a   :  { %v2875_v47 = vld [vmem:[#allocation1 + $0x540] ss:$8 sm:$0xf0]   ;;  %3849 = vst.msk [vmem:[#allocation0 + $0x260] sm:$0x3] %vm3525_vm2, %v9039_v28  }
 0x22b   :  { %3851 = vst.msk [vmem:[#allocation0 + $0x266] sm:$0xc] %vm3525_vm2, %v9039_v28   ;;  %3853 = vst.msk [vmem:[#allocation0 + $0x26c] sm:$0x30] %vm3525_vm2, %v9039_v28   ;;  %v5024_v17 = vld [vmem:[#allocation0 + $0x230] sm:$0x3] }
 0x22c   :  { %3855 = vst.msk [vmem:[#allocation0 + $0x272] sm:$0xc0] %vm3525_vm2, %v9039_v28   ;;  %v2877_v28 = vsel %vm2562_vm0, %v2875_v47, %v2873_v54  ;;  %v2888_v55 = vld [vmem:[#allocation1 + $0x580] ss:$8 sm:$0xf]  }
 0x22d   :  { %2865 = vst.msk [vmem:[#allocation0 + $0x280] sm:$0x3] %vm2564_vm1, %v2862_v11   ;;  %2867 = vst.msk [vmem:[#allocation0 + $0x286] sm:$0xc] %vm2564_vm1, %v2862_v11   ;;  %v5030_v20 = vld [vmem:[#allocation0 + $0x238] sm:$0x3] }
 0x22e   :  { %2869 = vst.msk [vmem:[#allocation0 + $0x28c] sm:$0x30] %vm2564_vm1, %v2862_v11   ;;  %2871 = vst.msk [vmem:[#allocation0 + $0x292] sm:$0xc0] %vm2564_vm1, %v2862_v11   ;;  %v5036_v36 = vld [vmem:[#allocation0 + $0x240] sm:$0x3] }
 0x22f   :  { %v2890_v60 = vld [vmem:[#allocation1 + $0x580] ss:$8 sm:$0xf0]   ;;  %3866 = vst.msk [vmem:[#allocation0 + $0x280] sm:$0x3] %vm3525_vm2, %v9070_v50  }
 0x230   :  { %3868 = vst.msk [vmem:[#allocation0 + $0x286] sm:$0xc] %vm3525_vm2, %v9070_v50   ;;  %3870 = vst.msk [vmem:[#allocation0 + $0x28c] sm:$0x30] %vm3525_vm2, %v9070_v50   ;;  %v5042_v24 = vld [vmem:[#allocation0 + $0x248] sm:$0x3] }
 0x231   :  { %3872 = vst.msk [vmem:[#allocation0 + $0x292] sm:$0xc0] %vm3525_vm2, %v9070_v50   ;;  %v2892_v50 = vsel %vm2562_vm0, %v2890_v60, %v2888_v55  ;;  %v2903_v57 = vld [vmem:[#allocation1 + $0x5c0] ss:$8 sm:$0xf]  }
 0x232   :  { %2880 = vst.msk [vmem:[#allocation0 + $0x2a0] sm:$0x3] %vm2564_vm1, %v2877_v28   ;;  %2882 = vst.msk [vmem:[#allocation0 + $0x2a6] sm:$0xc] %vm2564_vm1, %v2877_v28   ;;  %v5048_v27 = vld [vmem:[#allocation0 + $0x250] sm:$0x3] }
 0x233   :  { %2884 = vst.msk [vmem:[#allocation0 + $0x2ac] sm:$0x30] %vm2564_vm1, %v2877_v28   ;;  %2886 = vst.msk [vmem:[#allocation0 + $0x2b2] sm:$0xc0] %vm2564_vm1, %v2877_v28   ;;  %v5054_v33 = vld [vmem:[#allocation0 + $0x258] sm:$0x3] }
 0x234   :  { %v2905_v59 = vld [vmem:[#allocation1 + $0x5c0] ss:$8 sm:$0xf0]   ;;  %3883 = vst.msk [vmem:[#allocation0 + $0x2a0] sm:$0x3] %vm3525_vm2, %v9099_v3  }
 0x235   :  { %3885 = vst.msk [vmem:[#allocation0 + $0x2a6] sm:$0xc] %vm3525_vm2, %v9099_v3   ;;  %3887 = vst.msk [vmem:[#allocation0 + $0x2ac] sm:$0x30] %vm3525_vm2, %v9099_v3   ;;  %v5060_v34 = vld [vmem:[#allocation0 + $0x260] sm:$0x3] }
 0x236   :  { %3889 = vst.msk [vmem:[#allocation0 + $0x2b2] sm:$0xc0] %vm3525_vm2, %v9099_v3   ;;  %v2907_v3 = vsel %vm2562_vm0, %v2905_v59, %v2903_v57  ;;  %v2918_v23 = vld [vmem:[#allocation1 + $0x600] ss:$8 sm:$0xf]   ;;  %v10043_v57 = vpop.permute.xlu1 %4321  }
 0x237   :  { %2895 = vst.msk [vmem:[#allocation0 + $0x2c0] sm:$0x3] %vm2564_vm1, %v2892_v50   ;;  %2897 = vst.msk [vmem:[#allocation0 + $0x2c6] sm:$0xc] %vm2564_vm1, %v2892_v50   ;;  %v5066_v37 = vld [vmem:[#allocation0 + $0x268] sm:$0x3] }
 0x238   :  { %2899 = vst.msk [vmem:[#allocation0 + $0x2cc] sm:$0x30] %vm2564_vm1, %v2892_v50   ;;  %2901 = vst.msk [vmem:[#allocation0 + $0x2d2] sm:$0xc0] %vm2564_vm1, %v2892_v50   ;;  %v5072_v40 = vld [vmem:[#allocation0 + $0x270] sm:$0x3] }
 0x239   :  { %v2920_v61 = vld [vmem:[#allocation1 + $0x600] ss:$8 sm:$0xf0]   ;;  %3900 = vst.msk [vmem:[#allocation0 + $0x2c0] sm:$0x3] %vm3525_vm2, %v9117_v16  }
 0x23a   :  { %3902 = vst.msk [vmem:[#allocation0 + $0x2c6] sm:$0xc] %vm3525_vm2, %v9117_v16   ;;  %3904 = vst.msk [vmem:[#allocation0 + $0x2cc] sm:$0x30] %vm3525_vm2, %v9117_v16   ;;  %v5078_v53 = vld [vmem:[#allocation0 + $0x278] sm:$0x3] }
 0x23b   :  { %3906 = vst.msk [vmem:[#allocation0 + $0x2d2] sm:$0xc0] %vm3525_vm2, %v9117_v16   ;;  %v2922_v16 = vsel %vm2562_vm0, %v2920_v61, %v2918_v23  ;;  %7473 = vst [vmem:[%s11074_s1 + $0x78] sm:$0x3] %v4964_v0  ;;  %v5084_v42 = vld [vmem:[#allocation0 + $0x280] sm:$0x3] }
 0x23c   :  { %2910 = vst.msk [vmem:[#allocation0 + $0x2e0] sm:$0x3] %vm2564_vm1, %v2907_v3   ;;  %2912 = vst.msk [vmem:[#allocation0 + $0x2e6] sm:$0xc] %vm2564_vm1, %v2907_v3   ;;  %v5090_v30 = vld [vmem:[#allocation0 + $0x288] sm:$0x3] }
 0x23d   :  { %2914 = vst.msk [vmem:[#allocation0 + $0x2ec] sm:$0x30] %vm2564_vm1, %v2907_v3   ;;  %2916 = vst.msk [vmem:[#allocation0 + $0x2f2] sm:$0xc0] %vm2564_vm1, %v2907_v3   ;;  %v5096_v43 = vld [vmem:[#allocation0 + $0x290] sm:$0x3] }
 0x23e   :  { %7474 = vst [vmem:[%s11074_s1 + $0x7a] sm:$0x3] %v4970_v62  ;;  %7475 = vst [vmem:[%s11074_s1 + $0x7c] sm:$0x3] %v4976_v5  ;;  %v5102_v29 = vld [vmem:[#allocation0 + $0x298] sm:$0x3] }
 0x23f   :  { %3917 = vst.msk [vmem:[#allocation0 + $0x2e0] sm:$0x3] %vm3525_vm2, %v9151_v35   ;;  %3919 = vst.msk [vmem:[#allocation0 + $0x2e6] sm:$0xc] %vm3525_vm2, %v9151_v35   ;;  %v5108_v4 = vld [vmem:[#allocation0 + $0x2a0] sm:$0x3] }
 0x240   :  { %3921 = vst.msk [vmem:[#allocation0 + $0x2ec] sm:$0x30] %vm3525_vm2, %v9151_v35   ;;  %3923 = vst.msk [vmem:[#allocation0 + $0x2f2] sm:$0xc0] %vm3525_vm2, %v9151_v35   ;;  %v5000_v35 = vld [vmem:[#allocation0 + $0x210] sm:$0x3] }
 0x241   :  { %2925 = vst.msk [vmem:[#allocation0 + $0x300] sm:$0x3] %vm2564_vm1, %v2922_v16   ;;  %2927 = vst.msk [vmem:[#allocation0 + $0x306] sm:$0xc] %vm2564_vm1, %v2922_v16   ;;  %v5114_v48 = vld [vmem:[#allocation0 + $0x2a8] sm:$0x3] }
 0x242   :  { %2929 = vst.msk [vmem:[#allocation0 + $0x30c] sm:$0x30] %vm2564_vm1, %v2922_v16   ;;  %2931 = vst.msk [vmem:[#allocation0 + $0x312] sm:$0xc0] %vm2564_vm1, %v2922_v16   ;;  %v5120_v1 = vld [vmem:[#allocation0 + $0x2b0] sm:$0x3] }
 0x243   :  { %7476 = vst [vmem:[%s11074_s1 + $0x7e] sm:$0x3] %v4982_v6  ;;  %7477 = vst [vmem:[%s11074_s1 + $0x80] sm:$0x3] %v4988_v7  ;;  %v5126_v51 = vld [vmem:[#allocation0 + $0x2b8] sm:$0x3] }
 0x244   :  { %7478 = vst [vmem:[%s11074_s1 + $0x82] sm:$0x3] %v4994_v8  ;;  %3934 = vst.msk [vmem:[#allocation0 + $0x300] sm:$0x3] %vm3525_vm2, %v9182_v56   ;;  %v5132_v14 = vld [vmem:[#allocation0 + $0x2c0] sm:$0x3] }
 0x245   :  { %3936 = vst.msk [vmem:[#allocation0 + $0x306] sm:$0xc] %vm3525_vm2, %v9182_v56   ;;  %3938 = vst.msk [vmem:[#allocation0 + $0x30c] sm:$0x30] %vm3525_vm2, %v9182_v56   ;;  %v5138_v11 = vld [vmem:[#allocation0 + $0x2c8] sm:$0x3] }
 0x246   :  { %3940 = vst.msk [vmem:[#allocation0 + $0x312] sm:$0xc0] %vm3525_vm2, %v9182_v56   ;;  %7479 = vst [vmem:[%s11074_s1 + $0x84] sm:$0x3] %v5000_v35  ;;  %v5018_v56 = vld [vmem:[#allocation0 + $0x228] sm:$0x3] }
 0x247   :  { %7480 = vst [vmem:[%s11074_s1 + $0x86] sm:$0x3] %v5006_v9  ;;  %7481 = vst [vmem:[%s11074_s1 + $0x88] sm:$0x3] %v5012_v15  ;;  %v5144_v54 = vld [vmem:[#allocation0 + $0x2d0] sm:$0x3]  ;;  %v10072_v15 = vpop.permute.xlu0 %4338  }
 0x248   :  { %7482 = vst [vmem:[%s11074_s1 + $0x8a] sm:$0x3] %v5018_v56  ;;  %7483 = vst [vmem:[%s11074_s1 + $0x8c] sm:$0x3] %v5024_v17  ;;  %v5150_v47 = vld [vmem:[#allocation0 + $0x2d8] sm:$0x3] }
 0x249   :  { %7484 = vst [vmem:[%s11074_s1 + $0x8e] sm:$0x3] %v5030_v20  ;;  %7485 = vst [vmem:[%s11074_s1 + $0x90] sm:$0x3] %v5036_v36  ;;  %v5156_v28 = vld [vmem:[#allocation0 + $0x2e0] sm:$0x3] }
 0x24a   :  { %7486 = vst [vmem:[%s11074_s1 + $0x92] sm:$0x3] %v5042_v24  ;;  %7487 = vst [vmem:[%s11074_s1 + $0x94] sm:$0x3] %v5048_v27  ;;  %v5162_v55 = vld [vmem:[#allocation0 + $0x2e8] sm:$0x3] }
 0x24b   :  { %7488 = vst [vmem:[%s11074_s1 + $0x96] sm:$0x3] %v5054_v33  ;;  %7489 = vst [vmem:[%s11074_s1 + $0x98] sm:$0x3] %v5060_v34  ;;  %v5168_v60 = vld [vmem:[#allocation0 + $0x2f0] sm:$0x3] }
 0x24c   :  { %7490 = vst [vmem:[%s11074_s1 + $0x9a] sm:$0x3] %v5066_v37  ;;  %7491 = vst [vmem:[%s11074_s1 + $0x9c] sm:$0x3] %v5072_v40  ;;  %v5174_v50 = vld [vmem:[#allocation0 + $0x2f8] sm:$0x3]  ;;  %v10126_v37 = vpop.permute.xlu1 %4355  }
 0x24d   :  { %7492 = vst [vmem:[%s11074_s1 + $0x9e] sm:$0x3] %v5078_v53  ;;  %7493 = vst [vmem:[%s11074_s1 + $0xa0] sm:$0x3] %v5084_v42  ;;  %v5180_v59 = vld [vmem:[#allocation0 + $0x300] sm:$0x3] }
 0x24e   :  { %7494 = vst [vmem:[%s11074_s1 + $0xa2] sm:$0x3] %v5090_v30  ;;  %7495 = vst [vmem:[%s11074_s1 + $0xa4] sm:$0x3] %v5096_v43  ;;  %v5186_v3 = vld [vmem:[#allocation0 + $0x308] sm:$0x3] }
 0x24f   :  { %7496 = vst [vmem:[%s11074_s1 + $0xa6] sm:$0x3] %v5102_v29  ;;  %7497 = vst [vmem:[%s11074_s1 + $0xa8] sm:$0x3] %v5108_v4  ;;  %v5192_v23 = vld [vmem:[#allocation0 + $0x310] sm:$0x3]  ;;  %v10167_v29 = vpop.permute.xlu0 %4372  }
 0x250   :  { %7498 = vst [vmem:[%s11074_s1 + $0xaa] sm:$0x3] %v5114_v48  ;;  %7499 = vst [vmem:[%s11074_s1 + $0xac] sm:$0x3] %v5120_v1  ;;  %v5198_v61 = vld [vmem:[#allocation0 + $0x318] sm:$0x3] }
 0x251   :  { %7500 = vst [vmem:[%s11074_s1 + $0xae] sm:$0x3] %v5126_v51  ;;  %7501 = vst [vmem:[%s11074_s1 + $0xb0] sm:$0x3] %v5132_v14 }
 0x252   :  { %7502 = vst [vmem:[%s11074_s1 + $0xb2] sm:$0x3] %v5138_v11  ;;  %7503 = vst [vmem:[%s11074_s1 + $0xb4] sm:$0x3] %v5144_v54 }
 0x253   :  { %7504 = vst [vmem:[%s11074_s1 + $0xb6] sm:$0x3] %v5150_v47  ;;  %7505 = vst [vmem:[%s11074_s1 + $0xb8] sm:$0x3] %v5156_v28 }
 0x254   :  { %7506 = vst [vmem:[%s11074_s1 + $0xba] sm:$0x3] %v5162_v55  ;;  %7507 = vst [vmem:[%s11074_s1 + $0xbc] sm:$0x3] %v5168_v60  ;;  %v10229_v60 = vpop.permute.xlu1 %4389  }
 0x255   :  { %7508 = vst [vmem:[%s11074_s1 + $0xbe] sm:$0x3] %v5174_v50  ;;  %7509 = vst [vmem:[%s11074_s1 + $0xc0] sm:$0x3] %v5180_v59 }
 0x256   :  { %7510 = vst [vmem:[%s11074_s1 + $0xc2] sm:$0x3] %v5186_v3  ;;  %7511 = vst [vmem:[%s11074_s1 + $0xc4] sm:$0x3] %v5192_v23 }
 0x257   :  { %v2933_v0 = vld [vmem:[#allocation1 + $0x640] ss:$8 sm:$0xf]   ;;  %7512 = vst [vmem:[%s11074_s1 + $0xc6] sm:$0x3] %v5198_v61 }
 0x258   :  { %v2935_v62 = vld [vmem:[#allocation1 + $0x640] ss:$8 sm:$0xf0]  }
 0x259   :  { %v2948_v5 = vld [vmem:[#allocation1 + $0x680] ss:$8 sm:$0xf]   ;;  %v2937_v16 = vsel %vm2562_vm0, %v2935_v62, %v2933_v0 }
 0x25a   :  { %v2950_v6 = vld [vmem:[#allocation1 + $0x680] ss:$8 sm:$0xf0]   ;;  %2940 = vst.msk [vmem:[#allocation0 + $0x320] sm:$0x3] %vm2564_vm1, %v2937_v16  }
 0x25b   :  { %v2963_v7 = vld [vmem:[#allocation1 + $0x6c0] ss:$8 sm:$0xf]   ;;  %2942 = vst.msk [vmem:[#allocation0 + $0x326] sm:$0xc] %vm2564_vm1, %v2937_v16   ;;  %v2952_v8 = vsel %vm2562_vm0, %v2950_v6, %v2948_v5 }
 0x25c   :  { %2944 = vst.msk [vmem:[#allocation0 + $0x32c] sm:$0x30] %vm2564_vm1, %v2937_v16   ;;  %2946 = vst.msk [vmem:[#allocation0 + $0x332] sm:$0xc0] %vm2564_vm1, %v2937_v16  }
 0x25d   :  { %v2965_v35 = vld [vmem:[#allocation1 + $0x6c0] ss:$8 sm:$0xf0]   ;;  %3951 = vst.msk [vmem:[#allocation0 + $0x320] sm:$0x3] %vm3525_vm2, %v9211_v13  }
 0x25e   :  { %v2978_v9 = vld [vmem:[#allocation1 + $0x700] ss:$8 sm:$0xf]   ;;  %3953 = vst.msk [vmem:[#allocation0 + $0x326] sm:$0xc] %vm3525_vm2, %v9211_v13  }
 0x25f   :  { %3955 = vst.msk [vmem:[#allocation0 + $0x32c] sm:$0x30] %vm3525_vm2, %v9211_v13   ;;  %3957 = vst.msk [vmem:[#allocation0 + $0x332] sm:$0xc0] %vm3525_vm2, %v9211_v13   ;;  %v2967_v13 = vsel %vm2562_vm0, %v2965_v35, %v2963_v7 }
 0x260   :  { %2955 = vst.msk [vmem:[#allocation0 + $0x340] sm:$0x3] %vm2564_vm1, %v2952_v8   ;;  %2957 = vst.msk [vmem:[#allocation0 + $0x346] sm:$0xc] %vm2564_vm1, %v2952_v8  }
 0x261   :  { %2959 = vst.msk [vmem:[#allocation0 + $0x34c] sm:$0x30] %vm2564_vm1, %v2952_v8   ;;  %2961 = vst.msk [vmem:[#allocation0 + $0x352] sm:$0xc0] %vm2564_vm1, %v2952_v8  }
 0x262   :  { %v2980_v56 = vld [vmem:[#allocation1 + $0x700] ss:$8 sm:$0xf0]   ;;  %3968 = vst.msk [vmem:[#allocation0 + $0x340] sm:$0x3] %vm3525_vm2, %v9229_v25  }
 0x263   :  { %v2993_v17 = vld [vmem:[#allocation1 + $0x740] ss:$8 sm:$0xf]   ;;  %3970 = vst.msk [vmem:[#allocation0 + $0x346] sm:$0xc] %vm3525_vm2, %v9229_v25  }
 0x264   :  { %3972 = vst.msk [vmem:[#allocation0 + $0x34c] sm:$0x30] %vm3525_vm2, %v9229_v25   ;;  %3974 = vst.msk [vmem:[#allocation0 + $0x352] sm:$0xc0] %vm3525_vm2, %v9229_v25   ;;  %v2982_v25 = vsel %vm2562_vm0, %v2980_v56, %v2978_v9  ;;  %v5204_v4 = vld [vmem:[#allocation0 + $0x320] sm:$0x3]  ;;  %v10276_v56 = vpop.permute.xlu0 %4406  }
 0x265   :  { %2970 = vst.msk [vmem:[#allocation0 + $0x360] sm:$0x3] %vm2564_vm1, %v2967_v13   ;;  %2972 = vst.msk [vmem:[#allocation0 + $0x366] sm:$0xc] %vm2564_vm1, %v2967_v13   ;;  %v5210_v48 = vld [vmem:[#allocation0 + $0x328] sm:$0x3] }
 0x266   :  { %2974 = vst.msk [vmem:[#allocation0 + $0x36c] sm:$0x30] %vm2564_vm1, %v2967_v13   ;;  %2976 = vst.msk [vmem:[#allocation0 + $0x372] sm:$0xc0] %vm2564_vm1, %v2967_v13   ;;  %v5216_v1 = vld [vmem:[#allocation0 + $0x330] sm:$0x3] }
 0x267   :  { %v2995_v20 = vld [vmem:[#allocation1 + $0x740] ss:$8 sm:$0xf0]   ;;  %3985 = vst.msk [vmem:[#allocation0 + $0x360] sm:$0x3] %vm3525_vm2, %v9250_v44  }
 0x268   :  { %v3008_v36 = vld [vmem:[#allocation1 + $0x780] ss:$8 sm:$0xf]   ;;  %3987 = vst.msk [vmem:[#allocation0 + $0x366] sm:$0xc] %vm3525_vm2, %v9250_v44  }
 0x269   :  { %3989 = vst.msk [vmem:[#allocation0 + $0x36c] sm:$0x30] %vm3525_vm2, %v9250_v44   ;;  %3991 = vst.msk [vmem:[#allocation0 + $0x372] sm:$0xc0] %vm3525_vm2, %v9250_v44   ;;  %v2997_v44 = vsel %vm2562_vm0, %v2995_v20, %v2993_v17  ;;  %v5222_v51 = vld [vmem:[#allocation0 + $0x338] sm:$0x3] }
 0x26a   :  { %2985 = vst.msk [vmem:[#allocation0 + $0x380] sm:$0x3] %vm2564_vm1, %v2982_v25   ;;  %2987 = vst.msk [vmem:[#allocation0 + $0x386] sm:$0xc] %vm2564_vm1, %v2982_v25   ;;  %v5228_v14 = vld [vmem:[#allocation0 + $0x340] sm:$0x3] }
 0x26b   :  { %2989 = vst.msk [vmem:[#allocation0 + $0x38c] sm:$0x30] %vm2564_vm1, %v2982_v25   ;;  %2991 = vst.msk [vmem:[#allocation0 + $0x392] sm:$0xc0] %vm2564_vm1, %v2982_v25   ;;  %v5234_v11 = vld [vmem:[#allocation0 + $0x348] sm:$0x3] }
 0x26c   :  { %v3010_v24 = vld [vmem:[#allocation1 + $0x780] ss:$8 sm:$0xf0]   ;;  %4002 = vst.msk [vmem:[#allocation0 + $0x380] sm:$0x3] %vm3525_vm2, %v9302_v2  }
 0x26d   :  { %v3023_v27 = vld [vmem:[#allocation1 + $0x7c0] ss:$8 sm:$0xf]   ;;  %4004 = vst.msk [vmem:[#allocation0 + $0x386] sm:$0xc] %vm3525_vm2, %v9302_v2  }
 0x26e   :  { %4006 = vst.msk [vmem:[#allocation0 + $0x38c] sm:$0x30] %vm3525_vm2, %v9302_v2   ;;  %4008 = vst.msk [vmem:[#allocation0 + $0x392] sm:$0xc0] %vm3525_vm2, %v9302_v2   ;;  %v3012_v2 = vsel %vm2562_vm0, %v3010_v24, %v3008_v36  ;;  %v5246_v54 = vld [vmem:[#allocation0 + $0x358] sm:$0x3] }
 0x26f   :  { %3000 = vst.msk [vmem:[#allocation0 + $0x3a0] sm:$0x3] %vm2564_vm1, %v2997_v44   ;;  %3002 = vst.msk [vmem:[#allocation0 + $0x3a6] sm:$0xc] %vm2564_vm1, %v2997_v44   ;;  %v5252_v47 = vld [vmem:[#allocation0 + $0x360] sm:$0x3] }
 0x270   :  { %3004 = vst.msk [vmem:[#allocation0 + $0x3ac] sm:$0x30] %vm2564_vm1, %v2997_v44   ;;  %3006 = vst.msk [vmem:[#allocation0 + $0x3b2] sm:$0xc0] %vm2564_vm1, %v2997_v44   ;;  %v5264_v28 = vld [vmem:[#allocation0 + $0x370] sm:$0x3] }
 0x271   :  { %v3025_v33 = vld [vmem:[#allocation1 + $0x7c0] ss:$8 sm:$0xf0]   ;;  %4019 = vst.msk [vmem:[#allocation0 + $0x3a0] sm:$0x3] %vm3525_vm2, %v9333_v26  }
 0x272   :  { %v3038_v34 = vld [vmem:[#allocation1 + $0x800] ss:$8 sm:$0xf]   ;;  %4021 = vst.msk [vmem:[#allocation0 + $0x3a6] sm:$0xc] %vm3525_vm2, %v9333_v26  }
 0x273   :  { %4023 = vst.msk [vmem:[#allocation0 + $0x3ac] sm:$0x30] %vm3525_vm2, %v9333_v26   ;;  %4025 = vst.msk [vmem:[#allocation0 + $0x3b2] sm:$0xc0] %vm3525_vm2, %v9333_v26   ;;  %v3027_v26 = vsel %vm2562_vm0, %v3025_v33, %v3023_v27  ;;  %v5270_v55 = vld [vmem:[#allocation0 + $0x378] sm:$0x3] }
 0x274   :  { %3015 = vst.msk [vmem:[#allocation0 + $0x3c0] sm:$0x3] %vm2564_vm1, %v3012_v2   ;;  %3017 = vst.msk [vmem:[#allocation0 + $0x3c6] sm:$0xc] %vm2564_vm1, %v3012_v2   ;;  %v5276_v50 = vld [vmem:[#allocation0 + $0x380] sm:$0x3] }
 0x275   :  { %3019 = vst.msk [vmem:[#allocation0 + $0x3cc] sm:$0x30] %vm2564_vm1, %v3012_v2   ;;  %3021 = vst.msk [vmem:[#allocation0 + $0x3d2] sm:$0xc0] %vm2564_vm1, %v3012_v2   ;;  %v5282_v59 = vld [vmem:[#allocation0 + $0x388] sm:$0x3] }
 0x276   :  { %v3040_v40 = vld [vmem:[#allocation1 + $0x800] ss:$8 sm:$0xf0]   ;;  %4036 = vst.msk [vmem:[#allocation0 + $0x3c0] sm:$0x3] %vm3525_vm2, %v9350_v41  }
 0x277   :  { %v3053_v53 = vld [vmem:[#allocation1 + $0x840] ss:$8 sm:$0xf]   ;;  %4038 = vst.msk [vmem:[#allocation0 + $0x3c6] sm:$0xc] %vm3525_vm2, %v9350_v41  }
 0x278   :  { %4040 = vst.msk [vmem:[#allocation0 + $0x3cc] sm:$0x30] %vm3525_vm2, %v9350_v41   ;;  %4042 = vst.msk [vmem:[#allocation0 + $0x3d2] sm:$0xc0] %vm3525_vm2, %v9350_v41   ;;  %v3042_v41 = vsel %vm2562_vm0, %v3040_v40, %v3038_v34  ;;  %v5288_v3 = vld [vmem:[#allocation0 + $0x390] sm:$0x3] }
 0x279   :  { %3030 = vst.msk [vmem:[#allocation0 + $0x3e0] sm:$0x3] %vm2564_vm1, %v3027_v26   ;;  %3032 = vst.msk [vmem:[#allocation0 + $0x3e6] sm:$0xc] %vm2564_vm1, %v3027_v26   ;;  %v5294_v23 = vld [vmem:[#allocation0 + $0x398] sm:$0x3] }
 0x27a   :  { %3034 = vst.msk [vmem:[#allocation0 + $0x3ec] sm:$0x30] %vm2564_vm1, %v3027_v26   ;;  %3036 = vst.msk [vmem:[#allocation0 + $0x3f2] sm:$0xc0] %vm2564_vm1, %v3027_v26   ;;  %v5300_v61 = vld [vmem:[#allocation0 + $0x3a0] sm:$0x3] }
 0x27b   :  { %v3055_v42 = vld [vmem:[#allocation1 + $0x840] ss:$8 sm:$0xf0]   ;;  %4053 = vst.msk [vmem:[#allocation0 + $0x3e0] sm:$0x3] %vm3525_vm2, %v9396_v58  }
 0x27c   :  { %v3068_v30 = vld [vmem:[#allocation1 + $0x880] ss:$8 sm:$0xf]   ;;  %4055 = vst.msk [vmem:[#allocation0 + $0x3e6] sm:$0xc] %vm3525_vm2, %v9396_v58  }
 0x27d   :  { %4057 = vst.msk [vmem:[#allocation0 + $0x3ec] sm:$0x30] %vm3525_vm2, %v9396_v58   ;;  %4059 = vst.msk [vmem:[#allocation0 + $0x3f2] sm:$0xc0] %vm3525_vm2, %v9396_v58   ;;  %v3057_v58 = vsel %vm2562_vm0, %v3055_v42, %v3053_v53  ;;  %v5306_v0 = vld [vmem:[#allocation0 + $0x3a8] sm:$0x3] }
 0x27e   :  { %3045 = vst.msk [vmem:[#allocation0 + $0x400] sm:$0x3] %vm2564_vm1, %v3042_v41   ;;  %3047 = vst.msk [vmem:[#allocation0 + $0x406] sm:$0xc] %vm2564_vm1, %v3042_v41   ;;  %v5312_v62 = vld [vmem:[#allocation0 + $0x3b0] sm:$0x3] }
 0x27f   :  { %3049 = vst.msk [vmem:[#allocation0 + $0x40c] sm:$0x30] %vm2564_vm1, %v3042_v41   ;;  %3051 = vst.msk [vmem:[#allocation0 + $0x412] sm:$0xc0] %vm2564_vm1, %v3042_v41   ;;  %v5318_v5 = vld [vmem:[#allocation0 + $0x3b8] sm:$0x3]  ;;  %v10314_v41 = vpop.permute.xlu1 %4423  }
 0x280   :  { %v3070_v43 = vld [vmem:[#allocation1 + $0x880] ss:$8 sm:$0xf0]   ;;  %4070 = vst.msk [vmem:[#allocation0 + $0x400] sm:$0x3] %vm3525_vm2, %v9429_v19  }
 0x281   :  { %4072 = vst.msk [vmem:[#allocation0 + $0x406] sm:$0xc] %vm3525_vm2, %v9429_v19   ;;  %4074 = vst.msk [vmem:[#allocation0 + $0x40c] sm:$0x30] %vm3525_vm2, %v9429_v19   ;;  %v5324_v16 = vld [vmem:[#allocation0 + $0x3c0] sm:$0x3] }
 0x282   :  { %4076 = vst.msk [vmem:[#allocation0 + $0x412] sm:$0xc0] %vm3525_vm2, %v9429_v19   ;;  %v3072_v19 = vsel %vm2562_vm0, %v3070_v43, %v3068_v30  ;;  %7513 = vst [vmem:[%s11074_s1 + $0xc8] sm:$0x3] %v5204_v4  ;;  %v5330_v6 = vld [vmem:[#allocation0 + $0x3c8] sm:$0x3] }
 0x283   :  { %3060 = vst.msk [vmem:[#allocation0 + $0x420] sm:$0x3] %vm2564_vm1, %v3057_v58   ;;  %3062 = vst.msk [vmem:[#allocation0 + $0x426] sm:$0xc] %vm2564_vm1, %v3057_v58   ;;  %v5336_v7 = vld [vmem:[#allocation0 + $0x3d0] sm:$0x3] }
 0x284   :  { %3064 = vst.msk [vmem:[#allocation0 + $0x42c] sm:$0x30] %vm2564_vm1, %v3057_v58   ;;  %3066 = vst.msk [vmem:[#allocation0 + $0x432] sm:$0xc0] %vm2564_vm1, %v3057_v58   ;;  %v5342_v8 = vld [vmem:[#allocation0 + $0x3d8] sm:$0x3] }
 0x285   :  { %7514 = vst [vmem:[%s11074_s1 + $0xca] sm:$0x3] %v5210_v48  ;;  %7515 = vst [vmem:[%s11074_s1 + $0xcc] sm:$0x3] %v5216_v1  ;;  %v5348_v35 = vld [vmem:[#allocation0 + $0x3e0] sm:$0x3] }
 0x286   :  { %4087 = vst.msk [vmem:[#allocation0 + $0x420] sm:$0x3] %vm3525_vm2, %v9471_v45   ;;  %4089 = vst.msk [vmem:[#allocation0 + $0x426] sm:$0xc] %vm3525_vm2, %v9471_v45   ;;  %v5354_v9 = vld [vmem:[#allocation0 + $0x3e8] sm:$0x3] }
 0x287   :  { %4091 = vst.msk [vmem:[#allocation0 + $0x42c] sm:$0x30] %vm3525_vm2, %v9471_v45   ;;  %4093 = vst.msk [vmem:[#allocation0 + $0x432] sm:$0xc0] %vm3525_vm2, %v9471_v45   ;;  %v5240_v45 = vld [vmem:[#allocation0 + $0x350] sm:$0x3] }
 0x288   :  { %3075 = vst.msk [vmem:[#allocation0 + $0x440] sm:$0x3] %vm2564_vm1, %v3072_v19   ;;  %3077 = vst.msk [vmem:[#allocation0 + $0x446] sm:$0xc] %vm2564_vm1, %v3072_v19   ;;  %v5360_v13 = vld [vmem:[#allocation0 + $0x3f0] sm:$0x3] }
 0x289   :  { %3079 = vst.msk [vmem:[#allocation0 + $0x44c] sm:$0x30] %vm2564_vm1, %v3072_v19   ;;  %3081 = vst.msk [vmem:[#allocation0 + $0x452] sm:$0xc0] %vm2564_vm1, %v3072_v19   ;;  %v5366_v17 = vld [vmem:[#allocation0 + $0x3f8] sm:$0x3] }
 0x28a   :  { %7516 = vst [vmem:[%s11074_s1 + $0xce] sm:$0x3] %v5222_v51  ;;  %7517 = vst [vmem:[%s11074_s1 + $0xd0] sm:$0x3] %v5228_v14  ;;  %v5372_v25 = vld [vmem:[#allocation0 + $0x400] sm:$0x3]  ;;  %v10334_v51 = vpop.permute.xlu0 %4440  }
 0x28b   :  { %7518 = vst [vmem:[%s11074_s1 + $0xd2] sm:$0x3] %v5234_v11  ;;  %4104 = vst.msk [vmem:[#allocation0 + $0x440] sm:$0x3] %vm3525_vm2, %v9492_v39   ;;  %v5378_v20 = vld [vmem:[#allocation0 + $0x408] sm:$0x3] }
 0x28c   :  { %4106 = vst.msk [vmem:[#allocation0 + $0x446] sm:$0xc] %vm3525_vm2, %v9492_v39   ;;  %4108 = vst.msk [vmem:[#allocation0 + $0x44c] sm:$0x30] %vm3525_vm2, %v9492_v39   ;;  %v5384_v44 = vld [vmem:[#allocation0 + $0x410] sm:$0x3] }
 0x28d   :  { %4110 = vst.msk [vmem:[#allocation0 + $0x452] sm:$0xc0] %vm3525_vm2, %v9492_v39   ;;  %7519 = vst [vmem:[%s11074_s1 + $0xd4] sm:$0x3] %v5240_v45  ;;  %v5258_v39 = vld [vmem:[#allocation0 + $0x368] sm:$0x3] }
 0x28e   :  { %7520 = vst [vmem:[%s11074_s1 + $0xd6] sm:$0x3] %v5246_v54  ;;  %7521 = vst [vmem:[%s11074_s1 + $0xd8] sm:$0x3] %v5252_v47  ;;  %v5390_v24 = vld [vmem:[#allocation0 + $0x418] sm:$0x3] }
 0x28f   :  { %7522 = vst [vmem:[%s11074_s1 + $0xda] sm:$0x3] %v5258_v39  ;;  %7523 = vst [vmem:[%s11074_s1 + $0xdc] sm:$0x3] %v5264_v28  ;;  %v5396_v27 = vld [vmem:[#allocation0 + $0x420] sm:$0x3] }
 0x290   :  { %7524 = vst [vmem:[%s11074_s1 + $0xde] sm:$0x3] %v5270_v55  ;;  %7525 = vst [vmem:[%s11074_s1 + $0xe0] sm:$0x3] %v5276_v50  ;;  %v5402_v2 = vld [vmem:[#allocation0 + $0x428] sm:$0x3]  ;;  %v10388_v50 = vpop.permute.xlu1 %4457  }
 0x291   :  { %7526 = vst [vmem:[%s11074_s1 + $0xe2] sm:$0x3] %v5282_v59  ;;  %7527 = vst [vmem:[%s11074_s1 + $0xe4] sm:$0x3] %v5288_v3  ;;  %v5408_v33 = vld [vmem:[#allocation0 + $0x430] sm:$0x3] }
 0x292   :  { %7528 = vst [vmem:[%s11074_s1 + $0xe6] sm:$0x3] %v5294_v23  ;;  %7529 = vst [vmem:[%s11074_s1 + $0xe8] sm:$0x3] %v5300_v61  ;;  %v5414_v34 = vld [vmem:[#allocation0 + $0x438] sm:$0x3] }
 0x293   :  { %7530 = vst [vmem:[%s11074_s1 + $0xea] sm:$0x3] %v5306_v0  ;;  %7531 = vst [vmem:[%s11074_s1 + $0xec] sm:$0x3] %v5312_v62  ;;  %v5420_v26 = vld [vmem:[#allocation0 + $0x440] sm:$0x3] }
 0x294   :  { %7532 = vst [vmem:[%s11074_s1 + $0xee] sm:$0x3] %v5318_v5  ;;  %7533 = vst [vmem:[%s11074_s1 + $0xf0] sm:$0x3] %v5324_v16  ;;  %v5426_v40 = vld [vmem:[#allocation0 + $0x448] sm:$0x3] }
 0x295   :  { %7534 = vst [vmem:[%s11074_s1 + $0xf2] sm:$0x3] %v5330_v6  ;;  %7535 = vst [vmem:[%s11074_s1 + $0xf4] sm:$0x3] %v5336_v7  ;;  %v5432_v53 = vld [vmem:[#allocation0 + $0x450] sm:$0x3] }
 0x296   :  { %7536 = vst [vmem:[%s11074_s1 + $0xf6] sm:$0x3] %v5342_v8  ;;  %7537 = vst [vmem:[%s11074_s1 + $0xf8] sm:$0x3] %v5348_v35  ;;  %v5438_v42 = vld [vmem:[#allocation0 + $0x458] sm:$0x3] }
 0x297   :  { %7538 = vst [vmem:[%s11074_s1 + $0xfa] sm:$0x3] %v5354_v9  ;;  %7539 = vst [vmem:[%s11074_s1 + $0xfc] sm:$0x3] %v5360_v13 }
 0x298   :  { %v3083_v36 = vld [vmem:[#allocation1 + $0x8c0] ss:$8 sm:$0xf]   ;;  %7540 = vst [vmem:[%s11074_s1 + $0xfe] sm:$0x3] %v5366_v17 }
 0x299   :  { %7541 = vst [vmem:[%s11074_s1 + $0x100] sm:$0x3] %v5372_v25  ;;  %7542 = vst [vmem:[%s11074_s1 + $0x102] sm:$0x3] %v5378_v20 }
 0x29a   :  { %7543 = vst [vmem:[%s11074_s1 + $0x104] sm:$0x3] %v5384_v44  ;;  %7544 = vst [vmem:[%s11074_s1 + $0x106] sm:$0x3] %v5390_v24 }
 0x29b   :  { %7545 = vst [vmem:[%s11074_s1 + $0x108] sm:$0x3] %v5396_v27  ;;  %7546 = vst [vmem:[%s11074_s1 + $0x10a] sm:$0x3] %v5402_v2 }
 0x29c   :  { %7547 = vst [vmem:[%s11074_s1 + $0x10c] sm:$0x3] %v5408_v33  ;;  %7548 = vst [vmem:[%s11074_s1 + $0x10e] sm:$0x3] %v5414_v34  ;;  %v10509_v34 = vpop.permute.xlu1 %4491  }
 0x29d   :  { %7549 = vst [vmem:[%s11074_s1 + $0x110] sm:$0x3] %v5420_v26  ;;  %7550 = vst [vmem:[%s11074_s1 + $0x112] sm:$0x3] %v5426_v40 }
 0x29e   :  { %7551 = vst [vmem:[%s11074_s1 + $0x114] sm:$0x3] %v5432_v53  ;;  %v3085_v30 = vld [vmem:[#allocation1 + $0x8c0] ss:$8 sm:$0xf0]  }
 0x29f   :  { %7552 = vst [vmem:[%s11074_s1 + $0x116] sm:$0x3] %v5438_v42  ;;  %v3087_v58 = vsel %vm2562_vm0, %v3085_v30, %v3083_v36  ;;  %v3098_v43 = vld [vmem:[#allocation1 + $0x900] ss:$8 sm:$0xf]  }
 0x2a0   :  { %v3100_v4 = vld [vmem:[#allocation1 + $0x900] ss:$8 sm:$0xf0]   ;;  %3090 = vst.msk [vmem:[#allocation0 + $0x460] sm:$0x3] %vm2564_vm1, %v3087_v58  }
 0x2a1   :  { %3092 = vst.msk [vmem:[#allocation0 + $0x466] sm:$0xc] %vm2564_vm1, %v3087_v58   ;;  %3094 = vst.msk [vmem:[#allocation0 + $0x46c] sm:$0x30] %vm2564_vm1, %v3087_v58   ;;  %v3102_v48 = vsel %vm2562_vm0, %v3100_v4, %v3098_v43 }
 0x2a2   :  { %3096 = vst.msk [vmem:[#allocation0 + $0x472] sm:$0xc0] %vm2564_vm1, %v3087_v58   ;;  %v3113_v1 = vld [vmem:[#allocation1 + $0x940] ss:$8 sm:$0xf]  }
 0x2a3   :  { %v3115_v19 = vld [vmem:[#allocation1 + $0x940] ss:$8 sm:$0xf0]   ;;  %4121 = vst.msk [vmem:[#allocation0 + $0x460] sm:$0x3] %vm3525_vm2, %v9537_v21  }
 0x2a4   :  { %4123 = vst.msk [vmem:[#allocation0 + $0x466] sm:$0xc] %vm3525_vm2, %v9537_v21   ;;  %4125 = vst.msk [vmem:[#allocation0 + $0x46c] sm:$0x30] %vm3525_vm2, %v9537_v21  }
 0x2a5   :  { %4127 = vst.msk [vmem:[#allocation0 + $0x472] sm:$0xc0] %vm3525_vm2, %v9537_v21   ;;  %v3117_v21 = vsel %vm2562_vm0, %v3115_v19, %v3113_v1  ;;  %v3128_v14 = vld [vmem:[#allocation1 + $0x980] ss:$8 sm:$0xf]  }
 0x2a6   :  { %3105 = vst.msk [vmem:[#allocation0 + $0x480] sm:$0x3] %vm2564_vm1, %v3102_v48   ;;  %3107 = vst.msk [vmem:[#allocation0 + $0x486] sm:$0xc] %vm2564_vm1, %v3102_v48  }
 0x2a7   :  { %3109 = vst.msk [vmem:[#allocation0 + $0x48c] sm:$0x30] %vm2564_vm1, %v3102_v48   ;;  %3111 = vst.msk [vmem:[#allocation0 + $0x492] sm:$0xc0] %vm2564_vm1, %v3102_v48  }
 0x2a8   :  { %v3130_v11 = vld [vmem:[#allocation1 + $0x980] ss:$8 sm:$0xf0]   ;;  %4138 = vst.msk [vmem:[#allocation0 + $0x480] sm:$0x3] %vm3525_vm2, %v9573_v32  }
 0x2a9   :  { %4140 = vst.msk [vmem:[#allocation0 + $0x486] sm:$0xc] %vm3525_vm2, %v9573_v32   ;;  %4142 = vst.msk [vmem:[#allocation0 + $0x48c] sm:$0x30] %vm3525_vm2, %v9573_v32  }
 0x2aa   :  { %4144 = vst.msk [vmem:[#allocation0 + $0x492] sm:$0xc0] %vm3525_vm2, %v9573_v32   ;;  %v3132_v32 = vsel %vm2562_vm0, %v3130_v11, %v3128_v14  ;;  %v3143_v45 = vld [vmem:[#allocation1 + $0x9c0] ss:$8 sm:$0xf]  }
 0x2ab   :  { %3120 = vst.msk [vmem:[#allocation0 + $0x4a0] sm:$0x3] %vm2564_vm1, %v3117_v21   ;;  %3122 = vst.msk [vmem:[#allocation0 + $0x4a6] sm:$0xc] %vm2564_vm1, %v3117_v21   ;;  %v5444_v5 = vld [vmem:[#allocation0 + $0x460] sm:$0x3] }
 0x2ac   :  { %3124 = vst.msk [vmem:[#allocation0 + $0x4ac] sm:$0x30] %vm2564_vm1, %v3117_v21   ;;  %3126 = vst.msk [vmem:[#allocation0 + $0x4b2] sm:$0xc0] %vm2564_vm1, %v3117_v21   ;;  %v5450_v16 = vld [vmem:[#allocation0 + $0x468] sm:$0x3] }
 0x2ad   :  { %v3145_v54 = vld [vmem:[#allocation1 + $0x9c0] ss:$8 sm:$0xf0]   ;;  %4155 = vst.msk [vmem:[#allocation0 + $0x4a0] sm:$0x3] %vm3525_vm2, %v9599_v63  }
 0x2ae   :  { %4157 = vst.msk [vmem:[#allocation0 + $0x4a6] sm:$0xc] %vm3525_vm2, %v9599_v63   ;;  %4159 = vst.msk [vmem:[#allocation0 + $0x4ac] sm:$0x30] %vm3525_vm2, %v9599_v63   ;;  %v5456_v6 = vld [vmem:[#allocation0 + $0x470] sm:$0x3] }
 0x2af   :  { %4161 = vst.msk [vmem:[#allocation0 + $0x4b2] sm:$0xc0] %vm3525_vm2, %v9599_v63   ;;  %v3147_v63 = vsel %vm2562_vm0, %v3145_v54, %v3143_v45  ;;  %v3158_v47 = vld [vmem:[#allocation1 + $0xa00] ss:$8 sm:$0xf]  }
 0x2b0   :  { %3135 = vst.msk [vmem:[#allocation0 + $0x4c0] sm:$0x3] %vm2564_vm1, %v3132_v32   ;;  %3137 = vst.msk [vmem:[#allocation0 + $0x4c6] sm:$0xc] %vm2564_vm1, %v3132_v32   ;;  %v5462_v7 = vld [vmem:[#allocation0 + $0x478] sm:$0x3] }
 0x2b1   :  { %3139 = vst.msk [vmem:[#allocation0 + $0x4cc] sm:$0x30] %vm2564_vm1, %v3132_v32   ;;  %3141 = vst.msk [vmem:[#allocation0 + $0x4d2] sm:$0xc0] %vm2564_vm1, %v3132_v32   ;;  %v5468_v8 = vld [vmem:[#allocation0 + $0x480] sm:$0x3] }
 0x2b2   :  { %v3160_v39 = vld [vmem:[#allocation1 + $0xa00] ss:$8 sm:$0xf0]   ;;  %4172 = vst.msk [vmem:[#allocation0 + $0x4c0] sm:$0x3] %vm3525_vm2, %v9629_v18  }
 0x2b3   :  { %4174 = vst.msk [vmem:[#allocation0 + $0x4c6] sm:$0xc] %vm3525_vm2, %v9629_v18   ;;  %4176 = vst.msk [vmem:[#allocation0 + $0x4cc] sm:$0x30] %vm3525_vm2, %v9629_v18   ;;  %v5474_v35 = vld [vmem:[#allocation0 + $0x488] sm:$0x3] }
 0x2b4   :  { %4178 = vst.msk [vmem:[#allocation0 + $0x4d2] sm:$0xc0] %vm3525_vm2, %v9629_v18   ;;  %v3162_v18 = vsel %vm2562_vm0, %v3160_v39, %v3158_v47  ;;  %v3173_v28 = vld [vmem:[#allocation1 + $0xa40] ss:$8 sm:$0xf]  }
 0x2b5   :  { %3150 = vst.msk [vmem:[#allocation0 + $0x4e0] sm:$0x3] %vm2564_vm1, %v3147_v63   ;;  %3152 = vst.msk [vmem:[#allocation0 + $0x4e6] sm:$0xc] %vm2564_vm1, %v3147_v63   ;;  %v5480_v9 = vld [vmem:[#allocation0 + $0x490] sm:$0x3] }
 0x2b6   :  { %3154 = vst.msk [vmem:[#allocation0 + $0x4ec] sm:$0x30] %vm2564_vm1, %v3147_v63   ;;  %3156 = vst.msk [vmem:[#allocation0 + $0x4f2] sm:$0xc0] %vm2564_vm1, %v3147_v63   ;;  %v5486_v13 = vld [vmem:[#allocation0 + $0x498] sm:$0x3] }
 0x2b7   :  { %v3175_v55 = vld [vmem:[#allocation1 + $0xa40] ss:$8 sm:$0xf0]   ;;  %4189 = vst.msk [vmem:[#allocation0 + $0x4e0] sm:$0x3] %vm3525_vm2, %v9682_v10  }
 0x2b8   :  { %4191 = vst.msk [vmem:[#allocation0 + $0x4e6] sm:$0xc] %vm3525_vm2, %v9682_v10   ;;  %4193 = vst.msk [vmem:[#allocation0 + $0x4ec] sm:$0x30] %vm3525_vm2, %v9682_v10   ;;  %v5492_v17 = vld [vmem:[#allocation0 + $0x4a0] sm:$0x3] }
 0x2b9   :  { %4195 = vst.msk [vmem:[#allocation0 + $0x4f2] sm:$0xc0] %vm3525_vm2, %v9682_v10   ;;  %v3177_v10 = vsel %vm2562_vm0, %v3175_v55, %v3173_v28  ;;  %v3188_v59 = vld [vmem:[#allocation1 + $0xa80] ss:$8 sm:$0xf]  }
 0x2ba   :  { %3165 = vst.msk [vmem:[#allocation0 + $0x500] sm:$0x3] %vm2564_vm1, %v3162_v18   ;;  %3167 = vst.msk [vmem:[#allocation0 + $0x506] sm:$0xc] %vm2564_vm1, %v3162_v18   ;;  %v5504_v25 = vld [vmem:[#allocation0 + $0x4b0] sm:$0x3] }
 0x2bb   :  { %3169 = vst.msk [vmem:[#allocation0 + $0x50c] sm:$0x30] %vm2564_vm1, %v3162_v18   ;;  %3171 = vst.msk [vmem:[#allocation0 + $0x512] sm:$0xc0] %vm2564_vm1, %v3162_v18   ;;  %v5510_v20 = vld [vmem:[#allocation0 + $0x4b8] sm:$0x3] }
 0x2bc   :  { %v3190_v3 = vld [vmem:[#allocation1 + $0xa80] ss:$8 sm:$0xf0]   ;;  %4206 = vst.msk [vmem:[#allocation0 + $0x500] sm:$0x3] %vm3525_vm2, %v9749_v46  }
 0x2bd   :  { %4208 = vst.msk [vmem:[#allocation0 + $0x506] sm:$0xc] %vm3525_vm2, %v9749_v46   ;;  %4210 = vst.msk [vmem:[#allocation0 + $0x50c] sm:$0x30] %vm3525_vm2, %v9749_v46   ;;  %v5516_v36 = vld [vmem:[#allocation0 + $0x4c0] sm:$0x3] }
 0x2be   :  { %4212 = vst.msk [vmem:[#allocation0 + $0x512] sm:$0xc0] %vm3525_vm2, %v9749_v46   ;;  %v3192_v46 = vsel %vm2562_vm0, %v3190_v3, %v3188_v59  ;;  %v3203_v23 = vld [vmem:[#allocation1 + $0xac0] ss:$8 sm:$0xf]  }
 0x2bf   :  { %3180 = vst.msk [vmem:[#allocation0 + $0x520] sm:$0x3] %vm2564_vm1, %v3177_v10   ;;  %3182 = vst.msk [vmem:[#allocation0 + $0x526] sm:$0xc] %vm2564_vm1, %v3177_v10   ;;  %v5522_v44 = vld [vmem:[#allocation0 + $0x4c8] sm:$0x3] }
 0x2c0   :  { %3184 = vst.msk [vmem:[#allocation0 + $0x52c] sm:$0x30] %vm2564_vm1, %v3177_v10   ;;  %3186 = vst.msk [vmem:[#allocation0 + $0x532] sm:$0xc0] %vm2564_vm1, %v3177_v10   ;;  %v5528_v24 = vld [vmem:[#allocation0 + $0x4d0] sm:$0x3] }
 0x2c1   :  { %v3205_v61 = vld [vmem:[#allocation1 + $0xac0] ss:$8 sm:$0xf0]   ;;  %4223 = vst.msk [vmem:[#allocation0 + $0x520] sm:$0x3] %vm3525_vm2, %v9784_v22  }
 0x2c2   :  { %4225 = vst.msk [vmem:[#allocation0 + $0x526] sm:$0xc] %vm3525_vm2, %v9784_v22   ;;  %4227 = vst.msk [vmem:[#allocation0 + $0x52c] sm:$0x30] %vm3525_vm2, %v9784_v22   ;;  %v5534_v27 = vld [vmem:[#allocation0 + $0x4d8] sm:$0x3] }
 0x2c3   :  { %4229 = vst.msk [vmem:[#allocation0 + $0x532] sm:$0xc0] %vm3525_vm2, %v9784_v22   ;;  %v3207_v22 = vsel %vm2562_vm0, %v3205_v61, %v3203_v23  ;;  %v3218_v0 = vld [vmem:[#allocation1 + $0xb00] ss:$8 sm:$0xf]  }
 0x2c4   :  { %3195 = vst.msk [vmem:[#allocation0 + $0x540] sm:$0x3] %vm2564_vm1, %v3192_v46   ;;  %3197 = vst.msk [vmem:[#allocation0 + $0x546] sm:$0xc] %vm2564_vm1, %v3192_v46   ;;  %v5540_v2 = vld [vmem:[#allocation0 + $0x4e0] sm:$0x3] }
 0x2c5   :  { %3199 = vst.msk [vmem:[#allocation0 + $0x54c] sm:$0x30] %vm2564_vm1, %v3192_v46   ;;  %3201 = vst.msk [vmem:[#allocation0 + $0x552] sm:$0xc0] %vm2564_vm1, %v3192_v46   ;;  %v5546_v33 = vld [vmem:[#allocation0 + $0x4e8] sm:$0x3] }
 0x2c6   :  { %v3220_v62 = vld [vmem:[#allocation1 + $0xb00] ss:$8 sm:$0xf0]   ;;  %4240 = vst.msk [vmem:[#allocation0 + $0x540] sm:$0x3] %vm3525_vm2, %v9805_v38  }
 0x2c7   :  { %4242 = vst.msk [vmem:[#allocation0 + $0x546] sm:$0xc] %vm3525_vm2, %v9805_v38   ;;  %4244 = vst.msk [vmem:[#allocation0 + $0x54c] sm:$0x30] %vm3525_vm2, %v9805_v38   ;;  %v5552_v26 = vld [vmem:[#allocation0 + $0x4f0] sm:$0x3] }
 0x2c8   :  { %4246 = vst.msk [vmem:[#allocation0 + $0x552] sm:$0xc0] %vm3525_vm2, %v9805_v38   ;;  %v3222_v38 = vsel %vm2562_vm0, %v3220_v62, %v3218_v0  ;;  %7553 = vst [vmem:[%s11074_s1 + $0x118] sm:$0x3] %v5444_v5  ;;  %v5558_v40 = vld [vmem:[#allocation0 + $0x4f8] sm:$0x3] }
 0x2c9   :  { %3210 = vst.msk [vmem:[#allocation0 + $0x560] sm:$0x3] %vm2564_vm1, %v3207_v22   ;;  %3212 = vst.msk [vmem:[#allocation0 + $0x566] sm:$0xc] %vm2564_vm1, %v3207_v22   ;;  %v5564_v53 = vld [vmem:[#allocation0 + $0x500] sm:$0x3] }
 0x2ca   :  { %3214 = vst.msk [vmem:[#allocation0 + $0x56c] sm:$0x30] %vm2564_vm1, %v3207_v22   ;;  %3216 = vst.msk [vmem:[#allocation0 + $0x572] sm:$0xc0] %vm2564_vm1, %v3207_v22   ;;  %v5570_v42 = vld [vmem:[#allocation0 + $0x508] sm:$0x3]  ;;  %v10589_v22 = vpop.permute.xlu1 %4525  }
 0x2cb   :  { %7554 = vst [vmem:[%s11074_s1 + $0x11a] sm:$0x3] %v5450_v16  ;;  %7555 = vst [vmem:[%s11074_s1 + $0x11c] sm:$0x3] %v5456_v6  ;;  %v5576_v30 = vld [vmem:[#allocation0 + $0x510] sm:$0x3] }
 0x2cc   :  { %4257 = vst.msk [vmem:[#allocation0 + $0x560] sm:$0x3] %vm3525_vm2, %v9851_v52   ;;  %4259 = vst.msk [vmem:[#allocation0 + $0x566] sm:$0xc] %vm3525_vm2, %v9851_v52   ;;  %v5582_v58 = vld [vmem:[#allocation0 + $0x518] sm:$0x3] }
 0x2cd   :  { %4261 = vst.msk [vmem:[#allocation0 + $0x56c] sm:$0x30] %vm3525_vm2, %v9851_v52   ;;  %4263 = vst.msk [vmem:[#allocation0 + $0x572] sm:$0xc0] %vm3525_vm2, %v9851_v52   ;;  %v10463_v52 = vpop.permute.xlu0 %4474   ;;  %v5588_v43 = vld [vmem:[#allocation0 + $0x520] sm:$0x3] }
 0x2ce   :  { %3225 = vst.msk [vmem:[#allocation0 + $0x580] sm:$0x3] %vm2564_vm1, %v3222_v38   ;;  %3227 = vst.msk [vmem:[#allocation0 + $0x586] sm:$0xc] %vm2564_vm1, %v3222_v38   ;;  %v5594_v4 = vld [vmem:[#allocation0 + $0x528] sm:$0x3] }
 0x2cf   :  { %3229 = vst.msk [vmem:[#allocation0 + $0x58c] sm:$0x30] %vm2564_vm1, %v3222_v38   ;;  %3231 = vst.msk [vmem:[#allocation0 + $0x592] sm:$0xc0] %vm2564_vm1, %v3222_v38   ;;  %v5600_v48 = vld [vmem:[#allocation0 + $0x530] sm:$0x3] }
 0x2d0   :  { %7556 = vst [vmem:[%s11074_s1 + $0x11e] sm:$0x3] %v5462_v7  ;;  %7557 = vst [vmem:[%s11074_s1 + $0x120] sm:$0x3] %v5468_v8  ;;  %v5606_v1 = vld [vmem:[#allocation0 + $0x538] sm:$0x3] }
 0x2d1   :  { %7558 = vst [vmem:[%s11074_s1 + $0x122] sm:$0x3] %v5474_v35  ;;  %4274 = vst.msk [vmem:[#allocation0 + $0x580] sm:$0x3] %vm3525_vm2, %v9918_v12   ;;  %v5612_v19 = vld [vmem:[#allocation0 + $0x540] sm:$0x3]  ;;  %v10574_v28 = vpop.permute.xlu0 %4508  }
 0x2d2   :  { %4276 = vst.msk [vmem:[#allocation0 + $0x586] sm:$0xc] %vm3525_vm2, %v9918_v12   ;;  %4278 = vst.msk [vmem:[#allocation0 + $0x58c] sm:$0x30] %vm3525_vm2, %v9918_v12   ;;  %v5618_v21 = vld [vmem:[#allocation0 + $0x548] sm:$0x3] }
 0x2d3   :  { %4280 = vst.msk [vmem:[#allocation0 + $0x592] sm:$0xc0] %vm3525_vm2, %v9918_v12   ;;  %7559 = vst [vmem:[%s11074_s1 + $0x124] sm:$0x3] %v5480_v9  ;;  %v5498_v12 = vld [vmem:[#allocation0 + $0x4a8] sm:$0x3] }
 0x2d4   :  { %7560 = vst [vmem:[%s11074_s1 + $0x126] sm:$0x3] %v5486_v13  ;;  %7561 = vst [vmem:[%s11074_s1 + $0x128] sm:$0x3] %v5492_v17  ;;  %v5624_v14 = vld [vmem:[#allocation0 + $0x550] sm:$0x3] }
 0x2d5   :  { %7562 = vst [vmem:[%s11074_s1 + $0x12a] sm:$0x3] %v5498_v12  ;;  %7563 = vst [vmem:[%s11074_s1 + $0x12c] sm:$0x3] %v5504_v25  ;;  %v5630_v11 = vld [vmem:[#allocation0 + $0x558] sm:$0x3] }
 0x2d6   :  { %7564 = vst [vmem:[%s11074_s1 + $0x12e] sm:$0x3] %v5510_v20  ;;  %7565 = vst [vmem:[%s11074_s1 + $0x130] sm:$0x3] %v5516_v36  ;;  %v5636_v32 = vld [vmem:[#allocation0 + $0x560] sm:$0x3] }
 0x2d7   :  { %7566 = vst [vmem:[%s11074_s1 + $0x132] sm:$0x3] %v5522_v44  ;;  %7567 = vst [vmem:[%s11074_s1 + $0x134] sm:$0x3] %v5528_v24  ;;  %v5642_v45 = vld [vmem:[#allocation0 + $0x568] sm:$0x3] }
 0x2d8   :  { %7568 = vst [vmem:[%s11074_s1 + $0x136] sm:$0x3] %v5534_v27  ;;  %7569 = vst [vmem:[%s11074_s1 + $0x138] sm:$0x3] %v5540_v2  ;;  %v5648_v54 = vld [vmem:[#allocation0 + $0x570] sm:$0x3] }
 0x2d9   :  { %7570 = vst [vmem:[%s11074_s1 + $0x13a] sm:$0x3] %v5546_v33  ;;  %7571 = vst [vmem:[%s11074_s1 + $0x13c] sm:$0x3] %v5552_v26  ;;  %v5654_v63 = vld [vmem:[#allocation0 + $0x578] sm:$0x3] }
 0x2da   :  { %7572 = vst [vmem:[%s11074_s1 + $0x13e] sm:$0x3] %v5558_v40  ;;  %7573 = vst [vmem:[%s11074_s1 + $0x140] sm:$0x3] %v5564_v53  ;;  %v5660_v47 = vld [vmem:[#allocation0 + $0x580] sm:$0x3] }
 0x2db   :  { %7574 = vst [vmem:[%s11074_s1 + $0x142] sm:$0x3] %v5570_v42  ;;  %7575 = vst [vmem:[%s11074_s1 + $0x144] sm:$0x3] %v5576_v30  ;;  %v5666_v39 = vld [vmem:[#allocation0 + $0x588] sm:$0x3] }
 0x2dc   :  { %7576 = vst [vmem:[%s11074_s1 + $0x146] sm:$0x3] %v5582_v58  ;;  %7577 = vst [vmem:[%s11074_s1 + $0x148] sm:$0x3] %v5588_v43  ;;  %v5672_v18 = vld [vmem:[#allocation0 + $0x590] sm:$0x3] }
 0x2dd   :  { %7578 = vst [vmem:[%s11074_s1 + $0x14a] sm:$0x3] %v5594_v4  ;;  %7579 = vst [vmem:[%s11074_s1 + $0x14c] sm:$0x3] %v5600_v48  ;;  %v5678_v55 = vld [vmem:[#allocation0 + $0x598] sm:$0x3] }
 0x2de   :  { %7580 = vst [vmem:[%s11074_s1 + $0x14e] sm:$0x3] %v5606_v1  ;;  %7581 = vst [vmem:[%s11074_s1 + $0x150] sm:$0x3] %v5612_v19  ;;  %v10758_v1 = vpop.permute.xlu1 %4559  }
 0x2df   :  { %7582 = vst [vmem:[%s11074_s1 + $0x152] sm:$0x3] %v5618_v21  ;;  %7583 = vst [vmem:[%s11074_s1 + $0x154] sm:$0x3] %v5624_v14 }
 0x2e0   :  { %7584 = vst [vmem:[%s11074_s1 + $0x156] sm:$0x3] %v5630_v11  ;;  %7585 = vst [vmem:[%s11074_s1 + $0x158] sm:$0x3] %v5636_v32 }
 0x2e1   :  { %7586 = vst [vmem:[%s11074_s1 + $0x15a] sm:$0x3] %v5642_v45  ;;  %7587 = vst [vmem:[%s11074_s1 + $0x15c] sm:$0x3] %v5648_v54 }
 0x2e2   :  { %7588 = vst [vmem:[%s11074_s1 + $0x15e] sm:$0x3] %v5654_v63  ;;  %7589 = vst [vmem:[%s11074_s1 + $0x160] sm:$0x3] %v5660_v47 }
 0x2e3   :  { %7590 = vst [vmem:[%s11074_s1 + $0x162] sm:$0x3] %v5666_v39  ;;  %7591 = vst [vmem:[%s11074_s1 + $0x164] sm:$0x3] %v5672_v18 }
 0x2e4   :  { %v3233_v10 = vld [vmem:[#allocation1 + $0xb40] ss:$8 sm:$0xf]   ;;  %7592 = vst [vmem:[%s11074_s1 + $0x166] sm:$0x3] %v5678_v55 }
 0x2e5   :  { %v3235_v59 = vld [vmem:[#allocation1 + $0xb40] ss:$8 sm:$0xf0]  }
 0x2e6   :  { %v3248_v3 = vld [vmem:[#allocation1 + $0xb80] ss:$8 sm:$0xf]   ;;  %v3237_v46 = vsel %vm2562_vm0, %v3235_v59, %v3233_v10 }
 0x2e7   :  { %v3250_v23 = vld [vmem:[#allocation1 + $0xb80] ss:$8 sm:$0xf0]   ;;  %3240 = vst.msk [vmem:[#allocation0 + $0x5a0] sm:$0x3] %vm2564_vm1, %v3237_v46  }
 0x2e8   :  { %v3263_v61 = vld [vmem:[#allocation1 + $0xbc0] ss:$8 sm:$0xf]   ;;  %3242 = vst.msk [vmem:[#allocation0 + $0x5a6] sm:$0xc] %vm2564_vm1, %v3237_v46   ;;  %v3252_v0 = vsel %vm2562_vm0, %v3250_v23, %v3248_v3 }
 0x2e9   :  { %3244 = vst.msk [vmem:[#allocation0 + $0x5ac] sm:$0x30] %vm2564_vm1, %v3237_v46   ;;  %3246 = vst.msk [vmem:[#allocation0 + $0x5b2] sm:$0xc0] %vm2564_vm1, %v3237_v46  }
 0x2ea   :  { %v3265_v62 = vld [vmem:[#allocation1 + $0xbc0] ss:$8 sm:$0xf0]   ;;  %4291 = vst.msk [vmem:[#allocation0 + $0x5a0] sm:$0x3] %vm3525_vm2, %v9976_v31  }
 0x2eb   :  { %v3278_v5 = vld [vmem:[#allocation1 + $0xc00] ss:$8 sm:$0xf]   ;;  %4293 = vst.msk [vmem:[#allocation0 + $0x5a6] sm:$0xc] %vm3525_vm2, %v9976_v31  }
 0x2ec   :  { %4295 = vst.msk [vmem:[#allocation0 + $0x5ac] sm:$0x30] %vm3525_vm2, %v9976_v31   ;;  %4297 = vst.msk [vmem:[#allocation0 + $0x5b2] sm:$0xc0] %vm3525_vm2, %v9976_v31   ;;  %v3267_v31 = vsel %vm2562_vm0, %v3265_v62, %v3263_v61 }
 0x2ed   :  { %3255 = vst.msk [vmem:[#allocation0 + $0x5c0] sm:$0x3] %vm2564_vm1, %v3252_v0   ;;  %3257 = vst.msk [vmem:[#allocation0 + $0x5c6] sm:$0xc] %vm2564_vm1, %v3252_v0  }
 0x2ee   :  { %3259 = vst.msk [vmem:[#allocation0 + $0x5cc] sm:$0x30] %vm2564_vm1, %v3252_v0   ;;  %3261 = vst.msk [vmem:[#allocation0 + $0x5d2] sm:$0xc0] %vm2564_vm1, %v3252_v0  }
 0x2ef   :  { %v3280_v16 = vld [vmem:[#allocation1 + $0xc00] ss:$8 sm:$0xf0]   ;;  %4308 = vst.msk [vmem:[#allocation0 + $0x5c0] sm:$0x3] %vm3525_vm2, %v10005_v49  }
 0x2f0   :  { %v3293_v6 = vld [vmem:[#allocation1 + $0xc40] ss:$8 sm:$0xf]   ;;  %4310 = vst.msk [vmem:[#allocation0 + $0x5c6] sm:$0xc] %vm3525_vm2, %v10005_v49  }
 0x2f1   :  { %4312 = vst.msk [vmem:[#allocation0 + $0x5cc] sm:$0x30] %vm3525_vm2, %v10005_v49   ;;  %4314 = vst.msk [vmem:[#allocation0 + $0x5d2] sm:$0xc0] %vm3525_vm2, %v10005_v49   ;;  %v3282_v49 = vsel %vm2562_vm0, %v3280_v16, %v3278_v5  ;;  %v5684_v44 = vld [vmem:[#allocation0 + $0x5a0] sm:$0x3] }
 0x2f2   :  { %3270 = vst.msk [vmem:[#allocation0 + $0x5e0] sm:$0x3] %vm2564_vm1, %v3267_v31   ;;  %3272 = vst.msk [vmem:[#allocation0 + $0x5e6] sm:$0xc] %vm2564_vm1, %v3267_v31   ;;  %v5690_v24 = vld [vmem:[#allocation0 + $0x5a8] sm:$0x3] }
 0x2f3   :  { %3274 = vst.msk [vmem:[#allocation0 + $0x5ec] sm:$0x30] %vm2564_vm1, %v3267_v31   ;;  %3276 = vst.msk [vmem:[#allocation0 + $0x5f2] sm:$0xc0] %vm2564_vm1, %v3267_v31   ;;  %v5696_v27 = vld [vmem:[#allocation0 + $0x5b0] sm:$0x3] }
 0x2f4   :  { %v3295_v38 = vld [vmem:[#allocation1 + $0xc40] ss:$8 sm:$0xf0]   ;;  %4325 = vst.msk [vmem:[#allocation0 + $0x5e0] sm:$0x3] %vm3525_vm2, %v10043_v57  }
 0x2f5   :  { %v3308_v7 = vld [vmem:[#allocation1 + $0xc80] ss:$8 sm:$0xf]   ;;  %4327 = vst.msk [vmem:[#allocation0 + $0x5e6] sm:$0xc] %vm3525_vm2, %v10043_v57  }
 0x2f6   :  { %4329 = vst.msk [vmem:[#allocation0 + $0x5ec] sm:$0x30] %vm3525_vm2, %v10043_v57   ;;  %4331 = vst.msk [vmem:[#allocation0 + $0x5f2] sm:$0xc0] %vm3525_vm2, %v10043_v57   ;;  %v3297_v57 = vsel %vm2562_vm0, %v3295_v38, %v3293_v6  ;;  %v5702_v2 = vld [vmem:[#allocation0 + $0x5b8] sm:$0x3] }
 0x2f7   :  { %3285 = vst.msk [vmem:[#allocation0 + $0x600] sm:$0x3] %vm2564_vm1, %v3282_v49   ;;  %3287 = vst.msk [vmem:[#allocation0 + $0x606] sm:$0xc] %vm2564_vm1, %v3282_v49   ;;  %v5708_v33 = vld [vmem:[#allocation0 + $0x5c0] sm:$0x3] }
 0x2f8   :  { %3289 = vst.msk [vmem:[#allocation0 + $0x60c] sm:$0x30] %vm2564_vm1, %v3282_v49   ;;  %3291 = vst.msk [vmem:[#allocation0 + $0x612] sm:$0xc0] %vm2564_vm1, %v3282_v49   ;;  %v5714_v26 = vld [vmem:[#allocation0 + $0x5c8] sm:$0x3] }
 0x2f9   :  { %v3310_v8 = vld [vmem:[#allocation1 + $0xc80] ss:$8 sm:$0xf0]   ;;  %4342 = vst.msk [vmem:[#allocation0 + $0x600] sm:$0x3] %vm3525_vm2, %v10072_v15  }
 0x2fa   :  { %v3323_v35 = vld [vmem:[#allocation1 + $0xcc0] ss:$8 sm:$0xf]   ;;  %4344 = vst.msk [vmem:[#allocation0 + $0x606] sm:$0xc] %vm3525_vm2, %v10072_v15  }
 0x2fb   :  { %4346 = vst.msk [vmem:[#allocation0 + $0x60c] sm:$0x30] %vm3525_vm2, %v10072_v15   ;;  %4348 = vst.msk [vmem:[#allocation0 + $0x612] sm:$0xc0] %vm3525_vm2, %v10072_v15   ;;  %v3312_v15 = vsel %vm2562_vm0, %v3310_v8, %v3308_v7  ;;  %v5720_v40 = vld [vmem:[#allocation0 + $0x5d0] sm:$0x3] }
 0x2fc   :  { %3300 = vst.msk [vmem:[#allocation0 + $0x620] sm:$0x3] %vm2564_vm1, %v3297_v57   ;;  %3302 = vst.msk [vmem:[#allocation0 + $0x626] sm:$0xc] %vm2564_vm1, %v3297_v57   ;;  %v5726_v53 = vld [vmem:[#allocation0 + $0x5d8] sm:$0x3] }
 0x2fd   :  { %3304 = vst.msk [vmem:[#allocation0 + $0x62c] sm:$0x30] %vm2564_vm1, %v3297_v57   ;;  %3306 = vst.msk [vmem:[#allocation0 + $0x632] sm:$0xc0] %vm2564_vm1, %v3297_v57   ;;  %v5732_v42 = vld [vmem:[#allocation0 + $0x5e0] sm:$0x3] }
 0x2fe   :  { %v3325_v9 = vld [vmem:[#allocation1 + $0xcc0] ss:$8 sm:$0xf0]   ;;  %4359 = vst.msk [vmem:[#allocation0 + $0x620] sm:$0x3] %vm3525_vm2, %v10126_v37  }
 0x2ff   :  { %v3338_v13 = vld [vmem:[#allocation1 + $0xd00] ss:$8 sm:$0xf]   ;;  %4361 = vst.msk [vmem:[#allocation0 + $0x626] sm:$0xc] %vm3525_vm2, %v10126_v37  }
 0x300   :  { %4363 = vst.msk [vmem:[#allocation0 + $0x62c] sm:$0x30] %vm3525_vm2, %v10126_v37   ;;  %4365 = vst.msk [vmem:[#allocation0 + $0x632] sm:$0xc0] %vm3525_vm2, %v10126_v37   ;;  %v3327_v37 = vsel %vm2562_vm0, %v3325_v9, %v3323_v35  ;;  %v5744_v30 = vld [vmem:[#allocation0 + $0x5f0] sm:$0x3] }
 0x301   :  { %3315 = vst.msk [vmem:[#allocation0 + $0x640] sm:$0x3] %vm2564_vm1, %v3312_v15   ;;  %3317 = vst.msk [vmem:[#allocation0 + $0x646] sm:$0xc] %vm2564_vm1, %v3312_v15   ;;  %v5750_v58 = vld [vmem:[#allocation0 + $0x5f8] sm:$0x3] }
 0x302   :  { %3319 = vst.msk [vmem:[#allocation0 + $0x64c] sm:$0x30] %vm2564_vm1, %v3312_v15   ;;  %3321 = vst.msk [vmem:[#allocation0 + $0x652] sm:$0xc0] %vm2564_vm1, %v3312_v15   ;;  %v5756_v43 = vld [vmem:[#allocation0 + $0x600] sm:$0x3] }
 0x303   :  { %v3340_v17 = vld [vmem:[#allocation1 + $0xd00] ss:$8 sm:$0xf0]   ;;  %4376 = vst.msk [vmem:[#allocation0 + $0x640] sm:$0x3] %vm3525_vm2, %v10167_v29  }
 0x304   :  { %v3353_v12 = vld [vmem:[#allocation1 + $0xd40] ss:$8 sm:$0xf]   ;;  %4378 = vst.msk [vmem:[#allocation0 + $0x646] sm:$0xc] %vm3525_vm2, %v10167_v29  }
 0x305   :  { %4380 = vst.msk [vmem:[#allocation0 + $0x64c] sm:$0x30] %vm3525_vm2, %v10167_v29   ;;  %4382 = vst.msk [vmem:[#allocation0 + $0x652] sm:$0xc0] %vm3525_vm2, %v10167_v29   ;;  %v3342_v29 = vsel %vm2562_vm0, %v3340_v17, %v3338_v13  ;;  %v5762_v4 = vld [vmem:[#allocation0 + $0x608] sm:$0x3] }
 0x306   :  { %3330 = vst.msk [vmem:[#allocation0 + $0x660] sm:$0x3] %vm2564_vm1, %v3327_v37   ;;  %3332 = vst.msk [vmem:[#allocation0 + $0x666] sm:$0xc] %vm2564_vm1, %v3327_v37   ;;  %v5768_v48 = vld [vmem:[#allocation0 + $0x610] sm:$0x3] }
 0x307   :  { %3334 = vst.msk [vmem:[#allocation0 + $0x66c] sm:$0x30] %vm2564_vm1, %v3327_v37   ;;  %3336 = vst.msk [vmem:[#allocation0 + $0x672] sm:$0xc0] %vm2564_vm1, %v3327_v37   ;;  %v5774_v19 = vld [vmem:[#allocation0 + $0x618] sm:$0x3] }
 0x308   :  { %v3355_v25 = vld [vmem:[#allocation1 + $0xd40] ss:$8 sm:$0xf0]   ;;  %4393 = vst.msk [vmem:[#allocation0 + $0x660] sm:$0x3] %vm3525_vm2, %v10229_v60  }
 0x309   :  { %v3368_v20 = vld [vmem:[#allocation1 + $0xd80] ss:$8 sm:$0xf]   ;;  %4395 = vst.msk [vmem:[#allocation0 + $0x666] sm:$0xc] %vm3525_vm2, %v10229_v60  }
 0x30a   :  { %4397 = vst.msk [vmem:[#allocation0 + $0x66c] sm:$0x30] %vm3525_vm2, %v10229_v60   ;;  %4399 = vst.msk [vmem:[#allocation0 + $0x672] sm:$0xc0] %vm3525_vm2, %v10229_v60   ;;  %v3357_v60 = vsel %vm2562_vm0, %v3355_v25, %v3353_v12  ;;  %v5780_v21 = vld [vmem:[#allocation0 + $0x620] sm:$0x3] }
 0x30b   :  { %3345 = vst.msk [vmem:[#allocation0 + $0x680] sm:$0x3] %vm2564_vm1, %v3342_v29   ;;  %3347 = vst.msk [vmem:[#allocation0 + $0x686] sm:$0xc] %vm2564_vm1, %v3342_v29   ;;  %v5786_v14 = vld [vmem:[#allocation0 + $0x628] sm:$0x3] }
 0x30c   :  { %3349 = vst.msk [vmem:[#allocation0 + $0x68c] sm:$0x30] %vm2564_vm1, %v3342_v29   ;;  %3351 = vst.msk [vmem:[#allocation0 + $0x692] sm:$0xc0] %vm2564_vm1, %v3342_v29   ;;  %v5792_v11 = vld [vmem:[#allocation0 + $0x630] sm:$0x3] }
 0x30d   :  { %v3370_v36 = vld [vmem:[#allocation1 + $0xd80] ss:$8 sm:$0xf0]   ;;  %4410 = vst.msk [vmem:[#allocation0 + $0x680] sm:$0x3] %vm3525_vm2, %v10276_v56  }
 0x30e   :  { %4412 = vst.msk [vmem:[#allocation0 + $0x686] sm:$0xc] %vm3525_vm2, %v10276_v56   ;;  %4414 = vst.msk [vmem:[#allocation0 + $0x68c] sm:$0x30] %vm3525_vm2, %v10276_v56   ;;  %v5798_v32 = vld [vmem:[#allocation0 + $0x638] sm:$0x3] }
 0x30f   :  { %4416 = vst.msk [vmem:[#allocation0 + $0x692] sm:$0xc0] %vm3525_vm2, %v10276_v56   ;;  %v3372_v56 = vsel %vm2562_vm0, %v3370_v36, %v3368_v20  ;;  %7593 = vst [vmem:[%s11074_s1 + $0x168] sm:$0x3] %v5684_v44  ;;  %v5804_v45 = vld [vmem:[#allocation0 + $0x640] sm:$0x3]  ;;  %v10878_v20 = vpop.permute.xlu1 %4593  }
 0x310   :  { %3360 = vst.msk [vmem:[#allocation0 + $0x6a0] sm:$0x3] %vm2564_vm1, %v3357_v60   ;;  %3362 = vst.msk [vmem:[#allocation0 + $0x6a6] sm:$0xc] %vm2564_vm1, %v3357_v60   ;;  %v5810_v54 = vld [vmem:[#allocation0 + $0x648] sm:$0x3] }
 0x311   :  { %3364 = vst.msk [vmem:[#allocation0 + $0x6ac] sm:$0x30] %vm2564_vm1, %v3357_v60   ;;  %3366 = vst.msk [vmem:[#allocation0 + $0x6b2] sm:$0xc0] %vm2564_vm1, %v3357_v60   ;;  %v5816_v63 = vld [vmem:[#allocation0 + $0x650] sm:$0x3] }
 0x312   :  { %7594 = vst [vmem:[%s11074_s1 + $0x16a] sm:$0x3] %v5690_v24  ;;  %7595 = vst [vmem:[%s11074_s1 + $0x16c] sm:$0x3] %v5696_v27  ;;  %v5822_v47 = vld [vmem:[#allocation0 + $0x658] sm:$0x3] }
 0x313   :  { %4427 = vst.msk [vmem:[#allocation0 + $0x6a0] sm:$0x3] %vm3525_vm2, %v10314_v41   ;;  %4429 = vst.msk [vmem:[#allocation0 + $0x6a6] sm:$0xc] %vm3525_vm2, %v10314_v41   ;;  %v5828_v39 = vld [vmem:[#allocation0 + $0x660] sm:$0x3] }
 0x314   :  { %4431 = vst.msk [vmem:[#allocation0 + $0x6ac] sm:$0x30] %vm3525_vm2, %v10314_v41   ;;  %4433 = vst.msk [vmem:[#allocation0 + $0x6b2] sm:$0xc0] %vm3525_vm2, %v10314_v41   ;;  %v10721_v41 = vpop.permute.xlu0 %4542   ;;  %v5834_v18 = vld [vmem:[#allocation0 + $0x668] sm:$0x3] }
 0x315   :  { %3375 = vst.msk [vmem:[#allocation0 + $0x6c0] sm:$0x3] %vm2564_vm1, %v3372_v56   ;;  %3377 = vst.msk [vmem:[#allocation0 + $0x6c6] sm:$0xc] %vm2564_vm1, %v3372_v56   ;;  %v5840_v55 = vld [vmem:[#allocation0 + $0x670] sm:$0x3] }
 0x316   :  { %3379 = vst.msk [vmem:[#allocation0 + $0x6cc] sm:$0x30] %vm2564_vm1, %v3372_v56   ;;  %3381 = vst.msk [vmem:[#allocation0 + $0x6d2] sm:$0xc0] %vm2564_vm1, %v3372_v56   ;;  %v5846_v10 = vld [vmem:[#allocation0 + $0x678] sm:$0x3] }
 0x317   :  { %7596 = vst [vmem:[%s11074_s1 + $0x16e] sm:$0x3] %v5702_v2  ;;  %7597 = vst [vmem:[%s11074_s1 + $0x170] sm:$0x3] %v5708_v33  ;;  %v5852_v59 = vld [vmem:[#allocation0 + $0x680] sm:$0x3] }
 0x318   :  { %7598 = vst [vmem:[%s11074_s1 + $0x172] sm:$0x3] %v5714_v26  ;;  %4444 = vst.msk [vmem:[#allocation0 + $0x6c0] sm:$0x3] %vm3525_vm2, %v10334_v51   ;;  %v5858_v3 = vld [vmem:[#allocation0 + $0x688] sm:$0x3]  ;;  %v10841_v57 = vpop.permute.xlu0 %4576  }
 0x319   :  { %4446 = vst.msk [vmem:[#allocation0 + $0x6c6] sm:$0xc] %vm3525_vm2, %v10334_v51   ;;  %4448 = vst.msk [vmem:[#allocation0 + $0x6cc] sm:$0x30] %vm3525_vm2, %v10334_v51   ;;  %v5864_v23 = vld [vmem:[#allocation0 + $0x690] sm:$0x3] }
 0x31a   :  { %4450 = vst.msk [vmem:[#allocation0 + $0x6d2] sm:$0xc0] %vm3525_vm2, %v10334_v51   ;;  %7599 = vst [vmem:[%s11074_s1 + $0x174] sm:$0x3] %v5720_v40  ;;  %v5738_v51 = vld [vmem:[#allocation0 + $0x5e8] sm:$0x3] }
 0x31b   :  { %7600 = vst [vmem:[%s11074_s1 + $0x176] sm:$0x3] %v5726_v53  ;;  %7601 = vst [vmem:[%s11074_s1 + $0x178] sm:$0x3] %v5732_v42  ;;  %v5870_v61 = vld [vmem:[#allocation0 + $0x698] sm:$0x3] }
 0x31c   :  { %7602 = vst [vmem:[%s11074_s1 + $0x17a] sm:$0x3] %v5738_v51  ;;  %7603 = vst [vmem:[%s11074_s1 + $0x17c] sm:$0x3] %v5744_v30  ;;  %v5876_v0 = vld [vmem:[#allocation0 + $0x6a0] sm:$0x3] }
 0x31d   :  { %7604 = vst [vmem:[%s11074_s1 + $0x17e] sm:$0x3] %v5750_v58  ;;  %7605 = vst [vmem:[%s11074_s1 + $0x180] sm:$0x3] %v5756_v43  ;;  %v5882_v62 = vld [vmem:[#allocation0 + $0x6a8] sm:$0x3] }
 0x31e   :  { %7606 = vst [vmem:[%s11074_s1 + $0x182] sm:$0x3] %v5762_v4  ;;  %7607 = vst [vmem:[%s11074_s1 + $0x184] sm:$0x3] %v5768_v48  ;;  %v5888_v5 = vld [vmem:[#allocation0 + $0x6b0] sm:$0x3] }
 0x31f   :  { %7608 = vst [vmem:[%s11074_s1 + $0x186] sm:$0x3] %v5774_v19  ;;  %7609 = vst [vmem:[%s11074_s1 + $0x188] sm:$0x3] %v5780_v21  ;;  %v5894_v31 = vld [vmem:[#allocation0 + $0x6b8] sm:$0x3] }
 0x320   :  { %7610 = vst [vmem:[%s11074_s1 + $0x18a] sm:$0x3] %v5786_v14  ;;  %7611 = vst [vmem:[%s11074_s1 + $0x18c] sm:$0x3] %v5792_v11  ;;  %v5900_v16 = vld [vmem:[#allocation0 + $0x6c0] sm:$0x3] }
 0x321   :  { %7612 = vst [vmem:[%s11074_s1 + $0x18e] sm:$0x3] %v5798_v32  ;;  %7613 = vst [vmem:[%s11074_s1 + $0x190] sm:$0x3] %v5804_v45  ;;  %v5906_v6 = vld [vmem:[#allocation0 + $0x6c8] sm:$0x3] }
 0x322   :  { %7614 = vst [vmem:[%s11074_s1 + $0x192] sm:$0x3] %v5810_v54  ;;  %7615 = vst [vmem:[%s11074_s1 + $0x194] sm:$0x3] %v5816_v63  ;;  %v5912_v49 = vld [vmem:[#allocation0 + $0x6d0] sm:$0x3] }
 0x323   :  { %7616 = vst [vmem:[%s11074_s1 + $0x196] sm:$0x3] %v5822_v47  ;;  %7617 = vst [vmem:[%s11074_s1 + $0x198] sm:$0x3] %v5828_v39  ;;  %v5918_v38 = vld [vmem:[#allocation0 + $0x6d8] sm:$0x3] }
 0x324   :  { %7618 = vst [vmem:[%s11074_s1 + $0x19a] sm:$0x3] %v5834_v18  ;;  %7619 = vst [vmem:[%s11074_s1 + $0x19c] sm:$0x3] %v5840_v55 }
 0x325   :  { %v3383_v46 = vld [vmem:[#allocation1 + $0xdc0] ss:$8 sm:$0xf]   ;;  %7620 = vst [vmem:[%s11074_s1 + $0x19e] sm:$0x3] %v5846_v10 }
 0x326   :  { %7621 = vst [vmem:[%s11074_s1 + $0x1a0] sm:$0x3] %v5852_v59  ;;  %7622 = vst [vmem:[%s11074_s1 + $0x1a2] sm:$0x3] %v5858_v3 }
 0x327   :  { %7623 = vst [vmem:[%s11074_s1 + $0x1a4] sm:$0x3] %v5864_v23  ;;  %7624 = vst [vmem:[%s11074_s1 + $0x1a6] sm:$0x3] %v5870_v61 }
 0x328   :  { %7625 = vst [vmem:[%s11074_s1 + $0x1a8] sm:$0x3] %v5876_v0  ;;  %7626 = vst [vmem:[%s11074_s1 + $0x1aa] sm:$0x3] %v5882_v62 }
 0x329   :  { %7627 = vst [vmem:[%s11074_s1 + $0x1ac] sm:$0x3] %v5888_v5  ;;  %7628 = vst [vmem:[%s11074_s1 + $0x1ae] sm:$0x3] %v5894_v31 }
 0x32a   :  { %7629 = vst [vmem:[%s11074_s1 + $0x1b0] sm:$0x3] %v5900_v16  ;;  %7630 = vst [vmem:[%s11074_s1 + $0x1b2] sm:$0x3] %v5906_v6 }
 0x32b   :  { %7631 = vst [vmem:[%s11074_s1 + $0x1b4] sm:$0x3] %v5912_v49  ;;  %v3385_v7 = vld [vmem:[#allocation1 + $0xdc0] ss:$8 sm:$0xf0]  }
 0x32c   :  { %7632 = vst [vmem:[%s11074_s1 + $0x1b6] sm:$0x3] %v5918_v38  ;;  %v3387_v8 = vsel %vm2562_vm0, %v3385_v7, %v3383_v46  ;;  %v3398_v35 = vld [vmem:[#allocation1 + $0xe00] ss:$8 sm:$0xf]  }
 0x32d   :  { %v3400_v15 = vld [vmem:[#allocation1 + $0xe00] ss:$8 sm:$0xf0]   ;;  %3390 = vst.msk [vmem:[#allocation0 + $0x6e0] sm:$0x3] %vm2564_vm1, %v3387_v8  }
 0x32e   :  { %3392 = vst.msk [vmem:[#allocation0 + $0x6e6] sm:$0xc] %vm2564_vm1, %v3387_v8   ;;  %3394 = vst.msk [vmem:[#allocation0 + $0x6ec] sm:$0x30] %vm2564_vm1, %v3387_v8   ;;  %v3402_v9 = vsel %vm2562_vm0, %v3400_v15, %v3398_v35 }
 0x32f   :  { %3396 = vst.msk [vmem:[#allocation0 + $0x6f2] sm:$0xc0] %vm2564_vm1, %v3387_v8   ;;  %v3413_v13 = vld [vmem:[#allocation1 + $0xe40] ss:$8 sm:$0xf]  }
 0x330   :  { %v3415_v37 = vld [vmem:[#allocation1 + $0xe40] ss:$8 sm:$0xf0]   ;;  %4461 = vst.msk [vmem:[#allocation0 + $0x6e0] sm:$0x3] %vm3525_vm2, %v10388_v50  }
 0x331   :  { %4463 = vst.msk [vmem:[#allocation0 + $0x6e6] sm:$0xc] %vm3525_vm2, %v10388_v50   ;;  %4465 = vst.msk [vmem:[#allocation0 + $0x6ec] sm:$0x30] %vm3525_vm2, %v10388_v50  }
 0x332   :  { %4467 = vst.msk [vmem:[#allocation0 + $0x6f2] sm:$0xc0] %vm3525_vm2, %v10388_v50   ;;  %v3417_v50 = vsel %vm2562_vm0, %v3415_v37, %v3413_v13  ;;  %v3428_v17 = vld [vmem:[#allocation1 + $0xe80] ss:$8 sm:$0xf]  }
 0x333   :  { %3405 = vst.msk [vmem:[#allocation0 + $0x700] sm:$0x3] %vm2564_vm1, %v3402_v9   ;;  %3407 = vst.msk [vmem:[#allocation0 + $0x706] sm:$0xc] %vm2564_vm1, %v3402_v9  }
 0x334   :  { %3409 = vst.msk [vmem:[#allocation0 + $0x70c] sm:$0x30] %vm2564_vm1, %v3402_v9   ;;  %3411 = vst.msk [vmem:[#allocation0 + $0x712] sm:$0xc0] %vm2564_vm1, %v3402_v9  }
 0x335   :  { %v3430_v12 = vld [vmem:[#allocation1 + $0xe80] ss:$8 sm:$0xf0]   ;;  %4478 = vst.msk [vmem:[#allocation0 + $0x700] sm:$0x3] %vm3525_vm2, %v10463_v52  }
 0x336   :  { %4480 = vst.msk [vmem:[#allocation0 + $0x706] sm:$0xc] %vm3525_vm2, %v10463_v52   ;;  %4482 = vst.msk [vmem:[#allocation0 + $0x70c] sm:$0x30] %vm3525_vm2, %v10463_v52  }
 0x337   :  { %4484 = vst.msk [vmem:[#allocation0 + $0x712] sm:$0xc0] %vm3525_vm2, %v10463_v52   ;;  %v3432_v52 = vsel %vm2562_vm0, %v3430_v12, %v3428_v17  ;;  %v3443_v29 = vld [vmem:[#allocation1 + $0xec0] ss:$8 sm:$0xf]  }
 0x338   :  { %3420 = vst.msk [vmem:[#allocation0 + $0x720] sm:$0x3] %vm2564_vm1, %v3417_v50   ;;  %3422 = vst.msk [vmem:[#allocation0 + $0x726] sm:$0xc] %vm2564_vm1, %v3417_v50   ;;  %v5924_v40 = vld [vmem:[#allocation0 + $0x6e0] sm:$0x3] }
 0x339   :  { %3424 = vst.msk [vmem:[#allocation0 + $0x72c] sm:$0x30] %vm2564_vm1, %v3417_v50   ;;  %3426 = vst.msk [vmem:[#allocation0 + $0x732] sm:$0xc0] %vm2564_vm1, %v3417_v50   ;;  %v5930_v53 = vld [vmem:[#allocation0 + $0x6e8] sm:$0x3] }
 0x33a   :  { %v3445_v25 = vld [vmem:[#allocation1 + $0xec0] ss:$8 sm:$0xf0]   ;;  %4495 = vst.msk [vmem:[#allocation0 + $0x720] sm:$0x3] %vm3525_vm2, %v10509_v34  }
 0x33b   :  { %4497 = vst.msk [vmem:[#allocation0 + $0x726] sm:$0xc] %vm3525_vm2, %v10509_v34   ;;  %4499 = vst.msk [vmem:[#allocation0 + $0x72c] sm:$0x30] %vm3525_vm2, %v10509_v34   ;;  %v5936_v42 = vld [vmem:[#allocation0 + $0x6f0] sm:$0x3] }
 0x33c   :  { %4501 = vst.msk [vmem:[#allocation0 + $0x732] sm:$0xc0] %vm3525_vm2, %v10509_v34   ;;  %v3447_v34 = vsel %vm2562_vm0, %v3445_v25, %v3443_v29  ;;  %v3458_v60 = vld [vmem:[#allocation1 + $0xf00] ss:$8 sm:$0xf]  }
 0x33d   :  { %3435 = vst.msk [vmem:[#allocation0 + $0x740] sm:$0x3] %vm2564_vm1, %v3432_v52   ;;  %3437 = vst.msk [vmem:[#allocation0 + $0x746] sm:$0xc] %vm2564_vm1, %v3432_v52   ;;  %v5942_v51 = vld [vmem:[#allocation0 + $0x6f8] sm:$0x3] }
 0x33e   :  { %3439 = vst.msk [vmem:[#allocation0 + $0x74c] sm:$0x30] %vm2564_vm1, %v3432_v52   ;;  %3441 = vst.msk [vmem:[#allocation0 + $0x752] sm:$0xc0] %vm2564_vm1, %v3432_v52   ;;  %v5948_v30 = vld [vmem:[#allocation0 + $0x700] sm:$0x3] }
 0x33f   :  { %v3460_v36 = vld [vmem:[#allocation1 + $0xf00] ss:$8 sm:$0xf0]   ;;  %4512 = vst.msk [vmem:[#allocation0 + $0x740] sm:$0x3] %vm3525_vm2, %v10574_v28  }
 0x340   :  { %4514 = vst.msk [vmem:[#allocation0 + $0x746] sm:$0xc] %vm3525_vm2, %v10574_v28   ;;  %4516 = vst.msk [vmem:[#allocation0 + $0x74c] sm:$0x30] %vm3525_vm2, %v10574_v28   ;;  %v5954_v58 = vld [vmem:[#allocation0 + $0x708] sm:$0x3] }
 0x341   :  { %4518 = vst.msk [vmem:[#allocation0 + $0x752] sm:$0xc0] %vm3525_vm2, %v10574_v28   ;;  %v3462_v28 = vsel %vm2562_vm0, %v3460_v36, %v3458_v60  ;;  %v3473_v44 = vld [vmem:[#allocation1 + $0xf40] ss:$8 sm:$0xf]  }
 0x342   :  { %3450 = vst.msk [vmem:[#allocation0 + $0x760] sm:$0x3] %vm2564_vm1, %v3447_v34   ;;  %3452 = vst.msk [vmem:[#allocation0 + $0x766] sm:$0xc] %vm2564_vm1, %v3447_v34   ;;  %v5960_v43 = vld [vmem:[#allocation0 + $0x710] sm:$0x3] }
 0x343   :  { %3454 = vst.msk [vmem:[#allocation0 + $0x76c] sm:$0x30] %vm2564_vm1, %v3447_v34   ;;  %3456 = vst.msk [vmem:[#allocation0 + $0x772] sm:$0xc0] %vm2564_vm1, %v3447_v34   ;;  %v5966_v4 = vld [vmem:[#allocation0 + $0x718] sm:$0x3] }
 0x344   :  { %v3475_v24 = vld [vmem:[#allocation1 + $0xf40] ss:$8 sm:$0xf0]   ;;  %4529 = vst.msk [vmem:[#allocation0 + $0x760] sm:$0x3] %vm3525_vm2, %v10589_v22  }
 0x345   :  { %4531 = vst.msk [vmem:[#allocation0 + $0x766] sm:$0xc] %vm3525_vm2, %v10589_v22   ;;  %4533 = vst.msk [vmem:[#allocation0 + $0x76c] sm:$0x30] %vm3525_vm2, %v10589_v22   ;;  %v5972_v48 = vld [vmem:[#allocation0 + $0x720] sm:$0x3] }
 0x346   :  { %4535 = vst.msk [vmem:[#allocation0 + $0x772] sm:$0xc0] %vm3525_vm2, %v10589_v22   ;;  %v3477_v22 = vsel %vm2562_vm0, %v3475_v24, %v3473_v44  ;;  %v3488_v27 = vld [vmem:[#allocation1 + $0xf80] ss:$8 sm:$0xf]  }
 0x347   :  { %3465 = vst.msk [vmem:[#allocation0 + $0x780] sm:$0x3] %vm2564_vm1, %v3462_v28   ;;  %3467 = vst.msk [vmem:[#allocation0 + $0x786] sm:$0xc] %vm2564_vm1, %v3462_v28   ;;  %v5984_v19 = vld [vmem:[#allocation0 + $0x730] sm:$0x3] }
 0x348   :  { %3469 = vst.msk [vmem:[#allocation0 + $0x78c] sm:$0x30] %vm2564_vm1, %v3462_v28   ;;  %3471 = vst.msk [vmem:[#allocation0 + $0x792] sm:$0xc0] %vm2564_vm1, %v3462_v28   ;;  %v5990_v21 = vld [vmem:[#allocation0 + $0x738] sm:$0x3] }
 0x349   :  { %v3490_v56 = vld [vmem:[#allocation1 + $0xf80] ss:$8 sm:$0xf0]   ;;  %4546 = vst.msk [vmem:[#allocation0 + $0x780] sm:$0x3] %vm3525_vm2, %v10721_v41  }
 0x34a   :  { %4548 = vst.msk [vmem:[#allocation0 + $0x786] sm:$0xc] %vm3525_vm2, %v10721_v41   ;;  %4550 = vst.msk [vmem:[#allocation0 + $0x78c] sm:$0x30] %vm3525_vm2, %v10721_v41   ;;  %v3492_v2 = vsel %vm2562_vm0, %v3490_v56, %v3488_v27  ;;  %v5996_v14 = vld [vmem:[#allocation0 + $0x740] sm:$0x3] }
 0x34b   :  { %4552 = vst.msk [vmem:[#allocation0 + $0x792] sm:$0xc0] %vm3525_vm2, %v10721_v41   ;;  %v3503_v33 = vld [vmem:[#allocation1 + $0xfc0] ss:$8 sm:$0xf]  }
 0x34c   :  { %3480 = vst.msk [vmem:[#allocation0 + $0x7a0] sm:$0x3] %vm2564_vm1, %v3477_v22   ;;  %3482 = vst.msk [vmem:[#allocation0 + $0x7a6] sm:$0xc] %vm2564_vm1, %v3477_v22   ;;  %v6002_v11 = vld [vmem:[#allocation0 + $0x748] sm:$0x3] }
 0x34d   :  { %3484 = vst.msk [vmem:[#allocation0 + $0x7ac] sm:$0x30] %vm2564_vm1, %v3477_v22   ;;  %3486 = vst.msk [vmem:[#allocation0 + $0x7b2] sm:$0xc0] %vm2564_vm1, %v3477_v22   ;;  %v6008_v32 = vld [vmem:[#allocation0 + $0x750] sm:$0x3] }
 0x34e   :  { %v3505_v26 = vld [vmem:[#allocation1 + $0xfc0] ss:$8 sm:$0xf0]   ;;  %4563 = vst.msk [vmem:[#allocation0 + $0x7a0] sm:$0x3] %vm3525_vm2, %v10758_v1  }
 0x34f   :  { %4565 = vst.msk [vmem:[#allocation0 + $0x7a6] sm:$0xc] %vm3525_vm2, %v10758_v1   ;;  %4567 = vst.msk [vmem:[#allocation0 + $0x7ac] sm:$0x30] %vm3525_vm2, %v10758_v1   ;;  %v3507_v41 = vsel %vm2562_vm0, %v3505_v26, %v3503_v33  ;;  %v6014_v45 = vld [vmem:[#allocation0 + $0x758] sm:$0x3] }
 0x350   :  { %4569 = vst.msk [vmem:[#allocation0 + $0x7b2] sm:$0xc0] %vm3525_vm2, %v10758_v1   ;;  %7633 = vst [vmem:[%s11074_s1 + $0x1b8] sm:$0x3] %v5924_v40  ;;  %v5978_v1 = vld [vmem:[#allocation0 + $0x728] sm:$0x3] }
 0x351   :  { %3495 = vst.msk [vmem:[#allocation0 + $0x7c0] sm:$0x3] %vm2564_vm1, %v3492_v2   ;;  %3497 = vst.msk [vmem:[#allocation0 + $0x7c6] sm:$0xc] %vm2564_vm1, %v3492_v2   ;;  %v6020_v54 = vld [vmem:[#allocation0 + $0x760] sm:$0x3] }
 0x352   :  { %3499 = vst.msk [vmem:[#allocation0 + $0x7cc] sm:$0x30] %vm2564_vm1, %v3492_v2   ;;  %3501 = vst.msk [vmem:[#allocation0 + $0x7d2] sm:$0xc0] %vm2564_vm1, %v3492_v2   ;;  %v6026_v63 = vld [vmem:[#allocation0 + $0x768] sm:$0x3] }
 0x353   :  { %4580 = vst.msk [vmem:[#allocation0 + $0x7c0] sm:$0x3] %vm3525_vm2, %v10841_v57   ;;  %4582 = vst.msk [vmem:[#allocation0 + $0x7c6] sm:$0xc] %vm3525_vm2, %v10841_v57   ;;  %v6032_v47 = vld [vmem:[#allocation0 + $0x770] sm:$0x3] }
 0x354   :  { %4584 = vst.msk [vmem:[#allocation0 + $0x7cc] sm:$0x30] %vm3525_vm2, %v10841_v57   ;;  %4586 = vst.msk [vmem:[#allocation0 + $0x7d2] sm:$0xc0] %vm3525_vm2, %v10841_v57   ;;  %v6038_v39 = vld [vmem:[#allocation0 + $0x778] sm:$0x3] }
 0x355   :  { %3510 = vst.msk [vmem:[#allocation0 + $0x7e0] sm:$0x3] %vm2564_vm1, %v3507_v41   ;;  %3512 = vst.msk [vmem:[#allocation0 + $0x7e6] sm:$0xc] %vm2564_vm1, %v3507_v41   ;;  %v6044_v18 = vld [vmem:[#allocation0 + $0x780] sm:$0x3] }
 0x356   :  { %3514 = vst.msk [vmem:[#allocation0 + $0x7ec] sm:$0x30] %vm2564_vm1, %v3507_v41   ;;  %3516 = vst.msk [vmem:[#allocation0 + $0x7f2] sm:$0xc0] %vm2564_vm1, %v3507_v41   ;;  %v6050_v55 = vld [vmem:[#allocation0 + $0x788] sm:$0x3] }
 0x357   :  { %7634 = vst [vmem:[%s11074_s1 + $0x1ba] sm:$0x3] %v5930_v53  ;;  %7635 = vst [vmem:[%s11074_s1 + $0x1bc] sm:$0x3] %v5936_v42  ;;  %v6056_v10 = vld [vmem:[#allocation0 + $0x790] sm:$0x3] }
 0x358   :  { %4597 = vst.msk [vmem:[#allocation0 + $0x7e0] sm:$0x3] %vm3525_vm2, %v10878_v20   ;;  %4599 = vst.msk [vmem:[#allocation0 + $0x7e6] sm:$0xc] %vm3525_vm2, %v10878_v20   ;;  %v6062_v59 = vld [vmem:[#allocation0 + $0x798] sm:$0x3] }
 0x359   :  { %4601 = vst.msk [vmem:[#allocation0 + $0x7ec] sm:$0x30] %vm3525_vm2, %v10878_v20   ;;  %4603 = vst.msk [vmem:[#allocation0 + $0x7f2] sm:$0xc0] %vm3525_vm2, %v10878_v20   ;;  %v6068_v3 = vld [vmem:[#allocation0 + $0x7a0] sm:$0x3] }
 0x35a   :  { %7636 = vst [vmem:[%s11074_s1 + $0x1be] sm:$0x3] %v5942_v51  ;;  %7637 = vst [vmem:[%s11074_s1 + $0x1c0] sm:$0x3] %v5948_v30  ;;  %v6074_v46 = vld [vmem:[#allocation0 + $0x7a8] sm:$0x3] }
 0x35b   :  { %7638 = vst [vmem:[%s11074_s1 + $0x1c2] sm:$0x3] %v5954_v58  ;;  %7639 = vst [vmem:[%s11074_s1 + $0x1c4] sm:$0x3] %v5960_v43  ;;  %v6080_v23 = vld [vmem:[#allocation0 + $0x7b0] sm:$0x3] }
 0x35c   :  { %7640 = vst [vmem:[%s11074_s1 + $0x1c6] sm:$0x3] %v5966_v4  ;;  %7641 = vst [vmem:[%s11074_s1 + $0x1c8] sm:$0x3] %v5972_v48  ;;  %v6086_v61 = vld [vmem:[#allocation0 + $0x7b8] sm:$0x3] }
 0x35d   :  { %7642 = vst [vmem:[%s11074_s1 + $0x1ca] sm:$0x3] %v5978_v1  ;;  %7643 = vst [vmem:[%s11074_s1 + $0x1cc] sm:$0x3] %v5984_v19  ;;  %v6092_v0 = vld [vmem:[#allocation0 + $0x7c0] sm:$0x3] }
 0x35e   :  { %7644 = vst [vmem:[%s11074_s1 + $0x1ce] sm:$0x3] %v5990_v21  ;;  %7645 = vst [vmem:[%s11074_s1 + $0x1d0] sm:$0x3] %v5996_v14  ;;  %v6098_v62 = vld [vmem:[#allocation0 + $0x7c8] sm:$0x3] }
 0x35f   :  { %7646 = vst [vmem:[%s11074_s1 + $0x1d2] sm:$0x3] %v6002_v11  ;;  %7647 = vst [vmem:[%s11074_s1 + $0x1d4] sm:$0x3] %v6008_v32  ;;  %v6104_v5 = vld [vmem:[#allocation0 + $0x7d0] sm:$0x3] }
 0x360   :  { %7648 = vst [vmem:[%s11074_s1 + $0x1d6] sm:$0x3] %v6014_v45  ;;  %7649 = vst [vmem:[%s11074_s1 + $0x1d8] sm:$0x3] %v6020_v54  ;;  %v6110_v31 = vld [vmem:[#allocation0 + $0x7d8] sm:$0x3] }
 0x361   :  { %7650 = vst [vmem:[%s11074_s1 + $0x1da] sm:$0x3] %v6026_v63  ;;  %7651 = vst [vmem:[%s11074_s1 + $0x1dc] sm:$0x3] %v6032_v47  ;;  %v6116_v16 = vld [vmem:[#allocation0 + $0x7e0] sm:$0x3] }
 0x362   :  { %7652 = vst [vmem:[%s11074_s1 + $0x1de] sm:$0x3] %v6038_v39  ;;  %7653 = vst [vmem:[%s11074_s1 + $0x1e0] sm:$0x3] %v6044_v18  ;;  %v6122_v6 = vld [vmem:[#allocation0 + $0x7e8] sm:$0x3] }
 0x363   :  { %7654 = vst [vmem:[%s11074_s1 + $0x1e2] sm:$0x3] %v6050_v55  ;;  %7655 = vst [vmem:[%s11074_s1 + $0x1e4] sm:$0x3] %v6056_v10  ;;  %v6128_v49 = vld [vmem:[#allocation0 + $0x7f0] sm:$0x3] }
 0x364   :  { %7656 = vst [vmem:[%s11074_s1 + $0x1e6] sm:$0x3] %v6062_v59  ;;  %7657 = vst [vmem:[%s11074_s1 + $0x1e8] sm:$0x3] %v6068_v3  ;;  %v6134_v38 = vld [vmem:[#allocation0 + $0x7f8] sm:$0x3] }
 0x365   :  { %7658 = vst [vmem:[%s11074_s1 + $0x1ea] sm:$0x3] %v6074_v46  ;;  %7659 = vst [vmem:[%s11074_s1 + $0x1ec] sm:$0x3] %v6080_v23 }
 0x366   :  { %7660 = vst [vmem:[%s11074_s1 + $0x1ee] sm:$0x3] %v6086_v61  ;;  %7661 = vst [vmem:[%s11074_s1 + $0x1f0] sm:$0x3] %v6092_v0 }
 0x367   :  { %7662 = vst [vmem:[%s11074_s1 + $0x1f2] sm:$0x3] %v6098_v62  ;;  %7663 = vst [vmem:[%s11074_s1 + $0x1f4] sm:$0x3] %v6104_v5 }
 0x368   :  { %7664 = vst [vmem:[%s11074_s1 + $0x1f6] sm:$0x3] %v6110_v31  ;;  %7665 = vst [vmem:[%s11074_s1 + $0x1f8] sm:$0x3] %v6116_v16 }
 0x369   :  { %7666 = vst [vmem:[%s11074_s1 + $0x1fa] sm:$0x3] %v6122_v6  ;;  %7667 = vst [vmem:[%s11074_s1 + $0x1fc] sm:$0x3] %v6128_v49 }
 0x36a   :  { %7668 = vst [vmem:[%s11074_s1 + $0x1fe] sm:$0x3] %v6134_v38 }

// kernel: tile.272
= control target key start
LH: loop header
LB: loop body
LE: loop exit
PB: predicated region body
PF: predicated region fallthrough
CT: control target
= control target key end

     0   :  { %s22_s0 = inlined_call_operand.vmem [shape: f32[8], index: 0, kind: input, shape index: {}]   ;;  %s23_s1 = inlined_call_operand.vmem [shape: f32[2,8], index: 1, kind: output, shape index: {}]  }
   0x1   :  { %v4_v0 = vld [vmem:[%s22_s0] ss:$0 sm:$0xff] }
   0x2   :  { %5 = vst [vmem:[%s23_s1] sm:$0x3] %v4_v0 }

// kernel: tile.16
= control target key start
LH: loop header
LB: loop body
LE: loop exit
PB: predicated region body
PF: predicated region fallthrough
CT: control target
= control target key end

     0   :  { %s66_s8 = smov 125   ;;  %vm7_vm0 = vcmask 7168   ;;  %s67_s11 = smov 126   ;;  %s117_s0 = inlined_call_operand.vmem [shape: f32[2,8], index: 0, kind: input, shape index: {}]   ;;  %s118_s1 = inlined_call_operand.vmem [shape: f32[16,1], index: 1, kind: output, shape index: {}]  }
   0x1   :  { %v4_v0 = vld [vmem:[%s117_s0] sm:$0x3]  ;;  %s65_s0 = smov 127   ;;  %s68_s12 = smov 124  }
   0x2   :  { %5 = vst [vmem:[#allocation0] sm:$0x3] %v4_v0  ;;  %s69_s13 = smov 123   ;;  %s70_s14 = smov 122  }
   0x3   :  { %s71_s15 = smov 121  }
   0x9   :  { %v9_v1 = vld [vmem:[#allocation0] sm:$0x3]  }
   0xa   :  { %v21_v2 = vld [vmem:[#allocation0] sm:$0x3]   ;;  %10 = vrot.lane.b32.xlu0 %v9_v1, %s65_s0 }
   0xb   :  { %22 = vrot.lane.b32.xlu1 %v21_v2, %s66_s8  ;;  %v15_v3 = vld [vmem:[#allocation0] sm:$0x3]  }
   0xc   :  { %v27_v4 = vld [vmem:[#allocation0] sm:$0x3]  }
   0xd   :  { %v6_v5 = vld [vmem:[#allocation0] sm:$0x3]  }
   0xe   :  { %8 = vst.msk [vmem:[%s118_s1] ss:$8 sm:$0x3] %vm7_vm0, %v6_v5   ;;  %16 = vrot.lane.b32.xlu0 %v15_v3, %s67_s11  ;;  %v33_v6 = vld [vmem:[#allocation0] sm:$0x3]  }
   0xf   :  { %28 = vrot.lane.b32.xlu1 %v27_v4, %s68_s12  ;;  %v39_v7 = vld [vmem:[#allocation0] sm:$0x3]  }
  0x10   :  { %v45_v8 = vld [vmem:[#allocation0] sm:$0x3]  }
  0x12   :  { %34 = vrot.lane.b32.xlu0 %v33_v6, %s69_s13 }
  0x13   :  { %40 = vrot.lane.b32.xlu1 %v39_v7, %s70_s14 }
  0x16   :  { %46 = vrot.lane.b32.xlu0 %v45_v8, %s71_s15 }
  0x7c   :  { %v11_v9 = vpop.permute.xlu0 %10  }
  0x7d   :  { %v23_v10 = vpop.permute.xlu1 %22   ;;  %51 = vst.msk [vmem:[%s118_s1 + $0x1] ss:$8 sm:$0x3] %vm7_vm0, %v11_v9  }
  0x7e   :  { %53 = vst.msk [vmem:[%s118_s1 + $0x3] ss:$8 sm:$0x3] %vm7_vm0, %v23_v10  }
  0x80   :  { %v17_v11 = vpop.permute.xlu0 %16  }
  0x81   :  { %v29_v12 = vpop.permute.xlu1 %28   ;;  %52 = vst.msk [vmem:[%s118_s1 + $0x2] ss:$8 sm:$0x3] %vm7_vm0, %v17_v11  }
  0x82   :  { %54 = vst.msk [vmem:[%s118_s1 + $0x4] ss:$8 sm:$0x3] %vm7_vm0, %v29_v12  }
  0x84   :  { %v35_v13 = vpop.permute.xlu0 %34  }
  0x85   :  { %v41_v14 = vpop.permute.xlu1 %40   ;;  %55 = vst.msk [vmem:[%s118_s1 + $0x5] ss:$8 sm:$0x3] %vm7_vm0, %v35_v13  }
  0x86   :  { %56 = vst.msk [vmem:[%s118_s1 + $0x6] ss:$8 sm:$0x3] %vm7_vm0, %v41_v14  }
  0x88   :  { %v47_v15 = vpop.permute.xlu0 %46  }
  0x89   :  { %57 = vst.msk [vmem:[%s118_s1 + $0x7] ss:$8 sm:$0x3] %vm7_vm0, %v47_v15  }

// kernel: pfae_forward.33
= control target key start
LH: loop header
LB: loop body
LE: loop exit
PB: predicated region body
PF: predicated region fallthrough
CT: control target
= control target key end

     0   :  { %v68_v0 = vmov 0   ;;  %s125_s2 = inlined_call_operand.vmem [shape: f32[16,1], index: 2, kind: input, shape index: {}]   ;;  %s126_s1 = inlined_call_operand.vmem [shape: f32[16,1], index: 1, kind: input, shape index: {}]   ;;  %s127_s0 = inlined_call_operand.vmem [shape: f32[16,256], index: 0, kind: input, shape index: {}]   ;;  %s128_s3 = inlined_call_operand.vmem [shape: f32[16,256], index: 3, kind: output, shape index: {}]  }
   0x1   :  { %67 = vset.pattern.permute.xlu1 %v68_v0  ;;  %66 = vset.pattern.permute.xlu0 %v68_v0  ;;  %v19_v1 = vld [vmem:[%s125_s2] sm:$0xff]  ;;  %v20_v3 = vld [vmem:[%s125_s2 + $0x8] sm:$0xff]  ;;  %v23_v11 = vld [vmem:[%s127_s0 + $0x10] sm:$0xff] }
   0x2   :  { %v16_v2 = vld [vmem:[%s126_s1] sm:$0xff]  ;;  %41 = vperm.xlu1 %67, %v19_v1   ;;  %v17_v4 = vld [vmem:[%s126_s1 + $0x8] sm:$0xff]  ;;  %v24_v12 = vld [vmem:[%s127_s0 + $0x18] sm:$0xff] }
   0x3   :  { %27 = vperm.xlu0 %66, %v16_v2   ;;  %v21_v5 = vld [vmem:[%s127_s0] sm:$0xff]  ;;  %v22_v6 = vld [vmem:[%s127_s0 + $0x8] sm:$0xff] }
   0x6   :  { %46 = vperm.xlu1 %67, %v20_v3  }
   0x7   :  { %32 = vperm.xlu0 %66, %v17_v4  }
  0x81   :  { %v42_v7 = vpop.permute.xlu1 %41 }
  0x82   :  { %v28_v8 = vpop.permute.xlu0 %27 }
  0x83   :  { %v35_v9 = vmul.f32 %v28_v8, %v21_v5  ;;  %v36_v10 = vmul.f32 %v28_v8, %v22_v6 }
  0x85   :  { %v49_v13 = vadd.f32 %v42_v7, %v35_v9  ;;  %v50_v14 = vadd.f32 %v42_v7, %v36_v10  ;;  %v47_v20 = vpop.permute.xlu1 %46 }
  0x86   :  { %v33_v15 = vpop.permute.xlu0 %32 }
  0x87   :  { %v53_v16 = vmax.f32 %v49_v13, 0.0  ;;  %v54_v17 = vmax.f32 %v50_v14, 0.0  ;;  %v37_v18 = vmul.f32 %v33_v15, %v23_v11  ;;  %v38_v19 = vmul.f32 %v33_v15, %v24_v12 }
  0x89   :  { %57 = vst [vmem:[%s128_s3] sm:$0xff] %v53_v16  ;;  %58 = vst [vmem:[%s128_s3 + $0x8] sm:$0xff] %v54_v17  ;;  %v51_v21 = vadd.f32 %v47_v20, %v37_v18  ;;  %v52_v22 = vadd.f32 %v47_v20, %v38_v19 }
  0x8b   :  { %v55_v23 = vmax.f32 %v51_v21, 0.0  ;;  %v56_v24 = vmax.f32 %v52_v22, 0.0 }
  0x8d   :  { %59 = vst [vmem:[%s128_s3 + $0x10] sm:$0xff] %v55_v23  ;;  %60 = vst [vmem:[%s128_s3 + $0x18] sm:$0xff] %v56_v24 }

</bundles_post_ra>
